<compile_context>
chip_gen: v6e
topology: v6e:2x2x1
jax: 0.10.0
libtpu: 0.0.40
codegen_flags: <defaults>
</compile_context>

<pallas_src>
import functools
import math

import jax
import jax.numpy as jnp
from jax import lax
from jax.experimental import pallas as pl
from jax.experimental.pallas import tpu as pltpu

EPS = 1e-5
MXU_DTYPE = jnp.bfloat16


# ----------------------------- small helpers -----------------------------

def _bn_scale_shift(bn):
    scale = bn["gamma"] / jnp.sqrt(bn["var"] + EPS)
    shift = bn["beta"] - bn["mean"] * scale
    return scale.astype(jnp.float32), shift.astype(jnp.float32)


@functools.lru_cache(maxsize=None)
def _vmem_limit_bytes():
    cap = 64 * 1024 * 1024                      # conservative fallback (v7x-sized)
    try:
        info = pltpu.get_tpu_info()
        cap = int(getattr(info, "vmem_capacity_bytes", cap))
    except Exception:
        pass
    return int(min((cap * 3) // 4, 96 * 1024 * 1024))


def _cparams(n_axes):
    return pltpu.CompilerParams(
        dimension_semantics=("parallel",) * n_axes,
        vmem_limit_bytes=_vmem_limit_bytes())


def _row_tile(H, target=32):
    t = min(H, target)
    while H % t:
        t -= 1
    return t


# ----------------------------- Pallas kernels -----------------------------

def dw1x1_kernel(wdw_ref, s_ref, t_ref, w1_ref, xm_ref, xt_ref, xb_ref, *rest,
                 sigmoid, gated):
    """Depthwise 3x3 (pad 1) + eval-BN + 1x1 conv (MXU) + optional sigmoid*gate.

    Row-tiled; 1-row halos arrive via clamped BlockSpecs and are zero-masked at the
    image border.  Column padding / dx shifts come from one VMEM scratch round trip
    (3 shifted slabs reused across the 3 dy offsets).
    """
    if gated:
        g_ref, o_ref, xs_ref = rest
    else:
        o_ref, xs_ref = rest
    r = pl.program_id(1)
    nr = pl.num_programs(1)
    TH, W, Co = o_ref.shape[1], o_ref.shape[2], o_ref.shape[3]
    C = xm_ref.shape[3]

    top = jnp.where(r > 0, xt_ref[0, 0], jnp.zeros_like(xt_ref[0, 0]))
    bot = jnp.where(r < nr - 1, xb_ref[0, 0], jnp.zeros_like(xb_ref[0, 0]))
    xa = jnp.concatenate([top[None], xm_ref[0], bot[None]], axis=0)   # (TH+2, W, C)

    zcol = jnp.zeros((TH + 2, 1, C), xa.dtype)
    xs_ref[:, 0:1, :] = zcol
    xs_ref[:, W + 1:W + 2, :] = zcol
    xs_ref[:, 1:W + 1, :] = xa
    xl = xs_ref[:, 0:W, :].astype(jnp.float32)        # dx = 0 (shifted right, zero col)
    xm = xa.astype(jnp.float32)                       # dx = 1
    xr = xs_ref[:, 2:W + 2, :].astype(jnp.float32)    # dx = 2 (shifted left, zero col)

    wdw = wdw_ref[...]                                # (3, 3, C) f32
    acc = jnp.zeros((TH, W, C), jnp.float32)
    for dy in range(3):
        acc = (acc
               + xl[dy:dy + TH] * wdw[dy, 0]
               + xm[dy:dy + TH] * wdw[dy, 1]
               + xr[dy:dy + TH] * wdw[dy, 2])
    acc = acc * s_ref[...] + t_ref[...]                               # fused BN (eval)
    y = jnp.dot(acc.reshape(TH * W, C).astype(MXU_DTYPE), w1_ref[...],
                preferred_element_type=jnp.float32)                   # 1x1 conv on MXU
    if sigmoid:
        y = jax.nn.sigmoid(y)
    y = y.reshape(TH, W, Co)
    if gated:
        y = y * g_ref[0].astype(jnp.float32)                          # sb_out * db_pool
    o_ref[0] = y.astype(o_ref.dtype)


def conv3x3_kernel(w_ref, s_ref, t_ref, *refs, gated, n_in):
    """3x3 stride-1 conv (pad 1) + eval-BN, row-tiled, K-packed (K = 3C) MXU matmuls.

    If gated, the conv input tile is built in-kernel as a*sigmoid(b)+c, fusing BGA's
    gating (db_out*sigmoid(up(sb_conv)) + up(sb_out*db_pool)) into the final conv.
    """
    o_ref = refs[3 * n_in]
    pk_ref = refs[3 * n_in + 1]
    r = pl.program_id(1)
    nr = pl.num_programs(1)
    TH, W, Co = o_ref.shape[1], o_ref.shape[2], o_ref.shape[3]
    C = refs[0].shape[3]

    def assemble(i):
        m, tr, br = refs[3 * i], refs[3 * i + 1], refs[3 * i + 2]
        top = jnp.where(r > 0, tr[0, 0], jnp.zeros_like(tr[0, 0]))
        bot = jnp.where(r < nr - 1, br[0, 0], jnp.zeros_like(br[0, 0]))
        return jnp.concatenate([top[None], m[0], bot[None]], axis=0)  # (TH+2, W, C)

    if gated:
        xa = (assemble(0).astype(jnp.float32)
              * jax.nn.sigmoid(assemble(1).astype(jnp.float32))
              + assemble(2).astype(jnp.float32)).astype(MXU_DTYPE)
    else:
        xa = assemble(0).astype(MXU_DTYPE)

    # dx-shift hoist + K-packing: pack the 3 column-shifted taps along the lane axis.
    zcol = jnp.zeros((TH + 2, 1, C), MXU_DTYPE)
    pk_ref[:, 0:1, 0:C] = zcol
    pk_ref[:, 1:W, 0:C] = xa[:, 0:W - 1, :]           # dx = 0
    pk_ref[:, :, C:2 * C] = xa                        # dx = 1
    pk_ref[:, 0:W - 1, 2 * C:3 * C] = xa[:, 1:W, :]   # dx = 2
    pk_ref[:, W - 1:W, 2 * C:3 * C] = zcol

    acc = jnp.zeros((TH * W, Co), jnp.float32)
    for dy in range(3):
        tap = pk_ref[dy:dy + TH, :, :].reshape(TH * W, 3 * C)
        acc = acc + jnp.dot(tap, w_ref[dy], preferred_element_type=jnp.float32)
    y = acc * s_ref[...] + t_ref[...]                                 # fused BN (eval)
    o_ref[0] = y.reshape(TH, W, Co).astype(o_ref.dtype)


def dbconv_pool_kernel(w_ref, s_ref, t_ref, p_ref, xm_ref, ha_ref, hb_ref, hc_ref,
                       o_ref, pk_ref):
    """3x3 stride-2 conv (pad 1) + eval-BN + fused AvgPool2d(3,2,1) (count_include_pad).

    Input arrives lane-packed as (rows, W/2, 2C) (free HBM reshape), so the stride-2
    column phases are lane slices and the row phases are free major-axis reshapes.
    The pool is vectorized: row shift-adds + one batched matmul with a (Wq, Wo) 0/1
    pooling matrix, ending in a single dense store.
    """
    r = pl.program_id(1)
    TP, Wq, Co = o_ref.shape[1], o_ref.shape[2], o_ref.shape[3]
    Wo, C2 = xm_ref.shape[2], xm_ref.shape[3]
    C = C2 // 2
    CR = 2 * TP + 1                   # conv rows needed by this pool-row tile
    first = r == 0

    def halo(href):
        v = href[0, 0]
        return jnp.where(first, jnp.zeros_like(v), v)

    # 3 halo rows + 4*TP main rows + 1 zero row (for even parity split).
    x = jnp.concatenate([halo(ha_ref)[None], halo(hb_ref)[None], halo(hc_ref)[None],
                         xm_ref[0],
                         jnp.zeros((1, Wo, C2), xm_ref.dtype)], axis=0)
    xp = x.reshape(2 * TP + 2, 2, Wo, C2)
    ev = xp[:, 0]                     # local-even rows
    od = xp[:, 1]                     # local-odd rows

    zcol = jnp.zeros((CR, 1, C), x.dtype)
    pk_ref[:, 0:1, 0:C] = zcol        # left zero pad for the dx=0 tap
    acc = jnp.zeros((CR * Wo, Co), jnp.float32)
    row_ops = (ev[0:CR], od[0:CR], ev[1:CR + 1])      # dy = 0, 1, 2
    for dy in range(3):
        ro = row_ops[dy]                              # (CR, Wo, 2C)
        ec = ro[..., 0:C]                             # even input columns
        oc = ro[..., C:C2]                            # odd input columns
        pk_ref[:, 1:Wo, 0:C] = oc[:, 0:Wo - 1, :]     # dx = 0 (odd cols, shifted)
        pk_ref[:, :, C:2 * C] = ec                    # dx = 1
        pk_ref[:, :, 2 * C:3 * C] = oc                # dx = 2
        acc = acc + jnp.dot(pk_ref[...].reshape(CR * Wo, 3 * C), w_ref[dy],
                            preferred_element_type=jnp.float32)
    y = (acc * s_ref[...] + t_ref[...]).reshape(CR, Wo, Co)          # conv + BN
    # conv row -1 (only on the first tile) is pool zero-padding, not BN(0).
    row0 = jnp.where(first, jnp.zeros_like(y[0:1]), y[0:1])
    y = jnp.concatenate([row0, y[1:], jnp.zeros((1, Wo, Co), y.dtype)], axis=0)
    v = y.reshape(TP + 1, 2, Wo, Co)
    rs = v[0:TP, 0] + v[0:TP, 1] + v[1:TP + 1, 0]                    # 3-row window sums
    pb = jnp.broadcast_to(p_ref[...][None], (TP, Wq, Wo))            # column-pool matrix
    pooled = lax.dot_general(pb, rs, (((2,), (1,)), ((0,), (0,))),
                             preferred_element_type=jnp.float32)
    o_ref[0] = (pooled * (1.0 / 9.0)).astype(o_ref.dtype)


def upsample_kernel(x_ref, ax_ref, o_ref, *, ri0, ri1, rw):
    """Bilinear upsample, align_corners=True.

    Row lerp (static indices/weights) produces one (H, w, C) value; the column
    interpolation is a single batched MXU matmul against the (W, w) interpolation
    matrix; one dense (H, W, C) store.
    """
    H, W = o_ref.shape[1], o_ref.shape[2]
    w = x_ref.shape[2]
    x = x_ref[0].astype(jnp.float32)                                 # (h, w, C)
    rows = [(1.0 - rw[i]) * x[ri0[i]] + rw[i] * x[ri1[i]] for i in range(H)]
    yr = jnp.stack(rows, axis=0).astype(MXU_DTYPE)                   # (H, w, C)
    axb = jnp.broadcast_to(ax_ref[...][None], (H, W, w))
    out = lax.dot_general(axb, yr, (((2,), (1,)), ((0,), (0,))),
                          preferred_element_type=jnp.float32)        # (H, W, C)
    o_ref[0] = out.astype(o_ref.dtype)


# ----------------------------- Pallas wrappers -----------------------------

def dw1x1_pallas(x, w_dw, bn_scale, bn_shift, w_1x1, *, sigmoid=False, gate=None,
                 row_tile=32):
    N, H, W, C = x.shape
    Co = w_1x1.shape[-1]
    TH = _row_tile(H, row_tile)
    R = H // TH
    gated = gate is not None

    def main_map(n, r): return (n, r, 0, 0)
    def top_map(n, r): return (n, jnp.maximum(r * TH - 1, 0), 0, 0)
    def bot_map(n, r): return (n, jnp.minimum((r + 1) * TH, H - 1), 0, 0)

    args = [w_dw.astype(jnp.float32),
            bn_scale.reshape(1, C).astype(jnp.float32),
            bn_shift.reshape(1, C).astype(jnp.float32),
            w_1x1.reshape(C, Co).astype(MXU_DTYPE),
            x, x, x]
    in_specs = [
        pl.BlockSpec((3, 3, C), lambda n, r: (0, 0, 0)),
        pl.BlockSpec((1, C), lambda n, r: (0, 0)),
        pl.BlockSpec((1, C), lambda n, r: (0, 0)),
        pl.BlockSpec((C, Co), lambda n, r: (0, 0)),
        pl.BlockSpec((1, TH, W, C), main_map),
        pl.BlockSpec((1, 1, W, C), top_map),
        pl.BlockSpec((1, 1, W, C), bot_map),
    ]
    if gated:
        args.append(gate.astype(jnp.float32))
        in_specs.append(pl.BlockSpec((1, TH, W, Co), main_map))
    return pl.pallas_call(
        functools.partial(dw1x1_kernel, sigmoid=sigmoid, gated=gated),
        out_shape=jax.ShapeDtypeStruct((N, H, W, Co), MXU_DTYPE),
        grid=(N, R),
        in_specs=in_specs,
        out_specs=pl.BlockSpec((1, TH, W, Co), main_map),
        scratch_shapes=[pltpu.VMEM((TH + 2, W + 2, C), MXU_DTYPE)],
        compiler_params=_cparams(2),
    )(*args)


def conv3x3_bn_pallas(inputs, w_hwio, bn_scale, bn_shift, *, gated, out_dtype,
                      row_tile=32):
    N, H, W, C = inputs[0].shape
    Co = w_hwio.shape[3]
    n_in = len(inputs)
    TH = _row_tile(H, row_tile)
    R = H // TH

    def main_map(n, r): return (n, r, 0, 0)
    def top_map(n, r): return (n, jnp.maximum(r * TH - 1, 0), 0, 0)
    def bot_map(n, r): return (n, jnp.minimum((r + 1) * TH, H - 1), 0, 0)

    args = [w_hwio.reshape(3, 3 * C, Co).astype(MXU_DTYPE),   # rows ordered (dx, c)
            bn_scale.reshape(1, Co).astype(jnp.float32),
            bn_shift.reshape(1, Co).astype(jnp.float32)]
    in_specs = [pl.BlockSpec((3, 3 * C, Co), lambda n, r: (0, 0, 0)),
                pl.BlockSpec((1, Co), lambda n, r: (0, 0)),
                pl.BlockSpec((1, Co), lambda n, r: (0, 0))]
    for a in inputs:
        a = a.astype(MXU_DTYPE)
        args += [a, a, a]
        in_specs += [pl.BlockSpec((1, TH, W, C), main_map),
                     pl.BlockSpec((1, 1, W, C), top_map),
                     pl.BlockSpec((1, 1, W, C), bot_map)]
    return pl.pallas_call(
        functools.partial(conv3x3_kernel, gated=gated, n_in=n_in),
        out_shape=jax.ShapeDtypeStruct((N, H, W, Co), out_dtype),
        grid=(N, R),
        in_specs=in_specs,
        out_specs=pl.BlockSpec((1, TH, W, Co), main_map),
        scratch_shapes=[pltpu.VMEM((TH + 2, W, 3 * C), MXU_DTYPE)],
        compiler_params=_cparams(2),
    )(*args)


def dbconv_pool_pallas(x, w_hwio, bn_scale, bn_shift, *, pool_row_tile=8):
    N, H, W, C = x.shape
    Co = w_hwio.shape[3]
    assert H % 4 == 0 and W % 4 == 0
    Ho, Wo, Hq, Wq = H // 2, W // 2, H // 4, W // 4
    TP = _row_tile(Hq, pool_row_tile)
    R = Hq // TP
    x2 = x.reshape(N, H, Wo, 2 * C)          # free: packs column pairs into lanes

    qi = jnp.arange(Wq, dtype=jnp.int32).reshape(Wq, 1)
    wi = jnp.arange(Wo, dtype=jnp.int32).reshape(1, Wo)
    P = ((wi >= 2 * qi - 1) & (wi <= 2 * qi + 1)).astype(jnp.float32)   # (Wq, Wo)

    def main_map(n, r): return (n, r, 0, 0)

    def halo_map(k):
        return lambda n, r: (n, jnp.maximum(r * (4 * TP) - k, 0), 0, 0)

    return pl.pallas_call(
        dbconv_pool_kernel,
        out_shape=jax.ShapeDtypeStruct((N, Hq, Wq, Co), jnp.float32),
        grid=(N, R),
        in_specs=[pl.BlockSpec((3, 3 * C, Co), lambda n, r: (0, 0, 0)),
                  pl.BlockSpec((1, Co), lambda n, r: (0, 0)),
                  pl.BlockSpec((1, Co), lambda n, r: (0, 0)),
                  pl.BlockSpec((Wq, Wo), lambda n, r: (0, 0)),
                  pl.BlockSpec((1, 4 * TP, Wo, 2 * C), main_map),
                  pl.BlockSpec((1, 1, Wo, 2 * C), halo_map(3)),
                  pl.BlockSpec((1, 1, Wo, 2 * C), halo_map(2)),
                  pl.BlockSpec((1, 1, Wo, 2 * C), halo_map(1))],
        out_specs=pl.BlockSpec((1, TP, Wq, Co), main_map),
        scratch_shapes=[pltpu.VMEM((2 * TP + 1, Wo, 3 * C), MXU_DTYPE)],
        compiler_params=_cparams(2),
    )(w_hwio.reshape(3, 3 * C, Co).astype(MXU_DTYPE),
      bn_scale.reshape(1, Co).astype(jnp.float32),
      bn_shift.reshape(1, Co).astype(jnp.float32),
      P, x2, x2, x2, x2)


def _interp_coeffs(out_size, in_size):
    lo, hi, frac = [], [], []
    for i in range(out_size):
        if in_size <= 1 or out_size <= 1:
            src = 0.0
        else:
            src = i * (in_size - 1) / (out_size - 1)       # align_corners=True
        l0 = min(int(math.floor(src)), max(in_size - 2, 0))
        lo.append(l0)
        hi.append(min(l0 + 1, in_size - 1))
        frac.append(float(src - l0))
    return tuple(lo), tuple(hi), tuple(frac)


def upsample_pallas(x, H, W):
    M, h, w, C = x.shape
    ri0, ri1, rw = _interp_coeffs(H, h)
    Ax = _interp_matrix(W, w)                               # (W, w) column interp matrix
    return pl.pallas_call(
        functools.partial(upsample_kernel, ri0=ri0, ri1=ri1, rw=rw),
        out_shape=jax.ShapeDtypeStruct((M, H, W, C), MXU_DTYPE),
        grid=(M,),
        in_specs=[pl.BlockSpec((1, h, w, C), lambda m: (m, 0, 0, 0)),
                  pl.BlockSpec((W, w), lambda m: (0, 0))],
        out_specs=pl.BlockSpec((1, H, W, C), lambda m: (m, 0, 0, 0)),
        compiler_params=_cparams(1),
    )(x, Ax.astype(MXU_DTYPE))


# ----------------------------- BGA forward -----------------------------

def bga_pallas(db_nchw, sb_nchw, p):
    db = jnp.transpose(db_nchw, (0, 2, 3, 1)).astype(MXU_DTYPE)
    sb = jnp.transpose(sb_nchw, (0, 2, 3, 1)).astype(MXU_DTYPE)
    N, H, W, C = db.shape
    _, h, w, _ = sb.shape
    assert (h, w) == (H // 4, W // 4), "BGA expects semantic branch at 1/4 resolution"

    # ---- detail branch ----
    s, t = _bn_scale_shift(p["db_dw_bn"])
    db_out = dw1x1_pallas(db, p["db_dw_w"], s, t, p["db_1x1_w"])      # dw+BN+1x1

    s, t = _bn_scale_shift(p["db_conv_bn"])
    db_pool = dbconv_pool_pallas(db, p["db_conv_w"], s, t)            # s2 conv+BN+avgpool

    # ---- semantic branch ----
    s, t = _bn_scale_shift(p["sb_dw_bn"])
    sb_gated = dw1x1_pallas(sb, p["sb_dw_w"], s, t, p["sb_1x1_w"],
                            sigmoid=True, gate=db_pool)               # sigmoid(1x1(dw))*db_pool

    s, t = _bn_scale_shift(p["sb_conv_bn"])
    sb_conv = conv3x3_bn_pallas([sb], p["sb_conv_w"], s, t,
                                gated=False, out_dtype=MXU_DTYPE)

    # ---- bilateral aggregation ----
    ups = upsample_pallas(jnp.concatenate([sb_conv, sb_gated], axis=0), H, W)
    up_lin, up_gated = ups[:N], ups[N:]                               # pre-sigmoid / gated

    s, t = _bn_scale_shift(p["out_bn"])
    res = conv3x3_bn_pallas([db_out, up_lin, up_gated], p["out_conv_w"], s, t,
                            gated=True, out_dtype=jnp.float32)        # gate fused in prologue
    return jnp.transpose(res, (0, 3, 1, 2))


# ----------------------------- pure-JAX reference -----------------------------

def _ref_conv(x, w_hwio, stride, pad, groups=1):
    return lax.conv_general_dilated(
        x, w_hwio, window_strides=(stride, stride),
        padding=[(pad, pad), (pad, pad)],
        dimension_numbers=("NHWC", "HWIO", "NHWC"),
        feature_group_count=groups)


def _ref_bn(x, bn):
    return (x - bn["mean"]) / jnp.sqrt(bn["var"] + EPS) * bn["gamma"] + bn["beta"]


def _interp_matrix(out_size, in_size):
    if in_size == 1:
        return jnp.ones((out_size, 1), jnp.float32)
    src = jnp.arange(out_size, dtype=jnp.float32) * (in_size - 1) / (out_size - 1)
    i0 = jnp.clip(jnp.floor(src).astype(jnp.int32), 0, in_size - 2)
    w1 = src - i0.astype(jnp.float32)
    rows = jnp.arange(out_size)
    A = jnp.zeros((out_size, in_size), jnp.float32)
    A = A.at[rows, i0].add(1.0 - w1)
    A = A.at[rows, i0 + 1].add(w1)
    return A


def bga_ref(db_nchw, sb_nchw, p):
    db = jnp.transpose(db_nchw, (0, 2, 3, 1)).astype(jnp.float32)
    sb = jnp.transpose(sb_nchw, (0, 2, 3, 1)).astype(jnp.float32)
    N, H, W, C = db.shape
    _, h, w, _ = sb.shape

    db_dwc = _ref_bn(_ref_conv(db, p["db_dw_w"].reshape(3, 3, 1, C), 1, 1, groups=C),
                     p["db_dw_bn"])
    db_out = _ref_conv(db_dwc, p["db_1x1_w"], 1, 0)
    db_conv = _ref_bn(_ref_conv(db, p["db_conv_w"], 2, 1), p["db_conv_bn"])
    db_pool = lax.reduce_window(db_conv, 0.0, lax.add, (1, 3, 3, 1), (1, 2, 2, 1),
                                [(0, 0), (1, 1), (1, 1), (0, 0)]) / 9.0

    sb_dwc = _ref_bn(_ref_conv(sb, p["sb_dw_w"].reshape(3, 3, 1, C), 1, 1, groups=C),
                     p["sb_dw_bn"])
    sb_out = jax.nn.sigmoid(_ref_conv(sb_dwc, p["sb_1x1_w"], 1, 0))
    sb_conv = _ref_bn(_ref_conv(sb, p["sb_conv_w"], 1, 1), p["sb_conv_bn"])

    Ay = _interp_matrix(H, h)
    Ax = _interp_matrix(W, w)
    up = lambda z: jnp.einsum("Hh,nhwc,Ww->nHWc", Ay, z, Ax)
    sb_up = jax.nn.sigmoid(up(sb_conv))
    db_l = db_out * sb_up
    sb_r = up(sb_out * db_pool)
    res = _ref_bn(_ref_conv(db_l + sb_r, p["out_conv_w"], 1, 1), p["out_bn"])
    return jnp.transpose(res, (0, 3, 1, 2))


# ----------------------------- parameters -----------------------------

def init_params(key, C):
    ks = jax.random.split(key, 12)

    def conv_w(k, kh, kw, ci, co):
        return 0.2 * jax.random.normal(k, (kh, kw, ci, co), jnp.float32)

    def bn_p(k):
        k1, k2, k3, k4 = jax.random.split(k, 4)
        return dict(
            gamma=1.0 + 0.1 * jax.random.normal(k1, (C,), jnp.float32),
            beta=0.1 * jax.random.normal(k2, (C,), jnp.float32),
            mean=0.1 * jax.random.normal(k3, (C,), jnp.float32),
            var=jax.random.uniform(k4, (C,), jnp.float32, 0.5, 1.5),
        )

    return dict(
        db_dw_w=0.2 * jax.random.normal(ks[0], (3, 3, C), jnp.float32),
        db_dw_bn=bn_p(ks[1]),
        db_1x1_w=conv_w(ks[2], 1, 1, C, C),
        db_conv_w=conv_w(ks[3], 3, 3, C, C),
        db_conv_bn=bn_p(ks[4]),
        sb_dw_w=0.2 * jax.random.normal(ks[5], (3, 3, C), jnp.float32),
        sb_dw_bn=bn_p(ks[6]),
        sb_1x1_w=conv_w(ks[7], 1, 1, C, C),
        sb_conv_w=conv_w(ks[8], 3, 3, C, C),
        sb_conv_bn=bn_p(ks[9]),
        out_conv_w=conv_w(ks[10], 3, 3, C, C),
        out_bn=bn_p(ks[11]),
    )


# ----------------------------- main -----------------------------

if __name__ == "__main__":
    N, C, H, W = 2, 4, 16, 16
    h, w = H // 4, W // 4            # semantic branch is 1/4 resolution (BiSeNetV2)

    key = jax.random.PRNGKey(0)
    k_db, k_sb, k_params = jax.random.split(key, 3)
    db = jax.random.normal(k_db, (N, C, H, W), jnp.float32)   # NCHW, PyTorch convention
    sb = jax.random.normal(k_sb, (N, C, h, w), jnp.float32)
    params = init_params(k_params, C)

    out = jax.jit(bga_pallas)(db, sb, params)
    out = jax.block_until_ready(out)
    assert out.shape == (N, C, H, W), out.shape

    ref = bga_ref(db, sb, params)
    scale = float(jnp.max(jnp.abs(ref)))
    max_err = float(jnp.max(jnp.abs(out.astype(jnp.float32) - ref)))
    tol = 5e-2 * max(1.0, scale)     # bf16 MXU path vs f32 reference
    if max_err > tol:
        raise AssertionError(
            f"Pallas output mismatch vs reference: max|err|={max_err} (tol={tol})")
    print("KERNEL_OK")
</pallas_src>

<mosaic_0001>
module attributes {stable_mosaic.version = 11 : i64} {
  func.func private @main(%arg0: i32) attributes {dimension_semantics = [#tpu.dimension_semantics<core_parallel>], iteration_bounds = array<i64: 2>, tpu.core_type = #tpu.core_type<sc_scalar_subcore>, window_params = []} {
    return
  }
}

module attributes {stable_mosaic.version = 11 : i64} {
  func.func private @main(%arg0: i32) attributes {dimension_semantics = [#tpu.dimension_semantics<core_parallel>], iteration_bounds = array<i64: 2>, tpu.core_type = #tpu.core_type<sc_scalar_subcore>, window_params = []} {
    return
  }
}

module attributes {stable_mosaic.version = 11 : i64} {
  func.func @dbconv_pool_kernel(%arg0: i32, %arg1: i32, %arg2: memref<3x12x4xbf16, #tpu.memory_space<vmem>>, %arg3: memref<1x4xf32, #tpu.memory_space<vmem>>, %arg4: memref<1x4xf32, #tpu.memory_space<vmem>>, %arg5: memref<4x8xf32, #tpu.memory_space<vmem>>, %arg6: memref<1x16x8x8xbf16, #tpu.memory_space<vmem>>, %arg7: memref<1x1x8x8xbf16, #tpu.memory_space<vmem>>, %arg8: memref<1x1x8x8xbf16, #tpu.memory_space<vmem>>, %arg9: memref<1x1x8x8xbf16, #tpu.memory_space<vmem>>, %arg10: memref<1x4x4x4xf32, #tpu.memory_space<vmem>>, %arg11: memref<9x8x12xbf16, #tpu.memory_space<vmem>>) attributes {dimension_semantics = [#tpu.dimension_semantics<parallel>, #tpu.dimension_semantics<parallel>], iteration_bounds = array<i64: 2, 1>, scalar_prefetch = 0 : i64, scratch_operands = 1 : i64, tpu.core_type = #tpu.core_type<tc>, window_params = [{pipeline_mode = #tpu.pipeline_mode<synchronous>, transform_indices = @transform_0, window_bounds = array<i64: 3, 12, 4>}, {pipeline_mode = #tpu.pipeline_mode<synchronous>, transform_indices = @transform_1, window_bounds = array<i64: 1, 4>}, {pipeline_mode = #tpu.pipeline_mode<synchronous>, transform_indices = @transform_2, window_bounds = array<i64: 1, 4>}, {pipeline_mode = #tpu.pipeline_mode<synchronous>, transform_indices = @transform_3, window_bounds = array<i64: 4, 8>}, {transform_indices = @transform_4, window_bounds = array<i64: 1, 16, 8, 8>}, {transform_indices = @transform_5, window_bounds = array<i64: 1, 1, 8, 8>}, {transform_indices = @transform_6, window_bounds = array<i64: 1, 1, 8, 8>}, {transform_indices = @transform_7, window_bounds = array<i64: 1, 1, 8, 8>}, {transform_indices = @transform_8, window_bounds = array<i64: 1, 4, 4, 4>}]} {
    %c0_i32 = arith.constant 0 : i32
    %0 = arith.cmpi eq, %arg1, %c0_i32 : i32
    %c0 = arith.constant 0 : index
    %c0_0 = arith.constant 0 : index
    %c0_1 = arith.constant 0 : index
    %c0_2 = arith.constant 0 : index
    %1 = vector.load %arg7[%c0, %c0_0, %c0_1, %c0_2] : memref<1x1x8x8xbf16, #tpu.memory_space<vmem>>, vector<1x1x8x8xbf16>
    %2 = vector.shape_cast %1 : vector<1x1x8x8xbf16> to vector<8x8xbf16>
    %cst = arith.constant 0.000000e+00 : bf16
    %3 = vector.broadcast %cst : bf16 to vector<8x8xbf16>
    %4 = arith.select %0, %3, %2 : vector<8x8xbf16>
    %5 = vector.shape_cast %4 : vector<8x8xbf16> to vector<1x8x8xbf16>
    %c0_3 = arith.constant 0 : index
    %c0_4 = arith.constant 0 : index
    %c0_5 = arith.constant 0 : index
    %c0_6 = arith.constant 0 : index
    %6 = vector.load %arg8[%c0_3, %c0_4, %c0_5, %c0_6] : memref<1x1x8x8xbf16, #tpu.memory_space<vmem>>, vector<1x1x8x8xbf16>
    %7 = vector.shape_cast %6 : vector<1x1x8x8xbf16> to vector<8x8xbf16>
    %cst_7 = arith.constant 0.000000e+00 : bf16
    %8 = vector.broadcast %cst_7 : bf16 to vector<8x8xbf16>
    %9 = arith.select %0, %8, %7 : vector<8x8xbf16>
    %10 = vector.shape_cast %9 : vector<8x8xbf16> to vector<1x8x8xbf16>
    %c0_8 = arith.constant 0 : index
    %c0_9 = arith.constant 0 : index
    %c0_10 = arith.constant 0 : index
    %c0_11 = arith.constant 0 : index
    %11 = vector.load %arg9[%c0_8, %c0_9, %c0_10, %c0_11] : memref<1x1x8x8xbf16, #tpu.memory_space<vmem>>, vector<1x1x8x8xbf16>
    %12 = vector.shape_cast %11 : vector<1x1x8x8xbf16> to vector<8x8xbf16>
    %cst_12 = arith.constant 0.000000e+00 : bf16
    %13 = vector.broadcast %cst_12 : bf16 to vector<8x8xbf16>
    %14 = arith.select %0, %13, %12 : vector<8x8xbf16>
    %15 = vector.shape_cast %14 : vector<8x8xbf16> to vector<1x8x8xbf16>
    %c0_13 = arith.constant 0 : index
    %c0_14 = arith.constant 0 : index
    %c0_15 = arith.constant 0 : index
    %c0_16 = arith.constant 0 : index
    %16 = vector.load %arg6[%c0_13, %c0_14, %c0_15, %c0_16] : memref<1x16x8x8xbf16, #tpu.memory_space<vmem>>, vector<1x16x8x8xbf16>
    %17 = vector.shape_cast %16 : vector<1x16x8x8xbf16> to vector<16x8x8xbf16>
    %cst_17 = arith.constant 0.000000e+00 : bf16
    %18 = vector.broadcast %cst_17 : bf16 to vector<1x8x8xbf16>
    %19 = tpu.concatenate %5, %10, %15, %17, %18 in 0 : vector<1x8x8xbf16>, vector<1x8x8xbf16>, vector<1x8x8xbf16>, vector<16x8x8xbf16>, vector<1x8x8xbf16> -> vector<20x8x8xbf16>
    %20 = vector.shape_cast %19 : vector<20x8x8xbf16> to vector<10x2x8x8xbf16>
    %21 = vector.extract_strided_slice %20 {offsets = [0, 0, 0, 0], sizes = [10, 1, 8, 8], strides = [1, 1, 1, 1]} : vector<10x2x8x8xbf16> to vector<10x1x8x8xbf16>
    %22 = vector.shape_cast %21 : vector<10x1x8x8xbf16> to vector<10x8x8xbf16>
    %23 = vector.extract_strided_slice %20 {offsets = [0, 1, 0, 0], sizes = [10, 1, 8, 8], strides = [1, 1, 1, 1]} : vector<10x2x8x8xbf16> to vector<10x1x8x8xbf16>
    %24 = vector.shape_cast %23 : vector<10x1x8x8xbf16> to vector<10x8x8xbf16>
    %cst_18 = arith.constant 0.000000e+00 : bf16
    %25 = vector.broadcast %cst_18 : bf16 to vector<9x1x4xbf16>
    %c0_19 = arith.constant 0 : index
    %c0_20 = arith.constant 0 : index
    %c0_21 = arith.constant 0 : index
    %26 = vector.load %arg11[%c0_19, %c0_20, %c0_21] : memref<9x8x12xbf16, #tpu.memory_space<vmem>>, vector<9x1x4xbf16>
    tpu.vector_store %arg11[%c0_19, %c0_20, %c0_21], %25 {strides = array<i32>} : memref<9x8x12xbf16, #tpu.memory_space<vmem>>, vector<9x1x4xbf16>,
    %cst_22 = arith.constant 0.000000e+00 : f32
    %27 = vector.broadcast %cst_22 : f32 to vector<72x4xf32>
    %28 = vector.extract_strided_slice %22 {offsets = [0, 0, 0], sizes = [9, 8, 8], strides = [1, 1, 1]} : vector<10x8x8xbf16> to vector<9x8x8xbf16>
    %29 = vector.extract_strided_slice %24 {offsets = [0, 0, 0], sizes = [9, 8, 8], strides = [1, 1, 1]} : vector<10x8x8xbf16> to vector<9x8x8xbf16>
    %30 = vector.extract_strided_slice %22 {offsets = [1, 0, 0], sizes = [9, 8, 8], strides = [1, 1, 1]} : vector<10x8x8xbf16> to vector<9x8x8xbf16>
    %31 = vector.extract_strided_slice %28 {offsets = [0, 0, 0], sizes = [9, 8, 4], strides = [1, 1, 1]} : vector<9x8x8xbf16> to vector<9x8x4xbf16>
    %32 = vector.extract_strided_slice %28 {offsets = [0, 0, 4], sizes = [9, 8, 4], strides = [1, 1, 1]} : vector<9x8x8xbf16> to vector<9x8x4xbf16>
    %33 = vector.extract_strided_slice %32 {offsets = [0, 0, 0], sizes = [9, 7, 4], strides = [1, 1, 1]} : vector<9x8x4xbf16> to vector<9x7x4xbf16>
    %c0_23 = arith.constant 0 : index
    %c1 = arith.constant 1 : index
    %c0_24 = arith.constant 0 : index
    %34 = vector.load %arg11[%c0_23, %c1, %c0_24] : memref<9x8x12xbf16, #tpu.memory_space<vmem>>, vector<9x7x4xbf16>
    tpu.vector_store %arg11[%c0_23, %c1, %c0_24], %33 {strides = array<i32>} : memref<9x8x12xbf16, #tpu.memory_space<vmem>>, vector<9x7x4xbf16>,
    %c0_25 = arith.constant 0 : index
    %c0_26 = arith.constant 0 : index
    %c4 = arith.constant 4 : index
    %35 = vector.load %arg11[%c0_25, %c0_26, %c4] : memref<9x8x12xbf16, #tpu.memory_space<vmem>>, vector<9x8x4xbf16>
    tpu.vector_store %arg11[%c0_25, %c0_26, %c4], %31 {strides = array<i32>} : memref<9x8x12xbf16, #tpu.memory_space<vmem>>, vector<9x8x4xbf16>,
    %c0_27 = arith.constant 0 : index
    %c0_28 = arith.constant 0 : index
    %c8 = arith.constant 8 : index
    %36 = vector.load %arg11[%c0_27, %c0_28, %c8] : memref<9x8x12xbf16, #tpu.memory_space<vmem>>, vector<9x8x4xbf16>
    tpu.vector_store %arg11[%c0_27, %c0_28, %c8], %32 {strides = array<i32>} : memref<9x8x12xbf16, #tpu.memory_space<vmem>>, vector<9x8x4xbf16>,
    %c0_29 = arith.constant 0 : index
    %c0_30 = arith.constant 0 : index
    %c0_31 = arith.constant 0 : index
    %37 = vector.load %arg11[%c0_29, %c0_30, %c0_31] : memref<9x8x12xbf16, #tpu.memory_space<vmem>>, vector<9x8x12xbf16>
    %38 = vector.shape_cast %37 : vector<9x8x12xbf16> to vector<72x12xbf16>
    %c0_32 = arith.constant 0 : index
    %c0_33 = arith.constant 0 : index
    %c0_34 = arith.constant 0 : index
    %39 = vector.load %arg2[%c0_32, %c0_33, %c0_34] : memref<3x12x4xbf16, #tpu.memory_space<vmem>>, vector<1x12x4xbf16>
    %40 = vector.shape_cast %39 : vector<1x12x4xbf16> to vector<12x4xbf16>
    %cst_35 = arith.constant dense<0.000000e+00> : vector<72x4xf32>
    %41 = tpu.matmul %38, %40, %cst_35 {dimension_numbers = #tpu.dot_dimension_numbers<[1], [0], [0], [1], [0, 0, 1, 1], [], []>} : vector<72x12xbf16>, vector<12x4xbf16>, vector<72x4xf32> -> vector<72x4xf32>
    %42 = arith.addf %27, %41 : vector<72x4xf32>
    %43 = vector.extract_strided_slice %29 {offsets = [0, 0, 0], sizes = [9, 8, 4], strides = [1, 1, 1]} : vector<9x8x8xbf16> to vector<9x8x4xbf16>
    %44 = vector.extract_strided_slice %29 {offsets = [0, 0, 4], sizes = [9, 8, 4], strides = [1, 1, 1]} : vector<9x8x8xbf16> to vector<9x8x4xbf16>
    %45 = vector.extract_strided_slice %44 {offsets = [0, 0, 0], sizes = [9, 7, 4], strides = [1, 1, 1]} : vector<9x8x4xbf16> to vector<9x7x4xbf16>
    %c0_36 = arith.constant 0 : index
    %c1_37 = arith.constant 1 : index
    %c0_38 = arith.constant 0 : index
    %46 = vector.load %arg11[%c0_36, %c1_37, %c0_38] : memref<9x8x12xbf16, #tpu.memory_space<vmem>>, vector<9x7x4xbf16>
    tpu.vector_store %arg11[%c0_36, %c1_37, %c0_38], %45 {strides = array<i32>} : memref<9x8x12xbf16, #tpu.memory_space<vmem>>, vector<9x7x4xbf16>,
    %c0_39 = arith.constant 0 : index
    %c0_40 = arith.constant 0 : index
    %c4_41 = arith.constant 4 : index
    %47 = vector.load %arg11[%c0_39, %c0_40, %c4_41] : memref<9x8x12xbf16, #tpu.memory_space<vmem>>, vector<9x8x4xbf16>
    tpu.vector_store %arg11[%c0_39, %c0_40, %c4_41], %43 {strides = array<i32>} : memref<9x8x12xbf16, #tpu.memory_space<vmem>>, vector<9x8x4xbf16>,
    %c0_42 = arith.constant 0 : index
    %c0_43 = arith.constant 0 : index
    %c8_44 = arith.constant 8 : index
    %48 = vector.load %arg11[%c0_42, %c0_43, %c8_44] : memref<9x8x12xbf16, #tpu.memory_space<vmem>>, vector<9x8x4xbf16>
    tpu.vector_store %arg11[%c0_42, %c0_43, %c8_44], %44 {strides = array<i32>} : memref<9x8x12xbf16, #tpu.memory_space<vmem>>, vector<9x8x4xbf16>,
    %c0_45 = arith.constant 0 : index
    %c0_46 = arith.constant 0 : index
    %c0_47 = arith.constant 0 : index
    %49 = vector.load %arg11[%c0_45, %c0_46, %c0_47] : memref<9x8x12xbf16, #tpu.memory_space<vmem>>, vector<9x8x12xbf16>
    %50 = vector.shape_cast %49 : vector<9x8x12xbf16> to vector<72x12xbf16>
    %c1_48 = arith.constant 1 : index
    %c0_49 = arith.constant 0 : index
    %c0_50 = arith.constant 0 : index
    %51 = vector.load %arg2[%c1_48, %c0_49, %c0_50] : memref<3x12x4xbf16, #tpu.memory_space<vmem>>, vector<1x12x4xbf16>
    %52 = vector.shape_cast %51 : vector<1x12x4xbf16> to vector<12x4xbf16>
    %cst_51 = arith.constant dense<0.000000e+00> : vector<72x4xf32>
    %53 = tpu.matmul %50, %52, %cst_51 {dimension_numbers = #tpu.dot_dimension_numbers<[1], [0], [0], [1], [0, 0, 1, 1], [], []>} : vector<72x12xbf16>, vector<12x4xbf16>, vector<72x4xf32> -> vector<72x4xf32>
    %54 = arith.addf %42, %53 : vector<72x4xf32>
    %55 = vector.extract_strided_slice %30 {offsets = [0, 0, 0], sizes = [9, 8, 4], strides = [1, 1, 1]} : vector<9x8x8xbf16> to vector<9x8x4xbf16>
    %56 = vector.extract_strided_slice %30 {offsets = [0, 0, 4], sizes = [9, 8, 4], strides = [1, 1, 1]} : vector<9x8x8xbf16> to vector<9x8x4xbf16>
    %57 = vector.extract_strided_slice %56 {offsets = [0, 0, 0], sizes = [9, 7, 4], strides = [1, 1, 1]} : vector<9x8x4xbf16> to vector<9x7x4xbf16>
    %c0_52 = arith.constant 0 : index
    %c1_53 = arith.constant 1 : index
    %c0_54 = arith.constant 0 : index
    %58 = vector.load %arg11[%c0_52, %c1_53, %c0_54] : memref<9x8x12xbf16, #tpu.memory_space<vmem>>, vector<9x7x4xbf16>
    tpu.vector_store %arg11[%c0_52, %c1_53, %c0_54], %57 {strides = array<i32>} : memref<9x8x12xbf16, #tpu.memory_space<vmem>>, vector<9x7x4xbf16>,
    %c0_55 = arith.constant 0 : index
    %c0_56 = arith.constant 0 : index
    %c4_57 = arith.constant 4 : index
    %59 = vector.load %arg11[%c0_55, %c0_56, %c4_57] : memref<9x8x12xbf16, #tpu.memory_space<vmem>>, vector<9x8x4xbf16>
    tpu.vector_store %arg11[%c0_55, %c0_56, %c4_57], %55 {strides = array<i32>} : memref<9x8x12xbf16, #tpu.memory_space<vmem>>, vector<9x8x4xbf16>,
    %c0_58 = arith.constant 0 : index
    %c0_59 = arith.constant 0 : index
    %c8_60 = arith.constant 8 : index
    %60 = vector.load %arg11[%c0_58, %c0_59, %c8_60] : memref<9x8x12xbf16, #tpu.memory_space<vmem>>, vector<9x8x4xbf16>
    tpu.vector_store %arg11[%c0_58, %c0_59, %c8_60], %56 {strides = array<i32>} : memref<9x8x12xbf16, #tpu.memory_space<vmem>>, vector<9x8x4xbf16>,
    %c0_61 = arith.constant 0 : index
    %c0_62 = arith.constant 0 : index
    %c0_63 = arith.constant 0 : index
    %61 = vector.load %arg11[%c0_61, %c0_62, %c0_63] : memref<9x8x12xbf16, #tpu.memory_space<vmem>>, vector<9x8x12xbf16>
    %62 = vector.shape_cast %61 : vector<9x8x12xbf16> to vector<72x12xbf16>
    %c2 = arith.constant 2 : index
    %c0_64 = arith.constant 0 : index
    %c0_65 = arith.constant 0 : index
    %63 = vector.load %arg2[%c2, %c0_64, %c0_65] : memref<3x12x4xbf16, #tpu.memory_space<vmem>>, vector<1x12x4xbf16>
    %64 = vector.shape_cast %63 : vector<1x12x4xbf16> to vector<12x4xbf16>
    %cst_66 = arith.constant dense<0.000000e+00> : vector<72x4xf32>
    %65 = tpu.matmul %62, %64, %cst_66 {dimension_numbers = #tpu.dot_dimension_numbers<[1], [0], [0], [1], [0, 0, 1, 1], [], []>} : vector<72x12xbf16>, vector<12x4xbf16>, vector<72x4xf32> -> vector<72x4xf32>
    %66 = arith.addf %54, %65 : vector<72x4xf32>
    %c0_67 = arith.constant 0 : index
    %c0_68 = arith.constant 0 : index
    %67 = vector.load %arg3[%c0_67, %c0_68] : memref<1x4xf32, #tpu.memory_space<vmem>>, vector<1x4xf32>
    %68 = vector.broadcast %67 : vector<1x4xf32> to vector<72x4xf32>
    %69 = arith.mulf %66, %68 : vector<72x4xf32>
    %c0_69 = arith.constant 0 : index
    %c0_70 = arith.constant 0 : index
    %70 = vector.load %arg4[%c0_69, %c0_70] : memref<1x4xf32, #tpu.memory_space<vmem>>, vector<1x4xf32>
    %71 = vector.broadcast %70 : vector<1x4xf32> to vector<72x4xf32>
    %72 = arith.addf %69, %71 : vector<72x4xf32>
    %73 = vector.shape_cast %72 : vector<72x4xf32> to vector<9x8x4xf32>
    %cst_71 = arith.constant 0.000000e+00 : f32
    %74 = vector.broadcast %cst_71 : f32 to vector<1x8x4xf32>
    %75 = vector.extract_strided_slice %73 {offsets = [0, 0, 0], sizes = [1, 8, 4], strides = [1, 1, 1]} : vector<9x8x4xf32> to vector<1x8x4xf32>
    %76 = arith.select %0, %74, %75 : vector<1x8x4xf32>
    %77 = vector.extract_strided_slice %73 {offsets = [1, 0, 0], sizes = [8, 8, 4], strides = [1, 1, 1]} : vector<9x8x4xf32> to vector<8x8x4xf32>
    %cst_72 = arith.constant 0.000000e+00 : f32
    %78 = vector.broadcast %cst_72 : f32 to vector<1x8x4xf32>
    %79 = tpu.concatenate %76, %77, %78 in 0 : vector<1x8x4xf32>, vector<8x8x4xf32>, vector<1x8x4xf32> -> vector<10x8x4xf32>
    %80 = vector.shape_cast %79 : vector<10x8x4xf32> to vector<5x2x8x4xf32>
    %81 = vector.extract_strided_slice %80 {offsets = [0, 0, 0, 0], sizes = [4, 1, 8, 4], strides = [1, 1, 1, 1]} : vector<5x2x8x4xf32> to vector<4x1x8x4xf32>
    %82 = vector.shape_cast %81 : vector<4x1x8x4xf32> to vector<4x8x4xf32>
    %83 = vector.extract_strided_slice %80 {offsets = [0, 1, 0, 0], sizes = [4, 1, 8, 4], strides = [1, 1, 1, 1]} : vector<5x2x8x4xf32> to vector<4x1x8x4xf32>
    %84 = vector.shape_cast %83 : vector<4x1x8x4xf32> to vector<4x8x4xf32>
    %85 = arith.addf %82, %84 : vector<4x8x4xf32>
    %86 = vector.extract_strided_slice %80 {offsets = [1, 0, 0, 0], sizes = [4, 1, 8, 4], strides = [1, 1, 1, 1]} : vector<5x2x8x4xf32> to vector<4x1x8x4xf32>
    %87 = vector.shape_cast %86 : vector<4x1x8x4xf32> to vector<4x8x4xf32>
    %88 = arith.addf %85, %87 : vector<4x8x4xf32>
    %c0_73 = arith.constant 0 : index
    %c0_74 = arith.constant 0 : index
    %89 = vector.load %arg5[%c0_73, %c0_74] : memref<4x8xf32, #tpu.memory_space<vmem>>, vector<4x8xf32>
    %90 = vector.shape_cast %89 : vector<4x8xf32> to vector<1x4x8xf32>
    %91 = vector.shape_cast %90 : vector<1x4x8xf32> to vector<1x4x8xf32>
    %92 = vector.broadcast %91 : vector<1x4x8xf32> to vector<4x4x8xf32>
    %cst_75 = arith.constant dense<0.000000e+00> : vector<4x4x4xf32>
    %93 = tpu.matmul %92, %88, %cst_75 {dimension_numbers = #tpu.dot_dimension_numbers<[2], [1], [1], [2], [0, 0, 0, 1, 1, 2], [0], [0]>} : vector<4x4x8xf32>, vector<4x8x4xf32>, vector<4x4x4xf32> -> vector<4x4x4xf32>
    %cst_76 = arith.constant 0.111111112 : f32
    %94 = vector.broadcast %cst_76 : f32 to vector<4x4x4xf32>
    %95 = arith.mulf %93, %94 : vector<4x4x4xf32>
    %c0_77 = arith.constant 0 : index
    %c0_78 = arith.constant 0 : index
    %c0_79 = arith.constant 0 : index
    %c0_80 = arith.constant 0 : index
    %96 = vector.load %arg10[%c0_77, %c0_78, %c0_79, %c0_80] : memref<1x4x4x4xf32, #tpu.memory_space<vmem>>, vector<1x4x4x4xf32>
    %97 = vector.shape_cast %96 : vector<1x4x4x4xf32> to vector<4x4x4xf32>
    %98 = vector.shape_cast %95 : vector<4x4x4xf32> to vector<1x4x4x4xf32>
    tpu.vector_store %arg10[%c0_77, %c0_78, %c0_79, %c0_80], %98 {strides = array<i32>} : memref<1x4x4x4xf32, #tpu.memory_space<vmem>>, vector<1x4x4x4xf32>,
    return
  }
  func.func @transform_0(%arg0: i32, %arg1: i32) -> (i32, i32, i32) {
    %c0_i32 = arith.constant 0 : i32
    %c0_i32_0 = arith.constant 0 : i32
    %c0_i32_1 = arith.constant 0 : i32
    %c0_i32_2 = arith.constant 0 : i32
    return %c0_i32, %c0_i32_0, %c0_i32_1 : i32, i32, i32
  }
  func.func @transform_1(%arg0: i32, %arg1: i32) -> (i32, i32) {
    %c0_i32 = arith.constant 0 : i32
    %c0_i32_0 = arith.constant 0 : i32
    %c0_i32_1 = arith.constant 0 : i32
    return %c0_i32, %c0_i32_0 : i32, i32
  }
  func.func @transform_2(%arg0: i32, %arg1: i32) -> (i32, i32) {
    %c0_i32 = arith.constant 0 : i32
    %c0_i32_0 = arith.constant 0 : i32
    %c0_i32_1 = arith.constant 0 : i32
    return %c0_i32, %c0_i32_0 : i32, i32
  }
  func.func @transform_3(%arg0: i32, %arg1: i32) -> (i32, i32) {
    %c0_i32 = arith.constant 0 : i32
    %c0_i32_0 = arith.constant 0 : i32
    %c0_i32_1 = arith.constant 0 : i32
    return %c0_i32, %c0_i32_0 : i32, i32
  }
  func.func @transform_4(%arg0: i32, %arg1: i32) -> (i32, i32, i32, i32) {
    %c0_i32 = arith.constant 0 : i32
    %c0_i32_0 = arith.constant 0 : i32
    %c0_i32_1 = arith.constant 0 : i32
    return %arg0, %arg1, %c0_i32, %c0_i32_0 : i32, i32, i32, i32
  }
  func.func @transform_5(%arg0: i32, %arg1: i32) -> (i32, i32, i32, i32) {
    %c16_i32 = arith.constant 16 : i32
    %0 = arith.muli %arg1, %c16_i32 : i32
    %c3_i32 = arith.constant 3 : i32
    %1 = arith.subi %0, %c3_i32 : i32
    %c0_i32 = arith.constant 0 : i32
    %2 = arith.maxsi %1, %c0_i32 : i32
    %c0_i32_0 = arith.constant 0 : i32
    %c0_i32_1 = arith.constant 0 : i32
    %c0_i32_2 = arith.constant 0 : i32
    return %arg0, %2, %c0_i32_0, %c0_i32_1 : i32, i32, i32, i32
  }
  func.func @transform_6(%arg0: i32, %arg1: i32) -> (i32, i32, i32, i32) {
    %c16_i32 = arith.constant 16 : i32
    %0 = arith.muli %arg1, %c16_i32 : i32
    %c2_i32 = arith.constant 2 : i32
    %1 = arith.subi %0, %c2_i32 : i32
    %c0_i32 = arith.constant 0 : i32
    %2 = arith.maxsi %1, %c0_i32 : i32
    %c0_i32_0 = arith.constant 0 : i32
    %c0_i32_1 = arith.constant 0 : i32
    %c0_i32_2 = arith.constant 0 : i32
    return %arg0, %2, %c0_i32_0, %c0_i32_1 : i32, i32, i32, i32
  }
  func.func @transform_7(%arg0: i32, %arg1: i32) -> (i32, i32, i32, i32) {
    %c16_i32 = arith.constant 16 : i32
    %0 = arith.muli %arg1, %c16_i32 : i32
    %c1_i32 = arith.constant 1 : i32
    %1 = arith.subi %0, %c1_i32 : i32
    %c0_i32 = arith.constant 0 : i32
    %2 = arith.maxsi %1, %c0_i32 : i32
    %c0_i32_0 = arith.constant 0 : i32
    %c0_i32_1 = arith.constant 0 : i32
    %c0_i32_2 = arith.constant 0 : i32
    return %arg0, %2, %c0_i32_0, %c0_i32_1 : i32, i32, i32, i32
  }
  func.func @transform_8(%arg0: i32, %arg1: i32) -> (i32, i32, i32, i32) {
    %c0_i32 = arith.constant 0 : i32
    %c0_i32_0 = arith.constant 0 : i32
    %c0_i32_1 = arith.constant 0 : i32
    return %arg0, %arg1, %c0_i32, %c0_i32_0 : i32, i32, i32, i32
  }
}

module attributes {stable_mosaic.version = 11 : i64} {
  func.func @conv3x3_kernel(%arg0: i32, %arg1: i32, %arg2: memref<3x12x4xbf16, #tpu.memory_space<vmem>>, %arg3: memref<1x4xf32, #tpu.memory_space<vmem>>, %arg4: memref<1x4xf32, #tpu.memory_space<vmem>>, %arg5: memref<1x4x4x4xbf16, #tpu.memory_space<vmem>>, %arg6: memref<1x1x4x4xbf16, #tpu.memory_space<vmem>>, %arg7: memref<1x1x4x4xbf16, #tpu.memory_space<vmem>>, %arg8: memref<1x4x4x4xbf16, #tpu.memory_space<vmem>>, %arg9: memref<6x4x12xbf16, #tpu.memory_space<vmem>>) attributes {dimension_semantics = [#tpu.dimension_semantics<parallel>, #tpu.dimension_semantics<parallel>], iteration_bounds = array<i64: 2, 1>, scalar_prefetch = 0 : i64, scratch_operands = 1 : i64, tpu.core_type = #tpu.core_type<tc>, window_params = [{pipeline_mode = #tpu.pipeline_mode<synchronous>, transform_indices = @transform_0, window_bounds = array<i64: 3, 12, 4>}, {pipeline_mode = #tpu.pipeline_mode<synchronous>, transform_indices = @transform_1, window_bounds = array<i64: 1, 4>}, {pipeline_mode = #tpu.pipeline_mode<synchronous>, transform_indices = @transform_2, window_bounds = array<i64: 1, 4>}, {transform_indices = @transform_3, window_bounds = array<i64: 1, 4, 4, 4>}, {transform_indices = @transform_4, window_bounds = array<i64: 1, 1, 4, 4>}, {transform_indices = @transform_5, window_bounds = array<i64: 1, 1, 4, 4>}, {transform_indices = @transform_6, window_bounds = array<i64: 1, 4, 4, 4>}]} {
    %c0_i32 = arith.constant 0 : i32
    %0 = arith.cmpi sgt, %arg1, %c0_i32 : i32
    %c0 = arith.constant 0 : index
    %c0_0 = arith.constant 0 : index
    %c0_1 = arith.constant 0 : index
    %c0_2 = arith.constant 0 : index
    %1 = vector.load %arg6[%c0, %c0_0, %c0_1, %c0_2] : memref<1x1x4x4xbf16, #tpu.memory_space<vmem>>, vector<1x1x4x4xbf16>
    %2 = vector.shape_cast %1 : vector<1x1x4x4xbf16> to vector<4x4xbf16>
    %cst = arith.constant 0.000000e+00 : bf16
    %3 = vector.broadcast %cst : bf16 to vector<4x4xbf16>
    %4 = arith.select %0, %2, %3 : vector<4x4xbf16>
    %c0_i32_3 = arith.constant 0 : i32
    %5 = arith.cmpi slt, %arg1, %c0_i32_3 : i32
    %c0_4 = arith.constant 0 : index
    %c0_5 = arith.constant 0 : index
    %c0_6 = arith.constant 0 : index
    %c0_7 = arith.constant 0 : index
    %6 = vector.load %arg7[%c0_4, %c0_5, %c0_6, %c0_7] : memref<1x1x4x4xbf16, #tpu.memory_space<vmem>>, vector<1x1x4x4xbf16>
    %7 = vector.shape_cast %6 : vector<1x1x4x4xbf16> to vector<4x4xbf16>
    %cst_8 = arith.constant 0.000000e+00 : bf16
    %8 = vector.broadcast %cst_8 : bf16 to vector<4x4xbf16>
    %9 = arith.select %5, %7, %8 : vector<4x4xbf16>
    %10 = vector.shape_cast %4 : vector<4x4xbf16> to vector<1x4x4xbf16>
    %c0_9 = arith.constant 0 : index
    %c0_10 = arith.constant 0 : index
    %c0_11 = arith.constant 0 : index
    %c0_12 = arith.constant 0 : index
    %11 = vector.load %arg5[%c0_9, %c0_10, %c0_11, %c0_12] : memref<1x4x4x4xbf16, #tpu.memory_space<vmem>>, vector<1x4x4x4xbf16>
    %12 = vector.shape_cast %11 : vector<1x4x4x4xbf16> to vector<4x4x4xbf16>
    %13 = vector.shape_cast %9 : vector<4x4xbf16> to vector<1x4x4xbf16>
    %14 = tpu.concatenate %10, %12, %13 in 0 : vector<1x4x4xbf16>, vector<4x4x4xbf16>, vector<1x4x4xbf16> -> vector<6x4x4xbf16>
    %cst_13 = arith.constant 0.000000e+00 : bf16
    %15 = vector.broadcast %cst_13 : bf16 to vector<6x1x4xbf16>
    %c0_14 = arith.constant 0 : index
    %c0_15 = arith.constant 0 : index
    %c0_16 = arith.constant 0 : index
    %16 = vector.load %arg9[%c0_14, %c0_15, %c0_16] : memref<6x4x12xbf16, #tpu.memory_space<vmem>>, vector<6x1x4xbf16>
    tpu.vector_store %arg9[%c0_14, %c0_15, %c0_16], %15 {strides = array<i32>} : memref<6x4x12xbf16, #tpu.memory_space<vmem>>, vector<6x1x4xbf16>,
    %17 = vector.extract_strided_slice %14 {offsets = [0, 0, 0], sizes = [6, 3, 4], strides = [1, 1, 1]} : vector<6x4x4xbf16> to vector<6x3x4xbf16>
    %c0_17 = arith.constant 0 : index
    %c1 = arith.constant 1 : index
    %c0_18 = arith.constant 0 : index
    %18 = vector.load %arg9[%c0_17, %c1, %c0_18] : memref<6x4x12xbf16, #tpu.memory_space<vmem>>, vector<6x3x4xbf16>
    tpu.vector_store %arg9[%c0_17, %c1, %c0_18], %17 {strides = array<i32>} : memref<6x4x12xbf16, #tpu.memory_space<vmem>>, vector<6x3x4xbf16>,
    %c0_19 = arith.constant 0 : index
    %c0_20 = arith.constant 0 : index
    %c4 = arith.constant 4 : index
    %19 = vector.load %arg9[%c0_19, %c0_20, %c4] : memref<6x4x12xbf16, #tpu.memory_space<vmem>>, vector<6x4x4xbf16>
    tpu.vector_store %arg9[%c0_19, %c0_20, %c4], %14 {strides = array<i32>} : memref<6x4x12xbf16, #tpu.memory_space<vmem>>, vector<6x4x4xbf16>,
    %20 = vector.extract_strided_slice %14 {offsets = [0, 1, 0], sizes = [6, 3, 4], strides = [1, 1, 1]} : vector<6x4x4xbf16> to vector<6x3x4xbf16>
    %c0_21 = arith.constant 0 : index
    %c0_22 = arith.constant 0 : index
    %c8 = arith.constant 8 : index
    %21 = vector.load %arg9[%c0_21, %c0_22, %c8] : memref<6x4x12xbf16, #tpu.memory_space<vmem>>, vector<6x3x4xbf16>
    tpu.vector_store %arg9[%c0_21, %c0_22, %c8], %20 {strides = array<i32>} : memref<6x4x12xbf16, #tpu.memory_space<vmem>>, vector<6x3x4xbf16>,
    %c0_23 = arith.constant 0 : index
    %c3 = arith.constant 3 : index
    %c8_24 = arith.constant 8 : index
    %22 = vector.load %arg9[%c0_23, %c3, %c8_24] : memref<6x4x12xbf16, #tpu.memory_space<vmem>>, vector<6x1x4xbf16>
    tpu.vector_store %arg9[%c0_23, %c3, %c8_24], %15 {strides = array<i32>} : memref<6x4x12xbf16, #tpu.memory_space<vmem>>, vector<6x1x4xbf16>,
    %cst_25 = arith.constant 0.000000e+00 : f32
    %23 = vector.broadcast %cst_25 : f32 to vector<16x4xf32>
    %c0_26 = arith.constant 0 : index
    %c0_27 = arith.constant 0 : index
    %c0_28 = arith.constant 0 : index
    %24 = vector.load %arg9[%c0_26, %c0_27, %c0_28] : memref<6x4x12xbf16, #tpu.memory_space<vmem>>, vector<4x4x12xbf16>
    %25 = vector.shape_cast %24 : vector<4x4x12xbf16> to vector<16x12xbf16>
    %c0_29 = arith.constant 0 : index
    %c0_30 = arith.constant 0 : index
    %c0_31 = arith.constant 0 : index
    %26 = vector.load %arg2[%c0_29, %c0_30, %c0_31] : memref<3x12x4xbf16, #tpu.memory_space<vmem>>, vector<1x12x4xbf16>
    %27 = vector.shape_cast %26 : vector<1x12x4xbf16> to vector<12x4xbf16>
    %cst_32 = arith.constant dense<0.000000e+00> : vector<16x4xf32>
    %28 = tpu.matmul %25, %27, %cst_32 {dimension_numbers = #tpu.dot_dimension_numbers<[1], [0], [0], [1], [0, 0, 1, 1], [], []>} : vector<16x12xbf16>, vector<12x4xbf16>, vector<16x4xf32> -> vector<16x4xf32>
    %29 = arith.addf %23, %28 : vector<16x4xf32>
    %c1_33 = arith.constant 1 : index
    %c0_34 = arith.constant 0 : index
    %c0_35 = arith.constant 0 : index
    %30 = vector.load %arg9[%c1_33, %c0_34, %c0_35] : memref<6x4x12xbf16, #tpu.memory_space<vmem>>, vector<4x4x12xbf16>
    %31 = vector.shape_cast %30 : vector<4x4x12xbf16> to vector<16x12xbf16>
    %c1_36 = arith.constant 1 : index
    %c0_37 = arith.constant 0 : index
    %c0_38 = arith.constant 0 : index
    %32 = vector.load %arg2[%c1_36, %c0_37, %c0_38] : memref<3x12x4xbf16, #tpu.memory_space<vmem>>, vector<1x12x4xbf16>
    %33 = vector.shape_cast %32 : vector<1x12x4xbf16> to vector<12x4xbf16>
    %cst_39 = arith.constant dense<0.000000e+00> : vector<16x4xf32>
    %34 = tpu.matmul %31, %33, %cst_39 {dimension_numbers = #tpu.dot_dimension_numbers<[1], [0], [0], [1], [0, 0, 1, 1], [], []>} : vector<16x12xbf16>, vector<12x4xbf16>, vector<16x4xf32> -> vector<16x4xf32>
    %35 = arith.addf %29, %34 : vector<16x4xf32>
    %c2 = arith.constant 2 : index
    %c0_40 = arith.constant 0 : index
    %c0_41 = arith.constant 0 : index
    %36 = vector.load %arg9[%c2, %c0_40, %c0_41] : memref<6x4x12xbf16, #tpu.memory_space<vmem>>, vector<4x4x12xbf16>
    %37 = vector.shape_cast %36 : vector<4x4x12xbf16> to vector<16x12xbf16>
    %c2_42 = arith.constant 2 : index
    %c0_43 = arith.constant 0 : index
    %c0_44 = arith.constant 0 : index
    %38 = vector.load %arg2[%c2_42, %c0_43, %c0_44] : memref<3x12x4xbf16, #tpu.memory_space<vmem>>, vector<1x12x4xbf16>
    %39 = vector.shape_cast %38 : vector<1x12x4xbf16> to vector<12x4xbf16>
    %cst_45 = arith.constant dense<0.000000e+00> : vector<16x4xf32>
    %40 = tpu.matmul %37, %39, %cst_45 {dimension_numbers = #tpu.dot_dimension_numbers<[1], [0], [0], [1], [0, 0, 1, 1], [], []>} : vector<16x12xbf16>, vector<12x4xbf16>, vector<16x4xf32> -> vector<16x4xf32>
    %41 = arith.addf %35, %40 : vector<16x4xf32>
    %c0_46 = arith.constant 0 : index
    %c0_47 = arith.constant 0 : index
    %42 = vector.load %arg3[%c0_46, %c0_47] : memref<1x4xf32, #tpu.memory_space<vmem>>, vector<1x4xf32>
    %43 = vector.broadcast %42 : vector<1x4xf32> to vector<16x4xf32>
    %44 = arith.mulf %41, %43 : vector<16x4xf32>
    %c0_48 = arith.constant 0 : index
    %c0_49 = arith.constant 0 : index
    %45 = vector.load %arg4[%c0_48, %c0_49] : memref<1x4xf32, #tpu.memory_space<vmem>>, vector<1x4xf32>
    %46 = vector.broadcast %45 : vector<1x4xf32> to vector<16x4xf32>
    %47 = arith.addf %44, %46 : vector<16x4xf32>
    %48 = vector.shape_cast %47 : vector<16x4xf32> to vector<4x4x4xf32>
    %49 = arith.truncf %48 : vector<4x4x4xf32> to vector<4x4x4xbf16>
    %c0_50 = arith.constant 0 : index
    %c0_51 = arith.constant 0 : index
    %c0_52 = arith.constant 0 : index
    %c0_53 = arith.constant 0 : index
    %50 = vector.load %arg8[%c0_50, %c0_51, %c0_52, %c0_53] : memref<1x4x4x4xbf16, #tpu.memory_space<vmem>>, vector<1x4x4x4xbf16>
    %51 = vector.shape_cast %50 : vector<1x4x4x4xbf16> to vector<4x4x4xbf16>
    %52 = vector.shape_cast %49 : vector<4x4x4xbf16> to vector<1x4x4x4xbf16>
    tpu.vector_store %arg8[%c0_50, %c0_51, %c0_52, %c0_53], %52 {strides = array<i32>} : memref<1x4x4x4xbf16, #tpu.memory_space<vmem>>, vector<1x4x4x4xbf16>,
    return
  }
  func.func @transform_0(%arg0: i32, %arg1: i32) -> (i32, i32, i32) {
    %c0_i32 = arith.constant 0 : i32
    %c0_i32_0 = arith.constant 0 : i32
    %c0_i32_1 = arith.constant 0 : i32
    %c0_i32_2 = arith.constant 0 : i32
    return %c0_i32, %c0_i32_0, %c0_i32_1 : i32, i32, i32
  }
  func.func @transform_1(%arg0: i32, %arg1: i32) -> (i32, i32) {
    %c0_i32 = arith.constant 0 : i32
    %c0_i32_0 = arith.constant 0 : i32
    %c0_i32_1 = arith.constant 0 : i32
    return %c0_i32, %c0_i32_0 : i32, i32
  }
  func.func @transform_2(%arg0: i32, %arg1: i32) -> (i32, i32) {
    %c0_i32 = arith.constant 0 : i32
    %c0_i32_0 = arith.constant 0 : i32
    %c0_i32_1 = arith.constant 0 : i32
    return %c0_i32, %c0_i32_0 : i32, i32
  }
  func.func @transform_3(%arg0: i32, %arg1: i32) -> (i32, i32, i32, i32) {
    %c0_i32 = arith.constant 0 : i32
    %c0_i32_0 = arith.constant 0 : i32
    %c0_i32_1 = arith.constant 0 : i32
    return %arg0, %arg1, %c0_i32, %c0_i32_0 : i32, i32, i32, i32
  }
  func.func @transform_4(%arg0: i32, %arg1: i32) -> (i32, i32, i32, i32) {
    %c4_i32 = arith.constant 4 : i32
    %0 = arith.muli %arg1, %c4_i32 : i32
    %c1_i32 = arith.constant 1 : i32
    %1 = arith.subi %0, %c1_i32 : i32
    %c0_i32 = arith.constant 0 : i32
    %2 = arith.maxsi %1, %c0_i32 : i32
    %c0_i32_0 = arith.constant 0 : i32
    %c0_i32_1 = arith.constant 0 : i32
    %c0_i32_2 = arith.constant 0 : i32
    return %arg0, %2, %c0_i32_0, %c0_i32_1 : i32, i32, i32, i32
  }
  func.func @transform_5(%arg0: i32, %arg1: i32) -> (i32, i32, i32, i32) {
    %c1_i32 = arith.constant 1 : i32
    %0 = arith.addi %arg1, %c1_i32 : i32
    %c4_i32 = arith.constant 4 : i32
    %1 = arith.muli %0, %c4_i32 : i32
    %c3_i32 = arith.constant 3 : i32
    %2 = arith.minsi %1, %c3_i32 : i32
    %c0_i32 = arith.constant 0 : i32
    %c0_i32_0 = arith.constant 0 : i32
    %c0_i32_1 = arith.constant 0 : i32
    return %arg0, %2, %c0_i32, %c0_i32_0 : i32, i32, i32, i32
  }
  func.func @transform_6(%arg0: i32, %arg1: i32) -> (i32, i32, i32, i32) {
    %c0_i32 = arith.constant 0 : i32
    %c0_i32_0 = arith.constant 0 : i32
    %c0_i32_1 = arith.constant 0 : i32
    return %arg0, %arg1, %c0_i32, %c0_i32_0 : i32, i32, i32, i32
  }
}

module attributes {stable_mosaic.version = 11 : i64} {
  func.func @dw1x1_kernel(%arg0: i32, %arg1: i32, %arg2: memref<3x3x4xf32, #tpu.memory_space<vmem>>, %arg3: memref<1x4xf32, #tpu.memory_space<vmem>>, %arg4: memref<1x4xf32, #tpu.memory_space<vmem>>, %arg5: memref<4x4xbf16, #tpu.memory_space<vmem>>, %arg6: memref<1x4x4x4xbf16, #tpu.memory_space<vmem>>, %arg7: memref<1x1x4x4xbf16, #tpu.memory_space<vmem>>, %arg8: memref<1x1x4x4xbf16, #tpu.memory_space<vmem>>, %arg9: memref<1x4x4x4xf32, #tpu.memory_space<vmem>>, %arg10: memref<1x4x4x4xbf16, #tpu.memory_space<vmem>>, %arg11: memref<6x6x4xbf16, #tpu.memory_space<vmem>>) attributes {dimension_semantics = [#tpu.dimension_semantics<parallel>, #tpu.dimension_semantics<parallel>], iteration_bounds = array<i64: 2, 1>, scalar_prefetch = 0 : i64, scratch_operands = 1 : i64, tpu.core_type = #tpu.core_type<tc>, window_params = [{pipeline_mode = #tpu.pipeline_mode<synchronous>, transform_indices = @transform_0, window_bounds = array<i64: 3, 3, 4>}, {pipeline_mode = #tpu.pipeline_mode<synchronous>, transform_indices = @transform_1, window_bounds = array<i64: 1, 4>}, {pipeline_mode = #tpu.pipeline_mode<synchronous>, transform_indices = @transform_2, window_bounds = array<i64: 1, 4>}, {pipeline_mode = #tpu.pipeline_mode<synchronous>, transform_indices = @transform_3, window_bounds = array<i64: 4, 4>}, {transform_indices = @transform_4, window_bounds = array<i64: 1, 4, 4, 4>}, {transform_indices = @transform_5, window_bounds = array<i64: 1, 1, 4, 4>}, {transform_indices = @transform_6, window_bounds = array<i64: 1, 1, 4, 4>}, {transform_indices = @transform_7, window_bounds = array<i64: 1, 4, 4, 4>}, {transform_indices = @transform_8, window_bounds = array<i64: 1, 4, 4, 4>}]} {
    %c0_i32 = arith.constant 0 : i32
    %0 = arith.cmpi sgt, %arg1, %c0_i32 : i32
    %c0 = arith.constant 0 : index
    %c0_0 = arith.constant 0 : index
    %c0_1 = arith.constant 0 : index
    %c0_2 = arith.constant 0 : index
    %1 = vector.load %arg7[%c0, %c0_0, %c0_1, %c0_2] : memref<1x1x4x4xbf16, #tpu.memory_space<vmem>>, vector<1x1x4x4xbf16>
    %2 = vector.shape_cast %1 : vector<1x1x4x4xbf16> to vector<4x4xbf16>
    %cst = arith.constant 0.000000e+00 : bf16
    %3 = vector.broadcast %cst : bf16 to vector<4x4xbf16>
    %4 = arith.select %0, %2, %3 : vector<4x4xbf16>
    %c0_i32_3 = arith.constant 0 : i32
    %5 = arith.cmpi slt, %arg1, %c0_i32_3 : i32
    %c0_4 = arith.constant 0 : index
    %c0_5 = arith.constant 0 : index
    %c0_6 = arith.constant 0 : index
    %c0_7 = arith.constant 0 : index
    %6 = vector.load %arg8[%c0_4, %c0_5, %c0_6, %c0_7] : memref<1x1x4x4xbf16, #tpu.memory_space<vmem>>, vector<1x1x4x4xbf16>
    %7 = vector.shape_cast %6 : vector<1x1x4x4xbf16> to vector<4x4xbf16>
    %cst_8 = arith.constant 0.000000e+00 : bf16
    %8 = vector.broadcast %cst_8 : bf16 to vector<4x4xbf16>
    %9 = arith.select %5, %7, %8 : vector<4x4xbf16>
    %10 = vector.shape_cast %4 : vector<4x4xbf16> to vector<1x4x4xbf16>
    %c0_9 = arith.constant 0 : index
    %c0_10 = arith.constant 0 : index
    %c0_11 = arith.constant 0 : index
    %c0_12 = arith.constant 0 : index
    %11 = vector.load %arg6[%c0_9, %c0_10, %c0_11, %c0_12] : memref<1x4x4x4xbf16, #tpu.memory_space<vmem>>, vector<1x4x4x4xbf16>
    %12 = vector.shape_cast %11 : vector<1x4x4x4xbf16> to vector<4x4x4xbf16>
    %13 = vector.shape_cast %9 : vector<4x4xbf16> to vector<1x4x4xbf16>
    %14 = tpu.concatenate %10, %12, %13 in 0 : vector<1x4x4xbf16>, vector<4x4x4xbf16>, vector<1x4x4xbf16> -> vector<6x4x4xbf16>
    %cst_13 = arith.constant 0.000000e+00 : bf16
    %15 = vector.broadcast %cst_13 : bf16 to vector<6x1x4xbf16>
    %c0_14 = arith.constant 0 : index
    %c0_15 = arith.constant 0 : index
    %c0_16 = arith.constant 0 : index
    %16 = vector.load %arg11[%c0_14, %c0_15, %c0_16] : memref<6x6x4xbf16, #tpu.memory_space<vmem>>, vector<6x1x4xbf16>
    tpu.vector_store %arg11[%c0_14, %c0_15, %c0_16], %15 {strides = array<i32>} : memref<6x6x4xbf16, #tpu.memory_space<vmem>>, vector<6x1x4xbf16>,
    %c0_17 = arith.constant 0 : index
    %c5 = arith.constant 5 : index
    %c0_18 = arith.constant 0 : index
    %17 = vector.load %arg11[%c0_17, %c5, %c0_18] : memref<6x6x4xbf16, #tpu.memory_space<vmem>>, vector<6x1x4xbf16>
    tpu.vector_store %arg11[%c0_17, %c5, %c0_18], %15 {strides = array<i32>} : memref<6x6x4xbf16, #tpu.memory_space<vmem>>, vector<6x1x4xbf16>,
    %c0_19 = arith.constant 0 : index
    %c1 = arith.constant 1 : index
    %c0_20 = arith.constant 0 : index
    %18 = vector.load %arg11[%c0_19, %c1, %c0_20] : memref<6x6x4xbf16, #tpu.memory_space<vmem>>, vector<6x4x4xbf16>
    tpu.vector_store %arg11[%c0_19, %c1, %c0_20], %14 {strides = array<i32>} : memref<6x6x4xbf16, #tpu.memory_space<vmem>>, vector<6x4x4xbf16>,
    %c0_21 = arith.constant 0 : index
    %c0_22 = arith.constant 0 : index
    %c0_23 = arith.constant 0 : index
    %19 = vector.load %arg11[%c0_21, %c0_22, %c0_23] : memref<6x6x4xbf16, #tpu.memory_space<vmem>>, vector<6x4x4xbf16>
    %20 = arith.extf %19 : vector<6x4x4xbf16> to vector<6x4x4xf32>
    %21 = arith.extf %14 : vector<6x4x4xbf16> to vector<6x4x4xf32>
    %c0_24 = arith.constant 0 : index
    %c2 = arith.constant 2 : index
    %c0_25 = arith.constant 0 : index
    %22 = vector.load %arg11[%c0_24, %c2, %c0_25] : memref<6x6x4xbf16, #tpu.memory_space<vmem>>, vector<6x4x4xbf16>
    %23 = arith.extf %22 : vector<6x4x4xbf16> to vector<6x4x4xf32>
    %c0_26 = arith.constant 0 : index
    %c0_27 = arith.constant 0 : index
    %c0_28 = arith.constant 0 : index
    %24 = vector.load %arg2[%c0_26, %c0_27, %c0_28] : memref<3x3x4xf32, #tpu.memory_space<vmem>>, vector<3x3x4xf32>
    %cst_29 = arith.constant 0.000000e+00 : f32
    %25 = vector.broadcast %cst_29 : f32 to vector<4x4x4xf32>
    %26 = vector.extract_strided_slice %20 {offsets = [0, 0, 0], sizes = [4, 4, 4], strides = [1, 1, 1]} : vector<6x4x4xf32> to vector<4x4x4xf32>
    %27 = vector.extract_strided_slice %24 {offsets = [0, 0, 0], sizes = [1, 1, 4], strides = [1, 1, 1]} : vector<3x3x4xf32> to vector<1x1x4xf32>
    %28 = vector.shape_cast %27 : vector<1x1x4xf32> to vector<4xf32>
    %29 = vector.shape_cast %28 : vector<4xf32> to vector<1x1x4xf32>
    %30 = vector.broadcast %29 : vector<1x1x4xf32> to vector<4x4x4xf32>
    %31 = arith.mulf %26, %30 : vector<4x4x4xf32>
    %32 = arith.addf %25, %31 : vector<4x4x4xf32>
    %33 = vector.extract_strided_slice %21 {offsets = [0, 0, 0], sizes = [4, 4, 4], strides = [1, 1, 1]} : vector<6x4x4xf32> to vector<4x4x4xf32>
    %34 = vector.extract_strided_slice %24 {offsets = [0, 1, 0], sizes = [1, 1, 4], strides = [1, 1, 1]} : vector<3x3x4xf32> to vector<1x1x4xf32>
    %35 = vector.shape_cast %34 : vector<1x1x4xf32> to vector<4xf32>
    %36 = vector.shape_cast %35 : vector<4xf32> to vector<1x1x4xf32>
    %37 = vector.broadcast %36 : vector<1x1x4xf32> to vector<4x4x4xf32>
    %38 = arith.mulf %33, %37 : vector<4x4x4xf32>
    %39 = arith.addf %32, %38 : vector<4x4x4xf32>
    %40 = vector.extract_strided_slice %23 {offsets = [0, 0, 0], sizes = [4, 4, 4], strides = [1, 1, 1]} : vector<6x4x4xf32> to vector<4x4x4xf32>
    %41 = vector.extract_strided_slice %24 {offsets = [0, 2, 0], sizes = [1, 1, 4], strides = [1, 1, 1]} : vector<3x3x4xf32> to vector<1x1x4xf32>
    %42 = vector.shape_cast %41 : vector<1x1x4xf32> to vector<4xf32>
    %43 = vector.shape_cast %42 : vector<4xf32> to vector<1x1x4xf32>
    %44 = vector.broadcast %43 : vector<1x1x4xf32> to vector<4x4x4xf32>
    %45 = arith.mulf %40, %44 : vector<4x4x4xf32>
    %46 = arith.addf %39, %45 : vector<4x4x4xf32>
    %47 = vector.extract_strided_slice %20 {offsets = [1, 0, 0], sizes = [4, 4, 4], strides = [1, 1, 1]} : vector<6x4x4xf32> to vector<4x4x4xf32>
    %48 = vector.extract_strided_slice %24 {offsets = [1, 0, 0], sizes = [1, 1, 4], strides = [1, 1, 1]} : vector<3x3x4xf32> to vector<1x1x4xf32>
    %49 = vector.shape_cast %48 : vector<1x1x4xf32> to vector<4xf32>
    %50 = vector.shape_cast %49 : vector<4xf32> to vector<1x1x4xf32>
    %51 = vector.broadcast %50 : vector<1x1x4xf32> to vector<4x4x4xf32>
    %52 = arith.mulf %47, %51 : vector<4x4x4xf32>
    %53 = arith.addf %46, %52 : vector<4x4x4xf32>
    %54 = vector.extract_strided_slice %21 {offsets = [1, 0, 0], sizes = [4, 4, 4], strides = [1, 1, 1]} : vector<6x4x4xf32> to vector<4x4x4xf32>
    %55 = vector.extract_strided_slice %24 {offsets = [1, 1, 0], sizes = [1, 1, 4], strides = [1, 1, 1]} : vector<3x3x4xf32> to vector<1x1x4xf32>
    %56 = vector.shape_cast %55 : vector<1x1x4xf32> to vector<4xf32>
    %57 = vector.shape_cast %56 : vector<4xf32> to vector<1x1x4xf32>
    %58 = vector.broadcast %57 : vector<1x1x4xf32> to vector<4x4x4xf32>
    %59 = arith.mulf %54, %58 : vector<4x4x4xf32>
    %60 = arith.addf %53, %59 : vector<4x4x4xf32>
    %61 = vector.extract_strided_slice %23 {offsets = [1, 0, 0], sizes = [4, 4, 4], strides = [1, 1, 1]} : vector<6x4x4xf32> to vector<4x4x4xf32>
    %62 = vector.extract_strided_slice %24 {offsets = [1, 2, 0], sizes = [1, 1, 4], strides = [1, 1, 1]} : vector<3x3x4xf32> to vector<1x1x4xf32>
    %63 = vector.shape_cast %62 : vector<1x1x4xf32> to vector<4xf32>
    %64 = vector.shape_cast %63 : vector<4xf32> to vector<1x1x4xf32>
    %65 = vector.broadcast %64 : vector<1x1x4xf32> to vector<4x4x4xf32>
    %66 = arith.mulf %61, %65 : vector<4x4x4xf32>
    %67 = arith.addf %60, %66 : vector<4x4x4xf32>
    %68 = vector.extract_strided_slice %20 {offsets = [2, 0, 0], sizes = [4, 4, 4], strides = [1, 1, 1]} : vector<6x4x4xf32> to vector<4x4x4xf32>
    %69 = vector.extract_strided_slice %24 {offsets = [2, 0, 0], sizes = [1, 1, 4], strides = [1, 1, 1]} : vector<3x3x4xf32> to vector<1x1x4xf32>
    %70 = vector.shape_cast %69 : vector<1x1x4xf32> to vector<4xf32>
    %71 = vector.shape_cast %70 : vector<4xf32> to vector<1x1x4xf32>
    %72 = vector.broadcast %71 : vector<1x1x4xf32> to vector<4x4x4xf32>
    %73 = arith.mulf %68, %72 : vector<4x4x4xf32>
    %74 = arith.addf %67, %73 : vector<4x4x4xf32>
    %75 = vector.extract_strided_slice %21 {offsets = [2, 0, 0], sizes = [4, 4, 4], strides = [1, 1, 1]} : vector<6x4x4xf32> to vector<4x4x4xf32>
    %76 = vector.extract_strided_slice %24 {offsets = [2, 1, 0], sizes = [1, 1, 4], strides = [1, 1, 1]} : vector<3x3x4xf32> to vector<1x1x4xf32>
    %77 = vector.shape_cast %76 : vector<1x1x4xf32> to vector<4xf32>
    %78 = vector.shape_cast %77 : vector<4xf32> to vector<1x1x4xf32>
    %79 = vector.broadcast %78 : vector<1x1x4xf32> to vector<4x4x4xf32>
    %80 = arith.mulf %75, %79 : vector<4x4x4xf32>
    %81 = arith.addf %74, %80 : vector<4x4x4xf32>
    %82 = vector.extract_strided_slice %23 {offsets = [2, 0, 0], sizes = [4, 4, 4], strides = [1, 1, 1]} : vector<6x4x4xf32> to vector<4x4x4xf32>
    %83 = vector.extract_strided_slice %24 {offsets = [2, 2, 0], sizes = [1, 1, 4], strides = [1, 1, 1]} : vector<3x3x4xf32> to vector<1x1x4xf32>
    %84 = vector.shape_cast %83 : vector<1x1x4xf32> to vector<4xf32>
    %85 = vector.shape_cast %84 : vector<4xf32> to vector<1x1x4xf32>
    %86 = vector.broadcast %85 : vector<1x1x4xf32> to vector<4x4x4xf32>
    %87 = arith.mulf %82, %86 : vector<4x4x4xf32>
    %88 = arith.addf %81, %87 : vector<4x4x4xf32>
    %c0_30 = arith.constant 0 : index
    %c0_31 = arith.constant 0 : index
    %89 = vector.load %arg3[%c0_30, %c0_31] : memref<1x4xf32, #tpu.memory_space<vmem>>, vector<1x4xf32>
    %90 = vector.shape_cast %89 : vector<1x4xf32> to vector<1x1x4xf32>
    %91 = vector.broadcast %90 : vector<1x1x4xf32> to vector<4x4x4xf32>
    %92 = arith.mulf %88, %91 : vector<4x4x4xf32>
    %c0_32 = arith.constant 0 : index
    %c0_33 = arith.constant 0 : index
    %93 = vector.load %arg4[%c0_32, %c0_33] : memref<1x4xf32, #tpu.memory_space<vmem>>, vector<1x4xf32>
    %94 = vector.shape_cast %93 : vector<1x4xf32> to vector<1x1x4xf32>
    %95 = vector.broadcast %94 : vector<1x1x4xf32> to vector<4x4x4xf32>
    %96 = arith.addf %92, %95 : vector<4x4x4xf32>
    %97 = vector.shape_cast %96 : vector<4x4x4xf32> to vector<16x4xf32>
    %98 = arith.truncf %97 : vector<16x4xf32> to vector<16x4xbf16>
    %c0_34 = arith.constant 0 : index
    %c0_35 = arith.constant 0 : index
    %99 = vector.load %arg5[%c0_34, %c0_35] : memref<4x4xbf16, #tpu.memory_space<vmem>>, vector<4x4xbf16>
    %cst_36 = arith.constant dense<0.000000e+00> : vector<16x4xf32>
    %100 = tpu.matmul %98, %99, %cst_36 {dimension_numbers = #tpu.dot_dimension_numbers<[1], [0], [0], [1], [0, 0, 1, 1], [], []>} : vector<16x4xbf16>, vector<4x4xbf16>, vector<16x4xf32> -> vector<16x4xf32>
    %101 = arith.negf %100 : vector<16x4xf32>
    %102 = math.exp %101 : vector<16x4xf32>
    %cst_37 = arith.constant 1.000000e+00 : f32
    %103 = vector.broadcast %cst_37 : f32 to vector<16x4xf32>
    %104 = arith.addf %103, %102 : vector<16x4xf32>
    %105 = arith.divf %103, %104 : vector<16x4xf32>
    %106 = vector.shape_cast %105 : vector<16x4xf32> to vector<4x4x4xf32>
    %c0_38 = arith.constant 0 : index
    %c0_39 = arith.constant 0 : index
    %c0_40 = arith.constant 0 : index
    %c0_41 = arith.constant 0 : index
    %107 = vector.load %arg9[%c0_38, %c0_39, %c0_40, %c0_41] : memref<1x4x4x4xf32, #tpu.memory_space<vmem>>, vector<1x4x4x4xf32>
    %108 = vector.shape_cast %107 : vector<1x4x4x4xf32> to vector<4x4x4xf32>
    %109 = arith.mulf %106, %108 : vector<4x4x4xf32>
    %110 = arith.truncf %109 : vector<4x4x4xf32> to vector<4x4x4xbf16>
    %c0_42 = arith.constant 0 : index
    %c0_43 = arith.constant 0 : index
    %c0_44 = arith.constant 0 : index
    %c0_45 = arith.constant 0 : index
    %111 = vector.load %arg10[%c0_42, %c0_43, %c0_44, %c0_45] : memref<1x4x4x4xbf16, #tpu.memory_space<vmem>>, vector<1x4x4x4xbf16>
    %112 = vector.shape_cast %111 : vector<1x4x4x4xbf16> to vector<4x4x4xbf16>
    %113 = vector.shape_cast %110 : vector<4x4x4xbf16> to vector<1x4x4x4xbf16>
    tpu.vector_store %arg10[%c0_42, %c0_43, %c0_44, %c0_45], %113 {strides = array<i32>} : memref<1x4x4x4xbf16, #tpu.memory_space<vmem>>, vector<1x4x4x4xbf16>,
    return
  }
  func.func @transform_0(%arg0: i32, %arg1: i32) -> (i32, i32, i32) {
    %c0_i32 = arith.constant 0 : i32
    %c0_i32_0 = arith.constant 0 : i32
    %c0_i32_1 = arith.constant 0 : i32
    %c0_i32_2 = arith.constant 0 : i32
    return %c0_i32, %c0_i32_0, %c0_i32_1 : i32, i32, i32
  }
  func.func @transform_1(%arg0: i32, %arg1: i32) -> (i32, i32) {
    %c0_i32 = arith.constant 0 : i32
    %c0_i32_0 = arith.constant 0 : i32
    %c0_i32_1 = arith.constant 0 : i32
    return %c0_i32, %c0_i32_0 : i32, i32
  }
  func.func @transform_2(%arg0: i32, %arg1: i32) -> (i32, i32) {
    %c0_i32 = arith.constant 0 : i32
    %c0_i32_0 = arith.constant 0 : i32
    %c0_i32_1 = arith.constant 0 : i32
    return %c0_i32, %c0_i32_0 : i32, i32
  }
  func.func @transform_3(%arg0: i32, %arg1: i32) -> (i32, i32) {
    %c0_i32 = arith.constant 0 : i32
    %c0_i32_0 = arith.constant 0 : i32
    %c0_i32_1 = arith.constant 0 : i32
    return %c0_i32, %c0_i32_0 : i32, i32
  }
  func.func @transform_4(%arg0: i32, %arg1: i32) -> (i32, i32, i32, i32) {
    %c0_i32 = arith.constant 0 : i32
    %c0_i32_0 = arith.constant 0 : i32
    %c0_i32_1 = arith.constant 0 : i32
    return %arg0, %arg1, %c0_i32, %c0_i32_0 : i32, i32, i32, i32
  }
  func.func @transform_5(%arg0: i32, %arg1: i32) -> (i32, i32, i32, i32) {
    %c4_i32 = arith.constant 4 : i32
    %0 = arith.muli %arg1, %c4_i32 : i32
    %c1_i32 = arith.constant 1 : i32
    %1 = arith.subi %0, %c1_i32 : i32
    %c0_i32 = arith.constant 0 : i32
    %2 = arith.maxsi %1, %c0_i32 : i32
    %c0_i32_0 = arith.constant 0 : i32
    %c0_i32_1 = arith.constant 0 : i32
    %c0_i32_2 = arith.constant 0 : i32
    return %arg0, %2, %c0_i32_0, %c0_i32_1 : i32, i32, i32, i32
  }
  func.func @transform_6(%arg0: i32, %arg1: i32) -> (i32, i32, i32, i32) {
    %c1_i32 = arith.constant 1 : i32
    %0 = arith.addi %arg1, %c1_i32 : i32
    %c4_i32 = arith.constant 4 : i32
    %1 = arith.muli %0, %c4_i32 : i32
    %c3_i32 = arith.constant 3 : i32
    %2 = arith.minsi %1, %c3_i32 : i32
    %c0_i32 = arith.constant 0 : i32
    %c0_i32_0 = arith.constant 0 : i32
    %c0_i32_1 = arith.constant 0 : i32
    return %arg0, %2, %c0_i32, %c0_i32_0 : i32, i32, i32, i32
  }
  func.func @transform_7(%arg0: i32, %arg1: i32) -> (i32, i32, i32, i32) {
    %c0_i32 = arith.constant 0 : i32
    %c0_i32_0 = arith.constant 0 : i32
    %c0_i32_1 = arith.constant 0 : i32
    return %arg0, %arg1, %c0_i32, %c0_i32_0 : i32, i32, i32, i32
  }
  func.func @transform_8(%arg0: i32, %arg1: i32) -> (i32, i32, i32, i32) {
    %c0_i32 = arith.constant 0 : i32
    %c0_i32_0 = arith.constant 0 : i32
    %c0_i32_1 = arith.constant 0 : i32
    return %arg0, %arg1, %c0_i32, %c0_i32_0 : i32, i32, i32, i32
  }
}

module attributes {stable_mosaic.version = 11 : i64} {
  func.func @dw1x1_kernel(%arg0: i32, %arg1: i32, %arg2: memref<3x3x4xf32, #tpu.memory_space<vmem>>, %arg3: memref<1x4xf32, #tpu.memory_space<vmem>>, %arg4: memref<1x4xf32, #tpu.memory_space<vmem>>, %arg5: memref<4x4xbf16, #tpu.memory_space<vmem>>, %arg6: memref<1x16x16x4xbf16, #tpu.memory_space<vmem>>, %arg7: memref<1x1x16x4xbf16, #tpu.memory_space<vmem>>, %arg8: memref<1x1x16x4xbf16, #tpu.memory_space<vmem>>, %arg9: memref<1x16x16x4xbf16, #tpu.memory_space<vmem>>, %arg10: memref<18x18x4xbf16, #tpu.memory_space<vmem>>) attributes {dimension_semantics = [#tpu.dimension_semantics<parallel>, #tpu.dimension_semantics<parallel>], iteration_bounds = array<i64: 2, 1>, scalar_prefetch = 0 : i64, scratch_operands = 1 : i64, tpu.core_type = #tpu.core_type<tc>, window_params = [{pipeline_mode = #tpu.pipeline_mode<synchronous>, transform_indices = @transform_0, window_bounds = array<i64: 3, 3, 4>}, {pipeline_mode = #tpu.pipeline_mode<synchronous>, transform_indices = @transform_1, window_bounds = array<i64: 1, 4>}, {pipeline_mode = #tpu.pipeline_mode<synchronous>, transform_indices = @transform_2, window_bounds = array<i64: 1, 4>}, {pipeline_mode = #tpu.pipeline_mode<synchronous>, transform_indices = @transform_3, window_bounds = array<i64: 4, 4>}, {transform_indices = @transform_4, window_bounds = array<i64: 1, 16, 16, 4>}, {transform_indices = @transform_5, window_bounds = array<i64: 1, 1, 16, 4>}, {transform_indices = @transform_6, window_bounds = array<i64: 1, 1, 16, 4>}, {transform_indices = @transform_7, window_bounds = array<i64: 1, 16, 16, 4>}]} {
    %c0_i32 = arith.constant 0 : i32
    %0 = arith.cmpi sgt, %arg1, %c0_i32 : i32
    %c0 = arith.constant 0 : index
    %c0_0 = arith.constant 0 : index
    %c0_1 = arith.constant 0 : index
    %c0_2 = arith.constant 0 : index
    %1 = vector.load %arg7[%c0, %c0_0, %c0_1, %c0_2] : memref<1x1x16x4xbf16, #tpu.memory_space<vmem>>, vector<1x1x16x4xbf16>
    %2 = vector.shape_cast %1 : vector<1x1x16x4xbf16> to vector<16x4xbf16>
    %cst = arith.constant 0.000000e+00 : bf16
    %3 = vector.broadcast %cst : bf16 to vector<16x4xbf16>
    %4 = arith.select %0, %2, %3 : vector<16x4xbf16>
    %c0_i32_3 = arith.constant 0 : i32
    %5 = arith.cmpi slt, %arg1, %c0_i32_3 : i32
    %c0_4 = arith.constant 0 : index
    %c0_5 = arith.constant 0 : index
    %c0_6 = arith.constant 0 : index
    %c0_7 = arith.constant 0 : index
    %6 = vector.load %arg8[%c0_4, %c0_5, %c0_6, %c0_7] : memref<1x1x16x4xbf16, #tpu.memory_space<vmem>>, vector<1x1x16x4xbf16>
    %7 = vector.shape_cast %6 : vector<1x1x16x4xbf16> to vector<16x4xbf16>
    %cst_8 = arith.constant 0.000000e+00 : bf16
    %8 = vector.broadcast %cst_8 : bf16 to vector<16x4xbf16>
    %9 = arith.select %5, %7, %8 : vector<16x4xbf16>
    %10 = vector.shape_cast %4 : vector<16x4xbf16> to vector<1x16x4xbf16>
    %c0_9 = arith.constant 0 : index
    %c0_10 = arith.constant 0 : index
    %c0_11 = arith.constant 0 : index
    %c0_12 = arith.constant 0 : index
    %11 = vector.load %arg6[%c0_9, %c0_10, %c0_11, %c0_12] : memref<1x16x16x4xbf16, #tpu.memory_space<vmem>>, vector<1x16x16x4xbf16>
    %12 = vector.shape_cast %11 : vector<1x16x16x4xbf16> to vector<16x16x4xbf16>
    %13 = vector.shape_cast %9 : vector<16x4xbf16> to vector<1x16x4xbf16>
    %14 = tpu.concatenate %10, %12, %13 in 0 : vector<1x16x4xbf16>, vector<16x16x4xbf16>, vector<1x16x4xbf16> -> vector<18x16x4xbf16>
    %cst_13 = arith.constant 0.000000e+00 : bf16
    %15 = vector.broadcast %cst_13 : bf16 to vector<18x1x4xbf16>
    %c0_14 = arith.constant 0 : index
    %c0_15 = arith.constant 0 : index
    %c0_16 = arith.constant 0 : index
    %16 = vector.load %arg10[%c0_14, %c0_15, %c0_16] : memref<18x18x4xbf16, #tpu.memory_space<vmem>>, vector<18x1x4xbf16>
    tpu.vector_store %arg10[%c0_14, %c0_15, %c0_16], %15 {strides = array<i32>} : memref<18x18x4xbf16, #tpu.memory_space<vmem>>, vector<18x1x4xbf16>,
    %c0_17 = arith.constant 0 : index
    %c17 = arith.constant 17 : index
    %c0_18 = arith.constant 0 : index
    %17 = vector.load %arg10[%c0_17, %c17, %c0_18] : memref<18x18x4xbf16, #tpu.memory_space<vmem>>, vector<18x1x4xbf16>
    tpu.vector_store %arg10[%c0_17, %c17, %c0_18], %15 {strides = array<i32>} : memref<18x18x4xbf16, #tpu.memory_space<vmem>>, vector<18x1x4xbf16>,
    %c0_19 = arith.constant 0 : index
    %c1 = arith.constant 1 : index
    %c0_20 = arith.constant 0 : index
    %18 = vector.load %arg10[%c0_19, %c1, %c0_20] : memref<18x18x4xbf16, #tpu.memory_space<vmem>>, vector<18x16x4xbf16>
    tpu.vector_store %arg10[%c0_19, %c1, %c0_20], %14 {strides = array<i32>} : memref<18x18x4xbf16, #tpu.memory_space<vmem>>, vector<18x16x4xbf16>,
    %c0_21 = arith.constant 0 : index
    %c0_22 = arith.constant 0 : index
    %c0_23 = arith.constant 0 : index
    %19 = vector.load %arg10[%c0_21, %c0_22, %c0_23] : memref<18x18x4xbf16, #tpu.memory_space<vmem>>, vector<18x16x4xbf16>
    %20 = arith.extf %19 : vector<18x16x4xbf16> to vector<18x16x4xf32>
    %21 = arith.extf %14 : vector<18x16x4xbf16> to vector<18x16x4xf32>
    %c0_24 = arith.constant 0 : index
    %c2 = arith.constant 2 : index
    %c0_25 = arith.constant 0 : index
    %22 = vector.load %arg10[%c0_24, %c2, %c0_25] : memref<18x18x4xbf16, #tpu.memory_space<vmem>>, vector<18x16x4xbf16>
    %23 = arith.extf %22 : vector<18x16x4xbf16> to vector<18x16x4xf32>
    %c0_26 = arith.constant 0 : index
    %c0_27 = arith.constant 0 : index
    %c0_28 = arith.constant 0 : index
    %24 = vector.load %arg2[%c0_26, %c0_27, %c0_28] : memref<3x3x4xf32, #tpu.memory_space<vmem>>, vector<3x3x4xf32>
    %cst_29 = arith.constant 0.000000e+00 : f32
    %25 = vector.broadcast %cst_29 : f32 to vector<16x16x4xf32>
    %26 = vector.extract_strided_slice %20 {offsets = [0, 0, 0], sizes = [16, 16, 4], strides = [1, 1, 1]} : vector<18x16x4xf32> to vector<16x16x4xf32>
    %27 = vector.extract_strided_slice %24 {offsets = [0, 0, 0], sizes = [1, 1, 4], strides = [1, 1, 1]} : vector<3x3x4xf32> to vector<1x1x4xf32>
    %28 = vector.shape_cast %27 : vector<1x1x4xf32> to vector<4xf32>
    %29 = vector.shape_cast %28 : vector<4xf32> to vector<1x1x4xf32>
    %30 = vector.broadcast %29 : vector<1x1x4xf32> to vector<16x16x4xf32>
    %31 = arith.mulf %26, %30 : vector<16x16x4xf32>
    %32 = arith.addf %25, %31 : vector<16x16x4xf32>
    %33 = vector.extract_strided_slice %21 {offsets = [0, 0, 0], sizes = [16, 16, 4], strides = [1, 1, 1]} : vector<18x16x4xf32> to vector<16x16x4xf32>
    %34 = vector.extract_strided_slice %24 {offsets = [0, 1, 0], sizes = [1, 1, 4], strides = [1, 1, 1]} : vector<3x3x4xf32> to vector<1x1x4xf32>
    %35 = vector.shape_cast %34 : vector<1x1x4xf32> to vector<4xf32>
    %36 = vector.shape_cast %35 : vector<4xf32> to vector<1x1x4xf32>
    %37 = vector.broadcast %36 : vector<1x1x4xf32> to vector<16x16x4xf32>
    %38 = arith.mulf %33, %37 : vector<16x16x4xf32>
    %39 = arith.addf %32, %38 : vector<16x16x4xf32>
    %40 = vector.extract_strided_slice %23 {offsets = [0, 0, 0], sizes = [16, 16, 4], strides = [1, 1, 1]} : vector<18x16x4xf32> to vector<16x16x4xf32>
    %41 = vector.extract_strided_slice %24 {offsets = [0, 2, 0], sizes = [1, 1, 4], strides = [1, 1, 1]} : vector<3x3x4xf32> to vector<1x1x4xf32>
    %42 = vector.shape_cast %41 : vector<1x1x4xf32> to vector<4xf32>
    %43 = vector.shape_cast %42 : vector<4xf32> to vector<1x1x4xf32>
    %44 = vector.broadcast %43 : vector<1x1x4xf32> to vector<16x16x4xf32>
    %45 = arith.mulf %40, %44 : vector<16x16x4xf32>
    %46 = arith.addf %39, %45 : vector<16x16x4xf32>
    %47 = vector.extract_strided_slice %20 {offsets = [1, 0, 0], sizes = [16, 16, 4], strides = [1, 1, 1]} : vector<18x16x4xf32> to vector<16x16x4xf32>
    %48 = vector.extract_strided_slice %24 {offsets = [1, 0, 0], sizes = [1, 1, 4], strides = [1, 1, 1]} : vector<3x3x4xf32> to vector<1x1x4xf32>
    %49 = vector.shape_cast %48 : vector<1x1x4xf32> to vector<4xf32>
    %50 = vector.shape_cast %49 : vector<4xf32> to vector<1x1x4xf32>
    %51 = vector.broadcast %50 : vector<1x1x4xf32> to vector<16x16x4xf32>
    %52 = arith.mulf %47, %51 : vector<16x16x4xf32>
    %53 = arith.addf %46, %52 : vector<16x16x4xf32>
    %54 = vector.extract_strided_slice %21 {offsets = [1, 0, 0], sizes = [16, 16, 4], strides = [1, 1, 1]} : vector<18x16x4xf32> to vector<16x16x4xf32>
    %55 = vector.extract_strided_slice %24 {offsets = [1, 1, 0], sizes = [1, 1, 4], strides = [1, 1, 1]} : vector<3x3x4xf32> to vector<1x1x4xf32>
    %56 = vector.shape_cast %55 : vector<1x1x4xf32> to vector<4xf32>
    %57 = vector.shape_cast %56 : vector<4xf32> to vector<1x1x4xf32>
    %58 = vector.broadcast %57 : vector<1x1x4xf32> to vector<16x16x4xf32>
    %59 = arith.mulf %54, %58 : vector<16x16x4xf32>
    %60 = arith.addf %53, %59 : vector<16x16x4xf32>
    %61 = vector.extract_strided_slice %23 {offsets = [1, 0, 0], sizes = [16, 16, 4], strides = [1, 1, 1]} : vector<18x16x4xf32> to vector<16x16x4xf32>
    %62 = vector.extract_strided_slice %24 {offsets = [1, 2, 0], sizes = [1, 1, 4], strides = [1, 1, 1]} : vector<3x3x4xf32> to vector<1x1x4xf32>
    %63 = vector.shape_cast %62 : vector<1x1x4xf32> to vector<4xf32>
    %64 = vector.shape_cast %63 : vector<4xf32> to vector<1x1x4xf32>
    %65 = vector.broadcast %64 : vector<1x1x4xf32> to vector<16x16x4xf32>
    %66 = arith.mulf %61, %65 : vector<16x16x4xf32>
    %67 = arith.addf %60, %66 : vector<16x16x4xf32>
    %68 = vector.extract_strided_slice %20 {offsets = [2, 0, 0], sizes = [16, 16, 4], strides = [1, 1, 1]} : vector<18x16x4xf32> to vector<16x16x4xf32>
    %69 = vector.extract_strided_slice %24 {offsets = [2, 0, 0], sizes = [1, 1, 4], strides = [1, 1, 1]} : vector<3x3x4xf32> to vector<1x1x4xf32>
    %70 = vector.shape_cast %69 : vector<1x1x4xf32> to vector<4xf32>
    %71 = vector.shape_cast %70 : vector<4xf32> to vector<1x1x4xf32>
    %72 = vector.broadcast %71 : vector<1x1x4xf32> to vector<16x16x4xf32>
    %73 = arith.mulf %68, %72 : vector<16x16x4xf32>
    %74 = arith.addf %67, %73 : vector<16x16x4xf32>
    %75 = vector.extract_strided_slice %21 {offsets = [2, 0, 0], sizes = [16, 16, 4], strides = [1, 1, 1]} : vector<18x16x4xf32> to vector<16x16x4xf32>
    %76 = vector.extract_strided_slice %24 {offsets = [2, 1, 0], sizes = [1, 1, 4], strides = [1, 1, 1]} : vector<3x3x4xf32> to vector<1x1x4xf32>
    %77 = vector.shape_cast %76 : vector<1x1x4xf32> to vector<4xf32>
    %78 = vector.shape_cast %77 : vector<4xf32> to vector<1x1x4xf32>
    %79 = vector.broadcast %78 : vector<1x1x4xf32> to vector<16x16x4xf32>
    %80 = arith.mulf %75, %79 : vector<16x16x4xf32>
    %81 = arith.addf %74, %80 : vector<16x16x4xf32>
    %82 = vector.extract_strided_slice %23 {offsets = [2, 0, 0], sizes = [16, 16, 4], strides = [1, 1, 1]} : vector<18x16x4xf32> to vector<16x16x4xf32>
    %83 = vector.extract_strided_slice %24 {offsets = [2, 2, 0], sizes = [1, 1, 4], strides = [1, 1, 1]} : vector<3x3x4xf32> to vector<1x1x4xf32>
    %84 = vector.shape_cast %83 : vector<1x1x4xf32> to vector<4xf32>
    %85 = vector.shape_cast %84 : vector<4xf32> to vector<1x1x4xf32>
    %86 = vector.broadcast %85 : vector<1x1x4xf32> to vector<16x16x4xf32>
    %87 = arith.mulf %82, %86 : vector<16x16x4xf32>
    %88 = arith.addf %81, %87 : vector<16x16x4xf32>
    %c0_30 = arith.constant 0 : index
    %c0_31 = arith.constant 0 : index
    %89 = vector.load %arg3[%c0_30, %c0_31] : memref<1x4xf32, #tpu.memory_space<vmem>>, vector<1x4xf32>
    %90 = vector.shape_cast %89 : vector<1x4xf32> to vector<1x1x4xf32>
    %91 = vector.broadcast %90 : vector<1x1x4xf32> to vector<16x16x4xf32>
    %92 = arith.mulf %88, %91 : vector<16x16x4xf32>
    %c0_32 = arith.constant 0 : index
    %c0_33 = arith.constant 0 : index
    %93 = vector.load %arg4[%c0_32, %c0_33] : memref<1x4xf32, #tpu.memory_space<vmem>>, vector<1x4xf32>
    %94 = vector.shape_cast %93 : vector<1x4xf32> to vector<1x1x4xf32>
    %95 = vector.broadcast %94 : vector<1x1x4xf32> to vector<16x16x4xf32>
    %96 = arith.addf %92, %95 : vector<16x16x4xf32>
    %97 = vector.shape_cast %96 : vector<16x16x4xf32> to vector<256x4xf32>
    %98 = arith.truncf %97 : vector<256x4xf32> to vector<256x4xbf16>
    %c0_34 = arith.constant 0 : index
    %c0_35 = arith.constant 0 : index
    %99 = vector.load %arg5[%c0_34, %c0_35] : memref<4x4xbf16, #tpu.memory_space<vmem>>, vector<4x4xbf16>
    %cst_36 = arith.constant dense<0.000000e+00> : vector<256x4xf32>
    %100 = tpu.matmul %98, %99, %cst_36 {dimension_numbers = #tpu.dot_dimension_numbers<[1], [0], [0], [1], [0, 0, 1, 1], [], []>} : vector<256x4xbf16>, vector<4x4xbf16>, vector<256x4xf32> -> vector<256x4xf32>
    %101 = vector.shape_cast %100 : vector<256x4xf32> to vector<16x16x4xf32>
    %102 = arith.truncf %101 : vector<16x16x4xf32> to vector<16x16x4xbf16>
    %c0_37 = arith.constant 0 : index
    %c0_38 = arith.constant 0 : index
    %c0_39 = arith.constant 0 : index
    %c0_40 = arith.constant 0 : index
    %103 = vector.load %arg9[%c0_37, %c0_38, %c0_39, %c0_40] : memref<1x16x16x4xbf16, #tpu.memory_space<vmem>>, vector<1x16x16x4xbf16>
    %104 = vector.shape_cast %103 : vector<1x16x16x4xbf16> to vector<16x16x4xbf16>
    %105 = vector.shape_cast %102 : vector<16x16x4xbf16> to vector<1x16x16x4xbf16>
    tpu.vector_store %arg9[%c0_37, %c0_38, %c0_39, %c0_40], %105 {strides = array<i32>} : memref<1x16x16x4xbf16, #tpu.memory_space<vmem>>, vector<1x16x16x4xbf16>,
    return
  }
  func.func @transform_0(%arg0: i32, %arg1: i32) -> (i32, i32, i32) {
    %c0_i32 = arith.constant 0 : i32
    %c0_i32_0 = arith.constant 0 : i32
    %c0_i32_1 = arith.constant 0 : i32
    %c0_i32_2 = arith.constant 0 : i32
    return %c0_i32, %c0_i32_0, %c0_i32_1 : i32, i32, i32
  }
  func.func @transform_1(%arg0: i32, %arg1: i32) -> (i32, i32) {
    %c0_i32 = arith.constant 0 : i32
    %c0_i32_0 = arith.constant 0 : i32
    %c0_i32_1 = arith.constant 0 : i32
    return %c0_i32, %c0_i32_0 : i32, i32
  }
  func.func @transform_2(%arg0: i32, %arg1: i32) -> (i32, i32) {
    %c0_i32 = arith.constant 0 : i32
    %c0_i32_0 = arith.constant 0 : i32
    %c0_i32_1 = arith.constant 0 : i32
    return %c0_i32, %c0_i32_0 : i32, i32
  }
  func.func @transform_3(%arg0: i32, %arg1: i32) -> (i32, i32) {
    %c0_i32 = arith.constant 0 : i32
    %c0_i32_0 = arith.constant 0 : i32
    %c0_i32_1 = arith.constant 0 : i32
    return %c0_i32, %c0_i32_0 : i32, i32
  }
  func.func @transform_4(%arg0: i32, %arg1: i32) -> (i32, i32, i32, i32) {
    %c0_i32 = arith.constant 0 : i32
    %c0_i32_0 = arith.constant 0 : i32
    %c0_i32_1 = arith.constant 0 : i32
    return %arg0, %arg1, %c0_i32, %c0_i32_0 : i32, i32, i32, i32
  }
  func.func @transform_5(%arg0: i32, %arg1: i32) -> (i32, i32, i32, i32) {
    %c16_i32 = arith.constant 16 : i32
    %0 = arith.muli %arg1, %c16_i32 : i32
    %c1_i32 = arith.constant 1 : i32
    %1 = arith.subi %0, %c1_i32 : i32
    %c0_i32 = arith.constant 0 : i32
    %2 = arith.maxsi %1, %c0_i32 : i32
    %c0_i32_0 = arith.constant 0 : i32
    %c0_i32_1 = arith.constant 0 : i32
    %c0_i32_2 = arith.constant 0 : i32
    return %arg0, %2, %c0_i32_0, %c0_i32_1 : i32, i32, i32, i32
  }
  func.func @transform_6(%arg0: i32, %arg1: i32) -> (i32, i32, i32, i32) {
    %c1_i32 = arith.constant 1 : i32
    %0 = arith.addi %arg1, %c1_i32 : i32
    %c16_i32 = arith.constant 16 : i32
    %1 = arith.muli %0, %c16_i32 : i32
    %c15_i32 = arith.constant 15 : i32
    %2 = arith.minsi %1, %c15_i32 : i32
    %c0_i32 = arith.constant 0 : i32
    %c0_i32_0 = arith.constant 0 : i32
    %c0_i32_1 = arith.constant 0 : i32
    return %arg0, %2, %c0_i32, %c0_i32_0 : i32, i32, i32, i32
  }
  func.func @transform_7(%arg0: i32, %arg1: i32) -> (i32, i32, i32, i32) {
    %c0_i32 = arith.constant 0 : i32
    %c0_i32_0 = arith.constant 0 : i32
    %c0_i32_1 = arith.constant 0 : i32
    return %arg0, %arg1, %c0_i32, %c0_i32_0 : i32, i32, i32, i32
  }
}

module attributes {stable_mosaic.version = 11 : i64} {
  func.func @upsample_kernel(%arg0: i32, %arg1: memref<1x4x4x4xbf16, #tpu.memory_space<vmem>>, %arg2: memref<16x4xbf16, #tpu.memory_space<vmem>>, %arg3: memref<1x16x16x4xbf16, #tpu.memory_space<vmem>>) attributes {dimension_semantics = [#tpu.dimension_semantics<parallel>], iteration_bounds = array<i64: 4>, scalar_prefetch = 0 : i64, scratch_operands = 0 : i64, tpu.core_type = #tpu.core_type<tc>, window_params = [{transform_indices = @transform_0, window_bounds = array<i64: 1, 4, 4, 4>}, {pipeline_mode = #tpu.pipeline_mode<synchronous>, transform_indices = @transform_1, window_bounds = array<i64: 16, 4>}, {transform_indices = @transform_2, window_bounds = array<i64: 1, 16, 16, 4>}]} {
    %c0 = arith.constant 0 : index
    %c0_0 = arith.constant 0 : index
    %c0_1 = arith.constant 0 : index
    %c0_2 = arith.constant 0 : index
    %0 = vector.load %arg1[%c0, %c0_0, %c0_1, %c0_2] : memref<1x4x4x4xbf16, #tpu.memory_space<vmem>>, vector<1x4x4x4xbf16>
    %1 = vector.shape_cast %0 : vector<1x4x4x4xbf16> to vector<4x4x4xbf16>
    %2 = arith.extf %1 : vector<4x4x4xbf16> to vector<4x4x4xf32>
    %3 = vector.extract_strided_slice %2 {offsets = [0, 0, 0], sizes = [1, 4, 4], strides = [1, 1, 1]} : vector<4x4x4xf32> to vector<1x4x4xf32>
    %4 = vector.shape_cast %3 : vector<1x4x4xf32> to vector<4x4xf32>
    %cst = arith.constant 1.000000e+00 : f32
    %5 = vector.broadcast %cst : f32 to vector<4x4xf32>
    %6 = arith.mulf %5, %4 : vector<4x4xf32>
    %7 = vector.extract_strided_slice %2 {offsets = [1, 0, 0], sizes = [1, 4, 4], strides = [1, 1, 1]} : vector<4x4x4xf32> to vector<1x4x4xf32>
    %8 = vector.shape_cast %7 : vector<1x4x4xf32> to vector<4x4xf32>
    %cst_3 = arith.constant 0.000000e+00 : f32
    %9 = vector.broadcast %cst_3 : f32 to vector<4x4xf32>
    %10 = arith.mulf %9, %8 : vector<4x4xf32>
    %11 = arith.addf %6, %10 : vector<4x4xf32>
    %12 = vector.extract_strided_slice %2 {offsets = [0, 0, 0], sizes = [1, 4, 4], strides = [1, 1, 1]} : vector<4x4x4xf32> to vector<1x4x4xf32>
    %13 = vector.shape_cast %12 : vector<1x4x4xf32> to vector<4x4xf32>
    %cst_4 = arith.constant 8.000000e-01 : f32
    %14 = vector.broadcast %cst_4 : f32 to vector<4x4xf32>
    %15 = arith.mulf %14, %13 : vector<4x4xf32>
    %16 = vector.extract_strided_slice %2 {offsets = [1, 0, 0], sizes = [1, 4, 4], strides = [1, 1, 1]} : vector<4x4x4xf32> to vector<1x4x4xf32>
    %17 = vector.shape_cast %16 : vector<1x4x4xf32> to vector<4x4xf32>
    %cst_5 = arith.constant 2.000000e-01 : f32
    %18 = vector.broadcast %cst_5 : f32 to vector<4x4xf32>
    %19 = arith.mulf %18, %17 : vector<4x4xf32>
    %20 = arith.addf %15, %19 : vector<4x4xf32>
    %21 = vector.extract_strided_slice %2 {offsets = [0, 0, 0], sizes = [1, 4, 4], strides = [1, 1, 1]} : vector<4x4x4xf32> to vector<1x4x4xf32>
    %22 = vector.shape_cast %21 : vector<1x4x4xf32> to vector<4x4xf32>
    %cst_6 = arith.constant 6.000000e-01 : f32
    %23 = vector.broadcast %cst_6 : f32 to vector<4x4xf32>
    %24 = arith.mulf %23, %22 : vector<4x4xf32>
    %25 = vector.extract_strided_slice %2 {offsets = [1, 0, 0], sizes = [1, 4, 4], strides = [1, 1, 1]} : vector<4x4x4xf32> to vector<1x4x4xf32>
    %26 = vector.shape_cast %25 : vector<1x4x4xf32> to vector<4x4xf32>
    %cst_7 = arith.constant 4.000000e-01 : f32
    %27 = vector.broadcast %cst_7 : f32 to vector<4x4xf32>
    %28 = arith.mulf %27, %26 : vector<4x4xf32>
    %29 = arith.addf %24, %28 : vector<4x4xf32>
    %30 = vector.extract_strided_slice %2 {offsets = [0, 0, 0], sizes = [1, 4, 4], strides = [1, 1, 1]} : vector<4x4x4xf32> to vector<1x4x4xf32>
    %31 = vector.shape_cast %30 : vector<1x4x4xf32> to vector<4x4xf32>
    %cst_8 = arith.constant 4.000000e-01 : f32
    %32 = vector.broadcast %cst_8 : f32 to vector<4x4xf32>
    %33 = arith.mulf %32, %31 : vector<4x4xf32>
    %34 = vector.extract_strided_slice %2 {offsets = [1, 0, 0], sizes = [1, 4, 4], strides = [1, 1, 1]} : vector<4x4x4xf32> to vector<1x4x4xf32>
    %35 = vector.shape_cast %34 : vector<1x4x4xf32> to vector<4x4xf32>
    %cst_9 = arith.constant 6.000000e-01 : f32
    %36 = vector.broadcast %cst_9 : f32 to vector<4x4xf32>
    %37 = arith.mulf %36, %35 : vector<4x4xf32>
    %38 = arith.addf %33, %37 : vector<4x4xf32>
    %39 = vector.extract_strided_slice %2 {offsets = [0, 0, 0], sizes = [1, 4, 4], strides = [1, 1, 1]} : vector<4x4x4xf32> to vector<1x4x4xf32>
    %40 = vector.shape_cast %39 : vector<1x4x4xf32> to vector<4x4xf32>
    %cst_10 = arith.constant 2.000000e-01 : f32
    %41 = vector.broadcast %cst_10 : f32 to vector<4x4xf32>
    %42 = arith.mulf %41, %40 : vector<4x4xf32>
    %43 = vector.extract_strided_slice %2 {offsets = [1, 0, 0], sizes = [1, 4, 4], strides = [1, 1, 1]} : vector<4x4x4xf32> to vector<1x4x4xf32>
    %44 = vector.shape_cast %43 : vector<1x4x4xf32> to vector<4x4xf32>
    %cst_11 = arith.constant 8.000000e-01 : f32
    %45 = vector.broadcast %cst_11 : f32 to vector<4x4xf32>
    %46 = arith.mulf %45, %44 : vector<4x4xf32>
    %47 = arith.addf %42, %46 : vector<4x4xf32>
    %48 = vector.extract_strided_slice %2 {offsets = [1, 0, 0], sizes = [1, 4, 4], strides = [1, 1, 1]} : vector<4x4x4xf32> to vector<1x4x4xf32>
    %49 = vector.shape_cast %48 : vector<1x4x4xf32> to vector<4x4xf32>
    %cst_12 = arith.constant 1.000000e+00 : f32
    %50 = vector.broadcast %cst_12 : f32 to vector<4x4xf32>
    %51 = arith.mulf %50, %49 : vector<4x4xf32>
    %52 = vector.extract_strided_slice %2 {offsets = [2, 0, 0], sizes = [1, 4, 4], strides = [1, 1, 1]} : vector<4x4x4xf32> to vector<1x4x4xf32>
    %53 = vector.shape_cast %52 : vector<1x4x4xf32> to vector<4x4xf32>
    %cst_13 = arith.constant 0.000000e+00 : f32
    %54 = vector.broadcast %cst_13 : f32 to vector<4x4xf32>
    %55 = arith.mulf %54, %53 : vector<4x4xf32>
    %56 = arith.addf %51, %55 : vector<4x4xf32>
    %57 = vector.extract_strided_slice %2 {offsets = [1, 0, 0], sizes = [1, 4, 4], strides = [1, 1, 1]} : vector<4x4x4xf32> to vector<1x4x4xf32>
    %58 = vector.shape_cast %57 : vector<1x4x4xf32> to vector<4x4xf32>
    %cst_14 = arith.constant 8.000000e-01 : f32
    %59 = vector.broadcast %cst_14 : f32 to vector<4x4xf32>
    %60 = arith.mulf %59, %58 : vector<4x4xf32>
    %61 = vector.extract_strided_slice %2 {offsets = [2, 0, 0], sizes = [1, 4, 4], strides = [1, 1, 1]} : vector<4x4x4xf32> to vector<1x4x4xf32>
    %62 = vector.shape_cast %61 : vector<1x4x4xf32> to vector<4x4xf32>
    %cst_15 = arith.constant 2.000000e-01 : f32
    %63 = vector.broadcast %cst_15 : f32 to vector<4x4xf32>
    %64 = arith.mulf %63, %62 : vector<4x4xf32>
    %65 = arith.addf %60, %64 : vector<4x4xf32>
    %66 = vector.extract_strided_slice %2 {offsets = [1, 0, 0], sizes = [1, 4, 4], strides = [1, 1, 1]} : vector<4x4x4xf32> to vector<1x4x4xf32>
    %67 = vector.shape_cast %66 : vector<1x4x4xf32> to vector<4x4xf32>
    %cst_16 = arith.constant 6.000000e-01 : f32
    %68 = vector.broadcast %cst_16 : f32 to vector<4x4xf32>
    %69 = arith.mulf %68, %67 : vector<4x4xf32>
    %70 = vector.extract_strided_slice %2 {offsets = [2, 0, 0], sizes = [1, 4, 4], strides = [1, 1, 1]} : vector<4x4x4xf32> to vector<1x4x4xf32>
    %71 = vector.shape_cast %70 : vector<1x4x4xf32> to vector<4x4xf32>
    %cst_17 = arith.constant 4.000000e-01 : f32
    %72 = vector.broadcast %cst_17 : f32 to vector<4x4xf32>
    %73 = arith.mulf %72, %71 : vector<4x4xf32>
    %74 = arith.addf %69, %73 : vector<4x4xf32>
    %75 = vector.extract_strided_slice %2 {offsets = [1, 0, 0], sizes = [1, 4, 4], strides = [1, 1, 1]} : vector<4x4x4xf32> to vector<1x4x4xf32>
    %76 = vector.shape_cast %75 : vector<1x4x4xf32> to vector<4x4xf32>
    %cst_18 = arith.constant 4.000000e-01 : f32
    %77 = vector.broadcast %cst_18 : f32 to vector<4x4xf32>
    %78 = arith.mulf %77, %76 : vector<4x4xf32>
    %79 = vector.extract_strided_slice %2 {offsets = [2, 0, 0], sizes = [1, 4, 4], strides = [1, 1, 1]} : vector<4x4x4xf32> to vector<1x4x4xf32>
    %80 = vector.shape_cast %79 : vector<1x4x4xf32> to vector<4x4xf32>
    %cst_19 = arith.constant 6.000000e-01 : f32
    %81 = vector.broadcast %cst_19 : f32 to vector<4x4xf32>
    %82 = arith.mulf %81, %80 : vector<4x4xf32>
    %83 = arith.addf %78, %82 : vector<4x4xf32>
    %84 = vector.extract_strided_slice %2 {offsets = [1, 0, 0], sizes = [1, 4, 4], strides = [1, 1, 1]} : vector<4x4x4xf32> to vector<1x4x4xf32>
    %85 = vector.shape_cast %84 : vector<1x4x4xf32> to vector<4x4xf32>
    %cst_20 = arith.constant 2.000000e-01 : f32
    %86 = vector.broadcast %cst_20 : f32 to vector<4x4xf32>
    %87 = arith.mulf %86, %85 : vector<4x4xf32>
    %88 = vector.extract_strided_slice %2 {offsets = [2, 0, 0], sizes = [1, 4, 4], strides = [1, 1, 1]} : vector<4x4x4xf32> to vector<1x4x4xf32>
    %89 = vector.shape_cast %88 : vector<1x4x4xf32> to vector<4x4xf32>
    %cst_21 = arith.constant 8.000000e-01 : f32
    %90 = vector.broadcast %cst_21 : f32 to vector<4x4xf32>
    %91 = arith.mulf %90, %89 : vector<4x4xf32>
    %92 = arith.addf %87, %91 : vector<4x4xf32>
    %93 = vector.extract_strided_slice %2 {offsets = [2, 0, 0], sizes = [1, 4, 4], strides = [1, 1, 1]} : vector<4x4x4xf32> to vector<1x4x4xf32>
    %94 = vector.shape_cast %93 : vector<1x4x4xf32> to vector<4x4xf32>
    %cst_22 = arith.constant 1.000000e+00 : f32
    %95 = vector.broadcast %cst_22 : f32 to vector<4x4xf32>
    %96 = arith.mulf %95, %94 : vector<4x4xf32>
    %97 = vector.extract_strided_slice %2 {offsets = [3, 0, 0], sizes = [1, 4, 4], strides = [1, 1, 1]} : vector<4x4x4xf32> to vector<1x4x4xf32>
    %98 = vector.shape_cast %97 : vector<1x4x4xf32> to vector<4x4xf32>
    %cst_23 = arith.constant 0.000000e+00 : f32
    %99 = vector.broadcast %cst_23 : f32 to vector<4x4xf32>
    %100 = arith.mulf %99, %98 : vector<4x4xf32>
    %101 = arith.addf %96, %100 : vector<4x4xf32>
    %102 = vector.extract_strided_slice %2 {offsets = [2, 0, 0], sizes = [1, 4, 4], strides = [1, 1, 1]} : vector<4x4x4xf32> to vector<1x4x4xf32>
    %103 = vector.shape_cast %102 : vector<1x4x4xf32> to vector<4x4xf32>
    %cst_24 = arith.constant 8.000000e-01 : f32
    %104 = vector.broadcast %cst_24 : f32 to vector<4x4xf32>
    %105 = arith.mulf %104, %103 : vector<4x4xf32>
    %106 = vector.extract_strided_slice %2 {offsets = [3, 0, 0], sizes = [1, 4, 4], strides = [1, 1, 1]} : vector<4x4x4xf32> to vector<1x4x4xf32>
    %107 = vector.shape_cast %106 : vector<1x4x4xf32> to vector<4x4xf32>
    %cst_25 = arith.constant 2.000000e-01 : f32
    %108 = vector.broadcast %cst_25 : f32 to vector<4x4xf32>
    %109 = arith.mulf %108, %107 : vector<4x4xf32>
    %110 = arith.addf %105, %109 : vector<4x4xf32>
    %111 = vector.extract_strided_slice %2 {offsets = [2, 0, 0], sizes = [1, 4, 4], strides = [1, 1, 1]} : vector<4x4x4xf32> to vector<1x4x4xf32>
    %112 = vector.shape_cast %111 : vector<1x4x4xf32> to vector<4x4xf32>
    %cst_26 = arith.constant 6.000000e-01 : f32
    %113 = vector.broadcast %cst_26 : f32 to vector<4x4xf32>
    %114 = arith.mulf %113, %112 : vector<4x4xf32>
    %115 = vector.extract_strided_slice %2 {offsets = [3, 0, 0], sizes = [1, 4, 4], strides = [1, 1, 1]} : vector<4x4x4xf32> to vector<1x4x4xf32>
    %116 = vector.shape_cast %115 : vector<1x4x4xf32> to vector<4x4xf32>
    %cst_27 = arith.constant 4.000000e-01 : f32
    %117 = vector.broadcast %cst_27 : f32 to vector<4x4xf32>
    %118 = arith.mulf %117, %116 : vector<4x4xf32>
    %119 = arith.addf %114, %118 : vector<4x4xf32>
    %120 = vector.extract_strided_slice %2 {offsets = [2, 0, 0], sizes = [1, 4, 4], strides = [1, 1, 1]} : vector<4x4x4xf32> to vector<1x4x4xf32>
    %121 = vector.shape_cast %120 : vector<1x4x4xf32> to vector<4x4xf32>
    %cst_28 = arith.constant 4.000000e-01 : f32
    %122 = vector.broadcast %cst_28 : f32 to vector<4x4xf32>
    %123 = arith.mulf %122, %121 : vector<4x4xf32>
    %124 = vector.extract_strided_slice %2 {offsets = [3, 0, 0], sizes = [1, 4, 4], strides = [1, 1, 1]} : vector<4x4x4xf32> to vector<1x4x4xf32>
    %125 = vector.shape_cast %124 : vector<1x4x4xf32> to vector<4x4xf32>
    %cst_29 = arith.constant 6.000000e-01 : f32
    %126 = vector.broadcast %cst_29 : f32 to vector<4x4xf32>
    %127 = arith.mulf %126, %125 : vector<4x4xf32>
    %128 = arith.addf %123, %127 : vector<4x4xf32>
    %129 = vector.extract_strided_slice %2 {offsets = [2, 0, 0], sizes = [1, 4, 4], strides = [1, 1, 1]} : vector<4x4x4xf32> to vector<1x4x4xf32>
    %130 = vector.shape_cast %129 : vector<1x4x4xf32> to vector<4x4xf32>
    %cst_30 = arith.constant 2.000000e-01 : f32
    %131 = vector.broadcast %cst_30 : f32 to vector<4x4xf32>
    %132 = arith.mulf %131, %130 : vector<4x4xf32>
    %133 = vector.extract_strided_slice %2 {offsets = [3, 0, 0], sizes = [1, 4, 4], strides = [1, 1, 1]} : vector<4x4x4xf32> to vector<1x4x4xf32>
    %134 = vector.shape_cast %133 : vector<1x4x4xf32> to vector<4x4xf32>
    %cst_31 = arith.constant 8.000000e-01 : f32
    %135 = vector.broadcast %cst_31 : f32 to vector<4x4xf32>
    %136 = arith.mulf %135, %134 : vector<4x4xf32>
    %137 = arith.addf %132, %136 : vector<4x4xf32>
    %138 = vector.extract_strided_slice %2 {offsets = [2, 0, 0], sizes = [1, 4, 4], strides = [1, 1, 1]} : vector<4x4x4xf32> to vector<1x4x4xf32>
    %139 = vector.shape_cast %138 : vector<1x4x4xf32> to vector<4x4xf32>
    %cst_32 = arith.constant 0.000000e+00 : f32
    %140 = vector.broadcast %cst_32 : f32 to vector<4x4xf32>
    %141 = arith.mulf %140, %139 : vector<4x4xf32>
    %142 = vector.extract_strided_slice %2 {offsets = [3, 0, 0], sizes = [1, 4, 4], strides = [1, 1, 1]} : vector<4x4x4xf32> to vector<1x4x4xf32>
    %143 = vector.shape_cast %142 : vector<1x4x4xf32> to vector<4x4xf32>
    %cst_33 = arith.constant 1.000000e+00 : f32
    %144 = vector.broadcast %cst_33 : f32 to vector<4x4xf32>
    %145 = arith.mulf %144, %143 : vector<4x4xf32>
    %146 = arith.addf %141, %145 : vector<4x4xf32>
    %147 = vector.shape_cast %11 : vector<4x4xf32> to vector<1x4x4xf32>
    %148 = vector.shape_cast %20 : vector<4x4xf32> to vector<1x4x4xf32>
    %149 = vector.shape_cast %29 : vector<4x4xf32> to vector<1x4x4xf32>
    %150 = vector.shape_cast %38 : vector<4x4xf32> to vector<1x4x4xf32>
    %151 = vector.shape_cast %47 : vector<4x4xf32> to vector<1x4x4xf32>
    %152 = vector.shape_cast %56 : vector<4x4xf32> to vector<1x4x4xf32>
    %153 = vector.shape_cast %65 : vector<4x4xf32> to vector<1x4x4xf32>
    %154 = vector.shape_cast %74 : vector<4x4xf32> to vector<1x4x4xf32>
    %155 = vector.shape_cast %83 : vector<4x4xf32> to vector<1x4x4xf32>
    %156 = vector.shape_cast %92 : vector<4x4xf32> to vector<1x4x4xf32>
    %157 = vector.shape_cast %101 : vector<4x4xf32> to vector<1x4x4xf32>
    %158 = vector.shape_cast %110 : vector<4x4xf32> to vector<1x4x4xf32>
    %159 = vector.shape_cast %119 : vector<4x4xf32> to vector<1x4x4xf32>
    %160 = vector.shape_cast %128 : vector<4x4xf32> to vector<1x4x4xf32>
    %161 = vector.shape_cast %137 : vector<4x4xf32> to vector<1x4x4xf32>
    %162 = vector.shape_cast %146 : vector<4x4xf32> to vector<1x4x4xf32>
    %163 = tpu.concatenate %147, %148, %149, %150, %151, %152, %153, %154, %155, %156, %157, %158, %159, %160, %161, %162 in 0 : vector<1x4x4xf32>, vector<1x4x4xf32>, vector<1x4x4xf32>, vector<1x4x4xf32>, vector<1x4x4xf32>, vector<1x4x4xf32>, vector<1x4x4xf32>, vector<1x4x4xf32>, vector<1x4x4xf32>, vector<1x4x4xf32>, vector<1x4x4xf32>, vector<1x4x4xf32>, vector<1x4x4xf32>, vector<1x4x4xf32>, vector<1x4x4xf32>, vector<1x4x4xf32> -> vector<16x4x4xf32>
    %164 = arith.truncf %163 : vector<16x4x4xf32> to vector<16x4x4xbf16>
    %c0_34 = arith.constant 0 : index
    %c0_35 = arith.constant 0 : index
    %165 = vector.load %arg2[%c0_34, %c0_35] : memref<16x4xbf16, #tpu.memory_space<vmem>>, vector<16x4xbf16>
    %166 = vector.shape_cast %165 : vector<16x4xbf16> to vector<1x16x4xbf16>
    %167 = vector.shape_cast %166 : vector<1x16x4xbf16> to vector<1x16x4xbf16>
    %168 = vector.broadcast %167 : vector<1x16x4xbf16> to vector<16x16x4xbf16>
    %cst_36 = arith.constant dense<0.000000e+00> : vector<16x16x4xf32>
    %169 = tpu.matmul %168, %164, %cst_36 {dimension_numbers = #tpu.dot_dimension_numbers<[2], [1], [1], [2], [0, 0, 0, 1, 1, 2], [0], [0]>} : vector<16x16x4xbf16>, vector<16x4x4xbf16>, vector<16x16x4xf32> -> vector<16x16x4xf32>
    %170 = arith.truncf %169 : vector<16x16x4xf32> to vector<16x16x4xbf16>
    %c0_37 = arith.constant 0 : index
    %c0_38 = arith.constant 0 : index
    %c0_39 = arith.constant 0 : index
    %c0_40 = arith.constant 0 : index
    %171 = vector.load %arg3[%c0_37, %c0_38, %c0_39, %c0_40] : memref<1x16x16x4xbf16, #tpu.memory_space<vmem>>, vector<1x16x16x4xbf16>
    %172 = vector.shape_cast %171 : vector<1x16x16x4xbf16> to vector<16x16x4xbf16>
    %173 = vector.shape_cast %170 : vector<16x16x4xbf16> to vector<1x16x16x4xbf16>
    tpu.vector_store %arg3[%c0_37, %c0_38, %c0_39, %c0_40], %173 {strides = array<i32>} : memref<1x16x16x4xbf16, #tpu.memory_space<vmem>>, vector<1x16x16x4xbf16>,
    return
  }
  func.func @transform_0(%arg0: i32) -> (i32, i32, i32, i32) {
    %c0_i32 = arith.constant 0 : i32
    %c0_i32_0 = arith.constant 0 : i32
    %c0_i32_1 = arith.constant 0 : i32
    %c0_i32_2 = arith.constant 0 : i32
    return %arg0, %c0_i32, %c0_i32_0, %c0_i32_1 : i32, i32, i32, i32
  }
  func.func @transform_1(%arg0: i32) -> (i32, i32) {
    %c0_i32 = arith.constant 0 : i32
    %c0_i32_0 = arith.constant 0 : i32
    %c0_i32_1 = arith.constant 0 : i32
    return %c0_i32, %c0_i32_0 : i32, i32
  }
  func.func @transform_2(%arg0: i32) -> (i32, i32, i32, i32) {
    %c0_i32 = arith.constant 0 : i32
    %c0_i32_0 = arith.constant 0 : i32
    %c0_i32_1 = arith.constant 0 : i32
    %c0_i32_2 = arith.constant 0 : i32
    return %arg0, %c0_i32, %c0_i32_0, %c0_i32_1 : i32, i32, i32, i32
  }
}

module attributes {stable_mosaic.version = 11 : i64} {
  func.func @conv3x3_kernel(%arg0: i32, %arg1: i32, %arg2: memref<3x12x4xbf16, #tpu.memory_space<vmem>>, %arg3: memref<1x4xf32, #tpu.memory_space<vmem>>, %arg4: memref<1x4xf32, #tpu.memory_space<vmem>>, %arg5: memref<1x16x16x4xbf16, #tpu.memory_space<vmem>>, %arg6: memref<1x1x16x4xbf16, #tpu.memory_space<vmem>>, %arg7: memref<1x1x16x4xbf16, #tpu.memory_space<vmem>>, %arg8: memref<1x16x16x4xbf16, #tpu.memory_space<vmem>>, %arg9: memref<1x1x16x4xbf16, #tpu.memory_space<vmem>>, %arg10: memref<1x1x16x4xbf16, #tpu.memory_space<vmem>>, %arg11: memref<1x16x16x4xbf16, #tpu.memory_space<vmem>>, %arg12: memref<1x1x16x4xbf16, #tpu.memory_space<vmem>>, %arg13: memref<1x1x16x4xbf16, #tpu.memory_space<vmem>>, %arg14: memref<1x16x16x4xf32, #tpu.memory_space<vmem>>, %arg15: memref<18x16x12xbf16, #tpu.memory_space<vmem>>) attributes {dimension_semantics = [#tpu.dimension_semantics<parallel>, #tpu.dimension_semantics<parallel>], iteration_bounds = array<i64: 2, 1>, scalar_prefetch = 0 : i64, scratch_operands = 1 : i64, tpu.core_type = #tpu.core_type<tc>, window_params = [{pipeline_mode = #tpu.pipeline_mode<synchronous>, transform_indices = @transform_0, window_bounds = array<i64: 3, 12, 4>}, {pipeline_mode = #tpu.pipeline_mode<synchronous>, transform_indices = @transform_1, window_bounds = array<i64: 1, 4>}, {pipeline_mode = #tpu.pipeline_mode<synchronous>, transform_indices = @transform_2, window_bounds = array<i64: 1, 4>}, {transform_indices = @transform_3, window_bounds = array<i64: 1, 16, 16, 4>}, {transform_indices = @transform_4, window_bounds = array<i64: 1, 1, 16, 4>}, {transform_indices = @transform_5, window_bounds = array<i64: 1, 1, 16, 4>}, {transform_indices = @transform_6, window_bounds = array<i64: 1, 16, 16, 4>}, {transform_indices = @transform_7, window_bounds = array<i64: 1, 1, 16, 4>}, {transform_indices = @transform_8, window_bounds = array<i64: 1, 1, 16, 4>}, {transform_indices = @transform_9, window_bounds = array<i64: 1, 16, 16, 4>}, {transform_indices = @transform_10, window_bounds = array<i64: 1, 1, 16, 4>}, {transform_indices = @transform_11, window_bounds = array<i64: 1, 1, 16, 4>}, {transform_indices = @transform_12, window_bounds = array<i64: 1, 16, 16, 4>}]} {
    %c0_i32 = arith.constant 0 : i32
    %0 = arith.cmpi sgt, %arg1, %c0_i32 : i32
    %c0 = arith.constant 0 : index
    %c0_0 = arith.constant 0 : index
    %c0_1 = arith.constant 0 : index
    %c0_2 = arith.constant 0 : index
    %1 = vector.load %arg6[%c0, %c0_0, %c0_1, %c0_2] : memref<1x1x16x4xbf16, #tpu.memory_space<vmem>>, vector<1x1x16x4xbf16>
    %2 = vector.shape_cast %1 : vector<1x1x16x4xbf16> to vector<16x4xbf16>
    %cst = arith.constant 0.000000e+00 : bf16
    %3 = vector.broadcast %cst : bf16 to vector<16x4xbf16>
    %4 = arith.select %0, %2, %3 : vector<16x4xbf16>
    %c0_i32_3 = arith.constant 0 : i32
    %5 = arith.cmpi slt, %arg1, %c0_i32_3 : i32
    %c0_4 = arith.constant 0 : index
    %c0_5 = arith.constant 0 : index
    %c0_6 = arith.constant 0 : index
    %c0_7 = arith.constant 0 : index
    %6 = vector.load %arg7[%c0_4, %c0_5, %c0_6, %c0_7] : memref<1x1x16x4xbf16, #tpu.memory_space<vmem>>, vector<1x1x16x4xbf16>
    %7 = vector.shape_cast %6 : vector<1x1x16x4xbf16> to vector<16x4xbf16>
    %cst_8 = arith.constant 0.000000e+00 : bf16
    %8 = vector.broadcast %cst_8 : bf16 to vector<16x4xbf16>
    %9 = arith.select %5, %7, %8 : vector<16x4xbf16>
    %10 = vector.shape_cast %4 : vector<16x4xbf16> to vector<1x16x4xbf16>
    %c0_9 = arith.constant 0 : index
    %c0_10 = arith.constant 0 : index
    %c0_11 = arith.constant 0 : index
    %c0_12 = arith.constant 0 : index
    %11 = vector.load %arg5[%c0_9, %c0_10, %c0_11, %c0_12] : memref<1x16x16x4xbf16, #tpu.memory_space<vmem>>, vector<1x16x16x4xbf16>
    %12 = vector.shape_cast %11 : vector<1x16x16x4xbf16> to vector<16x16x4xbf16>
    %13 = vector.shape_cast %9 : vector<16x4xbf16> to vector<1x16x4xbf16>
    %14 = tpu.concatenate %10, %12, %13 in 0 : vector<1x16x4xbf16>, vector<16x16x4xbf16>, vector<1x16x4xbf16> -> vector<18x16x4xbf16>
    %15 = arith.extf %14 : vector<18x16x4xbf16> to vector<18x16x4xf32>
    %c0_i32_13 = arith.constant 0 : i32
    %16 = arith.cmpi sgt, %arg1, %c0_i32_13 : i32
    %c0_14 = arith.constant 0 : index
    %c0_15 = arith.constant 0 : index
    %c0_16 = arith.constant 0 : index
    %c0_17 = arith.constant 0 : index
    %17 = vector.load %arg9[%c0_14, %c0_15, %c0_16, %c0_17] : memref<1x1x16x4xbf16, #tpu.memory_space<vmem>>, vector<1x1x16x4xbf16>
    %18 = vector.shape_cast %17 : vector<1x1x16x4xbf16> to vector<16x4xbf16>
    %cst_18 = arith.constant 0.000000e+00 : bf16
    %19 = vector.broadcast %cst_18 : bf16 to vector<16x4xbf16>
    %20 = arith.select %16, %18, %19 : vector<16x4xbf16>
    %c0_i32_19 = arith.constant 0 : i32
    %21 = arith.cmpi slt, %arg1, %c0_i32_19 : i32
    %c0_20 = arith.constant 0 : index
    %c0_21 = arith.constant 0 : index
    %c0_22 = arith.constant 0 : index
    %c0_23 = arith.constant 0 : index
    %22 = vector.load %arg10[%c0_20, %c0_21, %c0_22, %c0_23] : memref<1x1x16x4xbf16, #tpu.memory_space<vmem>>, vector<1x1x16x4xbf16>
    %23 = vector.shape_cast %22 : vector<1x1x16x4xbf16> to vector<16x4xbf16>
    %cst_24 = arith.constant 0.000000e+00 : bf16
    %24 = vector.broadcast %cst_24 : bf16 to vector<16x4xbf16>
    %25 = arith.select %21, %23, %24 : vector<16x4xbf16>
    %26 = vector.shape_cast %20 : vector<16x4xbf16> to vector<1x16x4xbf16>
    %c0_25 = arith.constant 0 : index
    %c0_26 = arith.constant 0 : index
    %c0_27 = arith.constant 0 : index
    %c0_28 = arith.constant 0 : index
    %27 = vector.load %arg8[%c0_25, %c0_26, %c0_27, %c0_28] : memref<1x16x16x4xbf16, #tpu.memory_space<vmem>>, vector<1x16x16x4xbf16>
    %28 = vector.shape_cast %27 : vector<1x16x16x4xbf16> to vector<16x16x4xbf16>
    %29 = vector.shape_cast %25 : vector<16x4xbf16> to vector<1x16x4xbf16>
    %30 = tpu.concatenate %26, %28, %29 in 0 : vector<1x16x4xbf16>, vector<16x16x4xbf16>, vector<1x16x4xbf16> -> vector<18x16x4xbf16>
    %31 = arith.extf %30 : vector<18x16x4xbf16> to vector<18x16x4xf32>
    %32 = arith.negf %31 : vector<18x16x4xf32>
    %33 = math.exp %32 : vector<18x16x4xf32>
    %cst_29 = arith.constant 1.000000e+00 : f32
    %34 = vector.broadcast %cst_29 : f32 to vector<18x16x4xf32>
    %35 = arith.addf %34, %33 : vector<18x16x4xf32>
    %36 = arith.divf %34, %35 : vector<18x16x4xf32>
    %37 = arith.mulf %15, %36 : vector<18x16x4xf32>
    %c0_i32_30 = arith.constant 0 : i32
    %38 = arith.cmpi sgt, %arg1, %c0_i32_30 : i32
    %c0_31 = arith.constant 0 : index
    %c0_32 = arith.constant 0 : index
    %c0_33 = arith.constant 0 : index
    %c0_34 = arith.constant 0 : index
    %39 = vector.load %arg12[%c0_31, %c0_32, %c0_33, %c0_34] : memref<1x1x16x4xbf16, #tpu.memory_space<vmem>>, vector<1x1x16x4xbf16>
    %40 = vector.shape_cast %39 : vector<1x1x16x4xbf16> to vector<16x4xbf16>
    %cst_35 = arith.constant 0.000000e+00 : bf16
    %41 = vector.broadcast %cst_35 : bf16 to vector<16x4xbf16>
    %42 = arith.select %38, %40, %41 : vector<16x4xbf16>
    %c0_i32_36 = arith.constant 0 : i32
    %43 = arith.cmpi slt, %arg1, %c0_i32_36 : i32
    %c0_37 = arith.constant 0 : index
    %c0_38 = arith.constant 0 : index
    %c0_39 = arith.constant 0 : index
    %c0_40 = arith.constant 0 : index
    %44 = vector.load %arg13[%c0_37, %c0_38, %c0_39, %c0_40] : memref<1x1x16x4xbf16, #tpu.memory_space<vmem>>, vector<1x1x16x4xbf16>
    %45 = vector.shape_cast %44 : vector<1x1x16x4xbf16> to vector<16x4xbf16>
    %cst_41 = arith.constant 0.000000e+00 : bf16
    %46 = vector.broadcast %cst_41 : bf16 to vector<16x4xbf16>
    %47 = arith.select %43, %45, %46 : vector<16x4xbf16>
    %48 = vector.shape_cast %42 : vector<16x4xbf16> to vector<1x16x4xbf16>
    %c0_42 = arith.constant 0 : index
    %c0_43 = arith.constant 0 : index
    %c0_44 = arith.constant 0 : index
    %c0_45 = arith.constant 0 : index
    %49 = vector.load %arg11[%c0_42, %c0_43, %c0_44, %c0_45] : memref<1x16x16x4xbf16, #tpu.memory_space<vmem>>, vector<1x16x16x4xbf16>
    %50 = vector.shape_cast %49 : vector<1x16x16x4xbf16> to vector<16x16x4xbf16>
    %51 = vector.shape_cast %47 : vector<16x4xbf16> to vector<1x16x4xbf16>
    %52 = tpu.concatenate %48, %50, %51 in 0 : vector<1x16x4xbf16>, vector<16x16x4xbf16>, vector<1x16x4xbf16> -> vector<18x16x4xbf16>
    %53 = arith.extf %52 : vector<18x16x4xbf16> to vector<18x16x4xf32>
    %54 = arith.addf %37, %53 : vector<18x16x4xf32>
    %55 = arith.truncf %54 : vector<18x16x4xf32> to vector<18x16x4xbf16>
    %cst_46 = arith.constant 0.000000e+00 : bf16
    %56 = vector.broadcast %cst_46 : bf16 to vector<18x1x4xbf16>
    %c0_47 = arith.constant 0 : index
    %c0_48 = arith.constant 0 : index
    %c0_49 = arith.constant 0 : index
    %57 = vector.load %arg15[%c0_47, %c0_48, %c0_49] : memref<18x16x12xbf16, #tpu.memory_space<vmem>>, vector<18x1x4xbf16>
    tpu.vector_store %arg15[%c0_47, %c0_48, %c0_49], %56 {strides = array<i32>} : memref<18x16x12xbf16, #tpu.memory_space<vmem>>, vector<18x1x4xbf16>,
    %58 = vector.extract_strided_slice %55 {offsets = [0, 0, 0], sizes = [18, 15, 4], strides = [1, 1, 1]} : vector<18x16x4xbf16> to vector<18x15x4xbf16>
    %c0_50 = arith.constant 0 : index
    %c1 = arith.constant 1 : index
    %c0_51 = arith.constant 0 : index
    %59 = vector.load %arg15[%c0_50, %c1, %c0_51] : memref<18x16x12xbf16, #tpu.memory_space<vmem>>, vector<18x15x4xbf16>
    tpu.vector_store %arg15[%c0_50, %c1, %c0_51], %58 {strides = array<i32>} : memref<18x16x12xbf16, #tpu.memory_space<vmem>>, vector<18x15x4xbf16>,
    %c0_52 = arith.constant 0 : index
    %c0_53 = arith.constant 0 : index
    %c4 = arith.constant 4 : index
    %60 = vector.load %arg15[%c0_52, %c0_53, %c4] : memref<18x16x12xbf16, #tpu.memory_space<vmem>>, vector<18x16x4xbf16>
    tpu.vector_store %arg15[%c0_52, %c0_53, %c4], %55 {strides = array<i32>} : memref<18x16x12xbf16, #tpu.memory_space<vmem>>, vector<18x16x4xbf16>,
    %61 = vector.extract_strided_slice %55 {offsets = [0, 1, 0], sizes = [18, 15, 4], strides = [1, 1, 1]} : vector<18x16x4xbf16> to vector<18x15x4xbf16>
    %c0_54 = arith.constant 0 : index
    %c0_55 = arith.constant 0 : index
    %c8 = arith.constant 8 : index
    %62 = vector.load %arg15[%c0_54, %c0_55, %c8] : memref<18x16x12xbf16, #tpu.memory_space<vmem>>, vector<18x15x4xbf16>
    tpu.vector_store %arg15[%c0_54, %c0_55, %c8], %61 {strides = array<i32>} : memref<18x16x12xbf16, #tpu.memory_space<vmem>>, vector<18x15x4xbf16>,
    %c0_56 = arith.constant 0 : index
    %c15 = arith.constant 15 : index
    %c8_57 = arith.constant 8 : index
    %63 = vector.load %arg15[%c0_56, %c15, %c8_57] : memref<18x16x12xbf16, #tpu.memory_space<vmem>>, vector<18x1x4xbf16>
    tpu.vector_store %arg15[%c0_56, %c15, %c8_57], %56 {strides = array<i32>} : memref<18x16x12xbf16, #tpu.memory_space<vmem>>, vector<18x1x4xbf16>,
    %cst_58 = arith.constant 0.000000e+00 : f32
    %64 = vector.broadcast %cst_58 : f32 to vector<256x4xf32>
    %c0_59 = arith.constant 0 : index
    %c0_60 = arith.constant 0 : index
    %c0_61 = arith.constant 0 : index
    %65 = vector.load %arg15[%c0_59, %c0_60, %c0_61] : memref<18x16x12xbf16, #tpu.memory_space<vmem>>, vector<16x16x12xbf16>
    %66 = vector.shape_cast %65 : vector<16x16x12xbf16> to vector<256x12xbf16>
    %c0_62 = arith.constant 0 : index
    %c0_63 = arith.constant 0 : index
    %c0_64 = arith.constant 0 : index
    %67 = vector.load %arg2[%c0_62, %c0_63, %c0_64] : memref<3x12x4xbf16, #tpu.memory_space<vmem>>, vector<1x12x4xbf16>
    %68 = vector.shape_cast %67 : vector<1x12x4xbf16> to vector<12x4xbf16>
    %cst_65 = arith.constant dense<0.000000e+00> : vector<256x4xf32>
    %69 = tpu.matmul %66, %68, %cst_65 {dimension_numbers = #tpu.dot_dimension_numbers<[1], [0], [0], [1], [0, 0, 1, 1], [], []>} : vector<256x12xbf16>, vector<12x4xbf16>, vector<256x4xf32> -> vector<256x4xf32>
    %70 = arith.addf %64, %69 : vector<256x4xf32>
    %c1_66 = arith.constant 1 : index
    %c0_67 = arith.constant 0 : index
    %c0_68 = arith.constant 0 : index
    %71 = vector.load %arg15[%c1_66, %c0_67, %c0_68] : memref<18x16x12xbf16, #tpu.memory_space<vmem>>, vector<16x16x12xbf16>
    %72 = vector.shape_cast %71 : vector<16x16x12xbf16> to vector<256x12xbf16>
    %c1_69 = arith.constant 1 : index
    %c0_70 = arith.constant 0 : index
    %c0_71 = arith.constant 0 : index
    %73 = vector.load %arg2[%c1_69, %c0_70, %c0_71] : memref<3x12x4xbf16, #tpu.memory_space<vmem>>, vector<1x12x4xbf16>
    %74 = vector.shape_cast %73 : vector<1x12x4xbf16> to vector<12x4xbf16>
    %cst_72 = arith.constant dense<0.000000e+00> : vector<256x4xf32>
    %75 = tpu.matmul %72, %74, %cst_72 {dimension_numbers = #tpu.dot_dimension_numbers<[1], [0], [0], [1], [0, 0, 1, 1], [], []>} : vector<256x12xbf16>, vector<12x4xbf16>, vector<256x4xf32> -> vector<256x4xf32>
    %76 = arith.addf %70, %75 : vector<256x4xf32>
    %c2 = arith.constant 2 : index
    %c0_73 = arith.constant 0 : index
    %c0_74 = arith.constant 0 : index
    %77 = vector.load %arg15[%c2, %c0_73, %c0_74] : memref<18x16x12xbf16, #tpu.memory_space<vmem>>, vector<16x16x12xbf16>
    %78 = vector.shape_cast %77 : vector<16x16x12xbf16> to vector<256x12xbf16>
    %c2_75 = arith.constant 2 : index
    %c0_76 = arith.constant 0 : index
    %c0_77 = arith.constant 0 : index
    %79 = vector.load %arg2[%c2_75, %c0_76, %c0_77] : memref<3x12x4xbf16, #tpu.memory_space<vmem>>, vector<1x12x4xbf16>
    %80 = vector.shape_cast %79 : vector<1x12x4xbf16> to vector<12x4xbf16>
    %cst_78 = arith.constant dense<0.000000e+00> : vector<256x4xf32>
    %81 = tpu.matmul %78, %80, %cst_78 {dimension_numbers = #tpu.dot_dimension_numbers<[1], [0], [0], [1], [0, 0, 1, 1], [], []>} : vector<256x12xbf16>, vector<12x4xbf16>, vector<256x4xf32> -> vector<256x4xf32>
    %82 = arith.addf %76, %81 : vector<256x4xf32>
    %c0_79 = arith.constant 0 : index
    %c0_80 = arith.constant 0 : index
    %83 = vector.load %arg3[%c0_79, %c0_80] : memref<1x4xf32, #tpu.memory_space<vmem>>, vector<1x4xf32>
    %84 = vector.broadcast %83 : vector<1x4xf32> to vector<256x4xf32>
    %85 = arith.mulf %82, %84 : vector<256x4xf32>
    %c0_81 = arith.constant 0 : index
    %c0_82 = arith.constant 0 : index
    %86 = vector.load %arg4[%c0_81, %c0_82] : memref<1x4xf32, #tpu.memory_space<vmem>>, vector<1x4xf32>
    %87 = vector.broadcast %86 : vector<1x4xf32> to vector<256x4xf32>
    %88 = arith.addf %85, %87 : vector<256x4xf32>
    %89 = vector.shape_cast %88 : vector<256x4xf32> to vector<16x16x4xf32>
    %c0_83 = arith.constant 0 : index
    %c0_84 = arith.constant 0 : index
    %c0_85 = arith.constant 0 : index
    %c0_86 = arith.constant 0 : index
    %90 = vector.load %arg14[%c0_83, %c0_84, %c0_85, %c0_86] : memref<1x16x16x4xf32, #tpu.memory_space<vmem>>, vector<1x16x16x4xf32>
    %91 = vector.shape_cast %90 : vector<1x16x16x4xf32> to vector<16x16x4xf32>
    %92 = vector.shape_cast %89 : vector<16x16x4xf32> to vector<1x16x16x4xf32>
    tpu.vector_store %arg14[%c0_83, %c0_84, %c0_85, %c0_86], %92 {strides = array<i32>} : memref<1x16x16x4xf32, #tpu.memory_space<vmem>>, vector<1x16x16x4xf32>,
    return
  }
  func.func @transform_0(%arg0: i32, %arg1: i32) -> (i32, i32, i32) {
    %c0_i32 = arith.constant 0 : i32
    %c0_i32_0 = arith.constant 0 : i32
    %c0_i32_1 = arith.constant 0 : i32
    %c0_i32_2 = arith.constant 0 : i32
    return %c0_i32, %c0_i32_0, %c0_i32_1 : i32, i32, i32
  }
  func.func @transform_1(%arg0: i32, %arg1: i32) -> (i32, i32) {
    %c0_i32 = arith.constant 0 : i32
    %c0_i32_0 = arith.constant 0 : i32
    %c0_i32_1 = arith.constant 0 : i32
    return %c0_i32, %c0_i32_0 : i32, i32
  }
  func.func @transform_2(%arg0: i32, %arg1: i32) -> (i32, i32) {
    %c0_i32 = arith.constant 0 : i32
    %c0_i32_0 = arith.constant 0 : i32
    %c0_i32_1 = arith.constant 0 : i32
    return %c0_i32, %c0_i32_0 : i32, i32
  }
  func.func @transform_3(%arg0: i32, %arg1: i32) -> (i32, i32, i32, i32) {
    %c0_i32 = arith.constant 0 : i32
    %c0_i32_0 = arith.constant 0 : i32
    %c0_i32_1 = arith.constant 0 : i32
    return %arg0, %arg1, %c0_i32, %c0_i32_0 : i32, i32, i32, i32
  }
  func.func @transform_4(%arg0: i32, %arg1: i32) -> (i32, i32, i32, i32) {
    %c16_i32 = arith.constant 16 : i32
    %0 = arith.muli %arg1, %c16_i32 : i32
    %c1_i32 = arith.constant 1 : i32
    %1 = arith.subi %0, %c1_i32 : i32
    %c0_i32 = arith.constant 0 : i32
    %2 = arith.maxsi %1, %c0_i32 : i32
    %c0_i32_0 = arith.constant 0 : i32
    %c0_i32_1 = arith.constant 0 : i32
    %c0_i32_2 = arith.constant 0 : i32
    return %arg0, %2, %c0_i32_0, %c0_i32_1 : i32, i32, i32, i32
  }
  func.func @transform_5(%arg0: i32, %arg1: i32) -> (i32, i32, i32, i32) {
    %c1_i32 = arith.constant 1 : i32
    %0 = arith.addi %arg1, %c1_i32 : i32
    %c16_i32 = arith.constant 16 : i32
    %1 = arith.muli %0, %c16_i32 : i32
    %c15_i32 = arith.constant 15 : i32
    %2 = arith.minsi %1, %c15_i32 : i32
    %c0_i32 = arith.constant 0 : i32
    %c0_i32_0 = arith.constant 0 : i32
    %c0_i32_1 = arith.constant 0 : i32
    return %arg0, %2, %c0_i32, %c0_i32_0 : i32, i32, i32, i32
  }
  func.func @transform_6(%arg0: i32, %arg1: i32) -> (i32, i32, i32, i32) {
    %c0_i32 = arith.constant 0 : i32
    %c0_i32_0 = arith.constant 0 : i32
    %c0_i32_1 = arith.constant 0 : i32
    return %arg0, %arg1, %c0_i32, %c0_i32_0 : i32, i32, i32, i32
  }
  func.func @transform_7(%arg0: i32, %arg1: i32) -> (i32, i32, i32, i32) {
    %c16_i32 = arith.constant 16 : i32
    %0 = arith.muli %arg1, %c16_i32 : i32
    %c1_i32 = arith.constant 1 : i32
    %1 = arith.subi %0, %c1_i32 : i32
    %c0_i32 = arith.constant 0 : i32
    %2 = arith.maxsi %1, %c0_i32 : i32
    %c0_i32_0 = arith.constant 0 : i32
    %c0_i32_1 = arith.constant 0 : i32
    %c0_i32_2 = arith.constant 0 : i32
    return %arg0, %2, %c0_i32_0, %c0_i32_1 : i32, i32, i32, i32
  }
  func.func @transform_8(%arg0: i32, %arg1: i32) -> (i32, i32, i32, i32) {
    %c1_i32 = arith.constant 1 : i32
    %0 = arith.addi %arg1, %c1_i32 : i32
    %c16_i32 = arith.constant 16 : i32
    %1 = arith.muli %0, %c16_i32 : i32
    %c15_i32 = arith.constant 15 : i32
    %2 = arith.minsi %1, %c15_i32 : i32
    %c0_i32 = arith.constant 0 : i32
    %c0_i32_0 = arith.constant 0 : i32
    %c0_i32_1 = arith.constant 0 : i32
    return %arg0, %2, %c0_i32, %c0_i32_0 : i32, i32, i32, i32
  }
  func.func @transform_9(%arg0: i32, %arg1: i32) -> (i32, i32, i32, i32) {
    %c0_i32 = arith.constant 0 : i32
    %c0_i32_0 = arith.constant 0 : i32
    %c0_i32_1 = arith.constant 0 : i32
    return %arg0, %arg1, %c0_i32, %c0_i32_0 : i32, i32, i32, i32
  }
  func.func @transform_10(%arg0: i32, %arg1: i32) -> (i32, i32, i32, i32) {
    %c16_i32 = arith.constant 16 : i32
    %0 = arith.muli %arg1, %c16_i32 : i32
    %c1_i32 = arith.constant 1 : i32
    %1 = arith.subi %0, %c1_i32 : i32
    %c0_i32 = arith.constant 0 : i32
    %2 = arith.maxsi %1, %c0_i32 : i32
    %c0_i32_0 = arith.constant 0 : i32
    %c0_i32_1 = arith.constant 0 : i32
    %c0_i32_2 = arith.constant 0 : i32
    return %arg0, %2, %c0_i32_0, %c0_i32_1 : i32, i32, i32, i32
  }
  func.func @transform_11(%arg0: i32, %arg1: i32) -> (i32, i32, i32, i32) {
    %c1_i32 = arith.constant 1 : i32
    %0 = arith.addi %arg1, %c1_i32 : i32
    %c16_i32 = arith.constant 16 : i32
    %1 = arith.muli %0, %c16_i32 : i32
    %c15_i32 = arith.constant 15 : i32
    %2 = arith.minsi %1, %c15_i32 : i32
    %c0_i32 = arith.constant 0 : i32
    %c0_i32_0 = arith.constant 0 : i32
    %c0_i32_1 = arith.constant 0 : i32
    return %arg0, %2, %c0_i32, %c0_i32_0 : i32, i32, i32, i32
  }
  func.func @transform_12(%arg0: i32, %arg1: i32) -> (i32, i32, i32, i32) {
    %c0_i32 = arith.constant 0 : i32
    %c0_i32_0 = arith.constant 0 : i32
    %c0_i32_1 = arith.constant 0 : i32
    return %arg0, %arg1, %c0_i32, %c0_i32_0 : i32, i32, i32, i32
  }
}

</mosaic_0001>

<bundles_post_ra>
// kernel: bga_pallas.8
= control target key start
LH: loop header
LB: loop body
LE: loop exit
PB: predicated region body
PF: predicated region fallthrough
CT: control target
= control target key end

     0   :  { %s1261_s27 = smov 0   ;;  %s1263_s28 = smov 0   ;;  %s1427_s0 = inlined_call_operand.vmem [shape: f32[3,3,4], index: 0, kind: input, shape index: {}]   ;;  %s1428_s1 = inlined_call_operand.vmem [shape: f32[1,4], index: 1, kind: input, shape index: {}]   ;;  %s1429_s2 = inlined_call_operand.vmem [shape: f32[1,4], index: 2, kind: input, shape index: {}]   ;;  %s1430_s3 = inlined_call_operand.vmem [shape: bf16[4,4], index: 3, kind: input, shape index: {}]   ;;  %s1431_s4 = inlined_call_operand.vmem [shape: bf16[2,4,4,4], index: 4, kind: input, shape index: {}, may-alias: {4,5,6}]   ;;  %s1432_s5 = inlined_call_operand.vmem [shape: bf16[2,4,4,4], index: 5, kind: input, shape index: {}, may-alias: {4,5,6}]   ;;  %s1433_s6 = inlined_call_operand.vmem [shape: bf16[2,4,4,4], index: 6, kind: input, shape index: {}, may-alias: {4,5,6}]   ;;  %s1434_s7 = inlined_call_operand.vmem [shape: f32[2,4,4,4], index: 7, kind: input, shape index: {}]   ;;  %s1435_s8 = inlined_call_operand.vmem [shape: bf16[2,4,4,4], index: 8, kind: output, shape index: {}]  }
   0x1   :  { %s1265_s29 = smov 0  }
   0x2 LB: > { %s30_s5 = sadd.s32 1, %s1206_s28  ;;  %p1120_p0 = scmp.ge.s32.totalorder %s1210_s29, 1  ;;  %s1210_s29 = sphi %s1265_s29, %s18_s29   ;;  %s1206_s28 = sphi %s1263_s28, %s1443_s28   ;;  %s1202_s27 = sphi %s1261_s27, %s1442_s27  }
   0x3   : > { %p32_p1 = scmp.ge.s32.totalorder %s30_s5, 2  ;;  %p362_p2 = scmp.lt.s32.totalorder %s1210_s29, 3 }
   0x5   : > { %s1445_s5 = smov (%p32_p1, %s30_s5), 0  ;;  %p363_p3 = pnand %p1120_p0, %p362_p2 }
   0x6   : > { %p438_p4 = scmp.lt.s32.totalorder (!%p363_p3), %s1202_s27, 1 }
   0x7   : > { %366 = sbr.rel (%p363_p3) target bundleno = 312 (0x138), region = 52 }
   0xc   : > { %v890_v0 = vld [vmem:[%s1430_s3] sm:$0x3]  ;;  %vm895_vm0 = vcmask 1041408   ;;  %v1212_v1 = vmov 0.0   ;;  %vm1213_vm1 = vmmov 0   ;;  %vm523_vm2 = vcmask 24576  }
   0xd   : > { %1146 = vmatprep.subr.bf16.mxu0 %v1212_v1  ;;  %v897_v2 = vsel %vm895_vm0, %v890_v0, 0  ;;  %1148 = vmatprep.mubr.msk.bf16.mxu0 %vm1213_vm1, %v1212_v1  ;;  %vm524_vm3 = vsmask.f32 256  ;;  %v526_v3 = vld [vmem:[#allocation2] sm:$0x1]  ;;  %s1447_s27 = smov (!%p438_p4, %s1202_s27), 1  ;;  %v574_v7 = vlaneseq }
   0xe   : > { %1147 = vmatpush3.bf16.msra.mxu0 %v897_v2  ;;  %vm1284_vm4 = vmand %vm523_vm2, %vm524_vm3  ;;  %v529_v5 = vld [vmem:[#allocation2 + $0x4] sm:$0x1]  ;;  %v532_v6 = vld [vmem:[#allocation2 + $0x8] sm:$0x1]  ;;  %vm544_vm5 = vcmask 26626   ;;  %s1138_s9 = sshll.u32 %s1447_s27, 3 }
   0xf   : > { %v527_v8 = vsel %vm1284_vm4, 0, %v526_v3  ;;  %v530_v9 = vsel %vm1284_vm4, 0, %v529_v5  ;;  %v533_v10 = vsel %vm1284_vm4, 0, %v532_v6  ;;  %v535_v11 = vld [vmem:[#allocation2 + $0xc] sm:$0x1]  ;;  %s445_s12 = scalar_lea.vmem %s1431_s4, %s1138_s9  ;;  %v1311_v20 = vshrl.u32 %v574_v7, 7  ;;  %s497_s10 = scalar_lea.vmem %s1435_s8, %s1138_s9 }
  0x10   : > { %528 = vst [vmem:[#allocation2] sm:$0x1] %v527_v8  ;;  %531 = vst [vmem:[#allocation2 + $0x4] sm:$0x1] %v530_v9  ;;  %v536_v12 = vsel %vm1284_vm4, 0, %v535_v11  ;;  %v1215_v39 = vmov 0  }
  0x11   : > { %534 = vst [vmem:[#allocation2 + $0x8] sm:$0x1] %v533_v10  ;;  %v538_v13 = vld [vmem:[#allocation2 + $0x10] sm:$0x1]  ;;  %v541_v14 = vld [vmem:[#allocation2 + $0x14] sm:$0x1] }
  0x12   : > { %537 = vst [vmem:[#allocation2 + $0xc] sm:$0x1] %v536_v12  ;;  %v539_v15 = vsel %vm1284_vm4, 0, %v538_v13  ;;  %v542_v16 = vsel %vm1284_vm4, 0, %v541_v14  ;;  %vm545_vm6 = vsmask.f32 7946 }
  0x13   : > { %v547_v17 = vld [vmem:[#allocation2] sm:$0x4]  ;;  %540 = vst [vmem:[#allocation2 + $0x10] sm:$0x1] %v539_v15  ;;  %543 = vst [vmem:[#allocation2 + $0x14] sm:$0x1] %v542_v16 }
  0x14   : > { %vm1307_vm7 = vmand %vm544_vm5, %vm545_vm6  ;;  %v550_v19 = vld [vmem:[#allocation2 + $0x4] sm:$0x4]  ;;  %v553_v23 = vld [vmem:[#allocation2 + $0x8] sm:$0x4]  ;;  %v1214_v25 = vmov 1983009808  }
  0x15   : > { %v548_v21 = vsel %vm1307_vm7, 0, %v547_v17  ;;  %v551_v22 = vsel %vm1307_vm7, 0, %v550_v19  ;;  %v556_v24 = vld [vmem:[#allocation2 + $0xc] sm:$0x4]  ;;  %v572_v26 = vunpack.c.l.s4 %v1214_v25  ;;  %v554_v27 = vsel %vm1307_vm7, 0, %v553_v23  ;;  %s1142_s23 = sshll.u32 %s1447_s27, 4 }
  0x16   : > { %549 = vst [vmem:[#allocation2] sm:$0x4] %v548_v21  ;;  %552 = vst [vmem:[#allocation2 + $0x4] sm:$0x4] %v551_v22  ;;  %v557_v28 = vsel %vm1307_vm7, 0, %v556_v24  ;;  %vm661_vm8 = vcmask 26624   ;;  %v694_v21 = vunpack.c.l.bf16 %v1215_v39  ;;  %s487_s26 = scalar_lea.vmem %s1434_s7, %s1142_s23 }
  0x17   : > { %v559_v29 = vld [vmem:[#allocation2 + $0x10] sm:$0x4]  ;;  %v562_v30 = vld [vmem:[#allocation2 + $0x14] sm:$0x4]  ;;  %v1321_v31 = vld [vmem:[%s445_s12] sm:$0x3]  ;;  %v573_v34 = vunpack.c.0.s8 %v572_v26 }
  0x18   : > { %555 = vst [vmem:[#allocation2 + $0x8] sm:$0x4] %v554_v27  ;;  %558 = vst [vmem:[#allocation2 + $0xc] sm:$0x4] %v557_v28  ;;  %v560_v32 = vsel %vm1307_vm7, 0, %v559_v29  ;;  %v563_v33 = vsel %vm1307_vm7, 0, %v562_v30  ;;  %v695_v8 = vunpack.c.l.bf16 %v1321_v31 }
  0x19   : > { %v520_v35 = vld [vmem:[%s445_s12 + $0x2] sm:$0x3]  ;;  %v521_v36 = vld [vmem:[%s445_s12 + $0x4] sm:$0x3]  ;;  %561 = vst [vmem:[#allocation2 + $0x10] sm:$0x4] %v560_v32  ;;  %v576_v38 = vsub.s32 %v573_v34, %v1311_v20 }
  0x1a   : > { %564 = vst [vmem:[#allocation2 + $0x14] sm:$0x4] %v563_v33  ;;  %v1327_v37 = vld [vmem:[%s445_s12 + $0x6] sm:$0x3]  ;;  %vm662_vm9 = vsmask.f32 2306  ;;  %v696_v9 = vunpack.c.l.bf16 %v520_v35  ;;  %v697_v22 = vunpack.c.l.bf16 %v521_v36 }
  0x1b   : > { %v577_v40 = vrot.slane %v1215_v39, %v576_v38  ;;  %v584_v41 = vrot.slane %v1321_v31, %v576_v38  ;;  %v591_v42 = vrot.slane %v520_v35, %v576_v38  ;;  %v598_v43 = vrot.slane %v521_v36, %v576_v38  ;;  %vm1334_vm10 = vmand %vm661_vm8, %vm662_vm9  ;;  %v712_v10 = vld [vmem:[%s1427_s0] sm:$0x7]  ;;  %v713_v23 = vld [vmem:[%s1427_s0 + $0x4] sm:$0x7] }
  0x1c   : > { %v605_v44 = vrot.slane %v1327_v37, %v576_v38  ;;  %v729_v4 = vsub.s32 1, %v1311_v20  ;;  %v717_v17 = vsub.s32 0, %v1311_v20  ;;  %v741_v18 = vsub.s32 2, %v1311_v20  ;;  %v714_v24 = vld [vmem:[%s1427_s0 + $0x8] sm:$0x7] }
  0x1d   : > { %v614_v45 = vshrl.u32 %v577_v40, 16  ;;  %v617_v46 = vshll.u32 %v577_v40, 16  ;;  %v621_v47 = vshrl.u32 %v584_v41, 16  ;;  %v624_v48 = vshll.u32 %v584_v41, 16  ;;  %v664_v57 = vld [vmem:[#allocation2] sm:$0x7] }
  0x1e   : > { %v628_v49 = vshrl.u32 %v591_v42, 16  ;;  %v631_v50 = vshll.u32 %v591_v42, 16  ;;  %v635_v51 = vshrl.u32 %v598_v43, 16  ;;  %v638_v52 = vshll.u32 %v598_v43, 16  ;;  %v667_v61 = vld [vmem:[#allocation2 + $0x4] sm:$0x7] }
  0x1f   : > { %v616_v53 = vrot.slane %v614_v45, 7  ;;  %v623_v54 = vrot.slane %v621_v47, 7  ;;  %v642_v55 = vshrl.u32 %v605_v44, 16  ;;  %v645_v56 = vshll.u32 %v605_v44, 16  ;;  %v670_v62 = vld [vmem:[#allocation2 + $0x8] sm:$0x7] }
  0x20   : > { %v630_v58 = vrot.slane %v628_v49, 7  ;;  %v637_v59 = vrot.slane %v635_v51, 7  ;;  %v673_v2 = vld [vmem:[#allocation2 + $0xc] sm:$0x7]  ;;  %v676_v7 = vld [vmem:[#allocation2 + $0x10] sm:$0x7]  ;;  %v730_v25 = vrot.slane %v712_v10, %v729_v4  ;;  %v698_v26 = vunpack.c.l.bf16 %v1327_v37 }
  0x21   : > { %v619_v63 = vor.u32 %v617_v46, %v616_v53  ;;  %v626_v0 = vor.u32 %v624_v48, %v623_v54  ;;  %v644_v1 = vrot.slane %v642_v55, 7  ;;  %v679_v3 = vld [vmem:[#allocation2 + $0x14] sm:$0x7]  ;;  %v778_v20 = vrot.slane %v713_v23, %v729_v4 }
  0x22   : > { %v633_v5 = vor.u32 %v631_v50, %v630_v58  ;;  %v640_v6 = vor.u32 %v638_v52, %v637_v59  ;;  %v826_v27 = vrot.slane %v714_v24, %v729_v4  ;;  %v718_v28 = vrot.slane %v712_v10, %v717_v17 }
  0x23   : > { %v647_v11 = vor.u32 %v645_v56, %v644_v1  ;;  %v665_v12 = vsel %vm1334_vm10, %v619_v63, %v664_v57  ;;  %v668_v13 = vsel %vm1334_vm10, %v626_v0, %v667_v61  ;;  %v680_v14 = vsel %vm1334_vm10, %v619_v63, %v679_v3 }
  0x24   : > { %666 = vst [vmem:[#allocation2] sm:$0x7] %v665_v12  ;;  %669 = vst [vmem:[#allocation2 + $0x4] sm:$0x7] %v668_v13  ;;  %v671_v15 = vsel %vm1334_vm10, %v633_v5, %v670_v62  ;;  %v674_v16 = vsel %vm1334_vm10, %v640_v6, %v673_v2  ;;  %v742_v29 = vrot.slane %v712_v10, %v741_v18  ;;  %vm891_vm11 = vcmask 31744  }
  0x25   : > { %681 = vst [vmem:[#allocation2 + $0x14] sm:$0x7] %v680_v14  ;;  %672 = vst [vmem:[#allocation2 + $0x8] sm:$0x7] %v671_v15  ;;  %v677_v19 = vsel %vm1334_vm10, %v647_v11, %v676_v7  ;;  %v766_v30 = vrot.slane %v713_v23, %v717_v17  ;;  %v1364_v31 = vrot.slane %v714_v24, %v717_v17  ;;  %vm970_vm12 = vcmask 25600  }
  0x26   : > { %675 = vst [vmem:[#allocation2 + $0xc] sm:$0x7] %v674_v16  ;;  %678 = vst [vmem:[#allocation2 + $0x10] sm:$0x7] %v677_v19  ;;  %v731_v32 = vmul.f32 %v730_v25, %v694_v21  ;;  %v732_v33 = vmul.f32 %v730_v25, %v695_v8  ;;  %v733_v34 = vmul.f32 %v730_v25, %v696_v9 }
  0x27   : > { %v734_v35 = vmul.f32 %v730_v25, %v697_v22  ;;  %v1366_v36 = vmul.f32 %v778_v20, %v695_v8  ;;  %v1368_v38 = vmul.f32 %v778_v20, %v696_v9  ;;  %v1370_v39 = vmul.f32 %v778_v20, %v697_v22 }
  0x28   : > { %v1372_v40 = vmul.f32 %v778_v20, %v698_v26  ;;  %v790_v43 = vrot.slane %v713_v23, %v741_v18  ;;  %v1376_v44 = vmul.f32 %v826_v27, %v696_v9  ;;  %v1378_v45 = vmul.f32 %v826_v27, %v697_v22 }
  0x29   : > { %v1380_v46 = vrot.slane %v714_v24, %v741_v18  ;;  %v1382_v52 = vmul.f32 %v826_v27, %v698_v26  ;;  %v1384_v53 = vmul.f32 %v826_v27, %v694_v21 }
  0x2b   : > { %v682_v37 = vld [vmem:[#allocation2] sm:$0x3]  ;;  %v683_v41 = vld [vmem:[#allocation2 + $0x4] sm:$0x3] }
  0x2c   : > { %v1374_v42 = vld [vmem:[#allocation2 + $0x14] sm:$0x3]  ;;  %v684_v47 = vld [vmem:[#allocation2 + $0x8] sm:$0x3]  ;;  %v688_v49 = vunpack.c.l.bf16 %v682_v37  ;;  %v689_v50 = vunpack.c.l.bf16 %v683_v41  ;;  %v700_v51 = vld [vmem:[#allocation2] sm:$0x6] }
  0x2d   : > { %v685_v48 = vld [vmem:[#allocation2 + $0xc] sm:$0x3]  ;;  %v686_v54 = vld [vmem:[#allocation2 + $0x10] sm:$0x3]  ;;  %v690_v55 = vunpack.c.l.bf16 %v684_v47  ;;  %v693_v57 = vunpack.c.l.bf16 %v1374_v42  ;;  %v701_v58 = vld [vmem:[#allocation2 + $0x4] sm:$0x6]  ;;  %v706_v60 = vunpack.c.l.bf16 %v700_v51 }
  0x2e   : > { %v691_v56 = vunpack.c.l.bf16 %v685_v48  ;;  %v702_v59 = vld [vmem:[#allocation2 + $0x8] sm:$0x6]  ;;  %v692_v61 = vunpack.c.l.bf16 %v686_v54  ;;  %v703_v62 = vld [vmem:[#allocation2 + $0xc] sm:$0x6]  ;;  %v704_v63 = vld [vmem:[#allocation2 + $0x10] sm:$0x6]  ;;  %v707_v1 = vunpack.c.l.bf16 %v701_v58  ;;  %v719_v3 = vmul.f32 %v718_v28, %v688_v49 }
  0x2f   : > { %v705_v0 = vld [vmem:[#allocation2 + $0x14] sm:$0x6]  ;;  %v708_v2 = vunpack.c.l.bf16 %v702_v59  ;;  %v709_v4 = vunpack.c.l.bf16 %v703_v62  ;;  %v710_v5 = vunpack.c.l.bf16 %v704_v63  ;;  %v720_v7 = vmul.f32 %v718_v28, %v689_v50 }
  0x30   : > { %v711_v6 = vunpack.c.l.bf16 %v705_v0  ;;  %v721_v8 = vmul.f32 %v718_v28, %v690_v55  ;;  %v722_v9 = vmul.f32 %v718_v28, %v691_v56  ;;  %v735_v10 = vadd.f32 %v731_v32, %v719_v3 }
  0x31   : > { %v743_v11 = vmul.f32 %v742_v29, %v706_v60  ;;  %v736_v12 = vadd.f32 %v732_v33, %v720_v7  ;;  %v744_v13 = vmul.f32 %v742_v29, %v707_v1  ;;  %v745_v14 = vmul.f32 %v742_v29, %v708_v2 }
  0x32   : > { %v746_v15 = vmul.f32 %v742_v29, %v709_v4  ;;  %v737_v16 = vadd.f32 %v733_v34, %v721_v8  ;;  %v738_v17 = vadd.f32 %v734_v35, %v722_v9  ;;  %v767_v19 = vmul.f32 %v766_v30, %v689_v50 }
  0x33   : > { %v751_v18 = vrot.slane %v743_v11, 2  ;;  %v752_v21 = vrot.slane %v744_v13, 2  ;;  %v753_v22 = vrot.slane %v745_v14, 2  ;;  %v768_v24 = vmul.f32 %v766_v30, %v690_v55 }
  0x34   : > { %v754_v23 = vrot.slane %v746_v15, 2  ;;  %v769_v26 = vmul.f32 %v766_v30, %v691_v56  ;;  %v770_v20 = vmul.f32 %v766_v30, %v692_v61  ;;  %v791_v27 = vmul.f32 %v790_v43, %v707_v1 }
  0x35   : > { %v759_v25 = vadd.f32 %v751_v18, %v735_v10  ;;  %v760_v37 = vadd.f32 %v752_v21, %v736_v12  ;;  %v761_v28 = vadd.f32 %v753_v22, %v737_v16  ;;  %v792_v41 = vmul.f32 %v790_v43, %v708_v2 }
  0x36   : > { %v762_v32 = vadd.f32 %v754_v23, %v738_v17  ;;  %v793_v42 = vmul.f32 %v790_v43, %v709_v4  ;;  %v794_v47 = vmul.f32 %v790_v43, %v710_v5  ;;  %v799_v29 = vrot.slane %v791_v27, 2 }
  0x37   : > { %v771_v33 = vadd.f32 %v767_v19, %v759_v25  ;;  %v772_v34 = vadd.f32 %v768_v24, %v760_v37  ;;  %v773_v35 = vadd.f32 %v769_v26, %v761_v28  ;;  %v800_v49 = vrot.slane %v792_v41, 2 }
  0x38   : > { %v774_v48 = vadd.f32 %v770_v20, %v762_v32  ;;  %v801_v51 = vrot.slane %v793_v42, 2  ;;  %v802_v54 = vrot.slane %v794_v47, 2  ;;  %v815_v58 = vmul.f32 %v1364_v31, %v690_v55  ;;  %v958_v42 = vld [vmem:[%s487_s26] sm:$0xf] }
  0x39   : > { %v783_v50 = vadd.f32 %v1366_v36, %v771_v33  ;;  %v784_v30 = vadd.f32 %v1368_v38, %v772_v34  ;;  %v785_v59 = vadd.f32 %v1370_v39, %v773_v35  ;;  %v816_v62 = vmul.f32 %v1364_v31, %v691_v56 }
  0x3a   : > { %v786_v60 = vadd.f32 %v1372_v40, %v774_v48  ;;  %v817_v63 = vmul.f32 %v1364_v31, %v692_v61  ;;  %v818_v0 = vmul.f32 %v1364_v31, %v693_v57  ;;  %v839_v1 = vmul.f32 %v1380_v46, %v708_v2  ;;  %v960_v48 = vld [vmem:[%s487_s26 + $0x8] sm:$0xf] }
  0x3b   : > { %v807_v43 = vadd.f32 %v799_v29, %v783_v50  ;;  %v808_v36 = vadd.f32 %v800_v49, %v784_v30  ;;  %v809_v3 = vadd.f32 %v801_v51, %v785_v59  ;;  %v840_v55 = vmul.f32 %v1380_v46, %v709_v4  ;;  %v959_v29 = vld [vmem:[%s487_s26 + $0x4] sm:$0xf] }
  0x3c   : > { %v810_v7 = vadd.f32 %v802_v54, %v786_v60  ;;  %v841_v38 = vmul.f32 %v1380_v46, %v710_v5  ;;  %v842_v39 = vmul.f32 %v1380_v46, %v711_v6  ;;  %v847_v40 = vrot.slane %v839_v1, 2  ;;  %v1131_v5 = vld [vmem:[%s1428_s1] ss:$0 sm:$0xff]  ;;  %v961_v54 = vld [vmem:[%s487_s26 + $0xc] sm:$0xf] }
  0x3d   : > { %v819_v8 = vadd.f32 %v815_v58, %v807_v43  ;;  %v820_v9 = vadd.f32 %v816_v62, %v808_v36  ;;  %v821_v56 = vadd.f32 %v817_v63, %v809_v3  ;;  %v848_v11 = vrot.slane %v840_v55, 2 }
  0x3e   : > { %v822_v10 = vadd.f32 %v818_v0, %v810_v7  ;;  %v849_v31 = vrot.slane %v841_v38, 2  ;;  %v850_v57 = vrot.slane %v842_v39, 2 }
  0x3f   : > { %v831_v61 = vadd.f32 %v1376_v44, %v819_v8  ;;  %v832_v2 = vadd.f32 %v1378_v45, %v820_v9  ;;  %v833_v12 = vadd.f32 %v1382_v52, %v821_v56  ;;  %v1132_v44 = vld [vmem:[%s1429_s2] ss:$0 sm:$0xff] }
  0x40   : > { %v834_v4 = vadd.f32 %v1384_v53, %v822_v10 }
  0x41   : > { %v855_v46 = vadd.f32 %v847_v40, %v831_v61  ;;  %v856_v6 = vadd.f32 %v848_v11, %v832_v2  ;;  %v857_v13 = vadd.f32 %v849_v31, %v833_v12 }
  0x42   : > { %v858_v14 = vadd.f32 %v850_v57, %v834_v4 }
  0x43   : > { %v866_v15 = vmul.f32 %v1131_v5, %v855_v46  ;;  %v867_v16 = vmul.f32 %v1131_v5, %v856_v6  ;;  %v868_v17 = vmul.f32 %v1131_v5, %v857_v13 }
  0x44   : > { %v869_v45 = vmul.f32 %v1131_v5, %v858_v14 }
  0x45   : > { %v877_v18 = vadd.f32 %v1132_v44, %v866_v15  ;;  %v878_v52 = vadd.f32 %v1132_v44, %v867_v16  ;;  %v879_v19 = vadd.f32 %v1132_v44, %v868_v17 }
  0x46   : > { %v880_v53 = vadd.f32 %v1132_v44, %v869_v45 }
  0x47   : > { %v885_v21 = vcombine.low %v877_v18, %v878_v52 }
  0x48   : > { %v886_v22 = vcombine.low %v879_v19, %v880_v53 }
  0x4a   : > { %v889_v23 = vpack.c.bf16 %v886_v22, %v885_v21 }
  0x4c   : > { %1149 = vmatmul.mubr.msk.bf16.vlgmr.msra.gmra.mxu0 %vm891_vm11, %v889_v23 }
 0x10c   : > { %v933_v24 = vpop.f32.mrf.mxu0 }
 0x10d   : > { %v1134_v25 = vmul.f32 -1.442695, %v933_v24 }
 0x10e   : > { %v1150_v26 = vpop.f32.mrf.mxu0 }
 0x10f   : > { %1180 = vpow2.f32 %v1134_v25 }
 0x110   : > { %v936_v20 = vpop.f32.mrf.mxu0 }
 0x111   : > { %v1135_v27 = vmul.f32 -1.442695, %v936_v20 }
 0x112   : > { %v1151_v37 = vpop.f32.mrf.mxu0 }
 0x113   : > { %1182 = vpow2.f32 %v1135_v27 }
 0x11c   : > { %v1181_v28 = vpop.eup %1180 }
 0x11d   : > { %v946_v32 = vadd.f32 1.0, %v1181_v28 }
 0x11f   : > { %1184 = vrcp.f32 %v946_v32 }
 0x120   : > { %v1183_v41 = vpop.eup %1182 }
 0x121   : > { %v947_v33 = vadd.f32 1.0, %v1183_v41 }
 0x123   : > { %1186 = vrcp.f32 %v947_v33 }
 0x12c   : > { %v1185_v47 = vpop.eup %1184 }
 0x12d   : > { %v954_v34 = vcombine.high %v1185_v47, %v1185_v47  ;;  %v962_v35 = vmul.f32 %v1185_v47, %v958_v42 }
 0x12f   : > { %v963_v49 = vmul.f32 %v959_v29, %v954_v34  ;;  %v966_v50 = vpack.c.bf16 %v962_v35, %v962_v35 }
 0x130   : > { %v1187_v51 = vpop.eup %1186 }
 0x131   : > { %v967_v58 = vpack.c.bf16 %v963_v49, %v963_v49  ;;  %971 = vst.msk [vmem:[%s497_s10] sm:$0x3] %vm970_vm12, %v966_v50  ;;  %v955_v30 = vcombine.high %v1187_v51, %v1187_v51  ;;  %v964_v59 = vmul.f32 %v1187_v51, %v960_v48 }
 0x133   : > { %972 = vst.msk [vmem:[%s497_s10 + $0x2] sm:$0x3] %vm970_vm12, %v967_v58  ;;  %v965_v60 = vmul.f32 %v961_v54, %v955_v30  ;;  %v968_v62 = vpack.c.bf16 %v964_v59, %v964_v59 }
 0x135   : > { %v969_v43 = vpack.c.bf16 %v965_v60, %v965_v60  ;;  %973 = vst.msk [vmem:[%s497_s10 + $0x4] sm:$0x3] %vm970_vm12, %v968_v62 }
 0x137   : > { %974 = vst.msk [vmem:[%s497_s10 + $0x6] sm:$0x3] %vm970_vm12, %v969_v43 }
 0x138 PF: > { %s18_s29 = sadd.s32 1, %s1210_s29   ;;  %s1442_s27 = smov %s1206_s28 }
 0x139   : > { %p15_p5 = scmp.ge.s32.totalorder %s18_s29, 4   ;;  %s1443_s28 = smov %s1445_s5 }
 0x13b   :  { %17 = sbr.rel (!%p15_p5) target bundleno = 2 (0x2), region = 91 }

// kernel: bga_pallas.9
= control target key start
LH: loop header
LB: loop body
LE: loop exit
PB: predicated region body
PF: predicated region fallthrough
CT: control target
= control target key end

     0   :  { %s1198_s21 = smov 0   ;;  %s1200_s22 = smov 0   ;;  %s1357_s0 = inlined_call_operand.vmem [shape: bf16[3,12,4], index: 0, kind: input, shape index: {}]   ;;  %s1358_s1 = inlined_call_operand.vmem [shape: f32[1,4], index: 1, kind: input, shape index: {}]   ;;  %s1359_s2 = inlined_call_operand.vmem [shape: f32[1,4], index: 2, kind: input, shape index: {}]   ;;  %s1360_s3 = inlined_call_operand.vmem [shape: bf16[2,4,4,4], index: 3, kind: input, shape index: {}, may-alias: {3,4,5}]   ;;  %s1361_s4 = inlined_call_operand.vmem [shape: bf16[2,4,4,4], index: 4, kind: input, shape index: {}, may-alias: {3,4,5}]   ;;  %s1362_s5 = inlined_call_operand.vmem [shape: bf16[2,4,4,4], index: 5, kind: input, shape index: {}, may-alias: {3,4,5}]   ;;  %s1363_s6 = inlined_call_operand.vmem [shape: bf16[2,4,4,4], index: 6, kind: output, shape index: {}]  }
   0x1   :  { %s1202_s23 = smov 0  }
   0x2 LB: > { %s28_s4 = sadd.s32 1, %s1151_s22  ;;  %p1043_p0 = scmp.ge.s32.totalorder %s1155_s23, 1  ;;  %s1155_s23 = sphi %s1202_s23, %s16_s23   ;;  %s1151_s22 = sphi %s1200_s22, %s1373_s22   ;;  %s1147_s21 = sphi %s1198_s21, %s1372_s21  }
   0x3   : > { %p30_p1 = scmp.ge.s32.totalorder %s28_s4, 2  ;;  %p295_p2 = scmp.lt.s32.totalorder %s1155_s23, 3 }
   0x5   : > { %s1375_s4 = smov (%p30_p1, %s28_s4), 0  ;;  %p296_p3 = pnand %p1043_p0, %p295_p2 }
   0x6   : > { %p358_p4 = scmp.lt.s32.totalorder (!%p296_p3), %s1147_s21, 1  ;;  %s1158_s27 = smov (!%p296_p3), 4  }
   0x7   : > { %299 = sbr.rel (%p296_p3) target bundleno = 390 (0x186), region = 44  ;;  %s1159_s28 = smov (!%p296_p3), 8  }
   0xc   : > { %vm433_vm0 = vcmask 24576   ;;  %vm434_vm1 = vsmask.f32 256  ;;  %v445_v0 = vld [vmem:[#allocation2 + $0x6] sm:$0x1]  ;;  %s1377_s21 = smov (!%p358_p4, %s1147_s21), 1 }
   0xd   : > { %vm1216_vm2 = vmand %vm433_vm0, %vm434_vm1  ;;  %vm503_vm3 = vsmask.f32 7938  ;;  %v439_v2 = vld [vmem:[#allocation2 + $0x2] sm:$0x1]  ;;  %v448_v5 = vld [vmem:[#allocation2 + $0x8] sm:$0x1] }
   0xe   : > { %v446_v3 = vsel %vm1216_vm2, 0, %v445_v0  ;;  %v440_v4 = vsel %vm1216_vm2, 0, %v439_v2  ;;  %v449_v6 = vsel %vm1216_vm2, 0, %v448_v5  ;;  %v442_v7 = vld [vmem:[#allocation2 + $0x4] sm:$0x1]  ;;  %s1066_s5 = sshll.u32 %s1377_s21, 3 }
   0xf   : > { %447 = vst [vmem:[#allocation2 + $0x6] sm:$0x1] %v446_v3  ;;  %441 = vst [vmem:[#allocation2 + $0x2] sm:$0x1] %v440_v4  ;;  %v436_v8 = vld [vmem:[#allocation2] sm:$0x1]  ;;  %s365_s26 = scalar_lea.vmem %s1360_s3, %s1066_s5  ;;  %s407_s17 = scalar_lea.vmem %s1363_s6, %s1066_s5 }
  0x10   : > { %450 = vst [vmem:[#allocation2 + $0x8] sm:$0x1] %v449_v6  ;;  %v443_v9 = vsel %vm1216_vm2, 0, %v442_v7  ;;  %v437_v10 = vsel %vm1216_vm2, 0, %v436_v8  ;;  %v451_v11 = vld [vmem:[#allocation2 + $0xa] sm:$0x1] }
  0x11   : > { %vm502_vm4 = vcmask 25600   ;;  %444 = vst [vmem:[#allocation2 + $0x4] sm:$0x1] %v443_v9  ;;  %438 = vst [vmem:[#allocation2] sm:$0x1] %v437_v10  ;;  %v452_v12 = vsel %vm1216_vm2, 0, %v451_v11 }
  0x12   : > { %v1157_v13 = vmov 0   ;;  %v431_v16 = vld [vmem:[%s365_s26 + $0x4] sm:$0x3]  ;;  %v429_v17 = vld [vmem:[%s365_s26] sm:$0x3]  ;;  %vm1248_vm5 = vmand %vm502_vm4, %vm503_vm3  ;;  %vm682_vm6 = vcmask 1045504  }
  0x13   : > { %v1240_v14 = vrot.slane %v1157_v13, 7  ;;  %v1242_v15 = vrot.slane %v1157_v13, 6  ;;  %v432_v18 = vld [vmem:[%s365_s26 + $0x6] sm:$0x3]  ;;  %453 = vst [vmem:[#allocation2 + $0xa] sm:$0x1] %v452_v12  ;;  %535 = vrot.lane.b32.xlu1 %v431_v16, %s1158_s27  ;;  %531 = vrot.lane.b32.xlu0 %v429_v17, %s1158_s27 }
  0x14   : > { %v476_v19 = vshrl.u32 %v431_v16, 16  ;;  %v479_v20 = vshll.u32 %v431_v16, 16  ;;  %v462_v21 = vshrl.u32 %v429_v17, 16  ;;  %v465_v22 = vshll.u32 %v429_v17, 16  ;;  %v430_v23 = vld [vmem:[%s365_s26 + $0x2] sm:$0x3] }
  0x15   : > { %v483_v24 = vshrl.u32 %v432_v18, 16  ;;  %v486_v25 = vshll.u32 %v432_v18, 16  ;;  %v469_v26 = vshrl.u32 %v430_v23, 16  ;;  %v472_v27 = vshll.u32 %v430_v23, 16  ;;  %v1130_v3 = vld [vmem:[%s1357_s0 + $0x8] sm:$0x3f]  }
  0x16   : > { %v478_v28 = vrot.slane %v476_v19, 7  ;;  %v566_v29 = vrot.slane %v476_v19, 6  ;;  %v567_v30 = vrot.slane %v479_v20, 7  ;;  %v464_v31 = vrot.slane %v462_v21, 7  ;;  %v514_v33 = vld [vmem:[#allocation2 + $0x6] sm:$0x3] }
  0x17   : > { %v508_v34 = vld [vmem:[#allocation2 + $0x2] sm:$0x3]  ;;  %v558_v35 = vrot.slane %v462_v21, 6  ;;  %v559_v36 = vrot.slane %v465_v22, 7  ;;  %v485_v39 = vrot.slane %v483_v24, 7  ;;  %v570_v41 = vrot.slane %v483_v24, 6  ;;  %537 = vrot.lane.b32.xlu1 %v432_v18, %s1158_s27  ;;  %533 = vrot.lane.b32.xlu0 %v430_v23, %s1158_s27 }
  0x18   : > { %v481_v37 = vor.u32 %v479_v20, %v478_v28  ;;  %v467_v38 = vor.u32 %v465_v22, %v464_v31  ;;  %v517_v40 = vld [vmem:[#allocation2 + $0x8] sm:$0x3]  ;;  %v571_v42 = vrot.slane %v486_v25, 7  ;;  %v471_v43 = vrot.slane %v469_v26, 7  ;;  %v511_v44 = vld [vmem:[#allocation2 + $0x4] sm:$0x3] }
  0x19   : > { %v562_v45 = vrot.slane %v469_v26, 6  ;;  %v563_v46 = vrot.slane %v472_v27, 7  ;;  %v488_v49 = vor.u32 %v486_v25, %v485_v39  ;;  %v505_v50 = vld [vmem:[#allocation2] sm:$0x3]  ;;  %v560_v52 = vor.u32 %v559_v36, %v558_v35 }
  0x1a   : > { %v515_v47 = vsel %vm1248_vm5, %v481_v37, %v514_v33  ;;  %v509_v48 = vsel %vm1248_vm5, %v467_v38, %v508_v34  ;;  %v520_v51 = vld [vmem:[#allocation2 + $0xa] sm:$0x3]  ;;  %v474_v53 = vor.u32 %v472_v27, %v471_v43  ;;  %v506_v54 = vsel %vm1248_vm5, %v1240_v14, %v505_v50  ;;  %v1131_v5 = vld [vmem:[%s1357_s0] sm:$0x3f]  }
  0x1b   : > { %516 = vst [vmem:[#allocation2 + $0x6] sm:$0x3] %v515_v47  ;;  %510 = vst [vmem:[#allocation2 + $0x2] sm:$0x3] %v509_v48  ;;  %v521_v55 = vsel %vm1248_vm5, %v1240_v14, %v520_v51  ;;  %v564_v56 = vor.u32 %v563_v46, %v562_v45  ;;  %v518_v57 = vsel %vm1248_vm5, %v488_v49, %v517_v40  ;;  %1126 = vrot.lane.b32.xlu0 %v1157_v13, %s1158_s27  ;;  %v1160_v4 = vmov 0.0  }
  0x1c   : > { %507 = vst [vmem:[#allocation2] sm:$0x3] %v506_v54  ;;  %522 = vst [vmem:[#allocation2 + $0xa] sm:$0x3] %v521_v55  ;;  %v561_v58 = vrot.slane %v560_v52, 2  ;;  %v568_v59 = vor.u32 %v567_v30, %v566_v29  ;;  %v572_v60 = vor.u32 %v571_v42, %v570_v41  ;;  %v512_v61 = vsel %vm1248_vm5, %v474_v53, %v511_v44 }
  0x1d   : > { %519 = vst [vmem:[#allocation2 + $0x8] sm:$0x3] %v518_v57  ;;  %v565_v62 = vrot.slane %v564_v56, 2  ;;  %513 = vst [vmem:[#allocation2 + $0x4] sm:$0x3] %v512_v61  ;;  %v556_v0 = vor.u32 %v1242_v15, %v1240_v14  ;;  %1077 = vmatprep.subr.bf16.mxu0 %v1160_v4  ;;  %v684_v6 = vsel %vm682_vm6, %v1130_v3, 0  ;;  %1083 = vmatprep.subr.bf16.mxu1 %v1160_v4  ;;  %v661_v44 = vlaneseq }
  0x1e   : > { %580 = vrot.lane.b32.xlu1 %v561_v58, %s1159_s28  ;;  %v569_v63 = vrot.slane %v568_v59, 2  ;;  %v573_v1 = vrot.slane %v572_v60, 2  ;;  %vm1161_vm7 = vmmov 0   ;;  %1078 = vmatpush3.bf16.msra.mxu0 %v684_v6  ;;  %v757_v7 = vsel %vm682_vm6, %v1131_v5, 0  ;;  %v1132_v58 = vld [vmem:[%s1357_s0 + $0x10] sm:$0x3f]  }
  0x1f   : > { %582 = vrot.lane.b32.xlu0 %v565_v62, %s1159_s28  ;;  %v557_v2 = vrot.slane %v556_v0, 2  ;;  %1079 = vmatprep.mubr.msk.bf16.mxu0 %vm1161_vm7, %v1160_v4  ;;  %vm547_vm8 = vcmask 58400   ;;  %vm596_vm9 = vcmask 91200   ;;  %vm597_vm10 = vsmask.f32 1280 }
  0x20   : > { %1084 = vmatpush3.bf16.msra.mxu1 %v757_v7  ;;  %1089 = vmatprep.subr.bf16.mxu0 %v1160_v4  ;;  %vm1290_vm11 = vmand %vm596_vm9, %vm597_vm10  ;;  %vm617_vm12 = vcmask 91201   ;;  %vm618_vm13 = vsmask.f32 7942  ;;  %v1162_v42 = vmov 1983009808   ;;  %v662_v50 = vshrl.u32 %v661_v44, 7 }
  0x21   : > { %1085 = vmatprep.mubr.msk.bf16.mxu1 %vm1161_vm7, %v1160_v4  ;;  %vm1302_vm14 = vmand %vm617_vm12, %vm618_vm13  ;;  %v659_v43 = vunpack.c.l.s4 %v1162_v42  ;;  %vm678_vm15 = vcmask 97280   ;;  %v838_v3 = vsel %vm682_vm6, %v1132_v58, 0 }
  0x22   : > { %584 = vrot.lane.b32.xlu1 %v569_v63, %s1159_s28 }
  0x23   : > { %586 = vrot.lane.b32.xlu0 %v573_v1, %s1159_s28  ;;  %v660_v49 = vunpack.c.0.s8 %v659_v43 }
  0x25   : > { %v663_v57 = vsub.s32 %v660_v49, %v662_v50 }
  0x26   : > { %578 = vrot.lane.b32.xlu1 %v557_v2, %s1159_s28 }
  0x27   : > { %588 = vrot.lane.b32.xlu0 %v557_v2, %s1159_s28 }
  0x85   : > { %v536_v8 = vpop.permute.xlu1 %535  ;;  %v532_v9 = vpop.permute.xlu0 %531 }
  0x86   : > { %551 = vst.msk [vmem:[#allocation2 + $0x6] sm:$0x3] %vm547_vm8, %v536_v8  ;;  %549 = vst.msk [vmem:[#allocation2 + $0x2] sm:$0x3] %vm547_vm8, %v532_v9 }
  0x89   : > { %v538_v10 = vpop.permute.xlu1 %537  ;;  %v534_v11 = vpop.permute.xlu0 %533 }
  0x8a   : > { %552 = vst.msk [vmem:[#allocation2 + $0x8] sm:$0x3] %vm547_vm8, %v538_v10  ;;  %550 = vst.msk [vmem:[#allocation2 + $0x4] sm:$0x3] %vm547_vm8, %v534_v11 }
  0x8d   : > { %v1127_v12 = vpop.permute.xlu0 %1126  ;;  %v602_v14 = vld [vmem:[#allocation2 + $0x2] sm:$0x3]  ;;  %v608_v21 = vld [vmem:[#allocation2 + $0x6] sm:$0x3] }
  0x8e   : > { %v1129_v15 = vunpack.i.h.bf16 %v1127_v12  ;;  %v1128_v16 = vunpack.i.l.bf16 %v1127_v12 }
  0x90   : > { %v581_v17 = vpop.permute.xlu1 %580  ;;  %548 = vst.msk [vmem:[#allocation2] sm:$0x3] %vm547_vm8, %v1128_v16  ;;  %553 = vst.msk [vmem:[#allocation2 + $0xa] sm:$0x3] %vm547_vm8, %v1129_v15 }
  0x91   : > { %v603_v18 = vsel %vm1290_vm11, %v581_v17, %v602_v14  ;;  %v605_v19 = vld [vmem:[#allocation2 + $0x4] sm:$0x3]  ;;  %v583_v20 = vpop.permute.xlu0 %582  ;;  %v611_v24 = vld [vmem:[#allocation2 + $0x8] sm:$0x3] }
  0x92   : > { %604 = vst [vmem:[#allocation2 + $0x2] sm:$0x3] %v603_v18  ;;  %v606_v22 = vsel %vm1290_vm11, %v583_v20, %v605_v19 }
  0x93   : > { %607 = vst [vmem:[#allocation2 + $0x4] sm:$0x3] %v606_v22 }
  0x94   : > { %v585_v23 = vpop.permute.xlu1 %584 }
  0x95   : > { %v609_v25 = vsel %vm1290_vm11, %v585_v23, %v608_v21  ;;  %v587_v26 = vpop.permute.xlu0 %586 }
  0x96   : > { %610 = vst [vmem:[#allocation2 + $0x6] sm:$0x3] %v609_v25  ;;  %v612_v28 = vsel %vm1290_vm11, %v587_v26, %v611_v24 }
  0x97   : > { %613 = vst [vmem:[#allocation2 + $0x8] sm:$0x3] %v612_v28  ;;  %v599_v29 = vld [vmem:[#allocation2] sm:$0x3]  ;;  %v614_v35 = vld [vmem:[#allocation2 + $0xa] sm:$0x3] }
  0x98   : > { %v579_v30 = vpop.permute.xlu1 %578 }
  0x99   : > { %v623_v31 = vld [vmem:[#allocation2 + $0x2] sm:$0x2]  ;;  %v600_v32 = vsel %vm1290_vm11, %v579_v30, %v599_v29  ;;  %v589_v34 = vpop.permute.xlu0 %588  ;;  %v1063_v30 = vld [vmem:[%s1359_s2] ss:$0 sm:$0xff] }
  0x9a   : > { %v624_v33 = vsel %vm1302_vm14, 0, %v623_v31  ;;  %601 = vst [vmem:[#allocation2] sm:$0x3] %v600_v32  ;;  %v626_v36 = vld [vmem:[#allocation2 + $0x4] sm:$0x2]  ;;  %v615_v37 = vsel %vm1290_vm11, %v589_v34, %v614_v35 }
  0x9b   : > { %625 = vst [vmem:[#allocation2 + $0x2] sm:$0x2] %v624_v33  ;;  %v627_v38 = vsel %vm1302_vm14, 0, %v626_v36  ;;  %616 = vst [vmem:[#allocation2 + $0xa] sm:$0x3] %v615_v37 }
  0x9c   : > { %628 = vst [vmem:[#allocation2 + $0x4] sm:$0x2] %v627_v38 }
  0x9d   : > { %v629_v39 = vld [vmem:[#allocation2 + $0x6] sm:$0x2] }
  0x9e   : > { %v630_v40 = vsel %vm1302_vm14, 0, %v629_v39  ;;  %v632_v41 = vld [vmem:[#allocation2 + $0x8] sm:$0x2] }
  0x9f   : > { %631 = vst [vmem:[#allocation2 + $0x6] sm:$0x2] %v630_v40  ;;  %v633_v45 = vsel %vm1302_vm14, 0, %v632_v41 }
  0xa0   : > { %634 = vst [vmem:[#allocation2 + $0x8] sm:$0x2] %v633_v45 }
  0xa1   : > { %v620_v46 = vld [vmem:[#allocation2] sm:$0x2] }
  0xa2   : > { %v621_v47 = vsel %vm1302_vm14, 0, %v620_v46  ;;  %v635_v48 = vld [vmem:[#allocation2 + $0xa] sm:$0x2]  ;;  %v645_v53 = vld [vmem:[#allocation2 + $0x2] sm:$0x3] }
  0xa3   : > { %622 = vst [vmem:[#allocation2] sm:$0x2] %v621_v47  ;;  %v636_v51 = vsel %vm1302_vm14, 0, %v635_v48  ;;  %v646_v52 = vld [vmem:[#allocation2 + $0x4] sm:$0x3] }
  0xa4   : > { %637 = vst [vmem:[#allocation2 + $0xa] sm:$0x2] %v636_v51  ;;  %v640_v54 = vld [vmem:[#allocation2 + $0x4] sm:$0x3]  ;;  %v656_v56 = vcombine.low %v645_v53, %v646_v52  ;;  %v639_v0 = vld [vmem:[#allocation2 + $0x2] sm:$0x3] }
  0xa5   : > { %v801_v6 = vld [vmem:[#allocation2 + $0x4] sm:$0x3] }
  0xa6   : > { %v641_v55 = vld [vmem:[#allocation2 + $0x6] sm:$0x3]  ;;  %v664_v1 = vrot.slane %v656_v56, %v663_v57 }
  0xa7   : > { %v647_v59 = vld [vmem:[#allocation2 + $0x6] sm:$0x3]  ;;  %v648_v60 = vld [vmem:[#allocation2 + $0x8] sm:$0x3]  ;;  %v732_v62 = vcombine.low %v640_v54, %v641_v55 }
  0xa8   : > { %v657_v61 = vcombine.low %v647_v59, %v648_v60  ;;  %v802_v7 = vld [vmem:[#allocation2 + $0x6] sm:$0x3]  ;;  %v803_v8 = vld [vmem:[#allocation2 + $0x8] sm:$0x3] }
  0xa9   : > { %v746_v12 = vrot.slane %v732_v62, %v663_v57  ;;  %v812_v15 = vcombine.low %v801_v6, %v802_v7 }
  0xaa   : > { %v638_v63 = vld [vmem:[#allocation2] sm:$0x3]  ;;  %v671_v2 = vrot.slane %v657_v61, %v663_v57 }
  0xab   : > { %v731_v5 = vcombine.low %v638_v63, %v639_v0  ;;  %v804_v9 = vld [vmem:[#allocation2 + $0xa] sm:$0x3]  ;;  %v820_v17 = vrot.slane %v812_v15, %v663_v57 }
  0xac   : > { %v672_v10 = vcombine.low %v664_v1, %v671_v2  ;;  %v813_v13 = vcombine.low %v803_v8, %v804_v9 }
  0xad   : > { %v739_v11 = vrot.slane %v731_v5, %v663_v57 }
  0xae   : > { %1080 = vmatmul.mubr.msk.bf16.vlgmr.msra.gmra.mxu0 %vm678_vm15, %v672_v10  ;;  %v827_v16 = vrot.slane %v813_v13, %v663_v57 }
  0xaf   : > { %v747_v14 = vcombine.low %v739_v11, %v746_v12  ;;  %1090 = vmatpush3.bf16.msra.mxu0 %v838_v3  ;;  %1091 = vmatprep.mubr.msk.bf16.mxu0 %vm1161_vm7, %v1160_v4  ;;  %v1062_v4 = vld [vmem:[%s1358_s1] ss:$0 sm:$0xff] }
  0xb0   : > { %v828_v18 = vcombine.low %v820_v17, %v827_v16 }
  0xb1   : > { %1086 = vmatmul.mubr.msk.bf16.vlgmr.msra.gmra.mxu1 %vm678_vm15, %v747_v14 }
  0xb6   : > { %1092 = vmatmul.mubr.msk.bf16.vlgmr.msra.gmra.mxu0 %vm678_vm15, %v828_v18 }
 0x16e   : > { %v720_v19 = vpop.f32.mrf.mxu0 }
 0x170   : > { %v1081_v20 = vpop.f32.mrf.mxu0 }
 0x171   : > { %v793_v21 = vpop.f32.mrf.mxu1 }
 0x172   : > { %v723_v22 = vpop.f32.mrf.mxu0  ;;  %v794_v26 = vadd.f32 %v793_v21, %v720_v19 }
 0x173   : > { %v1087_v23 = vpop.f32.mrf.mxu1 }
 0x174   : > { %v1082_v24 = vpop.f32.mrf.mxu0 }
 0x175   : > { %v796_v25 = vpop.f32.mrf.mxu1 }
 0x176   : > { %v874_v28 = vpop.f32.mrf.mxu0  ;;  %v797_v32 = vadd.f32 %v796_v25, %v723_v22 }
 0x177   : > { %v1088_v27 = vpop.f32.mrf.mxu1  ;;  %v881_v29 = vadd.f32 %v874_v28, %v794_v26 }
 0x178   : > { %v1093_v31 = vpop.f32.mrf.mxu0 }
 0x179   : > { %v890_v33 = vmul.f32 %v1062_v4, %v881_v29 }
 0x17a   : > { %v877_v34 = vpop.f32.mrf.mxu0 }
 0x17b   : > { %v899_v35 = vadd.f32 %v1063_v30, %v890_v33  ;;  %v882_v36 = vadd.f32 %v877_v34, %v797_v32 }
 0x17c   : > { %v1094_v37 = vpop.f32.mrf.mxu0 }
 0x17d   : > { %v903_v38 = vcombine.high %v899_v35, %v899_v35  ;;  %v907_v39 = vpack.c.bf16 %v899_v35, %v899_v35  ;;  %v891_v40 = vmul.f32 %v1062_v4, %v882_v36 }
 0x17f   : > { %v908_v41 = vpack.c.bf16 %v903_v38, %v903_v38  ;;  %912 = vst.msk [vmem:[%s407_s17] sm:$0x3] %vm502_vm4, %v907_v39  ;;  %v900_v42 = vadd.f32 %v1063_v30, %v891_v40 }
 0x181   : > { %913 = vst.msk [vmem:[%s407_s17 + $0x2] sm:$0x3] %vm502_vm4, %v908_v41  ;;  %v904_v43 = vcombine.high %v900_v42, %v900_v42  ;;  %v909_v44 = vpack.c.bf16 %v900_v42, %v900_v42 }
 0x183   : > { %v910_v45 = vpack.c.bf16 %v904_v43, %v904_v43  ;;  %914 = vst.msk [vmem:[%s407_s17 + $0x4] sm:$0x3] %vm502_vm4, %v909_v44 }
 0x185   : > { %915 = vst.msk [vmem:[%s407_s17 + $0x6] sm:$0x3] %vm502_vm4, %v910_v45 }
 0x186 PF: > { %s16_s23 = sadd.s32 1, %s1155_s23   ;;  %s1372_s21 = smov %s1151_s22 }
 0x187   : > { %p13_p5 = scmp.ge.s32.totalorder %s16_s23, 4   ;;  %s1373_s22 = smov %s1375_s4 }
 0x189   :  { %15 = sbr.rel (!%p13_p5) target bundleno = 2 (0x2), region = 84 }

// kernel: bga_pallas.7
= control target key start
LH: loop header
LB: loop body
LE: loop exit
PB: predicated region body
PF: predicated region fallthrough
CT: control target
= control target key end

     0   :  { %s2167_s27 = smov 0   ;;  %s2169_s28 = smov 0   ;;  %s2601_s0 = inlined_call_operand.vmem [shape: bf16[3,12,4], index: 0, kind: input, shape index: {}]   ;;  %s2602_s1 = inlined_call_operand.vmem [shape: f32[1,4], index: 1, kind: input, shape index: {}]   ;;  %s2603_s2 = inlined_call_operand.vmem [shape: f32[1,4], index: 2, kind: input, shape index: {}]   ;;  %s2604_s3 = inlined_call_operand.vmem [shape: f32[4,8], index: 3, kind: input, shape index: {}]   ;;  %s2605_s4 = inlined_call_operand.vmem [shape: bf16[2,16,8,8], index: 4, kind: input, shape index: {}, may-alias: {4,5,6,7}]   ;;  %s2606_s5 = inlined_call_operand.vmem [shape: bf16[2,16,8,8], index: 5, kind: input, shape index: {}, may-alias: {4,5,6,7}]   ;;  %s2607_s6 = inlined_call_operand.vmem [shape: bf16[2,16,8,8], index: 6, kind: input, shape index: {}, may-alias: {4,5,6,7}]   ;;  %s2608_s7 = inlined_call_operand.vmem [shape: bf16[2,16,8,8], index: 7, kind: input, shape index: {}, may-alias: {4,5,6,7}]   ;;  %s2609_s8 = inlined_call_operand.vmem [shape: f32[2,4,4,4], index: 8, kind: output, shape index: {}]  }
   0x1   :  { %s2171_s29 = smov 0  }
   0x2 LB: > { %s30_s5 = sadd.s32 1, %s2111_s28  ;;  %p1863_p0 = scmp.ge.s32.totalorder %s2115_s29, 1  ;;  %s2115_s29 = sphi %s2171_s29, %s18_s29   ;;  %s2111_s28 = sphi %s2169_s28, %s2615_s28   ;;  %s2107_s27 = sphi %s2167_s27, %s2614_s27  }
   0x3   : > { %p32_p1 = scmp.ge.s32.totalorder %s30_s5, 2  ;;  %p376_p2 = scmp.lt.s32.totalorder %s2115_s29, 3 }
   0x5   : > { %s2617_s5 = smov (%p32_p1, %s30_s5), 0  ;;  %p377_p3 = pnand %p1863_p0, %p376_p2 }
   0x6   : > { %p455_p4 = scmp.lt.s32.totalorder (!%p377_p3), %s2107_s27, 1  ;;  %s2118_s6 = smov (!%p377_p3), 124  }
   0x7   : > { %380 = sbr.rel (%p377_p3) target bundleno = 647 (0x287), region = 52  ;;  %s2119_s11 = smov (!%p377_p3), 4  }
   0xc   : > { %v2117_v0 = vmov 0   ;;  %vm549_vm0 = vcmask 24576   ;;  %vm550_vm1 = vsmask.f32 256  ;;  %v552_v3 = vld [vmem:[#allocation2] sm:$0x1] }
   0xd   : > { %v582_v1 = vrot.slane %v2117_v0, 7  ;;  %vm2185_vm2 = vmand %vm549_vm0, %vm550_vm1  ;;  %v555_v4 = vld [vmem:[#allocation2 + $0x4] sm:$0x1]  ;;  %s2619_s27 = smov (!%p455_p4, %s2107_s27), 1  ;;  %v558_v8 = vld [vmem:[#allocation2 + $0x8] sm:$0x1] }
   0xe   : > { %v553_v6 = vsel %vm2185_vm2, 0, %v552_v3  ;;  %v556_v7 = vsel %vm2185_vm2, 0, %v555_v4  ;;  %v559_v9 = vsel %vm2185_vm2, 0, %v558_v8  ;;  %v561_v10 = vld [vmem:[#allocation2 + $0xc] sm:$0x1]  ;;  %s1919_s7 = sshll.u32 %s2619_s27, 6 }
   0xf   : > { %v2067_v5 = vpack.i.bf16 %v582_v1, %v582_v1  ;;  %554 = vst [vmem:[#allocation2] sm:$0x1] %v553_v6  ;;  %557 = vst [vmem:[#allocation2 + $0x4] sm:$0x1] %v556_v7  ;;  %v562_v11 = vsel %vm2185_vm2, 0, %v561_v10  ;;  %s2204_s10 = scalar_lea.vmem %s2605_s4, %s1919_s7  ;;  %vm992_vm3 = vcmask 1045504  }
  0x10   : > { %560 = vst [vmem:[#allocation2 + $0x8] sm:$0x1] %v559_v9  ;;  %563 = vst [vmem:[#allocation2 + $0xc] sm:$0x1] %v562_v11  ;;  %v536_v12 = vld [vmem:[%s2204_s10 + $0xc] sm:$0xf] }
  0x11   : > { %2068 = vrot.lane.b32.xlu0 %v2067_v5, %s2118_s6  ;;  %v534_v13 = vld [vmem:[%s2204_s10 + $0x4] sm:$0xf]  ;;  %v533_v14 = vld [vmem:[%s2204_s10] sm:$0xf]  ;;  %714 = vrot.lane.b32.xlu1 %v536_v12, %s2119_s11  ;;  %v601_v15 = vshrl.u32 %v536_v12, 16  ;;  %v604_v19 = vshll.u32 %v536_v12, 16 }
  0x12   : > { %v594_v16 = vshrl.u32 %v534_v13, 16  ;;  %v597_v17 = vshll.u32 %v534_v13, 16  ;;  %v774_v21 = vshrl.u32 %v533_v14, 16  ;;  %v538_v22 = vld [vmem:[%s2204_s10 + $0x14] sm:$0xf]  ;;  %v777_v27 = vshll.u32 %v533_v14, 16 }
  0x13   : > { %v603_v18 = vrot.slane %v601_v15, 7  ;;  %v608_v24 = vshrl.u32 %v538_v22, 16  ;;  %v540_v28 = vld [vmem:[%s2204_s10 + $0x1c] sm:$0xf]  ;;  %v611_v30 = vshll.u32 %v538_v22, 16  ;;  %v2120_v47 = vmov 0.0  }
  0x14   : > { %v596_v20 = vrot.slane %v594_v16, 7  ;;  %v776_v26 = vrot.slane %v774_v21, 7  ;;  %v615_v32 = vshrl.u32 %v540_v28, 16  ;;  %v535_v33 = vld [vmem:[%s2204_s10 + $0x8] sm:$0xf]  ;;  %v618_v37 = vshll.u32 %v540_v28, 16  ;;  %1950 = vmatprep.subr.bf16.mxu0 %v2120_v47  ;;  %2036 = vmatprep.subr.bf16.mxu1 %v2120_v47 }
  0x15   : > { %2073 = vrot.lane.b32.xlu0 %v2117_v0, %s2119_s11  ;;  %v606_v25 = vor.u32 %v604_v19, %v603_v18  ;;  %v610_v29 = vrot.slane %v608_v24, 7  ;;  %v781_v35 = vshrl.u32 %v535_v33, 16  ;;  %v564_v38 = vld [vmem:[#allocation2 + $0x10] sm:$0x1]  ;;  %v567_v39 = vld [vmem:[#allocation2 + $0x14] sm:$0x1] }
  0x16   : > { %v599_v23 = vor.u32 %v597_v17, %v596_v20  ;;  %v779_v31 = vor.u32 %v777_v27, %v776_v26  ;;  %v617_v36 = vrot.slane %v615_v32, 7  ;;  %v537_v40 = vld [vmem:[%s2204_s10 + $0x10] sm:$0xf]  ;;  %v565_v41 = vsel %vm2185_vm2, 0, %v564_v38  ;;  %v2077_v43 = vld [vmem:[%s2601_s0 + $0x8] sm:$0x3f]  }
  0x17   : > { %v613_v34 = vor.u32 %v611_v30, %v610_v29  ;;  %v568_v42 = vsel %vm2185_vm2, 0, %v567_v39  ;;  %566 = vst [vmem:[#allocation2 + $0x10] sm:$0x1] %v565_v41  ;;  %v576_v44 = vld [vmem:[#allocation2 + $0x20] sm:$0x1]  ;;  %v783_v45 = vrot.slane %v781_v35, 7 }
  0x18   : > { %646 = vrot.lane.b32.xlu1 %v599_v23, %s2118_s6  ;;  %569 = vst [vmem:[#allocation2 + $0x14] sm:$0x1] %v568_v42  ;;  %v784_v46 = vshll.u32 %v535_v33, 16  ;;  %v994_v48 = vsel %vm992_vm3, %v2077_v43, 0  ;;  %v570_v49 = vld [vmem:[#allocation2 + $0x18] sm:$0x1]  ;;  %v620_v50 = vor.u32 %v618_v37, %v617_v36 }
  0x19   : > { %712 = vrot.lane.b32.xlu0 %v534_v13, %s2119_s11  ;;  %v788_v51 = vshrl.u32 %v537_v40, 16  ;;  %v546_v52 = vld [vmem:[%s2204_s10 + $0x34] sm:$0xf]  ;;  %1951 = vmatpush3.bf16.msra.mxu0 %v994_v48  ;;  %v577_v53 = vsel %vm2185_vm2, 0, %v576_v44  ;;  %v571_v54 = vsel %vm2185_vm2, 0, %v570_v49  ;;  %vm2121_vm4 = vmmov 0  }
  0x1a   : > { %1952 = vmatprep.mubr.msk.bf16.mxu0 %vm2121_vm4, %v2120_v47  ;;  %578 = vst [vmem:[#allocation2 + $0x20] sm:$0x1] %v577_v53  ;;  %v573_v55 = vld [vmem:[#allocation2 + $0x1c] sm:$0x1]  ;;  %572 = vst [vmem:[#allocation2 + $0x18] sm:$0x1] %v571_v54  ;;  %2037 = vmatpush3.bf16.msra.mxu1 %v994_v48  ;;  %v786_v57 = vor.u32 %v784_v46, %v783_v45 }
  0x1b   : > { %v574_v56 = vsel %vm2185_vm2, 0, %v573_v55  ;;  %1968 = vmatprep.mubr.msk.bf16.mxu1 %vm2121_vm4, %v2120_v47  ;;  %v636_v58 = vshrl.u32 %v546_v52, 16  ;;  %1972 = vmatprep.subr.bf16.mxu1 %v2120_v47  ;;  %v790_v59 = vrot.slane %v788_v51, 7  ;;  %v791_v60 = vshll.u32 %v537_v40, 16  ;;  %v544_v61 = vld [vmem:[%s2204_s10 + $0x2c] sm:$0xf] }
  0x1c   : > { %648 = vrot.lane.b32.xlu1 %v606_v25, %s2118_s6  ;;  %575 = vst [vmem:[#allocation2 + $0x1c] sm:$0x1] %v574_v56  ;;  %1994 = vmatprep.subr.bf16.mxu0 %v2120_v47  ;;  %v542_v62 = vld [vmem:[%s2204_s10 + $0x24] sm:$0xf]  ;;  %v632_v6 = vshll.u32 %v544_v61, 16  ;;  %vm669_vm5 = vcmask 27648  }
  0x1d   : > { %829 = vrot.lane.b32.xlu0 %v582_v1, %s2118_s6  ;;  %v638_v63 = vrot.slane %v636_v58, 7  ;;  %v629_v1 = vshrl.u32 %v544_v61, 16  ;;  %v793_v2 = vor.u32 %v791_v60, %v790_v59  ;;  %v622_v3 = vshrl.u32 %v542_v62, 16  ;;  %v539_v9 = vld [vmem:[%s2204_s10 + $0x18] sm:$0xf]  ;;  %s1923_s24 = sshll.u32 %s2619_s27, 4 }
  0x1e   : > { %v625_v8 = vshll.u32 %v542_v62, 16  ;;  %v795_v11 = vshrl.u32 %v539_v9, 16  ;;  %v541_v13 = vld [vmem:[%s2204_s10 + $0x20] sm:$0xf]  ;;  %v798_v15 = vshll.u32 %v539_v9, 16  ;;  %vm735_vm8 = vcmask 60448  }
  0x1f   : > { %v631_v5 = vrot.slane %v629_v1, 7  ;;  %v624_v7 = vrot.slane %v622_v3, 7  ;;  %v802_v16 = vshrl.u32 %v541_v13, 16  ;;  %v547_v17 = vld [vmem:[%s2204_s10 + $0x38] sm:$0xf]  ;;  %v805_v21 = vshll.u32 %v541_v13, 16 }
  0x20   : > { %831 = vrot.lane.b32.xlu1 %v779_v31, %s2118_s6  ;;  %v823_v19 = vshrl.u32 %v547_v17, 16  ;;  %v543_v23 = vld [vmem:[%s2204_s10 + $0x28] sm:$0xf]  ;;  %v826_v25 = vshll.u32 %v547_v17, 16  ;;  %vm670_vm6 = vsmask.f32 7938 }
  0x21   : > { %891 = vrot.lane.b32.xlu0 %v2117_v0, %s2119_s11  ;;  %v639_v0 = vshll.u32 %v546_v52, 16  ;;  %v634_v10 = vor.u32 %v632_v6, %v631_v5  ;;  %v627_v12 = vor.u32 %v625_v8, %v624_v7  ;;  %v804_v20 = vrot.slane %v802_v16, 7  ;;  %vm2280_vm7 = vmand %vm669_vm5, %vm670_vm6  ;;  %v672_v43 = vld [vmem:[#allocation2] sm:$0xf]  ;;  %v675_v44 = vld [vmem:[#allocation2 + $0x4] sm:$0xf] }
  0x22   : > { %v825_v24 = vrot.slane %v823_v19, 7  ;;  %vm745_vm9 = vcmask 93248   ;;  %v678_v54 = vld [vmem:[#allocation2 + $0x8] sm:$0xf]  ;;  %v681_v58 = vld [vmem:[#allocation2 + $0xc] sm:$0xf] }
  0x23   : > { %v641_v4 = vor.u32 %v639_v0, %v638_v63  ;;  %v807_v27 = vor.u32 %v805_v21, %v804_v20  ;;  %v684_v5 = vld [vmem:[#allocation2 + $0x10] sm:$0xf]  ;;  %vm976_vm10 = vcmask 97280   ;;  %vm1425_vm11 = vcmask 64512  }
  0x24   : > { %893 = vrot.lane.b32.xlu1 %v533_v14, %s2119_s11  ;;  %v797_v14 = vrot.slane %v795_v11, 7  ;;  %v828_v29 = vor.u32 %v826_v25, %v825_v24 }
  0x25   : > { %650 = vrot.lane.b32.xlu0 %v613_v34, %s2118_s6  ;;  %v548_v34 = vld [vmem:[%s2204_s10 + $0x3c] sm:$0xf] }
  0x26   : > { %v800_v18 = vor.u32 %v798_v15, %v797_v14  ;;  %v1187_v36 = vshrl.u32 %v548_v34, 16  ;;  %v1190_v39 = vshll.u32 %v548_v34, 16  ;;  %v2084_v15 = vld [vmem:[%s2601_s0 + $0x10] sm:$0x3f]  }
  0x27   : > { %v1300_v25 = vsel %vm992_vm3, %v2084_v15, 0 }
  0x28   : > { %652 = vrot.lane.b32.xlu1 %v620_v50, %s2118_s6  ;;  %v1189_v38 = vrot.slane %v1187_v36, 7 }
  0x29   : > { %716 = vrot.lane.b32.xlu0 %v538_v22, %s2119_s11  ;;  %v545_v22 = vld [vmem:[%s2204_s10 + $0x30] sm:$0xf] }
  0x2a   : > { %v816_v26 = vshrl.u32 %v545_v22, 16  ;;  %v819_v31 = vshll.u32 %v545_v22, 16 }
  0x2c   : > { %718 = vrot.lane.b32.xlu1 %v540_v28, %s2119_s11  ;;  %v809_v28 = vshrl.u32 %v543_v23, 16  ;;  %v818_v30 = vrot.slane %v816_v26, 7 }
  0x2d   : > { %833 = vrot.lane.b32.xlu0 %v786_v57, %s2118_s6 }
  0x2e   : > { %v811_v32 = vrot.slane %v809_v28, 7  ;;  %v821_v35 = vor.u32 %v819_v31, %v818_v30  ;;  %v696_v30 = vld [vmem:[#allocation2 + $0x20] sm:$0xf] }
  0x30   : > { %835 = vrot.lane.b32.xlu1 %v793_v2, %s2118_s6 }
  0x31   : > { %895 = vrot.lane.b32.xlu0 %v535_v33, %s2119_s11  ;;  %v812_v33 = vshll.u32 %v543_v23, 16 }
  0x33   : > { %v814_v37 = vor.u32 %v812_v33, %v811_v32 }
  0x34   : > { %897 = vrot.lane.b32.xlu1 %v537_v40, %s2119_s11  ;;  %v1192_v40 = vor.u32 %v1190_v39, %v1189_v38 }
  0x35   : > { %658 = vrot.lane.b32.xlu0 %v641_v4, %s2118_s6 }
  0x38   : > { %654 = vrot.lane.b32.xlu1 %v627_v12, %s2118_s6 }
  0x39   : > { %656 = vrot.lane.b32.xlu0 %v634_v10, %s2118_s6 }
  0x3c   : > { %724 = vrot.lane.b32.xlu1 %v546_v52, %s2119_s11 }
  0x3d   : > { %720 = vrot.lane.b32.xlu0 %v542_v62, %s2119_s11 }
  0x40   : > { %722 = vrot.lane.b32.xlu1 %v544_v61, %s2119_s11 }
  0x41   : > { %837 = vrot.lane.b32.xlu0 %v800_v18, %s2118_s6 }
  0x44   : > { %839 = vrot.lane.b32.xlu1 %v807_v27, %s2118_s6 }
  0x45   : > { %899 = vrot.lane.b32.xlu0 %v539_v9, %s2119_s11  ;;  %v687_v9 = vld [vmem:[#allocation2 + $0x14] sm:$0xf] }
  0x48   : > { %901 = vrot.lane.b32.xlu1 %v541_v13, %s2119_s11 }
  0x49   : > { %845 = vrot.lane.b32.xlu0 %v828_v29, %s2118_s6 }
  0x4c   : > { %841 = vrot.lane.b32.xlu1 %v814_v37, %s2118_s6 }
  0x4d   : > { %843 = vrot.lane.b32.xlu0 %v821_v35, %s2118_s6  ;;  %v690_v35 = vld [vmem:[#allocation2 + $0x18] sm:$0xf] }
  0x50   : > { %907 = vrot.lane.b32.xlu1 %v547_v17, %s2119_s11 }
  0x51   : > { %903 = vrot.lane.b32.xlu0 %v543_v23, %s2119_s11 }
  0x54   : > { %905 = vrot.lane.b32.xlu1 %v545_v22, %s2119_s11 }
  0x55   : > { %1193 = vrot.lane.b32.xlu0 %v1192_v40, %s2118_s6  ;;  %s520_s6 = scalar_lea.vmem %s2609_s8, %s1923_s24 }
  0x58   : > { %1223 = vrot.lane.b32.xlu1 %v548_v34, %s2119_s11  ;;  %v693_v34 = vld [vmem:[#allocation2 + $0x1c] sm:$0xf] }
  0x83   : > { %v2069_v42 = vpop.permute.xlu0 %2068  ;;  %v2288_v50 = vpop.permute.xlu1 %714 }
  0x84   : > { %v2071_v45 = vunpack.i.h.bf16 %v2069_v42  ;;  %v2070_v46 = vunpack.i.l.bf16 %v2069_v42 }
  0x86   : > { %v673_v48 = vsel %vm2280_vm7, %v2070_v46, %v672_v43  ;;  %v676_v49 = vsel %vm2280_vm7, %v2071_v45, %v675_v44 }
  0x87   : > { %674 = vst [vmem:[#allocation2] sm:$0xf] %v673_v48  ;;  %677 = vst [vmem:[#allocation2 + $0x4] sm:$0xf] %v676_v49  ;;  %v2074_v51 = vpop.permute.xlu0 %2073 }
  0x88   : > { %v2076_v52 = vunpack.i.h.bf16 %v2074_v51  ;;  %v2075_v53 = vunpack.i.l.bf16 %v2074_v51 }
  0x8a   : > { %736 = vst.msk [vmem:[#allocation2] sm:$0xf] %vm735_vm8, %v2075_v53  ;;  %737 = vst.msk [vmem:[#allocation2 + $0x4] sm:$0xf] %vm735_vm8, %v2076_v52  ;;  %v647_v56 = vpop.permute.xlu1 %646 }
  0x8b   : > { %747 = vst.msk [vmem:[#allocation2 + $0x4] sm:$0xf] %vm745_vm9, %v2076_v52  ;;  %746 = vst.msk [vmem:[#allocation2] sm:$0xf] %vm745_vm9, %v2075_v53  ;;  %v2294_v55 = vpop.permute.xlu0 %712  ;;  %v679_v57 = vsel %vm2280_vm7, %v647_v56, %v678_v54 }
  0x8c   : > { %680 = vst [vmem:[#allocation2 + $0x8] sm:$0xf] %v679_v57 }
  0x8d   : > { %738 = vst.msk [vmem:[#allocation2 + $0x8] sm:$0xf] %vm735_vm8, %v2294_v55 }
  0x8e   : > { %748 = vst.msk [vmem:[#allocation2 + $0x8] sm:$0xf] %vm745_vm9, %v2294_v55  ;;  %v2302_v60 = vpop.permute.xlu1 %648 }
  0x8f   : > { %v830_v59 = vpop.permute.xlu0 %829  ;;  %v682_v61 = vsel %vm2280_vm7, %v2302_v60, %v681_v58 }
  0x90   : > { %683 = vst [vmem:[#allocation2 + $0xc] sm:$0xf] %v682_v61 }
  0x91   : > { %739 = vst.msk [vmem:[#allocation2 + $0xc] sm:$0xf] %vm735_vm8, %v2288_v50 }
  0x92   : > { %v2307_v62 = vld [vmem:[#allocation2] sm:$0xf]  ;;  %v858_v63 = vld [vmem:[#allocation2 + $0x4] sm:$0xf]  ;;  %749 = vst.msk [vmem:[#allocation2 + $0xc] sm:$0xf] %vm745_vm9, %v2288_v50  ;;  %v832_v3 = vpop.permute.xlu1 %831 }
  0x93   : > { %v856_v0 = vsel %vm2280_vm7, %v830_v59, %v2307_v62  ;;  %v892_v1 = vpop.permute.xlu0 %891  ;;  %v2314_v2 = vld [vmem:[#allocation2 + $0x4] sm:$0xf]  ;;  %v859_v4 = vsel %vm2280_vm7, %v832_v3, %v858_v63 }
  0x94   : > { %857 = vst [vmem:[#allocation2] sm:$0xf] %v856_v0  ;;  %860 = vst [vmem:[#allocation2 + $0x4] sm:$0xf] %v859_v4  ;;  %v1887_v41 = vcombine.low %v2307_v62, %v2314_v2 }
  0x95   : > { %918 = vst.msk [vmem:[#allocation2] sm:$0xf] %vm735_vm8, %v892_v1  ;;  %v861_v17 = vld [vmem:[#allocation2 + $0x8] sm:$0xf] }
  0x96   : > { %927 = vst.msk [vmem:[#allocation2] sm:$0xf] %vm745_vm9, %v892_v1  ;;  %v894_v8 = vpop.permute.xlu1 %893 }
  0x97   : > { %v2322_v6 = vpop.permute.xlu0 %650  ;;  %919 = vst.msk [vmem:[#allocation2 + $0x4] sm:$0xf] %vm735_vm8, %v894_v8 }
  0x98   : > { %v685_v7 = vsel %vm2280_vm7, %v2322_v6, %v684_v5  ;;  %928 = vst.msk [vmem:[#allocation2 + $0x4] sm:$0xf] %vm745_vm9, %v894_v8 }
  0x99   : > { %686 = vst [vmem:[#allocation2 + $0x10] sm:$0xf] %v685_v7  ;;  %v2345_v18 = vld [vmem:[#allocation2 + $0x8] sm:$0xff]  }
  0x9a   : > { %v2333_v11 = vpop.permute.xlu1 %652  ;;  %v864_v27 = vld [vmem:[#allocation2 + $0xc] sm:$0xf] }
  0x9b   : > { %v2329_v10 = vpop.permute.xlu0 %716  ;;  %v688_v12 = vsel %vm2280_vm7, %v2333_v11, %v687_v9 }
  0x9c   : > { %740 = vst.msk [vmem:[#allocation2 + $0x10] sm:$0xf] %vm735_vm8, %v2329_v10  ;;  %689 = vst [vmem:[#allocation2 + $0x14] sm:$0xf] %v688_v12 }
  0x9d   : > { %750 = vst.msk [vmem:[#allocation2 + $0x10] sm:$0xf] %vm745_vm9, %v2329_v10  ;;  %v936_v13 = vld [vmem:[#allocation2] sm:$0xf] }
  0x9e   : > { %v1196_v14 = vsel %vm2280_vm7, %v2071_v45, %v936_v13  ;;  %v2349_v20 = vpop.permute.xlu1 %718 }
  0x9f   : > { %v834_v16 = vpop.permute.xlu0 %833  ;;  %1197 = vst [vmem:[#allocation2] sm:$0xf] %v1196_v14  ;;  %741 = vst.msk [vmem:[#allocation2 + $0x14] sm:$0xf] %vm735_vm8, %v2349_v20  ;;  %v937_v21 = vld [vmem:[#allocation2 + $0x4] sm:$0xf] }
  0xa0   : > { %v862_v19 = vsel %vm2280_vm7, %v834_v16, %v861_v17  ;;  %1226 = vst.msk [vmem:[#allocation2] sm:$0xf] %vm735_vm8, %v2076_v52  ;;  %v1198_v22 = vld [vmem:[#allocation2 + $0x4] sm:$0xf]  ;;  %v1876_v23 = vcombine.low %v936_v13, %v937_v21 }
  0xa1   : > { %863 = vst [vmem:[#allocation2 + $0x8] sm:$0xf] %v862_v19  ;;  %1235 = vst.msk [vmem:[#allocation2] sm:$0xf] %vm745_vm9, %v2076_v52  ;;  %v1199_v24 = vsel %vm2280_vm7, %v647_v56, %v1198_v22  ;;  %v2083_v16 = vld [vmem:[%s2601_s0] sm:$0x3f]  }
  0xa2   : > { %751 = vst.msk [vmem:[#allocation2 + $0x14] sm:$0xf] %vm745_vm9, %v2349_v20  ;;  %1200 = vst [vmem:[#allocation2 + $0x4] sm:$0xf] %v1199_v24  ;;  %1953 = vmatmul.mubr.msk.bf16.vlgmr.msra.gmra.mxu0 %vm976_vm10, %v1876_v23  ;;  %v836_v28 = vpop.permute.xlu1 %835  ;;  %v1112_v19 = vsel %vm992_vm3, %v2083_v16, 0 }
  0xa3   : > { %v896_v26 = vpop.permute.xlu0 %895  ;;  %1227 = vst.msk [vmem:[#allocation2 + $0x4] sm:$0xf] %vm735_vm8, %v2294_v55  ;;  %v865_v29 = vsel %vm2280_vm7, %v836_v28, %v864_v27  ;;  %1956 = vmatprep.mubr.msk.bf16.mxu0 %vm2121_vm4, %v2120_v47  ;;  %1995 = vmatpush3.bf16.msra.mxu0 %v1300_v25 }
  0xa4   : > { %920 = vst.msk [vmem:[#allocation2 + $0x8] sm:$0xf] %vm735_vm8, %v896_v26  ;;  %866 = vst [vmem:[#allocation2 + $0xc] sm:$0xf] %v865_v29  ;;  %v867_v49 = vld [vmem:[#allocation2 + $0x10] sm:$0xf] }
  0xa5   : > { %929 = vst.msk [vmem:[#allocation2 + $0x8] sm:$0xf] %vm745_vm9, %v896_v26  ;;  %1236 = vst.msk [vmem:[#allocation2 + $0x4] sm:$0xf] %vm745_vm9, %v2294_v55 }
  0xa6   : > { %v898_v33 = vpop.permute.xlu1 %897 }
  0xa7   : > { %v2371_v31 = vpop.permute.xlu0 %658  ;;  %921 = vst.msk [vmem:[#allocation2 + $0xc] sm:$0xf] %vm735_vm8, %v898_v33 }
  0xa8   : > { %v697_v32 = vsel %vm2280_vm7, %v2371_v31, %v696_v30  ;;  %930 = vst.msk [vmem:[#allocation2 + $0xc] sm:$0xf] %vm745_vm9, %v898_v33 }
  0xa9   : > { %698 = vst [vmem:[#allocation2 + $0x20] sm:$0xf] %v697_v32  ;;  %v2409_v52 = vld [vmem:[#allocation2 + $0x10] sm:$0xff]  }
  0xaa   : > { %v2383_v38 = vpop.permute.xlu1 %654  ;;  %v870_v56 = vld [vmem:[#allocation2 + $0x14] sm:$0xf] }
  0xab   : > { %v2378_v36 = vpop.permute.xlu0 %656  ;;  %v691_v39 = vsel %vm2280_vm7, %v2383_v38, %v690_v35 }
  0xac   : > { %v694_v37 = vsel %vm2280_vm7, %v2378_v36, %v693_v34  ;;  %692 = vst [vmem:[#allocation2 + $0x18] sm:$0xf] %v691_v39  ;;  %v1201_v40 = vld [vmem:[#allocation2 + $0x8] sm:$0xf]  ;;  %v2085_v29 = vld [vmem:[#allocation2] sm:$0xff]  }
  0xad   : > { %695 = vst [vmem:[#allocation2 + $0x1c] sm:$0xf] %v694_v37  ;;  %v1202_v45 = vsel %vm2280_vm7, %v2302_v60, %v1201_v40 }
  0xae   : > { %v2392_v43 = vpop.permute.xlu1 %724 }
  0xaf   : > { %v2388_v42 = vpop.permute.xlu0 %720  ;;  %744 = vst.msk [vmem:[#allocation2 + $0x20] sm:$0xf] %vm735_vm8, %v2392_v43  ;;  %v2079_v44 = vld [vmem:[#allocation2 + $0x8] sm:$0xff]  }
  0xb0   : > { %742 = vst.msk [vmem:[#allocation2 + $0x18] sm:$0xf] %vm735_vm8, %v2388_v42  ;;  %v1204_v46 = vld [vmem:[#allocation2 + $0xc] sm:$0xf]  ;;  %1203 = vst [vmem:[#allocation2 + $0x8] sm:$0xf] %v1202_v45  ;;  %1957 = vmatmul.mubr.msk.bf16.gmra.mxu0 %vm976_vm10, %v2079_v44 }
  0xb1   : > { %752 = vst.msk [vmem:[#allocation2 + $0x18] sm:$0xf] %vm745_vm9, %v2388_v42  ;;  %754 = vst.msk [vmem:[#allocation2 + $0x20] sm:$0xf] %vm745_vm9, %v2392_v43  ;;  %v1205_v48 = vsel %vm2280_vm7, %v2322_v6, %v1204_v46  ;;  %1960 = vmatprep.mubr.msk.bf16.mxu0 %vm2121_vm4, %v2120_v47 }
  0xb2   : > { %1206 = vst [vmem:[#allocation2 + $0xc] sm:$0xf] %v1205_v48  ;;  %1228 = vst.msk [vmem:[#allocation2 + $0x8] sm:$0xf] %vm735_vm8, %v2288_v50  ;;  %v2417_v54 = vpop.permute.xlu1 %722 }
  0xb3   : > { %v838_v51 = vpop.permute.xlu0 %837  ;;  %1229 = vst.msk [vmem:[#allocation2 + $0xc] sm:$0xf] %vm735_vm8, %v2329_v10  ;;  %743 = vst.msk [vmem:[#allocation2 + $0x1c] sm:$0xf] %vm735_vm8, %v2417_v54 }
  0xb4   : > { %v868_v53 = vsel %vm2280_vm7, %v838_v51, %v867_v49  ;;  %1237 = vst.msk [vmem:[#allocation2 + $0x8] sm:$0xf] %vm745_vm9, %v2288_v50  ;;  %1238 = vst.msk [vmem:[#allocation2 + $0xc] sm:$0xf] %vm745_vm9, %v2329_v10 }
  0xb5   : > { %869 = vst [vmem:[#allocation2 + $0x10] sm:$0xf] %v868_v53  ;;  %753 = vst.msk [vmem:[#allocation2 + $0x1c] sm:$0xf] %vm745_vm9, %v2417_v54 }
  0xb6   : > { %v840_v50 = vpop.permute.xlu1 %839 }
  0xb7   : > { %v900_v55 = vpop.permute.xlu0 %899  ;;  %v871_v57 = vsel %vm2280_vm7, %v840_v50, %v870_v56 }
  0xb8   : > { %922 = vst.msk [vmem:[#allocation2 + $0x10] sm:$0xf] %vm735_vm8, %v900_v55  ;;  %872 = vst [vmem:[#allocation2 + $0x14] sm:$0xf] %v871_v57  ;;  %v879_v59 = vld [vmem:[#allocation2 + $0x20] sm:$0xf] }
  0xb9   : > { %931 = vst.msk [vmem:[#allocation2 + $0x10] sm:$0xf] %vm745_vm9, %v900_v55  ;;  %v2431_v60 = vld [vmem:[#allocation2 + $0x20] sm:$0xf]  ;;  %v873_v5 = vld [vmem:[#allocation2 + $0x18] sm:$0xf] }
  0xba   : > { %v902_v63 = vpop.permute.xlu1 %901 }
  0xbb   : > { %v846_v58 = vpop.permute.xlu0 %845  ;;  %923 = vst.msk [vmem:[#allocation2 + $0x14] sm:$0xf] %vm735_vm8, %v902_v63  ;;  %v2086_v30 = vld [vmem:[#allocation2 + $0x8] sm:$0xff]  }
  0xbc   : > { %v880_v61 = vsel %vm2280_vm7, %v846_v58, %v879_v59  ;;  %932 = vst.msk [vmem:[#allocation2 + $0x14] sm:$0xf] %vm745_vm9, %v902_v63  ;;  %v876_v1 = vld [vmem:[#allocation2 + $0x1c] sm:$0xf] }
  0xbd   : > { %881 = vst [vmem:[#allocation2 + $0x20] sm:$0xf] %v880_v61  ;;  %v2437_v3 = vld [vmem:[#allocation2 + $0x18] sm:$0xff]  }
  0xbe   : > { %v842_v6 = vpop.permute.xlu1 %841 }
  0xbf   : > { %v844_v0 = vpop.permute.xlu0 %843  ;;  %v874_v7 = vsel %vm2280_vm7, %v842_v6, %v873_v5 }
  0xc0   : > { %v877_v4 = vsel %vm2280_vm7, %v844_v0, %v876_v1  ;;  %875 = vst [vmem:[#allocation2 + $0x18] sm:$0xf] %v874_v7  ;;  %v1207_v8 = vld [vmem:[#allocation2 + $0x10] sm:$0xf]  ;;  %v2537_v1 = vld [vmem:[%s2602_s1] ss:$0 sm:$0xff] }
  0xc1   : > { %878 = vst [vmem:[#allocation2 + $0x1c] sm:$0xf] %v877_v4  ;;  %v1208_v13 = vsel %vm2280_vm7, %v2333_v11, %v1207_v8 }
  0xc2   : > { %v908_v10 = vpop.permute.xlu1 %907 }
  0xc3   : > { %v904_v9 = vpop.permute.xlu0 %903  ;;  %926 = vst.msk [vmem:[#allocation2 + $0x20] sm:$0xf] %vm735_vm8, %v908_v10  ;;  %v2080_v12 = vld [vmem:[#allocation2 + $0x10] sm:$0xff]  }
  0xc4   : > { %924 = vst.msk [vmem:[#allocation2 + $0x18] sm:$0xf] %vm735_vm8, %v904_v9  ;;  %v1210_v14 = vld [vmem:[#allocation2 + $0x14] sm:$0xf]  ;;  %1209 = vst [vmem:[#allocation2 + $0x10] sm:$0xf] %v1208_v13  ;;  %1961 = vmatmul.mubr.msk.bf16.gmra.mxu0 %vm976_vm10, %v2080_v12 }
  0xc5   : > { %933 = vst.msk [vmem:[#allocation2 + $0x18] sm:$0xf] %vm745_vm9, %v904_v9  ;;  %935 = vst.msk [vmem:[#allocation2 + $0x20] sm:$0xf] %vm745_vm9, %v908_v10  ;;  %v1211_v15 = vsel %vm2280_vm7, %v2383_v38, %v1210_v14  ;;  %1964 = vmatprep.mubr.msk.bf16.mxu0 %vm2121_vm4, %v2120_v47  ;;  %v2543_v10 = vld [vmem:[%s2603_s2] ss:$0 sm:$0xff] }
  0xc6   : > { %1212 = vst [vmem:[#allocation2 + $0x14] sm:$0xf] %v1211_v15  ;;  %1230 = vst.msk [vmem:[#allocation2 + $0x10] sm:$0xf] %vm735_vm8, %v2349_v20  ;;  %v906_v11 = vpop.permute.xlu1 %905 }
  0xc7   : > { %1231 = vst.msk [vmem:[#allocation2 + $0x14] sm:$0xf] %vm735_vm8, %v2388_v42  ;;  %925 = vst.msk [vmem:[#allocation2 + $0x1c] sm:$0xf] %vm735_vm8, %v906_v11  ;;  %v1194_v17 = vpop.permute.xlu0 %1193 }
  0xc8   : > { %1239 = vst.msk [vmem:[#allocation2 + $0x10] sm:$0xf] %vm745_vm9, %v2349_v20  ;;  %1240 = vst.msk [vmem:[#allocation2 + $0x14] sm:$0xf] %vm745_vm9, %v2388_v42 }
  0xc9   : > { %934 = vst.msk [vmem:[#allocation2 + $0x1c] sm:$0xf] %vm745_vm9, %v906_v11 }
  0xca   : > { %v1224_v22 = vpop.permute.xlu1 %1223 }
  0xcc   : > { %v1219_v21 = vld [vmem:[#allocation2 + $0x20] sm:$0xf]  ;;  %v1213_v24 = vld [vmem:[#allocation2 + $0x18] sm:$0xf] }
  0xcd   : > { %v2081_v20 = vld [vmem:[#allocation2 + $0x20] ss:$0 sps:$4 sm:$0xff]   ;;  %v1220_v23 = vsel %vm2280_vm7, %v1194_v17, %v1219_v21  ;;  %v1214_v26 = vsel %vm2280_vm7, %v2378_v36, %v1213_v24 }
  0xce   : > { %1969 = vmatmul.mubr.msk.bf16.vlgmr.msra.gmra.mxu1 %vm976_vm10, %v2081_v20  ;;  %1221 = vst [vmem:[#allocation2 + $0x20] sm:$0xf] %v1220_v23 }
  0xcf   : > { %1973 = vmatpush3.bf16.msra.mxu1 %v1112_v19  ;;  %1974 = vmatprep.mubr.msk.bf16.mxu1 %vm2121_vm4, %v2120_v47  ;;  %1234 = vst.msk [vmem:[#allocation2 + $0x20] sm:$0xf] %vm735_vm8, %v1224_v22  ;;  %v2087_v62 = vld [vmem:[#allocation2 + $0x10] sm:$0xff]  }
  0xd0   : > { %v2082_v25 = vld [vmem:[#allocation2 + $0x18] sm:$0xff]   ;;  %1243 = vst.msk [vmem:[#allocation2 + $0x20] sm:$0xf] %vm745_vm9, %v1224_v22  ;;  %2016 = vmatprep.subr.mxu1 %v2120_v47 }
  0xd1   : > { %v1216_v27 = vld [vmem:[#allocation2 + $0x1c] sm:$0xf]  ;;  %1215 = vst [vmem:[#allocation2 + $0x18] sm:$0xf] %v1214_v26  ;;  %1965 = vmatmul.mubr.msk.bf16.gmra.mxu0 %vm976_vm10, %v2082_v25  ;;  %v2552_v26 = vld [vmem:[%s2604_s3] sm:$0xf] }
  0xd2   : > { %v1217_v28 = vsel %vm2280_vm7, %v2371_v31, %v1216_v27  ;;  %1232 = vst.msk [vmem:[#allocation2 + $0x18] sm:$0xf] %vm735_vm8, %v2417_v54  ;;  %1996 = vmatprep.mubr.msk.bf16.mxu0 %vm2121_vm4, %v2120_v47 }
  0xd3   : > { %1218 = vst [vmem:[#allocation2 + $0x1c] sm:$0xf] %v1217_v28  ;;  %1241 = vst.msk [vmem:[#allocation2 + $0x18] sm:$0xf] %vm745_vm9, %v2417_v54 }
  0xd4   : > { %1233 = vst.msk [vmem:[#allocation2 + $0x1c] sm:$0xf] %vm735_vm8, %v2392_v43 }
  0xd5   : > { %1242 = vst.msk [vmem:[#allocation2 + $0x1c] sm:$0xf] %vm745_vm9, %v2392_v43 }
  0xd6   : > { %1975 = vmatmul.mubr.msk.bf16.vlgmr.msra.gmra.mxu1 %vm976_vm10, %v1887_v41 }
  0xd7   : > { %1978 = vmatprep.mubr.msk.bf16.mxu1 %vm2121_vm4, %v2120_v47  ;;  %v2089_v31 = vld [vmem:[#allocation2 + $0x20] ss:$0 sps:$4 sm:$0xff]  }
  0xd9   : > { %1997 = vmatmul.mubr.msk.bf16.vlgmr.msra.gmra.mxu0 %vm976_vm10, %v2085_v29 }
  0xda   : > { %2000 = vmatprep.mubr.msk.bf16.mxu0 %vm2121_vm4, %v2120_v47 }
  0xdc   : > { %v2088_v2 = vld [vmem:[#allocation2 + $0x18] sm:$0xff]  }
  0xde   : > { %1979 = vmatmul.mubr.msk.bf16.gmra.mxu1 %vm976_vm10, %v2345_v18  ;;  %v1891_v18 = vcombine.low %v2431_v60, %v2431_v60 }
  0xdf   : > { %1982 = vmatprep.mubr.msk.bf16.mxu1 %vm2121_vm4, %v2120_v47 }
  0xe1   : > { %2001 = vmatmul.mubr.msk.bf16.gmra.mxu0 %vm976_vm10, %v2086_v30 }
  0xe2   : > { %2004 = vmatprep.mubr.msk.bf16.mxu0 %vm2121_vm4, %v2120_v47 }
  0xe6   : > { %1983 = vmatmul.mubr.msk.bf16.gmra.mxu1 %vm976_vm10, %v2409_v52 }
  0xe7   : > { %1986 = vmatprep.mubr.msk.bf16.mxu1 %vm2121_vm4, %v2120_v47 }
  0xe9   : > { %2005 = vmatmul.mubr.msk.bf16.gmra.mxu0 %vm976_vm10, %v2087_v62 }
  0xea   : > { %2008 = vmatprep.mubr.msk.bf16.mxu0 %vm2121_vm4, %v2120_v47 }
  0xee   : > { %1987 = vmatmul.mubr.msk.bf16.gmra.mxu1 %vm976_vm10, %v2437_v3 }
  0xef   : > { %1990 = vmatprep.mubr.msk.bf16.mxu1 %vm2121_vm4, %v2120_v47 }
  0xf1   : > { %2009 = vmatmul.mubr.msk.bf16.gmra.mxu0 %vm976_vm10, %v2088_v2 }
  0xf2   : > { %2012 = vmatprep.mubr.msk.bf16.mxu0 %vm2121_vm4, %v2120_v47 }
  0xf6   : > { %1991 = vmatmul.mubr.msk.bf16.gmra.mxu1 %vm976_vm10, %v1891_v18 }
  0xf7   : > { %2018 = vmatprep.mubr.msk.f32.mxu1 %vm2121_vm4, %v2120_v47 }
  0xf9   : > { %2013 = vmatmul.mubr.msk.bf16.gmra.mxu0 %vm976_vm10, %v2089_v31 }
 0x162   : > { %v1030_v32 = vpop.f32.mrf.mxu0 }
 0x164   : > { %v1954_v33 = vpop.f32.mrf.mxu0 }
 0x166   : > { %v1033_v34 = vpop.f32.mrf.mxu0 }
 0x168   : > { %v1955_v35 = vpop.f32.mrf.mxu0 }
 0x170   : > { %v1038_v36 = vpop.f32.mrf.mxu0 }
 0x172   : > { %v1958_v37 = vpop.f32.mrf.mxu0 }
 0x174   : > { %v1041_v38 = vpop.f32.mrf.mxu0 }
 0x176   : > { %v1959_v39 = vpop.f32.mrf.mxu0 }
 0x184   : > { %v1046_v40 = vpop.f32.mrf.mxu0 }
 0x186   : > { %v1962_v42 = vpop.f32.mrf.mxu0 }
 0x188   : > { %v1049_v43 = vpop.f32.mrf.mxu0 }
 0x18a   : > { %v1963_v44 = vpop.f32.mrf.mxu0 }
 0x18e   : > { %v2530_v45 = vpop.f32.mrf.mxu1 }
 0x190   : > { %v1970_v46 = vpop.f32.mrf.mxu1 }
 0x191   : > { %v1054_v48 = vpop.f32.mrf.mxu0 }
 0x192   : > { %v1065_v49 = vpop.f32.mrf.mxu1 }
 0x193   : > { %v1966_v51 = vpop.f32.mrf.mxu0 }
 0x194   : > { %v1971_v52 = vpop.f32.mrf.mxu1 }
 0x195   : > { %v2532_v53 = vpop.f32.mrf.mxu0 }
 0x196   : > { %v1148_v54 = vpop.f32.mrf.mxu1 }
 0x197   : > { %v1967_v55 = vpop.f32.mrf.mxu0 }
 0x198   : > { %v1976_v56 = vpop.f32.mrf.mxu1 }
 0x199   : > { %v1336_v57 = vpop.f32.mrf.mxu0 }
 0x19a   : > { %v1151_v50 = vpop.f32.mrf.mxu1 }
 0x19b   : > { %v1998_v59 = vpop.f32.mrf.mxu0  ;;  %v1152_v60 = vadd.f32 %v1151_v50, %v1033_v34 }
 0x19c   : > { %v1977_v58 = vpop.f32.mrf.mxu1 }
 0x19d   : > { %v1339_v63 = vpop.f32.mrf.mxu0 }
 0x19e   : > { %v1156_v61 = vpop.f32.mrf.mxu1  ;;  %v1375_v0 = vadd.f32 %v1339_v63, %v1152_v60 }
 0x19f   : > { %v1999_v4 = vpop.f32.mrf.mxu0  ;;  %v1157_v5 = vadd.f32 %v1156_v61, %v1038_v36 }
 0x1a0   : > { %v1980_v3 = vpop.f32.mrf.mxu1  ;;  %v1391_v8 = vmul.f32 %v2537_v1, %v1375_v0 }
 0x1a1   : > { %v1344_v7 = vpop.f32.mrf.mxu0 }
 0x1a2   : > { %v1159_v6 = vpop.f32.mrf.mxu1  ;;  %v1376_v9 = vadd.f32 %v1344_v7, %v1157_v5  ;;  %v1407_v17 = vadd.f32 %v2543_v10, %v1391_v8 }
 0x1a3   : > { %v2002_v13 = vpop.f32.mrf.mxu0  ;;  %v1160_v14 = vadd.f32 %v1159_v6, %v1041_v38 }
 0x1a4   : > { %v1981_v12 = vpop.f32.mrf.mxu1  ;;  %v1392_v15 = vmul.f32 %v2537_v1, %v1376_v9 }
 0x1a5   : > { %v1347_v16 = vpop.f32.mrf.mxu0 }
 0x1a6   : > { %v1164_v11 = vpop.f32.mrf.mxu1  ;;  %v1408_v19 = vadd.f32 %v2543_v10, %v1392_v15  ;;  %v1377_v21 = vadd.f32 %v1347_v16, %v1160_v14 }
 0x1a7   : > { %v2003_v22 = vpop.f32.mrf.mxu0  ;;  %v1165_v24 = vadd.f32 %v1164_v11, %v1046_v40 }
 0x1a8   : > { %v1984_v20 = vpop.f32.mrf.mxu1  ;;  %v1420_v23 = vadd.f32 %v1408_v19, %v1407_v17  ;;  %v1393_v25 = vmul.f32 %v2537_v1, %v1377_v21 }
 0x1a9   : > { %v1352_v28 = vpop.f32.mrf.mxu0 }
 0x1aa   : > { %v1167_v27 = vpop.f32.mrf.mxu1  ;;  %v1409_v41 = vadd.f32 %v2543_v10, %v1393_v25  ;;  %v1378_v29 = vadd.f32 %v1352_v28, %v1165_v24  ;;  %2017 = vmatpush3.msra.mxu1 %v1420_v23 }
 0x1ab   : > { %v2006_v62 = vpop.f32.mrf.mxu0  ;;  %2021 = vmatprep.subr.mxu1 %v2120_v47  ;;  %2019 = vmatmul.mubr.msk.f32.vlgmr.msra.gmra.mxu1 %vm1425_vm11, %v2552_v26  ;;  %v1168_v2 = vadd.f32 %v1167_v27, %v1049_v43 }
 0x1ac   : > { %v1985_v30 = vpop.f32.mrf.mxu1  ;;  %v1394_v18 = vmul.f32 %v2537_v1, %v1378_v29  ;;  %2023 = vmatprep.mubr.msk.f32.mxu1 %vm2121_vm4, %v2120_v47  ;;  %v1417_v33 = vadd.f32 %v1409_v41, %v1408_v19 }
 0x1ad   : > { %v1355_v32 = vpop.f32.mrf.mxu0 }
 0x1ae   : > { %v1172_v31 = vpop.f32.mrf.mxu1  ;;  %v1410_v34 = vadd.f32 %v2543_v10, %v1394_v18  ;;  %v1379_v35 = vadd.f32 %v1355_v32, %v1168_v2 }
 0x1af   : > { %v2007_v37 = vpop.f32.mrf.mxu0  ;;  %v1173_v39 = vadd.f32 %v1172_v31, %v1054_v48 }
 0x1b0   : > { %v1988_v36 = vpop.f32.mrf.mxu1  ;;  %v1421_v38 = vadd.f32 %v1417_v33, %v1410_v34  ;;  %v1395_v40 = vmul.f32 %v2537_v1, %v1379_v35 }
 0x1b1   : > { %v1360_v44 = vpop.f32.mrf.mxu0 }
 0x1b2   : > { %v1175_v42 = vpop.f32.mrf.mxu1  ;;  %v1411_v43 = vadd.f32 %v2543_v10, %v1395_v40  ;;  %v1380_v46 = vadd.f32 %v1360_v44, %v1173_v39  ;;  %2022 = vmatpush3.msra.mxu1 %v1421_v38 }
 0x1b3   : > { %v2010_v51 = vpop.f32.mrf.mxu0  ;;  %2026 = vmatprep.subr.mxu1 %v2120_v47  ;;  %2024 = vmatmul.mubr.msk.f32.vlgmr.msra.gmra.mxu1 %vm1425_vm11, %v2552_v26  ;;  %v1176_v52 = vadd.f32 %v1175_v42, %v2532_v53 }
 0x1b4   : > { %v1989_v49 = vpop.f32.mrf.mxu1  ;;  %v1396_v54 = vmul.f32 %v2537_v1, %v1380_v46  ;;  %2028 = vmatprep.mubr.msk.f32.mxu1 %vm2121_vm4, %v2120_v47  ;;  %v1418_v56 = vadd.f32 %v1411_v43, %v1410_v34 }
 0x1b5   : > { %v1363_v55 = vpop.f32.mrf.mxu0 }
 0x1b6   : > { %v1180_v48 = vpop.f32.mrf.mxu1  ;;  %v1412_v50 = vadd.f32 %v2543_v10, %v1396_v54  ;;  %v1381_v57 = vadd.f32 %v1363_v55, %v1176_v52 }
 0x1b7   : > { %v2011_v59 = vpop.f32.mrf.mxu0  ;;  %v1181_v61 = vadd.f32 %v1180_v48, %v2530_v45 }
 0x1b8   : > { %v1992_v58 = vpop.f32.mrf.mxu1  ;;  %v1422_v60 = vadd.f32 %v1418_v56, %v1412_v50  ;;  %v1397_v63 = vmul.f32 %v2537_v1, %v1381_v57 }
 0x1b9   : > { %v1368_v53 = vpop.f32.mrf.mxu0 }
 0x1ba   : > { %v1183_v0 = vpop.f32.mrf.mxu1  ;;  %v1413_v3 = vadd.f32 %v2543_v10, %v1397_v63  ;;  %v1382_v4 = vadd.f32 %v1368_v53, %v1181_v61  ;;  %2027 = vmatpush3.msra.mxu1 %v1422_v60 }
 0x1bb   : > { %2031 = vmatprep.subr.mxu1 %v2120_v47  ;;  %2029 = vmatmul.mubr.msk.f32.vlgmr.msra.gmra.mxu1 %vm1425_vm11, %v2552_v26  ;;  %v2014_v6 = vpop.f32.mrf.mxu0 }
 0x1bc   : > { %v1993_v5 = vpop.f32.mrf.mxu1  ;;  %v1398_v7 = vmul.f32 %v2537_v1, %v1382_v4  ;;  %2033 = vmatprep.mubr.msk.f32.mxu1 %vm2121_vm4, %v2120_v47  ;;  %v1419_v8 = vadd.f32 %v1413_v3, %v1412_v50 }
 0x1bd   : > { %v1371_v45 = vpop.f32.mrf.mxu0 }
 0x1be   : > { %v1414_v9 = vadd.f32 %v2543_v10, %v1398_v7 }
 0x1bf   : > { %v2015_v12 = vpop.f32.mrf.mxu0 }
 0x1c0   : > { %v1423_v13 = vadd.f32 %v1419_v8, %v1414_v9 }
 0x1c2   : > { %2032 = vmatpush3.msra.mxu1 %v1423_v13 }
 0x1c3   : > { %2034 = vmatmul.mubr.msk.f32.vlgmr.msra.gmra.mxu1 %vm1425_vm11, %v2552_v26 }
 0x26b   : > { %v1495_v14 = vpop.f32.mrf.mxu1 }
 0x26c   : > { %v1709_v1 = vmul.f32 0.11111111, %v1495_v14 }
 0x26d   : > { %v2020_v15 = vpop.f32.mrf.mxu1 }
 0x26e   : > { %1714 = vst.msk [vmem:[%s520_s6] sm:$0xf] %vm669_vm5, %v1709_v1 }
 0x273   : > { %v1565_v47 = vpop.f32.mrf.mxu1 }
 0x274   : > { %v1710_v11 = vmul.f32 0.11111111, %v1565_v47 }
 0x275   : > { %v2025_v16 = vpop.f32.mrf.mxu1 }
 0x276   : > { %1715 = vst.msk [vmem:[%s520_s6 + $0x4] sm:$0xf] %vm669_vm5, %v1710_v11 }
 0x27b   : > { %v1635_v10 = vpop.f32.mrf.mxu1 }
 0x27c   : > { %v1711_v17 = vmul.f32 0.11111111, %v1635_v10 }
 0x27d   : > { %v2030_v19 = vpop.f32.mrf.mxu1 }
 0x27e   : > { %1716 = vst.msk [vmem:[%s520_s6 + $0x8] sm:$0xf] %vm669_vm5, %v1711_v17 }
 0x283   : > { %v1705_v21 = vpop.f32.mrf.mxu1 }
 0x284   : > { %v1712_v20 = vmul.f32 0.11111111, %v1705_v21 }
 0x285   : > { %v2035_v22 = vpop.f32.mrf.mxu1 }
 0x286   : > { %1717 = vst.msk [vmem:[%s520_s6 + $0xc] sm:$0xf] %vm669_vm5, %v1712_v20 }
 0x287 PF: > { %s18_s29 = sadd.s32 1, %s2115_s29   ;;  %s2614_s27 = smov %s2111_s28 }
 0x288   : > { %p15_p5 = scmp.ge.s32.totalorder %s18_s29, 4   ;;  %s2615_s28 = smov %s2617_s5 }
 0x28a   :  { %17 = sbr.rel (!%p15_p5) target bundleno = 2 (0x2), region = 93 }

// kernel: bga_pallas.10
= control target key start
LH: loop header
LB: loop body
LE: loop exit
PB: predicated region body
PF: predicated region fallthrough
CT: control target
= control target key end

     0   :  { %s1394_s9 = smov 0   ;;  %s1604_s0 = inlined_call_operand.vmem [shape: bf16[4,4,4,4], index: 0, kind: input, shape index: {}]   ;;  %s1605_s1 = inlined_call_operand.vmem [shape: bf16[16,4], index: 1, kind: input, shape index: {}]   ;;  %s1606_s2 = inlined_call_operand.vmem [shape: bf16[4,16,16,4], index: 2, kind: output, shape index: {}]  }
   0x1 LB: > { %s1136_s10 = sadd.s32 4294967295, %s1375_s9   ;;  %p1140_p0 = scmp.ge.s32.totalorder %s1375_s9, 1  ;;  %s1375_s9 = sphi %s1394_s9, %s12_s9  }
   0x2   : > { %p112_p1 = scmp.lt.s32.totalorder %s1375_s9, 5 }
   0x4   : > { %p113_p2 = pnand %p1140_p0, %p112_p1 }
   0x5   : > { %p134_p3 = scmp.lt.s32.totalorder (!%p113_p2), %s1136_s10, 3 }
   0x6   : > { %116 = sbr.rel (%p113_p2) target bundleno = 283 (0x11b), region = 28 }
   0xb   : > { %v1377_v0 = vmov 0.0   ;;  %s1608_s10 = smov (!%p134_p3, %s1136_s10), 3  ;;  %vm1378_vm0 = vmmov 0   ;;  %vm215_vm1 = vcmask 1041408   ;;  %v1429_v26 = vld [vmem:[%s1605_s1] sm:$0xff]   ;;  %vm211_vm2 = vcmask 31744  }
   0xc   : > { %1262 = vmatprep.subr.bf16.mxu0 %v1377_v0  ;;  %1268 = vmatprep.subr.bf16.mxu1 %v1377_v0  ;;  %s1196_s11 = sshll.u32 %s1608_s10, 3  ;;  %s1197_s17 = sshll.u32 %s1608_s10, 7  ;;  %vm1048_vm3 = vcmask 27648  }
   0xd   : > { %1264 = vmatprep.mubr.msk.bf16.mxu0 %vm1378_vm0, %v1377_v0  ;;  %1270 = vmatprep.mubr.msk.bf16.mxu1 %vm1378_vm0, %v1377_v0  ;;  %s1414_s14 = scalar_lea.vmem %s1604_s0, %s1196_s11  ;;  %s1535_s20 = scalar_lea.vmem %s1606_s2, %s1197_s17 }
   0xe   : > { %v145_v1 = vld [vmem:[%s1414_s14] sm:$0x3]  ;;  %v146_v2 = vld [vmem:[%s1414_s14 + $0x2] sm:$0x3]  ;;  %v147_v3 = vld [vmem:[%s1414_s14 + $0x4] sm:$0x3] }
   0xf   : > { %v149_v4 = vunpack.c.l.bf16 %v145_v1  ;;  %v150_v5 = vunpack.c.l.bf16 %v146_v2  ;;  %v1419_v6 = vunpack.c.l.bf16 %v147_v3  ;;  %v148_v40 = vld [vmem:[%s1414_s14 + $0x6] sm:$0x3] }
  0x10   : > { %v152_v45 = vunpack.c.l.bf16 %v148_v40 }
  0x11   : > { %v153_v7 = vmul.f32 0.0, %v150_v5  ;;  %v155_v8 = vmul.f32 0.8, %v149_v4  ;;  %v156_v9 = vmul.f32 0.2, %v150_v5  ;;  %v1422_v18 = vmul.f32 0.0, %v1419_v6 }
  0x12   : > { %v158_v10 = vmul.f32 0.6, %v149_v4  ;;  %v159_v11 = vmul.f32 0.4, %v150_v5  ;;  %v161_v12 = vmul.f32 0.4, %v149_v4 }
  0x13   : > { %v154_v13 = vadd.f32 %v153_v7, %v149_v4  ;;  %v157_v14 = vadd.f32 %v156_v9, %v155_v8  ;;  %v162_v15 = vmul.f32 0.6, %v150_v5  ;;  %v164_v17 = vmul.f32 0.2, %v149_v4 }
  0x14   : > { %v160_v16 = vadd.f32 %v159_v11, %v158_v10  ;;  %v165_v22 = vmul.f32 0.8, %v150_v5  ;;  %v168_v31 = vadd.f32 %v1422_v18, %v150_v5  ;;  %v1445_v34 = vmul.f32 0.2, %v1419_v6 }
  0x15   : > { %v188_v19 = vpack.c.bf16 %v154_v13, %v154_v13  ;;  %v189_v20 = vpack.c.bf16 %v157_v14, %v157_v14  ;;  %v163_v21 = vadd.f32 %v162_v15, %v161_v12  ;;  %v171_v35 = vmul.f32 0.4, %v1419_v6 }
  0x16   : > { %v190_v23 = vpack.c.bf16 %v160_v16, %v160_v16  ;;  %v166_v30 = vadd.f32 %v165_v22, %v164_v17  ;;  %v193_v33 = vpack.c.bf16 %v168_v31, %v168_v31  ;;  %v170_v38 = vadd.f32 %v1445_v34, %v165_v22 }
  0x17   : > { %v217_v24 = vsel %vm215_vm1, %v188_v19, 0  ;;  %v261_v25 = vsel %vm215_vm1, %v189_v20, 0  ;;  %v191_v27 = vpack.c.bf16 %v163_v21, %v163_v21  ;;  %v172_v39 = vadd.f32 %v171_v35, %v162_v15 }
  0x18   : > { %1263 = vmatpush3.bf16.msra.mxu0 %v217_v24  ;;  %1269 = vmatpush3.bf16.msra.mxu1 %v261_v25  ;;  %v305_v28 = vsel %vm215_vm1, %v190_v23, 0  ;;  %v192_v32 = vpack.c.bf16 %v166_v30, %v166_v30  ;;  %v437_v37 = vsel %vm215_vm1, %v193_v33, 0  ;;  %v194_v41 = vpack.c.bf16 %v170_v38, %v170_v38 }
  0x19   : > { %1274 = vmatprep.subr.bf16.mxu0 %v1377_v0  ;;  %1280 = vmatprep.subr.bf16.mxu1 %v1377_v0  ;;  %v349_v29 = vsel %vm215_vm1, %v191_v27, 0  ;;  %v195_v42 = vpack.c.bf16 %v172_v39, %v172_v39  ;;  %v173_v43 = vmul.f32 0.6, %v1419_v6  ;;  %v175_v44 = vmul.f32 0.8, %v1419_v6 }
  0x1a   : > { %v393_v36 = vsel %vm215_vm1, %v192_v32, 0  ;;  %v481_v46 = vsel %vm215_vm1, %v194_v41, 0  ;;  %v177_v52 = vmul.f32 0.0, %v152_v45  ;;  %v179_v53 = vmul.f32 0.2, %v152_v45 }
  0x1b   : > { %1265 = vmatmul.mubr.msk.bf16.vlgmr.msra.gmra.mxu0 %vm211_vm2, %v1429_v26  ;;  %1271 = vmatmul.mubr.msk.bf16.vlgmr.msra.gmra.mxu1 %vm211_vm2, %v1429_v26  ;;  %v525_v47 = vsel %vm215_vm1, %v195_v42, 0  ;;  %v174_v48 = vadd.f32 %v173_v43, %v159_v11  ;;  %v176_v49 = vadd.f32 %v175_v44, %v156_v9  ;;  %v181_v60 = vmul.f32 0.4, %v152_v45 }
  0x1c   : > { %1275 = vmatpush3.bf16.msra.mxu0 %v305_v28  ;;  %1281 = vmatpush3.bf16.msra.mxu1 %v349_v29  ;;  %v178_v56 = vadd.f32 %v177_v52, %v1419_v6  ;;  %v180_v57 = vadd.f32 %v179_v53, %v175_v44  ;;  %v183_v61 = vmul.f32 0.6, %v152_v45  ;;  %v185_v5 = vmul.f32 0.8, %v152_v45 }
  0x1d   : > { %1276 = vmatprep.mubr.msk.bf16.mxu0 %vm1378_vm0, %v1377_v0  ;;  %1282 = vmatprep.mubr.msk.bf16.mxu1 %vm1378_vm0, %v1377_v0  ;;  %v196_v50 = vpack.c.bf16 %v174_v48, %v174_v48  ;;  %v197_v51 = vpack.c.bf16 %v176_v49, %v176_v49  ;;  %v182_v1 = vadd.f32 %v181_v60, %v173_v43 }
  0x1e   : > { %1286 = vmatprep.subr.bf16.mxu0 %v1377_v0  ;;  %1292 = vmatprep.subr.bf16.mxu1 %v1377_v0  ;;  %v198_v58 = vpack.c.bf16 %v178_v56, %v178_v56  ;;  %v199_v59 = vpack.c.bf16 %v180_v57, %v180_v57  ;;  %v184_v2 = vadd.f32 %v183_v61, %v171_v35 }
  0x1f   : > { %v569_v54 = vsel %vm215_vm1, %v196_v50, 0  ;;  %v613_v55 = vsel %vm215_vm1, %v197_v51, 0  ;;  %v200_v3 = vpack.c.bf16 %v182_v1, %v182_v1  ;;  %v186_v8 = vadd.f32 %v185_v5, %v1445_v34 }
  0x20   : > { %v657_v62 = vsel %vm215_vm1, %v198_v58, 0  ;;  %v701_v63 = vsel %vm215_vm1, %v199_v59, 0  ;;  %v201_v4 = vpack.c.bf16 %v184_v2, %v184_v2  ;;  %v187_v9 = vadd.f32 %v1422_v18, %v152_v45 }
  0x21   : > { %v745_v6 = vsel %vm215_vm1, %v200_v3, 0  ;;  %v202_v10 = vpack.c.bf16 %v186_v8, %v186_v8 }
  0x22   : > { %v789_v7 = vsel %vm215_vm1, %v201_v4, 0  ;;  %v203_v11 = vpack.c.bf16 %v187_v9, %v187_v9 }
  0x23   : > { %1277 = vmatmul.mubr.msk.bf16.vlgmr.msra.gmra.mxu0 %vm211_vm2, %v1429_v26  ;;  %1283 = vmatmul.mubr.msk.bf16.vlgmr.msra.gmra.mxu1 %vm211_vm2, %v1429_v26  ;;  %v833_v12 = vsel %vm215_vm1, %v202_v10, 0 }
  0x24   : > { %1287 = vmatpush3.bf16.msra.mxu0 %v393_v36  ;;  %1293 = vmatpush3.bf16.msra.mxu1 %v437_v37  ;;  %v877_v13 = vsel %vm215_vm1, %v203_v11, 0 }
  0x25   : > { %1288 = vmatprep.mubr.msk.bf16.mxu0 %vm1378_vm0, %v1377_v0  ;;  %1294 = vmatprep.mubr.msk.bf16.mxu1 %vm1378_vm0, %v1377_v0 }
  0x26   : > { %1298 = vmatprep.subr.bf16.mxu0 %v1377_v0  ;;  %1304 = vmatprep.subr.bf16.mxu1 %v1377_v0 }
  0x2b   : > { %1289 = vmatmul.mubr.msk.bf16.vlgmr.msra.gmra.mxu0 %vm211_vm2, %v1429_v26  ;;  %1295 = vmatmul.mubr.msk.bf16.vlgmr.msra.gmra.mxu1 %vm211_vm2, %v1429_v26 }
  0x2c   : > { %1299 = vmatpush3.bf16.msra.mxu0 %v481_v46  ;;  %1305 = vmatpush3.bf16.msra.mxu1 %v525_v47 }
  0x2d   : > { %1300 = vmatprep.mubr.msk.bf16.mxu0 %vm1378_vm0, %v1377_v0  ;;  %1306 = vmatprep.mubr.msk.bf16.mxu1 %vm1378_vm0, %v1377_v0 }
  0x2e   : > { %1310 = vmatprep.subr.bf16.mxu0 %v1377_v0  ;;  %1316 = vmatprep.subr.bf16.mxu1 %v1377_v0 }
  0x33   : > { %1301 = vmatmul.mubr.msk.bf16.vlgmr.msra.gmra.mxu0 %vm211_vm2, %v1429_v26  ;;  %1307 = vmatmul.mubr.msk.bf16.vlgmr.msra.gmra.mxu1 %vm211_vm2, %v1429_v26 }
  0x34   : > { %1311 = vmatpush3.bf16.msra.mxu0 %v569_v54  ;;  %1317 = vmatpush3.bf16.msra.mxu1 %v613_v55 }
  0x35   : > { %1312 = vmatprep.mubr.msk.bf16.mxu0 %vm1378_vm0, %v1377_v0  ;;  %1318 = vmatprep.mubr.msk.bf16.mxu1 %vm1378_vm0, %v1377_v0 }
  0x36   : > { %1322 = vmatprep.subr.bf16.mxu0 %v1377_v0  ;;  %1328 = vmatprep.subr.bf16.mxu1 %v1377_v0 }
  0x3b   : > { %1313 = vmatmul.mubr.msk.bf16.vlgmr.msra.gmra.mxu0 %vm211_vm2, %v1429_v26  ;;  %1319 = vmatmul.mubr.msk.bf16.vlgmr.msra.gmra.mxu1 %vm211_vm2, %v1429_v26 }
  0x3c   : > { %1323 = vmatpush3.bf16.msra.mxu0 %v657_v62  ;;  %1329 = vmatpush3.bf16.msra.mxu1 %v701_v63 }
  0x3d   : > { %1324 = vmatprep.mubr.msk.bf16.mxu0 %vm1378_vm0, %v1377_v0  ;;  %1330 = vmatprep.mubr.msk.bf16.mxu1 %vm1378_vm0, %v1377_v0 }
  0x3e   : > { %1334 = vmatprep.subr.bf16.mxu0 %v1377_v0  ;;  %1340 = vmatprep.subr.bf16.mxu1 %v1377_v0 }
  0x43   : > { %1325 = vmatmul.mubr.msk.bf16.vlgmr.msra.gmra.mxu0 %vm211_vm2, %v1429_v26  ;;  %1331 = vmatmul.mubr.msk.bf16.vlgmr.msra.gmra.mxu1 %vm211_vm2, %v1429_v26 }
  0x44   : > { %1335 = vmatpush3.bf16.msra.mxu0 %v745_v6  ;;  %1341 = vmatpush3.bf16.msra.mxu1 %v789_v7 }
  0x45   : > { %1336 = vmatprep.mubr.msk.bf16.mxu0 %vm1378_vm0, %v1377_v0  ;;  %1342 = vmatprep.mubr.msk.bf16.mxu1 %vm1378_vm0, %v1377_v0 }
  0x46   : > { %1346 = vmatprep.subr.bf16.mxu0 %v1377_v0  ;;  %1352 = vmatprep.subr.bf16.mxu1 %v1377_v0 }
  0x4b   : > { %1337 = vmatmul.mubr.msk.bf16.vlgmr.msra.gmra.mxu0 %vm211_vm2, %v1429_v26  ;;  %1343 = vmatmul.mubr.msk.bf16.vlgmr.msra.gmra.mxu1 %vm211_vm2, %v1429_v26 }
  0x4c   : > { %1347 = vmatpush3.bf16.msra.mxu0 %v833_v12  ;;  %1353 = vmatpush3.bf16.msra.mxu1 %v877_v13 }
  0x4d   : > { %1348 = vmatprep.mubr.msk.bf16.mxu0 %vm1378_vm0, %v1377_v0  ;;  %1354 = vmatprep.mubr.msk.bf16.mxu1 %vm1378_vm0, %v1377_v0 }
  0x53   : > { %1349 = vmatmul.mubr.msk.bf16.vlgmr.msra.gmra.mxu0 %vm211_vm2, %v1429_v26  ;;  %1355 = vmatmul.mubr.msk.bf16.vlgmr.msra.gmra.mxu1 %vm211_vm2, %v1429_v26 }
  0xdb   : > { %v253_v14 = vpop.f32.mrf.mxu0  ;;  %v297_v15 = vpop.f32.mrf.mxu1 }
  0xdc   : > { %v1198_v0 = vpack.c.bf16 %v253_v14, %v253_v14  ;;  %v1200_v16 = vpack.c.bf16 %v297_v15, %v297_v15 }
  0xdd   : > { %v1266_v17 = vpop.f32.mrf.mxu0  ;;  %v1272_v18 = vpop.f32.mrf.mxu1 }
  0xde   : > { %1049 = vst.msk [vmem:[%s1535_s20] sm:$0xf] %vm1048_vm3, %v1198_v0  ;;  %1051 = vst.msk [vmem:[%s1535_s20 + $0x8] sm:$0xf] %vm1048_vm3, %v1200_v16 }
  0xdf   : > { %v256_v19 = vpop.f32.mrf.mxu0  ;;  %v300_v20 = vpop.f32.mrf.mxu1 }
  0xe0   : > { %v1199_v21 = vpack.c.bf16 %v256_v19, %v256_v19  ;;  %v1201_v22 = vpack.c.bf16 %v300_v20, %v300_v20 }
  0xe1   : > { %v1267_v23 = vpop.f32.mrf.mxu0  ;;  %v1273_v24 = vpop.f32.mrf.mxu1 }
  0xe2   : > { %1050 = vst.msk [vmem:[%s1535_s20 + $0x4] sm:$0xf] %vm1048_vm3, %v1199_v21  ;;  %1052 = vst.msk [vmem:[%s1535_s20 + $0xc] sm:$0xf] %vm1048_vm3, %v1201_v22 }
  0xe3   : > { %v341_v25 = vpop.f32.mrf.mxu0  ;;  %v385_v26 = vpop.f32.mrf.mxu1 }
  0xe4   : > { %v1202_v27 = vpack.c.bf16 %v341_v25, %v341_v25  ;;  %v1204_v28 = vpack.c.bf16 %v385_v26, %v385_v26 }
  0xe5   : > { %v1278_v29 = vpop.f32.mrf.mxu0  ;;  %v1284_v30 = vpop.f32.mrf.mxu1 }
  0xe6   : > { %1053 = vst.msk [vmem:[%s1535_s20 + $0x10] sm:$0xf] %vm1048_vm3, %v1202_v27  ;;  %1055 = vst.msk [vmem:[%s1535_s20 + $0x18] sm:$0xf] %vm1048_vm3, %v1204_v28 }
  0xe7   : > { %v344_v31 = vpop.f32.mrf.mxu0  ;;  %v388_v32 = vpop.f32.mrf.mxu1 }
  0xe8   : > { %v1203_v33 = vpack.c.bf16 %v344_v31, %v344_v31  ;;  %v1205_v34 = vpack.c.bf16 %v388_v32, %v388_v32 }
  0xe9   : > { %v1279_v35 = vpop.f32.mrf.mxu0  ;;  %v1285_v36 = vpop.f32.mrf.mxu1 }
  0xea   : > { %1054 = vst.msk [vmem:[%s1535_s20 + $0x14] sm:$0xf] %vm1048_vm3, %v1203_v33  ;;  %1056 = vst.msk [vmem:[%s1535_s20 + $0x1c] sm:$0xf] %vm1048_vm3, %v1205_v34 }
  0xeb   : > { %v429_v37 = vpop.f32.mrf.mxu0  ;;  %v473_v38 = vpop.f32.mrf.mxu1 }
  0xec   : > { %v1206_v39 = vpack.c.bf16 %v429_v37, %v429_v37  ;;  %v1208_v40 = vpack.c.bf16 %v473_v38, %v473_v38 }
  0xed   : > { %v1290_v41 = vpop.f32.mrf.mxu0  ;;  %v1296_v42 = vpop.f32.mrf.mxu1 }
  0xee   : > { %1057 = vst.msk [vmem:[%s1535_s20 + $0x20] sm:$0xf] %vm1048_vm3, %v1206_v39  ;;  %1059 = vst.msk [vmem:[%s1535_s20 + $0x28] sm:$0xf] %vm1048_vm3, %v1208_v40 }
  0xef   : > { %v432_v43 = vpop.f32.mrf.mxu0  ;;  %v476_v44 = vpop.f32.mrf.mxu1 }
  0xf0   : > { %v1207_v45 = vpack.c.bf16 %v432_v43, %v432_v43  ;;  %v1209_v46 = vpack.c.bf16 %v476_v44, %v476_v44 }
  0xf1   : > { %v1291_v47 = vpop.f32.mrf.mxu0  ;;  %v1297_v48 = vpop.f32.mrf.mxu1 }
  0xf2   : > { %1058 = vst.msk [vmem:[%s1535_s20 + $0x24] sm:$0xf] %vm1048_vm3, %v1207_v45  ;;  %1060 = vst.msk [vmem:[%s1535_s20 + $0x2c] sm:$0xf] %vm1048_vm3, %v1209_v46 }
  0xf3   : > { %v517_v49 = vpop.f32.mrf.mxu0  ;;  %v561_v50 = vpop.f32.mrf.mxu1 }
  0xf4   : > { %v1210_v51 = vpack.c.bf16 %v517_v49, %v517_v49  ;;  %v1212_v52 = vpack.c.bf16 %v561_v50, %v561_v50 }
  0xf5   : > { %v1302_v53 = vpop.f32.mrf.mxu0  ;;  %v1308_v54 = vpop.f32.mrf.mxu1 }
  0xf6   : > { %1061 = vst.msk [vmem:[%s1535_s20 + $0x30] sm:$0xf] %vm1048_vm3, %v1210_v51  ;;  %1063 = vst.msk [vmem:[%s1535_s20 + $0x38] sm:$0xf] %vm1048_vm3, %v1212_v52 }
  0xf7   : > { %v520_v55 = vpop.f32.mrf.mxu0  ;;  %v564_v56 = vpop.f32.mrf.mxu1 }
  0xf8   : > { %v1211_v57 = vpack.c.bf16 %v520_v55, %v520_v55  ;;  %v1213_v58 = vpack.c.bf16 %v564_v56, %v564_v56 }
  0xf9   : > { %v1303_v59 = vpop.f32.mrf.mxu0  ;;  %v1309_v60 = vpop.f32.mrf.mxu1 }
  0xfa   : > { %1062 = vst.msk [vmem:[%s1535_s20 + $0x34] sm:$0xf] %vm1048_vm3, %v1211_v57  ;;  %1064 = vst.msk [vmem:[%s1535_s20 + $0x3c] sm:$0xf] %vm1048_vm3, %v1213_v58 }
  0xfb   : > { %v605_v61 = vpop.f32.mrf.mxu0  ;;  %v649_v62 = vpop.f32.mrf.mxu1 }
  0xfc   : > { %v1214_v63 = vpack.c.bf16 %v605_v61, %v605_v61  ;;  %v1216_v1 = vpack.c.bf16 %v649_v62, %v649_v62 }
  0xfd   : > { %v1314_v2 = vpop.f32.mrf.mxu0  ;;  %v1320_v3 = vpop.f32.mrf.mxu1 }
  0xfe   : > { %1065 = vst.msk [vmem:[%s1535_s20 + $0x40] sm:$0xf] %vm1048_vm3, %v1214_v63  ;;  %1067 = vst.msk [vmem:[%s1535_s20 + $0x48] sm:$0xf] %vm1048_vm3, %v1216_v1 }
  0xff   : > { %v608_v4 = vpop.f32.mrf.mxu0  ;;  %v652_v5 = vpop.f32.mrf.mxu1 }
 0x100   : > { %v1215_v6 = vpack.c.bf16 %v608_v4, %v608_v4  ;;  %v1217_v7 = vpack.c.bf16 %v652_v5, %v652_v5 }
 0x101   : > { %v1315_v8 = vpop.f32.mrf.mxu0  ;;  %v1321_v9 = vpop.f32.mrf.mxu1 }
 0x102   : > { %1066 = vst.msk [vmem:[%s1535_s20 + $0x44] sm:$0xf] %vm1048_vm3, %v1215_v6  ;;  %1068 = vst.msk [vmem:[%s1535_s20 + $0x4c] sm:$0xf] %vm1048_vm3, %v1217_v7 }
 0x103   : > { %v693_v10 = vpop.f32.mrf.mxu0  ;;  %v737_v11 = vpop.f32.mrf.mxu1 }
 0x104   : > { %v1218_v12 = vpack.c.bf16 %v693_v10, %v693_v10  ;;  %v1220_v13 = vpack.c.bf16 %v737_v11, %v737_v11 }
 0x105   : > { %v1326_v14 = vpop.f32.mrf.mxu0  ;;  %v1332_v15 = vpop.f32.mrf.mxu1 }
 0x106   : > { %1069 = vst.msk [vmem:[%s1535_s20 + $0x50] sm:$0xf] %vm1048_vm3, %v1218_v12  ;;  %1071 = vst.msk [vmem:[%s1535_s20 + $0x58] sm:$0xf] %vm1048_vm3, %v1220_v13 }
 0x107   : > { %v696_v0 = vpop.f32.mrf.mxu0  ;;  %v740_v16 = vpop.f32.mrf.mxu1 }
 0x108   : > { %v1219_v17 = vpack.c.bf16 %v696_v0, %v696_v0  ;;  %v1221_v18 = vpack.c.bf16 %v740_v16, %v740_v16 }
 0x109   : > { %v1327_v19 = vpop.f32.mrf.mxu0  ;;  %v1333_v20 = vpop.f32.mrf.mxu1 }
 0x10a   : > { %1070 = vst.msk [vmem:[%s1535_s20 + $0x54] sm:$0xf] %vm1048_vm3, %v1219_v17  ;;  %1072 = vst.msk [vmem:[%s1535_s20 + $0x5c] sm:$0xf] %vm1048_vm3, %v1221_v18 }
 0x10b   : > { %v781_v21 = vpop.f32.mrf.mxu0  ;;  %v825_v22 = vpop.f32.mrf.mxu1 }
 0x10c   : > { %v1222_v23 = vpack.c.bf16 %v781_v21, %v781_v21  ;;  %v1224_v24 = vpack.c.bf16 %v825_v22, %v825_v22 }
 0x10d   : > { %v1338_v25 = vpop.f32.mrf.mxu0  ;;  %v1344_v26 = vpop.f32.mrf.mxu1 }
 0x10e   : > { %1073 = vst.msk [vmem:[%s1535_s20 + $0x60] sm:$0xf] %vm1048_vm3, %v1222_v23  ;;  %1075 = vst.msk [vmem:[%s1535_s20 + $0x68] sm:$0xf] %vm1048_vm3, %v1224_v24 }
 0x10f   : > { %v784_v27 = vpop.f32.mrf.mxu0  ;;  %v828_v28 = vpop.f32.mrf.mxu1 }
 0x110   : > { %v1223_v29 = vpack.c.bf16 %v784_v27, %v784_v27  ;;  %v1225_v30 = vpack.c.bf16 %v828_v28, %v828_v28 }
 0x111   : > { %v1339_v31 = vpop.f32.mrf.mxu0  ;;  %v1345_v32 = vpop.f32.mrf.mxu1 }
 0x112   : > { %1074 = vst.msk [vmem:[%s1535_s20 + $0x64] sm:$0xf] %vm1048_vm3, %v1223_v29  ;;  %1076 = vst.msk [vmem:[%s1535_s20 + $0x6c] sm:$0xf] %vm1048_vm3, %v1225_v30 }
 0x113   : > { %v869_v33 = vpop.f32.mrf.mxu0  ;;  %v913_v34 = vpop.f32.mrf.mxu1 }
 0x114   : > { %v1226_v35 = vpack.c.bf16 %v869_v33, %v869_v33  ;;  %v1228_v36 = vpack.c.bf16 %v913_v34, %v913_v34 }
 0x115   : > { %v1350_v37 = vpop.f32.mrf.mxu0  ;;  %v1356_v38 = vpop.f32.mrf.mxu1 }
 0x116   : > { %1077 = vst.msk [vmem:[%s1535_s20 + $0x70] sm:$0xf] %vm1048_vm3, %v1226_v35  ;;  %1079 = vst.msk [vmem:[%s1535_s20 + $0x78] sm:$0xf] %vm1048_vm3, %v1228_v36 }
 0x117   : > { %v872_v39 = vpop.f32.mrf.mxu0  ;;  %v916_v40 = vpop.f32.mrf.mxu1 }
 0x118   : > { %v1227_v41 = vpack.c.bf16 %v872_v39, %v872_v39  ;;  %v1229_v42 = vpack.c.bf16 %v916_v40, %v916_v40 }
 0x119   : > { %v1351_v43 = vpop.f32.mrf.mxu0  ;;  %v1357_v44 = vpop.f32.mrf.mxu1 }
 0x11a   : > { %1078 = vst.msk [vmem:[%s1535_s20 + $0x74] sm:$0xf] %vm1048_vm3, %v1227_v41  ;;  %1080 = vst.msk [vmem:[%s1535_s20 + $0x7c] sm:$0xf] %vm1048_vm3, %v1229_v42 }
 0x11b PF: > { %s12_s9 = sadd.s32 1, %s1375_s9  }
 0x11c   : > { %p9_p4 = scmp.ge.s32.totalorder %s12_s9, 6  }
 0x11e   :  { %11 = sbr.rel (!%p9_p4) target bundleno = 1 (0x1), region = 58 }

// kernel: bga_pallas.6
= control target key start
LH: loop header
LB: loop body
LE: loop exit
PB: predicated region body
PF: predicated region fallthrough
CT: control target
= control target key end

     0   :  { %s3326_s24 = smov 0   ;;  %s3328_s25 = smov 0   ;;  %s5143_s0 = inlined_call_operand.vmem [shape: f32[3,3,4], index: 0, kind: input, shape index: {}]   ;;  %s5144_s1 = inlined_call_operand.vmem [shape: f32[1,4], index: 1, kind: input, shape index: {}]   ;;  %s5145_s2 = inlined_call_operand.vmem [shape: f32[1,4], index: 2, kind: input, shape index: {}]   ;;  %s5146_s3 = inlined_call_operand.vmem [shape: bf16[4,4], index: 3, kind: input, shape index: {}]   ;;  %s5147_s4 = inlined_call_operand.vmem [shape: bf16[2,16,16,4], index: 4, kind: input, shape index: {}, may-alias: {4,5,6}]   ;;  %s5148_s5 = inlined_call_operand.vmem [shape: bf16[2,16,16,4], index: 5, kind: input, shape index: {}, may-alias: {4,5,6}]   ;;  %s5149_s6 = inlined_call_operand.vmem [shape: bf16[2,16,16,4], index: 6, kind: input, shape index: {}, may-alias: {4,5,6}]   ;;  %s5150_s7 = inlined_call_operand.vmem [shape: bf16[2,16,16,4], index: 7, kind: output, shape index: {}]  }
   0x1   :  { %s3330_s26 = smov 0  }
   0x2 LB: > { %s29_s5 = sadd.s32 1, %s3279_s25  ;;  %p3035_p0 = scmp.ge.s32.totalorder %s3283_s26, 1  ;;  %s3283_s26 = sphi %s3330_s26, %s17_s26   ;;  %s3279_s25 = sphi %s3328_s25, %s5344_s25   ;;  %s3275_s24 = sphi %s3326_s24, %s5343_s24  }
   0x3   : > { %p31_p1 = scmp.ge.s32.totalorder %s29_s5, 2  ;;  %p323_p2 = scmp.lt.s32.totalorder %s3283_s26, 3 }
   0x5   : > { %s5346_s5 = smov (%p31_p1, %s29_s5), 0  ;;  %p324_p3 = pnand %p3035_p0, %p323_p2 }
   0x7   : > { %327 = sbr.rel (%p324_p3) target bundleno = 558 (0x22e), region = 48 }
   0xc   : > { %v2518_v0 = vld [vmem:[%s5146_s3] sm:$0x3]  ;;  %vm2568_vm0 = vcmask 1041408   ;;  %p392_p4 = scmp.lt.s32.totalorder %s3275_s24, 1  ;;  %vm496_vm1 = vcmask 24576   ;;  %v3285_v3 = vmov 0   ;;  %v1283_v45 = vlaneseq }
   0xd   : > { %3230 = vmatprep.subr.msk.bf16.mxu0 %vm2568_vm0, %v2518_v0  ;;  %3231 = vmatprep.subr.msk.bf16.mxu1 %vm2568_vm0, %v2518_v0  ;;  %v2570_v1 = vsel %vm2568_vm0, %v2518_v0, 0  ;;  %vm497_vm2 = vsmask.f32 256  ;;  %v499_v2 = vld [vmem:[#allocation2] sm:$0x1]  ;;  %v3348_v4 = vrot.slane %v3285_v3, 7  ;;  %v3435_v59 = vunpack.c.l.bf16 %v3285_v3 }
   0xe   : > { %3195 = vmatpush3.bf16.msra.mxu0 %v2570_v1  ;;  %3229 = vmatpush3.bf16.msra.mxu1 %v2570_v1  ;;  %s5348_s24 = smov (!%p392_p4, %s3275_s24), 1  ;;  %vm3354_vm3 = vmand %vm496_vm1, %vm497_vm2  ;;  %v502_v6 = vld [vmem:[#allocation2 + $0xc] sm:$0x1]  ;;  %v505_v7 = vld [vmem:[#allocation2 + $0x18] sm:$0x1]  ;;  %vm971_vm4 = vcmask 27648  }
   0xf   : > { %v500_v8 = vsel %vm3354_vm3, 0, %v499_v2  ;;  %v503_v9 = vsel %vm3354_vm3, 0, %v502_v6  ;;  %v506_v10 = vsel %vm3354_vm3, 0, %v505_v7  ;;  %v550_v11 = vld [vmem:[#allocation2 + $0xcc] sm:$0x1]  ;;  %v3365_v12 = vrot.slane %v3348_v4, 4 }
  0x10   : > { %s3096_s28 = sshll.u32 %s5348_s24, 7  ;;  %501 = vst [vmem:[#allocation2] sm:$0x1] %v500_v8  ;;  %504 = vst [vmem:[#allocation2 + $0xc] sm:$0x1] %v503_v9  ;;  %v551_v13 = vsel %vm3354_vm3, 0, %v550_v11 }
  0x11   : > { %507 = vst [vmem:[#allocation2 + $0x18] sm:$0x1] %v506_v10  ;;  %vm553_vm5 = vsmask.f32 7938  ;;  %v555_v14 = vld [vmem:[#allocation2 + $0x8] sm:$0x1]  ;;  %s3375_s8 = scalar_lea.vmem %s5147_s4, %s3096_s28  ;;  %s5058_s9 = scalar_lea.vmem %s5150_s7, %s3096_s28 }
  0x12   : > { %552 = vst [vmem:[#allocation2 + $0xcc] sm:$0x1] %v551_v13  ;;  %vm3379_vm6 = vmand %vm496_vm1, %vm553_vm5  ;;  %v558_v16 = vld [vmem:[#allocation2 + $0x14] sm:$0x1]  ;;  %v561_v17 = vld [vmem:[#allocation2 + $0x20] sm:$0x1] }
  0x13   : > { %vm609_vm7 = vsmask.f32 4368  ;;  %v3384_v18 = vld [vmem:[%s3375_s8] sm:$0xf]  ;;  %v3387_v19 = vld [vmem:[%s3375_s8 + $0x4] sm:$0xf]  ;;  %vm3416_vm9 = vmand %vm971_vm4, %vm553_vm5 }
  0x14   : > { %v466_v20 = vld [vmem:[%s3375_s8 + $0x8] sm:$0xf]  ;;  %v3391_v21 = vld [vmem:[%s3375_s8 + $0xc] sm:$0xf]  ;;  %v556_v22 = vsel %vm3379_vm6, 0, %v555_v14  ;;  %v559_v23 = vsel %vm3379_vm6, 0, %v558_v16  ;;  %vm3400_vm8 = vmor %vm497_vm2, %vm609_vm7  ;;  %v1174_v1 = vunpack.c.l.bf16 %v3384_v18  ;;  %v1175_v2 = vunpack.c.l.bf16 %v3387_v19 }
  0x15   : > { %v562_v24 = vsel %vm3379_vm6, 0, %v561_v17  ;;  %v629_v26 = vshrl.u32 %v3384_v18, 16  ;;  %557 = vst [vmem:[#allocation2 + $0x8] sm:$0x1] %v556_v22  ;;  %560 = vst [vmem:[#allocation2 + $0x14] sm:$0x1] %v559_v23  ;;  %v626_v28 = vsel %vm3400_vm8, %v3365_v12, %v3348_v4  ;;  %v3461_v14 = vunpack.c.l.bf16 %v3391_v21 }
  0x16   : > { %563 = vst [vmem:[#allocation2 + $0x20] sm:$0x1] %v562_v24  ;;  %v606_v27 = vld [vmem:[#allocation2 + $0xd4] sm:$0x1]  ;;  %v632_v29 = vshll.u32 %v3384_v18, 16  ;;  %v637_v30 = vshrl.u32 %v3387_v19, 16 }
  0x17   : > { %v640_v31 = vshll.u32 %v3387_v19, 16  ;;  %v607_v32 = vsel %vm3379_vm6, 0, %v606_v27  ;;  %v631_v33 = vrot.slane %v629_v26, 7  ;;  %v646_v34 = vshrl.u32 %v466_v20, 16  ;;  %977 = vst.msk [vmem:[#allocation2 + $0x4] sm:$0xf] %vm971_vm4, %v626_v28 }
  0x18   : > { %v649_v35 = vshll.u32 %v466_v20, 16  ;;  %1096 = vst.msk [vmem:[#allocation2 + $0xd0] sm:$0xf] %vm971_vm4, %v626_v28  ;;  %608 = vst [vmem:[#allocation2 + $0xd4] sm:$0x1] %v607_v32  ;;  %v639_v37 = vrot.slane %v637_v30, 7 }
  0x19   : > { %v654_v38 = vshrl.u32 %v3391_v21, 16  ;;  %v657_v39 = vshll.u32 %v3391_v21, 16  ;;  %v634_v40 = vor.u32 %v632_v29, %v631_v33  ;;  %v635_v41 = vrot.slane %v631_v33, 4  ;;  %v973_v43 = vld [vmem:[#allocation2] sm:$0xf]  ;;  %5203 = vst [vmem:[#allocation3_spill] sm:$0xff] %v3435_v59 }
  0x1a   : > { %v648_v42 = vrot.slane %v646_v34, 7  ;;  %v981_v44 = vld [vmem:[#allocation2 + $0xc] sm:$0xf]  ;;  %v642_v46 = vor.u32 %v640_v31, %v639_v37  ;;  %v644_v47 = vrot.slane %v639_v37, 4  ;;  %v974_v49 = vsel %vm3416_vm9, %v3348_v4, %v973_v43  ;;  %v988_v50 = vld [vmem:[#allocation2 + $0x18] sm:$0xf] }
  0x1b   : > { %v656_v48 = vrot.slane %v654_v38, 7  ;;  %v1093_v51 = vld [vmem:[#allocation2 + $0xcc] sm:$0xf]  ;;  %975 = vst [vmem:[#allocation2] sm:$0xf] %v974_v49  ;;  %v982_v54 = vsel %vm3416_vm9, %v634_v40, %v981_v44  ;;  %v1284_v17 = vshrl.u32 %v1283_v45, 7 }
  0x1c   : > { %v651_v52 = vor.u32 %v649_v35, %v648_v42  ;;  %v652_v53 = vrot.slane %v648_v42, 4  ;;  %v1094_v55 = vsel %vm3416_vm9, %v3348_v4, %v1093_v51  ;;  %v643_v56 = vsel %vm3400_vm8, %v635_v41, %v642_v46  ;;  %983 = vst [vmem:[#allocation2 + $0xc] sm:$0xf] %v982_v54  ;;  %v3438_v60 = vld [vmem:[%s3375_s8 + $0x10] sm:$0xf] }
  0x1d   : > { %v659_v57 = vor.u32 %v657_v39, %v656_v48  ;;  %v661_v58 = vrot.slane %v656_v48, 4  ;;  %1095 = vst [vmem:[#allocation2 + $0xcc] sm:$0xf] %v1094_v55  ;;  %v978_v61 = vld [vmem:[#allocation2 + $0x8] sm:$0x1]  ;;  %v3445_v4 = vunpack.c.l.bf16 %v466_v20  ;;  %v3469_v22 = vunpack.c.l.bf16 %v3438_v60 }
  0x1e   : > { %984 = vst.msk [vmem:[#allocation2 + $0x10] sm:$0xf] %vm971_vm4, %v643_v56  ;;  %v985_v62 = vld [vmem:[#allocation2 + $0x14] sm:$0x1]  ;;  %v989_v63 = vsel %vm3416_vm9, %v651_v52, %v988_v50  ;;  %v992_v0 = vld [vmem:[#allocation2 + $0x20] sm:$0x1]  ;;  %v979_v6 = vsel %vm3354_vm3, %v3365_v12, %v978_v61 }
  0x1f   : > { %v660_v3 = vsel %vm3400_vm8, %v652_v53, %v659_v57  ;;  %v986_v7 = vsel %vm3354_vm3, %v644_v47, %v985_v62  ;;  %990 = vst [vmem:[#allocation2 + $0x18] sm:$0xf] %v989_v63  ;;  %v993_v8 = vsel %vm3354_vm3, %v661_v58, %v992_v0  ;;  %v3457_v9 = vld [vmem:[%s3375_s8 + $0x14] sm:$0xf]  ;;  %v508_v10 = vld [vmem:[#allocation2 + $0x24] sm:$0x1] }
  0x20   : > { %v564_v11 = vld [vmem:[#allocation2 + $0x2c] sm:$0x1]  ;;  %980 = vst [vmem:[#allocation2 + $0x8] sm:$0x1] %v979_v6  ;;  %987 = vst [vmem:[#allocation2 + $0x14] sm:$0x1] %v986_v7  ;;  %v3497_v37 = vunpack.c.l.bf16 %v3457_v9 }
  0x21   : > { %991 = vst.msk [vmem:[#allocation2 + $0x1c] sm:$0xf] %vm971_vm4, %v660_v3  ;;  %994 = vst [vmem:[#allocation2 + $0x20] sm:$0x1] %v993_v8  ;;  %v1097_v13 = vld [vmem:[#allocation2 + $0xd4] sm:$0x1] }
  0x22   : > { %v1280_v16 = vld [vmem:[%s5143_s0] sm:$0x7]  ;;  %v509_v20 = vsel %vm3354_vm3, 0, %v508_v10  ;;  %5204 = vst [vmem:[#allocation4_spill] sm:$0xff] %v3469_v22  ;;  %v1098_v23 = vsel %vm3354_vm3, %v3365_v12, %v1097_v13  ;;  %v565_v21 = vsel %vm3379_vm6, 0, %v564_v11  ;;  %v663_v24 = vshrl.u32 %v3438_v60, 16 }
  0x23   : > { %510 = vst [vmem:[#allocation2 + $0x24] sm:$0x1] %v509_v20  ;;  %v666_v26 = vshll.u32 %v3438_v60, 16  ;;  %v3479_v27 = vld [vmem:[%s3375_s8 + $0x38] sm:$0xf]  ;;  %v3486_v29 = vsub.s32 0, %v1284_v17 }
  0x24   : > { %1099 = vst [vmem:[#allocation2 + $0xd4] sm:$0x1] %v1098_v23  ;;  %v3484_v28 = vld [vmem:[%s5143_s0 + $0x4] sm:$0x7]  ;;  %v3488_v30 = vsub.s32 1, %v1284_v17  ;;  %v3490_v12 = vsub.s32 2, %v1284_v17 }
  0x25   : > { %566 = vst [vmem:[#allocation2 + $0x2c] sm:$0x1] %v565_v21  ;;  %v671_v31 = vshrl.u32 %v3457_v9, 16  ;;  %v3134_v32 = vld [vmem:[#allocation2] sm:$0xff]   ;;  %v3493_v34 = vrot.slane %v663_v24, 7  ;;  %5205 = vst [vmem:[#allocation5_spill] sm:$0xff] %v3497_v37  ;;  %v3503_v43 = vrot.slane %v1280_v16, %v3486_v29  ;;  %v3514_v48 = vrot.slane %v3484_v28, %v3486_v29 }
  0x26   : > { %v1208_v33 = vld [vmem:[#allocation2] sm:$0xe]  ;;  %v3135_v39 = vunpack.c.l.bf16 %v3134_v32  ;;  %v3136_v40 = vunpack.c.h.bf16 %v3134_v32  ;;  %v3500_v41 = vld [vmem:[#allocation2 + $0xc] sm:$0xe]  ;;  %v3507_v46 = vrot.slane %v1280_v16, %v3488_v30  ;;  %v3510_v47 = vrot.slane %v1280_v16, %v3490_v12  ;;  %v1212_v51 = vld [vmem:[#allocation2 + $0x18] sm:$0xe] }
  0x27   : > { %v1244_v42 = vunpack.c.l.bf16 %v1208_v33  ;;  %v1102_v44 = vld [vmem:[#allocation2 + $0xc] sm:$0xff]   ;;  %v1246_v45 = vunpack.c.l.bf16 %v3500_v41  ;;  %vm1519_vm10 = vcmask 1045504   ;;  %v1209_v55 = vld [vmem:[#allocation2 + $0x8] sm:$0x1]  ;;  %v1211_v56 = vld [vmem:[#allocation2 + $0x14] sm:$0x1]  ;;  %v3520_v57 = vunpack.c.l.bf16 %v1212_v51 }
  0x28   : > { %v1138_v49 = vunpack.c.l.bf16 %v1102_v44  ;;  %v3516_v50 = vunpack.c.h.bf16 %v1102_v44  ;;  %v1287_v52 = vmul.f32 %v3135_v39, %v3503_v43  ;;  %v1288_v53 = vmul.f32 %v3136_v40, %v3503_v43  ;;  %v3169_v54 = vld [vmem:[#allocation2 + $0x18] sm:$0xff]   ;;  %v1213_v3 = vld [vmem:[#allocation2 + $0x20] sm:$0x1] }
  0x29   : > { %v1355_v58 = vmul.f32 %v3507_v46, %v3435_v59  ;;  %v1357_v61 = vmul.f32 %v3507_v46, %v1174_v1  ;;  %v1358_v62 = vmul.f32 %v3507_v46, %v1175_v2  ;;  %v3530_v63 = vunpack.c.l.bf16 %v3169_v54 }
  0x2a   : > { %v3532_v0 = vunpack.c.h.bf16 %v3169_v54  ;;  %v1245_v6 = vunpack.c.l.bf16 %v1209_v55  ;;  %v1247_v7 = vunpack.c.l.bf16 %v1211_v56  ;;  %v3534_v8 = vunpack.c.l.bf16 %v1213_v3 }
  0x2b   : > { %v1289_v10 = vmul.f32 %v3503_v43, %v1138_v49  ;;  %v1290_v11 = vmul.f32 %v3503_v43, %v3516_v50  ;;  %v1359_v13 = vmul.f32 %v3507_v46, %v3445_v4  ;;  %v1291_v16 = vmul.f32 %v3530_v63, %v3503_v43 }
  0x2c   : > { %v1292_v17 = vmul.f32 %v3532_v0, %v3503_v43  ;;  %v1360_v20 = vmul.f32 %v3507_v46, %v3461_v14  ;;  %v1387_v23 = vadd.f32 %v1355_v58, %v1287_v52  ;;  %v1388_v21 = vadd.f32 %v1355_v58, %v1288_v53 }
  0x2d   : > { %v3547_v24 = vadd.f32 %v1357_v61, %v1289_v10  ;;  %v3549_v32 = vadd.f32 %v1358_v62, %v1290_v11  ;;  %v1423_v33 = vmul.f32 %v3510_v47, %v1244_v42  ;;  %v1391_v39 = vadd.f32 %v1359_v13, %v1291_v16 }
  0x2e   : > { %v1392_v44 = vadd.f32 %v1360_v20, %v1292_v17  ;;  %v1424_v51 = vmul.f32 %v3136_v40, %v3510_v47  ;;  %v1425_v54 = vmul.f32 %v3510_v47, %v1245_v6  ;;  %v3557_v55 = vmul.f32 %v3510_v47, %v1246_v45 }
  0x2f   : > { %v3560_v52 = vmul.f32 %v3510_v47, %v1247_v7  ;;  %v1429_v53 = vmul.f32 %v3510_v47, %v3520_v57  ;;  %v1430_v42 = vmul.f32 %v3532_v0, %v3510_v47  ;;  %v1431_v56 = vmul.f32 %v3510_v47, %v3534_v8 }
  0x30   : > { %v1520_v40 = vrot.slane %v1423_v33, 2  ;;  %v1521_v58 = vrot.slane %v1424_v51, 2  ;;  %v1523_v61 = vrot.slane %v1425_v54, 2  ;;  %v1525_v62 = vrot.slane %v3557_v55, 2 }
  0x31   : > { %v1528_v3 = vrot.slane %v3560_v52, 2  ;;  %v1530_v6 = vrot.slane %v1429_v53, 2  ;;  %v1531_v10 = vrot.slane %v1430_v42, 2  ;;  %v1533_v16 = vrot.slane %v1431_v56, 2  ;;  %v585_v52 = vld [vmem:[#allocation2 + $0x80] sm:$0x1] }
  0x32   : > { %v1522_v11 = vsel %vm1519_vm10, %v1520_v40, %v1521_v58  ;;  %v1524_v13 = vsel %vm1519_vm10, %v1521_v58, %v1523_v61  ;;  %v1668_v17 = vmul.f32 %v3514_v48, %v1138_v49  ;;  %v1669_v33 = vmul.f32 %v3514_v48, %v3516_v50  ;;  %v1282_v49 = vld [vmem:[%s5143_s0 + $0x8] sm:$0x7] }
  0x33   : > { %v1532_v20 = vsel %vm1519_vm10, %v1530_v6, %v1531_v10  ;;  %v1632_v38 = vadd.f32 %v1522_v11, %v1387_v23  ;;  %v1633_v35 = vadd.f32 %v1524_v13, %v1388_v21  ;;  %v1534_v51 = vsel %vm1519_vm10, %v1531_v10, %v1533_v16 }
  0x34   : > { %v3577_v54 = vadd.f32 %v1532_v20, %v1391_v39  ;;  %v3581_v53 = vmul.f32 %v3530_v63, %v3514_v48  ;;  %v3585_v42 = vrot.slane %v3484_v28, %v3488_v30  ;;  %v3590_v23 = vadd.f32 %v1534_v51, %v1392_v44 }
  0x35   : > { %v1700_v21 = vadd.f32 %v1668_v17, %v1632_v38  ;;  %v1701_v56 = vadd.f32 %v1669_v33, %v1633_v35  ;;  %v3594_v39 = vrot.slane %v3484_v28, %v3490_v12  ;;  %v3625_v6 = vrot.slane %v1282_v49, %v3486_v29 }
  0x36   : > { %5206 = vst [vmem:[#allocation6_spill] sm:$0xff] %v3577_v54  ;;  %5207 = vst [vmem:[#allocation7_spill] sm:$0xff] %v3585_v42  ;;  %v1736_v40 = vmul.f32 %v3585_v42, %v1174_v1  ;;  %v1737_v58 = vmul.f32 %v3585_v42, %v1175_v2  ;;  %v3604_v61 = vmul.f32 %v3585_v42, %v3445_v4  ;;  %v669_v60 = vrot.slane %v3493_v34, 4 }
  0x37   : > { %5208 = vst [vmem:[#allocation8_spill] sm:$0xff] %v3590_v23  ;;  %v3608_v38 = vmul.f32 %v3585_v42, %v3461_v14  ;;  %v1804_v28 = vmul.f32 %v3594_v39, %v1246_v45  ;;  %v1805_v18 = vmul.f32 %v3594_v39, %v3516_v50  ;;  %v1806_v1 = vmul.f32 %v3594_v39, %v1247_v7 }
  0x38   : > { %v3618_v19 = vmul.f32 %v3594_v39, %v3520_v57  ;;  %v1768_v2 = vadd.f32 %v1736_v40, %v1700_v21  ;;  %v1769_v35 = vadd.f32 %v1737_v58, %v1701_v56  ;;  %v3622_v44 = vmul.f32 %v3594_v39, %v3534_v8  ;;  %v995_v21 = vld [vmem:[#allocation2 + $0x24] sm:$0xf] }
  0x39   : > { %v1900_v41 = vrot.slane %v1804_v28, 2  ;;  %v1901_v45 = vrot.slane %v1805_v18, 2  ;;  %v1903_v10 = vrot.slane %v1806_v1, 2  ;;  %v2048_v13 = vmul.f32 %v3530_v63, %v3625_v6 }
  0x3a   : > { %v1905_v11 = vrot.slane %v3618_v19, 2  ;;  %v1908_v7 = vrot.slane %v3622_v44, 2  ;;  %v2049_v16 = vmul.f32 %v3532_v0, %v3625_v6  ;;  %v3634_v17 = vrot.slane %v1282_v49, %v3488_v30 }
  0x3b   : > { %v1902_v20 = vsel %vm1519_vm10, %v1900_v41, %v1901_v45  ;;  %v1904_v29 = vsel %vm1519_vm10, %v1901_v45, %v1903_v10  ;;  %v3639_v33 = vrot.slane %v1282_v49, %v3490_v12  ;;  %v668_v51 = vor.u32 %v666_v26, %v3493_v34 }
  0x3c   : > { %v2012_v56 = vadd.f32 %v1902_v20, %v1768_v2  ;;  %v2013_v63 = vadd.f32 %v1904_v29, %v1769_v35  ;;  %v2116_v40 = vmul.f32 %v3634_v17, %v3445_v4  ;;  %v2117_v30 = vmul.f32 %v3634_v17, %v3461_v14 }
  0x3d   : > { %v2184_v58 = vmul.f32 %v3639_v33, %v3520_v57  ;;  %v2185_v12 = vmul.f32 %v3532_v0, %v3639_v33  ;;  %v2186_v49 = vmul.f32 %v3639_v33, %v3534_v8  ;;  %v673_v18 = vrot.slane %v671_v31, 7  ;;  %v999_v57 = vld [vmem:[#allocation2 + $0x2c] sm:$0x1] }
  0x3e   : > { %v2080_v26 = vadd.f32 %v2048_v13, %v2012_v56  ;;  %v2081_v28 = vadd.f32 %v2049_v16, %v2013_v63  ;;  %v996_v4 = vsel %vm3416_vm9, %v668_v51, %v995_v21  ;;  %vm2519_vm11 = vcmask 31744   ;;  %v3670_v16 = vld [vmem:[%s5144_s1] ss:$0 sm:$0xff] }
  0x3f   : > { %v2280_v14 = vrot.slane %v2184_v58, 2  ;;  %v2281_v1 = vrot.slane %v2185_v12, 2  ;;  %v2283_v2 = vrot.slane %v2186_v49, 2  ;;  %997 = vst [vmem:[#allocation2 + $0x24] sm:$0xf] %v996_v4  ;;  %v3661_v35 = vmul.f32 %v3507_v46, %v3469_v22 }
  0x40   : > { %v2148_v8 = vadd.f32 %v2116_v40, %v2080_v26  ;;  %v2149_v34 = vadd.f32 %v2117_v30, %v2081_v28  ;;  %v5210_v41 = vshll.u32 %v3457_v9, 16  ;;  %v678_v10 = vrot.slane %v673_v18, 4  ;;  %v523_v51 = vld [vmem:[#allocation2 + $0x60] sm:$0x1]  ;;  %v526_v40 = vld [vmem:[#allocation2 + $0x6c] sm:$0x1] }
  0x41   : > { %5209 = vst [vmem:[#allocation9_spill] sm:$0xff] %v3661_v35  ;;  %v2282_v31 = vsel %vm1519_vm10, %v2280_v14, %v2281_v1  ;;  %v2284_v13 = vsel %vm1519_vm10, %v2281_v1, %v2283_v2  ;;  %v3674_v20 = vmul.f32 %v3507_v46, %v3497_v37  ;;  %v1427_v29 = vmul.f32 %v3510_v47, %v3516_v50  ;;  %v3685_v30 = vld [vmem:[%s5145_s2] ss:$0 sm:$0xff]  ;;  %v529_v4 = vld [vmem:[#allocation2 + $0x78] sm:$0x1] }
  0x42   : > { %v676_v45 = vor.u32 %v5210_v41, %v673_v18  ;;  %v2392_v9 = vadd.f32 %v2282_v31, %v2148_v8  ;;  %v2393_v21 = vadd.f32 %v2284_v13, %v2149_v34  ;;  %v1000_v63 = vsel %vm3354_vm3, %v678_v10, %v999_v57  ;;  %v579_v57 = vld [vmem:[#allocation2 + $0x68] sm:$0x1] }
  0x43   : > { %5211 = vst [vmem:[#allocation10_spill] sm:$0xff] %v3674_v20  ;;  %1001 = vst [vmem:[#allocation2 + $0x2c] sm:$0x1] %v1000_v63  ;;  %v1526_v58 = vrot.slane %v1427_v29, 2  ;;  %v1671_v50 = vmul.f32 %v3532_v0, %v3514_v48  ;;  %v1808_v12 = vmul.f32 %v3532_v0, %v3594_v39  ;;  %v3694_v49 = vmul.f32 %v3634_v17, %v3469_v22 }
  0x44   : > { %v677_v56 = vsel %vm3400_vm8, %v669_v60, %v676_v45  ;;  %v2431_v60 = vmul.f32 %v3670_v16, %v2392_v9  ;;  %v2432_v26 = vmul.f32 %v3670_v16, %v2393_v21  ;;  %v3700_v28 = vmul.f32 %v3634_v17, %v3497_v37 }
  0x45   : > { %998 = vst.msk [vmem:[#allocation2 + $0x28] sm:$0xf] %vm971_vm4, %v677_v56  ;;  %v524_v18 = vsel %vm3354_vm3, 0, %v523_v51  ;;  %v1527_v0 = vsel %vm1519_vm10, %v1525_v62, %v1526_v58  ;;  %v1529_v14 = vsel %vm1519_vm10, %v1526_v58, %v1528_v3  ;;  %v1906_v1 = vrot.slane %v1808_v12, 2  ;;  %v582_v62 = vld [vmem:[#allocation2 + $0x74] sm:$0x1] }
  0x46   : > { %525 = vst [vmem:[#allocation2 + $0x60] sm:$0x1] %v524_v18  ;;  %v527_v2 = vsel %vm3354_vm3, 0, %v526_v40  ;;  %v2470_v8 = vadd.f32 %v3685_v30, %v2431_v60  ;;  %v2471_v34 = vadd.f32 %v3685_v30, %v2432_v26  ;;  %v1214_v41 = vld [vmem:[#allocation2 + $0x24] sm:$0xe]  ;;  %v1634_v45 = vadd.f32 %v1527_v0, %v3547_v24 }
  0x47   : > { %v1635_v55 = vadd.f32 %v1529_v14, %v3549_v32  ;;  %528 = vst [vmem:[#allocation2 + $0x6c] sm:$0x1] %v527_v2  ;;  %v3716_v10 = vunpack.c.l.bf16 %v1214_v41  ;;  %v1907_v3 = vsel %vm1519_vm10, %v1905_v11, %v1906_v1  ;;  %v1909_v31 = vsel %vm1519_vm10, %v1906_v1, %v1908_v7 }
  0x48   : > { %v530_v13 = vsel %vm3354_vm3, 0, %v529_v4  ;;  %v2502_v29 = vpack.c.bf16 %v2471_v34, %v2470_v8  ;;  %v1702_v24 = vadd.f32 %v3581_v53, %v1634_v45  ;;  %v580_v51 = vsel %vm3379_vm6, 0, %v579_v57  ;;  %v3768_v8 = vld [vmem:[%s3375_s8 + $0x40] sm:$0xf]  ;;  %v3775_v45 = vld [vmem:[%s3375_s8 + $0x44] sm:$0xf] }
  0x49   : > { %5212 = vst [vmem:[#allocation11_spill] sm:$0xff] %v3716_v10  ;;  %v1703_v32 = vadd.f32 %v1671_v50, %v1635_v55  ;;  %531 = vst [vmem:[#allocation2 + $0x78] sm:$0x1] %v530_v13  ;;  %v3731_v19 = vmul.f32 %v3510_v47, %v3716_v10  ;;  %v2187_v44 = vmul.f32 %v3639_v33, %v3716_v10  ;;  %v583_v11 = vsel %vm3379_vm6, 0, %v582_v62 }
  0x4a   : > { %581 = vst [vmem:[#allocation2 + $0x68] sm:$0x1] %v580_v51  ;;  %v586_v53 = vsel %vm3379_vm6, 0, %v585_v52  ;;  %3196 = vmatprep.mubr.msk.bf16.mxu0 %vm2519_vm11, %v2502_v29  ;;  %v1215_v9 = vld [vmem:[#allocation2 + $0x2c] sm:$0x1]  ;;  %v1770_v21 = vadd.f32 %v3604_v61, %v1702_v24  ;;  %v5214_v63 = vshrl.u32 %v3479_v27, 16 }
  0x4b   : > { %5213 = vst [vmem:[#allocation12_spill] sm:$0xff] %v3731_v19  ;;  %v1771_v56 = vadd.f32 %v3608_v38, %v1703_v32  ;;  %584 = vst [vmem:[#allocation2 + $0x74] sm:$0x1] %v583_v11  ;;  %v751_v58 = vshll.u32 %v3479_v27, 16  ;;  %v3749_v60 = vunpack.c.l.bf16 %v1215_v9  ;;  %v3753_v61 = vld [vmem:[%s3375_s8 + $0x3c] sm:$0xf] }
  0x4c   : > { %v1106_v7 = vld [vmem:[#allocation2 + $0x24] sm:$0xff]   ;;  %587 = vst [vmem:[#allocation2 + $0x80] sm:$0x1] %v586_v53  ;;  %v750_v40 = vrot.slane %v5214_v63, 7  ;;  %v2014_v38 = vadd.f32 %v1907_v3, %v1770_v21  ;;  %v2285_v4 = vrot.slane %v2187_v44, 2  ;;  %v756_v62 = vshrl.u32 %v3753_v61, 16 }
  0x4d   : > { %v3745_v50 = vunpack.c.l.bf16 %v1106_v7  ;;  %v3747_v12 = vunpack.c.h.bf16 %v1106_v7  ;;  %5217 = vst [vmem:[#allocation15_spill] sm:$0xff] %v3749_v60  ;;  %v2015_v18 = vadd.f32 %v1909_v31, %v1771_v56  ;;  %v3761_v1 = vmul.f32 %v3510_v47, %v3749_v60  ;;  %v482_v53 = vld [vmem:[%s3375_s8 + $0x48] sm:$0xf] }
  0x4e   : > { %v753_v0 = vor.u32 %v751_v58, %v750_v40  ;;  %v2189_v41 = vmul.f32 %v3639_v33, %v3749_v60  ;;  %v754_v55 = vrot.slane %v750_v40, 4  ;;  %v759_v13 = vshll.u32 %v3753_v61, 16 }
  0x4f   : > { %5215 = vst [vmem:[#allocation13_spill] sm:$0xff] %v3745_v50  ;;  %5216 = vst [vmem:[#allocation14_spill] sm:$0xff] %v3747_v12  ;;  %v3757_v14 = vmul.f32 %v3503_v43, %v3745_v50  ;;  %v2050_v2 = vmul.f32 %v3625_v6, %v3745_v50  ;;  %v2051_v57 = vmul.f32 %v3625_v6, %v3747_v12  ;;  %v758_v32 = vrot.slane %v756_v62, 7  ;;  %v1030_v62 = vld [vmem:[#allocation2 + $0x60] sm:$0xf] }
  0x50   : > { %5219 = vst [vmem:[#allocation17_spill] sm:$0xff] %v3761_v1  ;;  %v2188_v34 = vmul.f32 %v3639_v33, %v3747_v12  ;;  %v2288_v24 = vrot.slane %v2189_v41, 2  ;;  %v765_v51 = vshrl.u32 %v3768_v8, 16  ;;  %v768_v7 = vshll.u32 %v3768_v8, 16 }
  0x51   : > { %5218 = vst [vmem:[#allocation16_spill] sm:$0xff] %v3757_v14  ;;  %v2082_v3 = vadd.f32 %v2050_v2, %v2014_v38  ;;  %v2083_v31 = vadd.f32 %v2051_v57, %v2015_v18  ;;  %v773_v9 = vshrl.u32 %v3775_v45, 16  ;;  %v761_v63 = vor.u32 %v759_v13, %v758_v32  ;;  %v483_v18 = vld [vmem:[%s3375_s8 + $0x4c] sm:$0xf] }
  0x52   : > { %v2286_v29 = vrot.slane %v2188_v34, 2  ;;  %v763_v40 = vrot.slane %v758_v32, 4  ;;  %v767_v2 = vrot.slane %v765_v51, 7  ;;  %v782_v34 = vshrl.u32 %v482_v53, 16 }
  0x53   : > { %v2150_v44 = vadd.f32 %v3694_v49, %v2082_v3  ;;  %v2151_v11 = vadd.f32 %v3700_v28, %v2083_v31  ;;  %v775_v57 = vrot.slane %v773_v9, 7  ;;  %v762_v49 = vsel %vm3400_vm8, %v754_v55, %v761_v63  ;;  %v1041_v55 = vld [vmem:[#allocation2 + $0x74] sm:$0x1] }
  0x54   : > { %v2287_v21 = vsel %vm1519_vm10, %v2285_v4, %v2286_v29  ;;  %v2289_v56 = vsel %vm1519_vm10, %v2286_v29, %v2288_v24  ;;  %v776_v28 = vshll.u32 %v3775_v45, 16  ;;  %v785_v41 = vshll.u32 %v482_v53, 16  ;;  %1033 = vst.msk [vmem:[#allocation2 + $0x64] sm:$0xf] %vm971_vm4, %v762_v49  ;;  %v1034_v29 = vld [vmem:[#allocation2 + $0x68] sm:$0x1] }
  0x55   : > { %v2394_v58 = vadd.f32 %v2287_v21, %v2150_v44  ;;  %v2395_v38 = vadd.f32 %v2289_v56, %v2151_v11  ;;  %v770_v31 = vor.u32 %v768_v7, %v767_v2  ;;  %v771_v13 = vrot.slane %v767_v2, 4  ;;  %v1037_v24 = vld [vmem:[#allocation2 + $0x6c] sm:$0xf] }
  0x56   : > { %v778_v32 = vor.u32 %v776_v28, %v775_v57  ;;  %v780_v51 = vrot.slane %v775_v57, 4  ;;  %v784_v44 = vrot.slane %v782_v34, 7  ;;  %v790_v11 = vshrl.u32 %v483_v18, 16 }
  0x57   : > { %v2433_v3 = vmul.f32 %v3670_v16, %v2394_v58  ;;  %v2434_v4 = vmul.f32 %v3670_v16, %v2395_v38  ;;  %v793_v56 = vshll.u32 %v483_v18, 16  ;;  %v1031_v63 = vsel %vm3416_vm9, %v753_v0, %v1030_v62  ;;  %v1044_v58 = vld [vmem:[#allocation2 + $0x78] sm:$0xf]  ;;  %v1048_v62 = vld [vmem:[#allocation2 + $0x80] sm:$0x1] }
  0x58   : > { %v779_v7 = vsel %vm3400_vm8, %v771_v13, %v778_v32  ;;  %v787_v38 = vor.u32 %v785_v41, %v784_v44  ;;  %v788_v2 = vrot.slane %v784_v44, 4  ;;  %v792_v49 = vrot.slane %v790_v11, 7  ;;  %1032 = vst [vmem:[#allocation2 + $0x60] sm:$0xf] %v1031_v63  ;;  %v588_v11 = vld [vmem:[#allocation2 + $0x8c] sm:$0x1] }
  0x59   : > { %v2472_v9 = vadd.f32 %v3685_v30, %v2433_v3  ;;  %v2473_v21 = vadd.f32 %v3685_v30, %v2434_v4  ;;  %v1035_v28 = vsel %vm3354_vm3, %v763_v40, %v1034_v29  ;;  %v1038_v34 = vsel %vm3416_vm9, %v770_v31, %v1037_v24  ;;  %1040 = vst.msk [vmem:[#allocation2 + $0x70] sm:$0xf] %vm971_vm4, %v779_v7  ;;  %v3854_v63 = vld [vmem:[%s3375_s8 + $0x50] sm:$0xf] }
  0x5a   : > { %v1042_v0 = vsel %vm3354_vm3, %v780_v51, %v1041_v55  ;;  %v795_v3 = vor.u32 %v793_v56, %v792_v49  ;;  %v797_v4 = vrot.slane %v792_v49, 4  ;;  %1036 = vst [vmem:[#allocation2 + $0x68] sm:$0x1] %v1035_v28  ;;  %1039 = vst [vmem:[#allocation2 + $0x6c] sm:$0xf] %v1038_v34  ;;  %v1045_v41 = vsel %vm3416_vm9, %v787_v38, %v1044_v58 }
  0x5b   : > { %v2503_v57 = vpack.c.bf16 %v2473_v21, %v2472_v9  ;;  %1043 = vst [vmem:[#allocation2 + $0x74] sm:$0x1] %v1042_v0  ;;  %v3811_v13 = vunpack.c.l.bf16 %v3479_v27  ;;  %1046 = vst [vmem:[#allocation2 + $0x78] sm:$0xf] %v1045_v41  ;;  %v3815_v40 = vunpack.c.l.bf16 %v3753_v61  ;;  %v3818_v31 = vunpack.c.l.bf16 %v3768_v8  ;;  %v532_v61 = vld [vmem:[#allocation2 + $0x84] sm:$0x1] }
  0x5c   : > { %v3821_v29 = vunpack.c.l.bf16 %v3775_v45  ;;  %v1192_v24 = vunpack.c.l.bf16 %v482_v53  ;;  %v796_v32 = vsel %vm3400_vm8, %v788_v2, %v795_v3  ;;  %v1049_v27 = vsel %vm3354_vm3, %v797_v4, %v1048_v62  ;;  %v3874_v62 = vld [vmem:[%s3375_s8 + $0x54] sm:$0xf]  ;;  %v3879_v4 = vld [vmem:[%s3375_s8 + $0x18] sm:$0xf] }
  0x5d   : > { %5220 = vst [vmem:[#allocation18_spill] sm:$0xff] %v3811_v13  ;;  %3197 = vmatmul.mubr.msk.bf16.vlgmr.msra.gmra.mxu0 %vm2519_vm11, %v2503_v57  ;;  %5221 = vst [vmem:[#allocation19_spill] sm:$0xff] %v3815_v40  ;;  %v1193_v51 = vunpack.c.l.bf16 %v483_v18  ;;  %v1371_v44 = vmul.f32 %v3507_v46, %v3811_v13  ;;  %v1372_v8 = vmul.f32 %v3507_v46, %v3815_v40  ;;  %v533_v57 = vsel %vm3354_vm3, 0, %v532_v61 }
  0x5e   : > { %5222 = vst [vmem:[#allocation20_spill] sm:$0xff] %v3818_v31  ;;  %5223 = vst [vmem:[#allocation21_spill] sm:$0xff] %v3821_v29  ;;  %v3834_v45 = vmul.f32 %v3507_v46, %v3818_v31  ;;  %v3838_v53 = vmul.f32 %v3507_v46, %v3821_v29  ;;  %v1375_v18 = vmul.f32 %v3507_v46, %v1192_v24  ;;  %v589_v3 = vsel %vm3379_vm6, 0, %v588_v11 }
  0x5f   : > { %1047 = vst.msk [vmem:[#allocation2 + $0x7c] sm:$0xf] %vm971_vm4, %v796_v32  ;;  %1050 = vst [vmem:[#allocation2 + $0x80] sm:$0x1] %v1049_v27  ;;  %v1376_v55 = vmul.f32 %v3507_v46, %v1193_v51  ;;  %v3844_v9 = vmul.f32 %v3585_v42, %v3818_v31  ;;  %v3848_v21 = vmul.f32 %v3585_v42, %v3821_v29  ;;  %v3172_v58 = vld [vmem:[#allocation2 + $0x60] sm:$0xff]   ;;  %v3886_v61 = vunpack.c.l.bf16 %v3874_v62 }
  0x60   : > { %v3851_v56 = vmul.f32 %v3585_v42, %v1192_v24  ;;  %v1224_v7 = vld [vmem:[#allocation2 + $0x60] sm:$0xe]  ;;  %v3857_v38 = vmul.f32 %v3585_v42, %v1193_v51  ;;  %v3860_v2 = vmul.f32 %v3634_v17, %v1192_v24  ;;  %v3863_v49 = vmul.f32 %v3634_v17, %v1193_v51  ;;  %534 = vst [vmem:[#allocation2 + $0x84] sm:$0x1] %v533_v57 }
  0x61   : > { %v3867_v28 = vunpack.c.l.bf16 %v3172_v58  ;;  %v3869_v34 = vunpack.c.h.bf16 %v3172_v58  ;;  %v3871_v0 = vunpack.c.l.bf16 %v1224_v7  ;;  %v1118_v41 = vld [vmem:[#allocation2 + $0x6c] sm:$0xff]   ;;  %v1225_v24 = vld [vmem:[#allocation2 + $0x68] sm:$0x1]  ;;  %590 = vst [vmem:[#allocation2 + $0x8c] sm:$0x1] %v589_v3  ;;  %v3883_v51 = vunpack.c.l.bf16 %v3854_v63 }
  0x62   : > { %v1226_v32 = vld [vmem:[#allocation2 + $0x6c] sm:$0xe]  ;;  %v3889_v58 = vunpack.c.l.bf16 %v3879_v4  ;;  %v3891_v7 = vunpack.c.l.bf16 %v1118_v41  ;;  %v3893_v11 = vunpack.c.h.bf16 %v1118_v41  ;;  %v1227_v57 = vld [vmem:[#allocation2 + $0x74] sm:$0x1]  ;;  %v1228_v52 = vld [vmem:[#allocation2 + $0x78] sm:$0xe]  ;;  %v3895_v26 = vunpack.c.l.bf16 %v1225_v24 }
  0x63   : > { %5224 = vst [vmem:[#allocation22_spill] sm:$0xff] %v3867_v28  ;;  %5225 = vst [vmem:[#allocation23_spill] sm:$0xff] %v3869_v34  ;;  %v3897_v3 = vunpack.c.l.bf16 %v1226_v32  ;;  %v3899_v27 = vunpack.c.l.bf16 %v1227_v57  ;;  %v1264_v59 = vunpack.c.l.bf16 %v1228_v52  ;;  %v1303_v29 = vmul.f32 %v3867_v28, %v3503_v43 }
  0x64   : > { %5226 = vst [vmem:[#allocation24_spill] sm:$0xff] %v3871_v0  ;;  %5227 = vst [vmem:[#allocation25_spill] sm:$0xff] %v3889_v58  ;;  %v1304_v31 = vmul.f32 %v3869_v34, %v3503_v43  ;;  %v3907_v41 = vmul.f32 %v3503_v43, %v3891_v7  ;;  %v1447_v24 = vmul.f32 %v3510_v47, %v3871_v0  ;;  %v807_v23 = vshrl.u32 %v3874_v62, 16 }
  0x65   : > { %5228 = vst [vmem:[#allocation26_spill] sm:$0xff] %v3891_v7  ;;  %5229 = vst [vmem:[#allocation27_spill] sm:$0xff] %v3893_v11  ;;  %v1448_v32 = vmul.f32 %v3869_v34, %v3510_v47  ;;  %v1449_v52 = vmul.f32 %v3510_v47, %v3895_v26  ;;  %v1403_v19 = vadd.f32 %v1371_v44, %v1303_v29 }
  0x66   : > { %5230 = vst [vmem:[#allocation28_spill] sm:$0xff] %v3895_v26  ;;  %5231 = vst [vmem:[#allocation29_spill] sm:$0xff] %v3897_v3  ;;  %v3173_v40 = vld [vmem:[#allocation2 + $0x78] sm:$0xff]   ;;  %v1229_v13 = vld [vmem:[#allocation2 + $0x80] sm:$0x1]  ;;  %v1404_v20 = vadd.f32 %v1372_v8, %v1304_v31  ;;  %v3919_v35 = vmul.f32 %v3510_v47, %v3897_v3  ;;  %v3923_v14 = vmul.f32 %v3510_v47, %v3899_v27  ;;  %v1560_v31 = vrot.slane %v1447_v24, 2 }
  0x67   : > { %5232 = vst [vmem:[#allocation30_spill] sm:$0xff] %v3899_v27  ;;  %v3155_v57 = vunpack.c.l.bf16 %v3173_v40  ;;  %v3915_v28 = vunpack.c.h.bf16 %v3173_v40  ;;  %v1265_v1 = vunpack.c.l.bf16 %v1229_v13  ;;  %v1453_v0 = vmul.f32 %v3510_v47, %v1264_v59 }
  0x68   : > { %v1561_v29 = vrot.slane %v1448_v32, 2  ;;  %v1563_v44 = vrot.slane %v1449_v52, 2  ;;  %v1684_v24 = vmul.f32 %v3514_v48, %v3891_v7  ;;  %v1685_v32 = vmul.f32 %v3514_v48, %v3893_v11 }
  0x69   : > { %v1307_v34 = vmul.f32 %v3155_v57, %v3503_v43  ;;  %v1308_v26 = vmul.f32 %v3915_v28, %v3503_v43  ;;  %v1454_v13 = vmul.f32 %v3915_v28, %v3510_v47  ;;  %v1455_v40 = vmul.f32 %v3510_v47, %v1265_v1 }
  0x6a   : > { %v1570_v37 = vrot.slane %v1453_v0, 2  ;;  %v1562_v54 = vsel %vm1519_vm10, %v1560_v31, %v1561_v29  ;;  %v1564_v42 = vsel %vm1519_vm10, %v1561_v29, %v1563_v44  ;;  %v2065_v29 = vmul.f32 %v3915_v28, %v3625_v6 }
  0x6b   : > { %v1407_v60 = vadd.f32 %v1375_v18, %v1307_v34  ;;  %v1408_v10 = vadd.f32 %v1376_v55, %v1308_v26  ;;  %v1571_v22 = vrot.slane %v1454_v13, 2  ;;  %v1573_v12 = vrot.slane %v1455_v40, 2 }
  0x6c   : > { %v1648_v50 = vadd.f32 %v1562_v54, %v1403_v19  ;;  %v1649_v58 = vadd.f32 %v1564_v42, %v1404_v20  ;;  %v3943_v55 = vmul.f32 %v3155_v57, %v3514_v48  ;;  %v1828_v34 = vmul.f32 %v3594_v39, %v3897_v3 }
  0x6d   : > { %v1572_v18 = vsel %vm1519_vm10, %v1570_v37, %v1571_v22  ;;  %v1574_v26 = vsel %vm1519_vm10, %v1571_v22, %v1573_v12  ;;  %v1829_v19 = vmul.f32 %v3594_v39, %v3893_v11  ;;  %v1830_v37 = vmul.f32 %v3594_v39, %v3899_v27 }
  0x6e   : > { %v3947_v0 = vadd.f32 %v1572_v18, %v1407_v60  ;;  %v3949_v54 = vadd.f32 %v1574_v26, %v1408_v10  ;;  %v1716_v42 = vadd.f32 %v1684_v24, %v1648_v50  ;;  %v1717_v20 = vadd.f32 %v1685_v32, %v1649_v58 }
  0x6f   : > { %v3956_v22 = vmul.f32 %v3594_v39, %v1264_v59  ;;  %v3959_v12 = vmul.f32 %v3594_v39, %v1265_v1  ;;  %v1940_v10 = vrot.slane %v1828_v34, 2  ;;  %v2064_v50 = vmul.f32 %v3155_v57, %v3625_v6 }
  0x70   : > { %v1784_v52 = vadd.f32 %v3844_v9, %v1716_v42  ;;  %v1785_v60 = vadd.f32 %v3848_v21, %v1717_v20  ;;  %v1941_v58 = vrot.slane %v1829_v19, 2  ;;  %v1943_v13 = vrot.slane %v1830_v37, 2  ;;  %v1051_v37 = vld [vmem:[#allocation2 + $0x84] sm:$0xf] }
  0x71   : > { %v2208_v44 = vmul.f32 %v3639_v33, %v1264_v59  ;;  %v2209_v24 = vmul.f32 %v3915_v28, %v3639_v33  ;;  %v2210_v9 = vmul.f32 %v3639_v33, %v1265_v1  ;;  %v5233_v32 = vshrl.u32 %v3854_v63, 16 }
  0x72   : > { %v1942_v21 = vsel %vm1519_vm10, %v1940_v10, %v1941_v58  ;;  %v1944_v57 = vsel %vm1519_vm10, %v1941_v58, %v1943_v13  ;;  %v802_v26 = vshll.u32 %v3854_v63, 16  ;;  %v810_v58 = vshll.u32 %v3874_v62, 16 }
  0x73   : > { %v801_v18 = vrot.slane %v5233_v32, 7  ;;  %v2028_v34 = vadd.f32 %v1942_v21, %v1784_v52  ;;  %v2029_v42 = vadd.f32 %v1944_v57, %v1785_v60  ;;  %v2320_v20 = vrot.slane %v2208_v44, 2  ;;  %v511_v57 = vld [vmem:[#allocation2 + $0x30] sm:$0x1] }
  0x74   : > { %v2321_v19 = vrot.slane %v2209_v24, 2  ;;  %v2323_v59 = vrot.slane %v2210_v9, 2  ;;  %v809_v32 = vrot.slane %v807_v23, 7  ;;  %v1306_v52 = vmul.f32 %v3503_v43, %v3893_v11 }
  0x75   : > { %v804_v31 = vor.u32 %v802_v26, %v801_v18  ;;  %v805_v40 = vrot.slane %v801_v18, 4  ;;  %v2096_v1 = vadd.f32 %v2064_v50, %v2028_v34  ;;  %v2097_v8 = vadd.f32 %v2065_v29, %v2029_v42  ;;  %v1055_v50 = vld [vmem:[#allocation2 + $0x8c] sm:$0x1]  ;;  %v567_v18 = vld [vmem:[#allocation2 + $0x38] sm:$0x1] }
  0x76   : > { %v2322_v10 = vsel %vm1519_vm10, %v2320_v20, %v2321_v19  ;;  %v2324_v13 = vsel %vm1519_vm10, %v2321_v19, %v2323_v59  ;;  %v3989_v29 = vmul.f32 %v3507_v46, %v3883_v51  ;;  %v3993_v62 = vmul.f32 %v3507_v46, %v3886_v61 }
  0x77   : > { %v1052_v63 = vsel %vm3416_vm9, %v804_v31, %v1051_v37  ;;  %v2164_v60 = vadd.f32 %v3860_v2, %v2096_v1  ;;  %v2165_v44 = vadd.f32 %v3863_v49, %v2097_v8  ;;  %v812_v23 = vor.u32 %v810_v58, %v809_v32 }
  0x78   : > { %1053 = vst [vmem:[#allocation2 + $0x84] sm:$0xf] %v1052_v63  ;;  %v814_v24 = vrot.slane %v809_v32, 4  ;;  %v1405_v31 = vadd.f32 %v3834_v45, %v3907_v41  ;;  %v1406_v9 = vadd.f32 %v3838_v53, %v1306_v52  ;;  %v1451_v49 = vmul.f32 %v3510_v47, %v3893_v11  ;;  %v471_v52 = vld [vmem:[%s3375_s8 + $0x1c] sm:$0xf] }
  0x79   : > { %v2408_v2 = vadd.f32 %v2322_v10, %v2164_v60  ;;  %v2409_v21 = vadd.f32 %v2324_v13, %v2165_v44  ;;  %v1687_v8 = vmul.f32 %v3915_v28, %v3514_v48  ;;  %v813_v26 = vsel %vm3400_vm8, %v805_v40, %v812_v23 }
  0x7a   : > { %v1056_v34 = vsel %vm3354_vm3, %v814_v24, %v1055_v50  ;;  %v1832_v45 = vmul.f32 %v3915_v28, %v3594_v39  ;;  %v4010_v53 = vmul.f32 %v3634_v17, %v3883_v51  ;;  %1054 = vst.msk [vmem:[#allocation2 + $0x88] sm:$0xf] %vm971_vm4, %v813_v26  ;;  %v1566_v20 = vrot.slane %v1451_v49, 2 }
  0x7b   : > { %v2447_v41 = vmul.f32 %v3670_v16, %v2408_v2  ;;  %v2448_v42 = vmul.f32 %v3670_v16, %v2409_v21  ;;  %1057 = vst [vmem:[#allocation2 + $0x8c] sm:$0x1] %v1056_v34  ;;  %v4017_v40 = vmul.f32 %v3634_v17, %v3886_v61  ;;  %v512_v28 = vsel %vm3354_vm3, 0, %v511_v57 }
  0x7c   : > { %v1946_v19 = vrot.slane %v1832_v45, 2  ;;  %v568_v37 = vsel %vm3379_vm6, 0, %v567_v18  ;;  %v680_v59 = vshrl.u32 %v3879_v4, 16  ;;  %v5234_v58 = vrot.slane %v3919_v35, 2  ;;  %513 = vst [vmem:[#allocation2 + $0x30] sm:$0x1] %v512_v28 }
  0x7d   : > { %v2486_v1 = vadd.f32 %v3685_v30, %v2447_v41  ;;  %v2487_v10 = vadd.f32 %v3685_v30, %v2448_v42  ;;  %v5235_v32 = vrot.slane %v3923_v14, 2  ;;  %569 = vst [vmem:[#allocation2 + $0x38] sm:$0x1] %v568_v37  ;;  %v5236_v23 = vrot.slane %v3956_v22, 2 }
  0x7e   : > { %v1567_v13 = vsel %vm1519_vm10, %v5234_v58, %v1566_v20  ;;  %v5237_v2 = vrot.slane %v3959_v12, 2  ;;  %v682_v14 = vrot.slane %v680_v59, 7  ;;  %v683_v57 = vshll.u32 %v3879_v4, 16 }
  0x7f   : > { %v1569_v63 = vsel %vm1519_vm10, %v1566_v20, %v5235_v32  ;;  %v1230_v60 = vld [vmem:[#allocation2 + $0x84] sm:$0xe]  ;;  %v1650_v44 = vadd.f32 %v1567_v13, %v1405_v31  ;;  %v1947_v24 = vsel %vm1519_vm10, %v5236_v23, %v1946_v19  ;;  %v2510_v21 = vpack.c.bf16 %v2487_v10, %v2486_v1 }
  0x80   : > { %v1651_v50 = vadd.f32 %v1569_v63, %v1406_v9  ;;  %v1949_v35 = vsel %vm1519_vm10, %v1946_v19, %v5237_v2  ;;  %v4039_v49 = vunpack.c.l.bf16 %v1230_v60  ;;  %v688_v34 = vshrl.u32 %v471_v52, 16 }
  0x81   : > { %v1718_v18 = vadd.f32 %v3943_v55, %v1650_v44  ;;  %v691_v31 = vshll.u32 %v471_v52, 16  ;;  %3212 = vmatprep.mubr.msk.bf16.mxu1 %vm2519_vm11, %v2510_v21  ;;  %v685_v9 = vor.u32 %v683_v57, %v682_v14  ;;  %v686_v45 = vrot.slane %v682_v14, 4  ;;  %v1122_v41 = vld [vmem:[#allocation2 + $0x84] sm:$0xff]  }
  0x82   : > { %v1719_v26 = vadd.f32 %v1687_v8, %v1651_v50  ;;  %v4046_v22 = vmul.f32 %v3510_v47, %v4039_v49  ;;  %v2211_v12 = vmul.f32 %v3639_v33, %v4039_v49  ;;  %v1231_v42 = vld [vmem:[#allocation2 + $0x8c] sm:$0x1]  ;;  %v690_v8 = vrot.slane %v688_v34, 7 }
  0x83   : > { %v1786_v4 = vadd.f32 %v3851_v56, %v1718_v18  ;;  %v4052_v20 = vunpack.c.l.bf16 %v471_v52  ;;  %v4054_v19 = vunpack.c.l.bf16 %v1122_v41  ;;  %v4056_v28 = vunpack.c.h.bf16 %v1122_v41  ;;  %v1002_v32 = vld [vmem:[#allocation2 + $0x30] sm:$0xf]  ;;  %v5238_v34 = vld [vmem:[#allocation25_spill] sm:$0xff] }
  0x84   : > { %v1787_v55 = vadd.f32 %v3857_v38, %v1719_v26  ;;  %v4058_v37 = vunpack.c.l.bf16 %v1231_v42  ;;  %v2325_v58 = vrot.slane %v2211_v12, 2  ;;  %v693_v13 = vor.u32 %v691_v31, %v690_v8  ;;  %v1006_v60 = vld [vmem:[#allocation2 + $0x38] sm:$0x1]  ;;  %v5241_v41 = vld [vmem:[#allocation13_spill] sm:$0xff] }
  0x85   : > { %v2030_v1 = vadd.f32 %v1947_v24, %v1786_v4  ;;  %v4063_v56 = vmul.f32 %v3503_v43, %v4054_v19  ;;  %v2066_v63 = vmul.f32 %v3625_v6, %v4054_v19  ;;  %v2067_v52 = vmul.f32 %v3625_v6, %v4056_v28 }
  0x86   : > { %v2031_v10 = vadd.f32 %v1949_v35, %v1787_v55  ;;  %v4067_v38 = vmul.f32 %v3510_v47, %v4058_v37  ;;  %v2212_v44 = vmul.f32 %v3639_v33, %v4056_v28  ;;  %v2213_v50 = vmul.f32 %v3639_v33, %v4058_v37 }
  0x87   : > { %v694_v23 = vsel %vm3400_vm8, %v686_v45, %v693_v13  ;;  %v695_v24 = vrot.slane %v690_v8, 4  ;;  %v2098_v35 = vadd.f32 %v2066_v63, %v2030_v1  ;;  %v1003_v14 = vsel %vm3416_vm9, %v685_v9, %v1002_v32  ;;  %v5242_v8 = vld [vmem:[#allocation14_spill] sm:$0xff]  ;;  %v5244_v13 = vld [vmem:[#allocation7_spill] sm:$0xff] }
  0x88   : > { %v2099_v21 = vadd.f32 %v2067_v52, %v2031_v10  ;;  %1005 = vst.msk [vmem:[#allocation2 + $0x34] sm:$0xf] %vm971_vm4, %v694_v23  ;;  %v2326_v57 = vrot.slane %v2212_v44, 2  ;;  %v2328_v18 = vrot.slane %v2213_v50, 2  ;;  %1004 = vst [vmem:[#allocation2 + $0x30] sm:$0xf] %v1003_v14  ;;  %v4087_v31 = vmul.f32 %v3507_v46, %v5238_v34 }
  0x89   : > { %v1007_v26 = vsel %vm3354_vm3, %v695_v24, %v1006_v60  ;;  %v2166_v12 = vadd.f32 %v4010_v53, %v2098_v35  ;;  %v4093_v9 = vmul.f32 %v3507_v46, %v4052_v20  ;;  %v1672_v42 = vmul.f32 %v3514_v48, %v5241_v41  ;;  %v5243_v10 = vld [vmem:[#allocation4_spill] sm:$0xff]  ;;  %v5245_v63 = vld [vmem:[#allocation6_spill] sm:$0xff]  ;;  %v5246_v60 = vld [vmem:[#allocation5_spill] sm:$0xff] }
  0x8a   : > { %5239 = vst [vmem:[#allocation25_spill] sm:$0xff] %v4087_v31  ;;  %v2167_v45 = vadd.f32 %v4017_v40, %v2099_v21  ;;  %1008 = vst [vmem:[#allocation2 + $0x38] sm:$0x1] %v1007_v26  ;;  %v2327_v4 = vsel %vm1519_vm10, %v2325_v58, %v2326_v57  ;;  %v2329_v55 = vsel %vm1519_vm10, %v2326_v57, %v2328_v18  ;;  %v5247_v50 = vld [vmem:[#allocation8_spill] sm:$0xff]  ;;  %v5248_v24 = vld [vmem:[#allocation11_spill] sm:$0xff] }
  0x8b   : > { %5240 = vst [vmem:[#allocation31_spill] sm:$0xff] %v4093_v9  ;;  %v1673_v1 = vmul.f32 %v3514_v48, %v5242_v8  ;;  %v1740_v53 = vmul.f32 %v5244_v13, %v5243_v10  ;;  %v2410_v32 = vadd.f32 %v2327_v4, %v2166_v12  ;;  %v1704_v52 = vadd.f32 %v1672_v42, %v5245_v63  ;;  %v5249_v21 = vld [vmem:[#allocation15_spill] sm:$0xff] }
  0x8c   : > { %v2411_v40 = vadd.f32 %v2329_v55, %v2167_v45  ;;  %v1741_v44 = vmul.f32 %v5244_v13, %v5246_v60  ;;  %v1810_v58 = vmul.f32 %v3594_v39, %v5248_v24  ;;  %v1811_v35 = vmul.f32 %v3594_v39, %v5242_v8  ;;  %v514_v57 = vld [vmem:[#allocation2 + $0x3c] sm:$0x1] }
  0x8d   : > { %v1705_v23 = vadd.f32 %v1673_v1, %v5247_v50  ;;  %v1812_v14 = vmul.f32 %v3594_v39, %v5249_v21  ;;  %v2449_v18 = vmul.f32 %v3670_v16, %v2410_v32  ;;  %v1772_v12 = vadd.f32 %v1740_v53, %v1704_v52 }
  0x8e   : > { %v2450_v26 = vmul.f32 %v3670_v16, %v2411_v40  ;;  %v2120_v45 = vmul.f32 %v3634_v17, %v5238_v34  ;;  %v1910_v42 = vrot.slane %v1810_v58, 2  ;;  %v1911_v4 = vrot.slane %v1811_v35, 2 }
  0x8f   : > { %v1773_v41 = vadd.f32 %v1741_v44, %v1705_v23  ;;  %v1913_v55 = vrot.slane %v1812_v14, 2  ;;  %v2488_v1 = vadd.f32 %v3685_v30, %v2449_v18  ;;  %v3170_v63 = vld [vmem:[#allocation2 + $0x30] sm:$0xff]   ;;  %v2121_v50 = vmul.f32 %v3634_v17, %v4052_v20  ;;  %v570_v14 = vld [vmem:[#allocation2 + $0x44] sm:$0x1] }
  0x90   : > { %v2489_v10 = vadd.f32 %v3685_v30, %v2450_v26  ;;  %v1216_v60 = vld [vmem:[#allocation2 + $0x30] sm:$0xe]  ;;  %v515_v32 = vsel %vm3354_vm3, 0, %v514_v57  ;;  %v4123_v53 = vunpack.c.l.bf16 %v3170_v63  ;;  %v4125_v40 = vunpack.c.h.bf16 %v3170_v63 }
  0x91   : > { %v1217_v52 = vld [vmem:[#allocation2 + $0x38] sm:$0x1]  ;;  %v4127_v44 = vunpack.c.l.bf16 %v1216_v60  ;;  %v1912_v23 = vsel %vm1519_vm10, %v1910_v42, %v1911_v4  ;;  %516 = vst [vmem:[#allocation2 + $0x3c] sm:$0x1] %v515_v32  ;;  %v1914_v35 = vsel %vm1519_vm10, %v1911_v4, %v1913_v55  ;;  %v473_v32 = vld [vmem:[%s3375_s8 + $0x24] sm:$0xf] }
  0x92   : > { %v2511_v24 = vpack.c.bf16 %v2489_v10, %v2488_v1  ;;  %v4130_v58 = vunpack.c.l.bf16 %v1217_v52  ;;  %v2016_v21 = vadd.f32 %v1912_v23, %v1772_v12  ;;  %v4135_v57 = vmul.f32 %v4123_v53, %v3503_v43  ;;  %v472_v10 = vld [vmem:[%s3375_s8 + $0x20] sm:$0xf] }
  0x93   : > { %v4139_v18 = vmul.f32 %v3510_v47, %v4127_v44  ;;  %v2017_v26 = vadd.f32 %v1914_v35, %v1773_v41  ;;  %v2052_v42 = vmul.f32 %v4123_v53, %v3625_v6  ;;  %v2053_v12 = vmul.f32 %v4125_v40, %v3625_v6 }
  0x94   : > { %3213 = vmatmul.mubr.msk.bf16.vlgmr.msra.gmra.mxu1 %vm2519_vm11, %v2511_v24  ;;  %v4146_v4 = vmul.f32 %v3510_v47, %v4130_v58  ;;  %v2190_v55 = vmul.f32 %v3639_v33, %v4127_v44  ;;  %v2191_v1 = vmul.f32 %v4125_v40, %v3639_v33  ;;  %v2192_v60 = vmul.f32 %v3639_v33, %v4130_v58 }
  0x95   : > { %5250 = vst [vmem:[#allocation13_spill] sm:$0xff] %v4139_v18  ;;  %v2084_v63 = vadd.f32 %v2052_v42, %v2016_v21  ;;  %v571_v52 = vsel %vm3379_vm6, 0, %v570_v14  ;;  %v2085_v24 = vadd.f32 %v2053_v12, %v2017_v26  ;;  %v697_v3 = vshrl.u32 %v472_v10, 16 }
  0x96   : > { %5251 = vst [vmem:[#allocation14_spill] sm:$0xff] %v4146_v4  ;;  %v2290_v35 = vrot.slane %v2190_v55, 2  ;;  %v2291_v2 = vrot.slane %v2191_v1, 2  ;;  %572 = vst [vmem:[#allocation2 + $0x44] sm:$0x1] %v571_v52  ;;  %v2293_v27 = vrot.slane %v2192_v60, 2  ;;  %v4164_v14 = vunpack.c.l.bf16 %v472_v10 }
  0x97   : > { %v2152_v59 = vadd.f32 %v2120_v45, %v2084_v63  ;;  %v700_v11 = vshll.u32 %v472_v10, 16  ;;  %v2153_v7 = vadd.f32 %v2121_v50, %v2085_v24  ;;  %v705_v42 = vshrl.u32 %v473_v32, 16 }
  0x98   : > { %v2292_v21 = vsel %vm1519_vm10, %v2290_v35, %v2291_v2  ;;  %v708_v41 = vshll.u32 %v473_v32, 16  ;;  %v2294_v18 = vsel %vm1519_vm10, %v2291_v2, %v2293_v27  ;;  %v699_v31 = vrot.slane %v697_v3, 7  ;;  %v1009_v12 = vld [vmem:[#allocation2 + $0x3c] sm:$0xf]  ;;  %v535_v35 = vld [vmem:[#allocation2 + $0x90] sm:$0x1] }
  0x99   : > { %v2396_v9 = vadd.f32 %v2292_v21, %v2152_v59  ;;  %v2397_v23 = vadd.f32 %v2294_v18, %v2153_v7  ;;  %v707_v26 = vrot.slane %v705_v42, 7  ;;  %v4166_v55 = vunpack.c.l.bf16 %v473_v32  ;;  %v5256_v32 = vld [vmem:[#allocation10_spill] sm:$0xff] }
  0x9a   : > { %v1294_v45 = vmul.f32 %v3503_v43, %v5242_v8  ;;  %v702_v1 = vor.u32 %v700_v11, %v699_v31  ;;  %v703_v63 = vrot.slane %v699_v31, 4  ;;  %v4173_v60 = vmul.f32 %v3507_v46, %v4164_v14  ;;  %v5254_v11 = vld [vmem:[#allocation16_spill] sm:$0xff]  ;;  %v5255_v31 = vld [vmem:[#allocation9_spill] sm:$0xff] }
  0x9b   : > { %v2435_v50 = vmul.f32 %v3670_v16, %v2396_v9  ;;  %v2436_v27 = vmul.f32 %v3670_v16, %v2397_v23  ;;  %v710_v3 = vor.u32 %v708_v41, %v707_v26  ;;  %v712_v59 = vrot.slane %v707_v26, 4 }
  0x9c   : > { %5252 = vst [vmem:[#allocation4_spill] sm:$0xff] %v4173_v60  ;;  %v4178_v7 = vmul.f32 %v3507_v46, %v4166_v55  ;;  %v1010_v18 = vsel %vm3416_vm9, %v702_v1, %v1009_v12  ;;  %v1393_v10 = vadd.f32 %v5255_v31, %v5254_v11  ;;  %v1394_v52 = vadd.f32 %v5256_v32, %v1294_v45  ;;  %v591_v1 = vld [vmem:[#allocation2 + $0x98] sm:$0x1] }
  0x9d   : > { %v2474_v2 = vadd.f32 %v3685_v30, %v2435_v50  ;;  %v1013_v9 = vld [vmem:[#allocation2 + $0x44] sm:$0x1]  ;;  %v2475_v24 = vadd.f32 %v3685_v30, %v2436_v27  ;;  %v711_v16 = vsel %vm3400_vm8, %v703_v63, %v710_v3  ;;  %1011 = vst [vmem:[#allocation2 + $0x3c] sm:$0xf] %v1010_v18  ;;  %v1433_v23 = vmul.f32 %v3510_v47, %v5242_v8  ;;  %v486_v27 = vld [vmem:[%s3375_s8 + $0x58] sm:$0xf] }
  0x9e   : > { %5253 = vst [vmem:[#allocation7_spill] sm:$0xff] %v4178_v7  ;;  %v1014_v41 = vsel %vm3354_vm3, %v712_v59, %v1013_v9  ;;  %1012 = vst.msk [vmem:[#allocation2 + $0x40] sm:$0xf] %vm971_vm4, %v711_v16  ;;  %v1674_v21 = vmul.f32 %v4123_v53, %v3514_v48  ;;  %v1675_v30 = vmul.f32 %v4125_v40, %v3514_v48  ;;  %v536_v3 = vsel %vm3354_vm3, 0, %v535_v35  ;;  %v5259_v18 = vld [vmem:[#allocation17_spill] sm:$0xff] }
  0x9f   : > { %1015 = vst [vmem:[#allocation2 + $0x44] sm:$0x1] %v1014_v41  ;;  %v1742_v42 = vmul.f32 %v5244_v13, %v5238_v34  ;;  %v1743_v26 = vmul.f32 %v5244_v13, %v4052_v20  ;;  %v2504_v12 = vpack.c.bf16 %v2475_v24, %v2474_v2  ;;  %v1536_v8 = vrot.slane %v1433_v23, 2  ;;  %v487_v20 = vld [vmem:[%s3375_s8 + $0x5c] sm:$0xf] }
  0xa0   : > { %v1813_v45 = vmul.f32 %v3594_v39, %v4127_v44  ;;  %v1814_v50 = vmul.f32 %v4125_v40, %v3594_v39  ;;  %v1815_v53 = vmul.f32 %v3594_v39, %v4130_v58  ;;  %v2122_v63 = vmul.f32 %v3634_v17, %v4164_v14  ;;  %v5257_v44 = vld [vmem:[#allocation12_spill] sm:$0xff]  ;;  %537 = vst [vmem:[#allocation2 + $0x90] sm:$0x1] %v536_v3 }
  0xa1   : > { %v2123_v34 = vmul.f32 %v3634_v17, %v4166_v55  ;;  %3200 = vmatprep.mubr.msk.bf16.mxu0 %vm2519_vm11, %v2504_v12  ;;  %v5258_v59 = vrot.slane %v5257_v44, 2  ;;  %v5260_v9 = vrot.slane %v5259_v18, 2  ;;  %v592_v41 = vsel %vm3379_vm6, 0, %v591_v1 }
  0xa2   : > { %v1915_v11 = vrot.slane %v1813_v45, 2  ;;  %v1916_v31 = vrot.slane %v1814_v50, 2  ;;  %v1918_v16 = vrot.slane %v1815_v53, 2  ;;  %593 = vst [vmem:[#allocation2 + $0x98] sm:$0x1] %v592_v41  ;;  %v816_v35 = vshrl.u32 %v486_v27, 16 }
  0xa3   : > { %v1537_v2 = vsel %vm1519_vm10, %v5258_v59, %v1536_v8  ;;  %v1539_v58 = vsel %vm1519_vm10, %v1536_v8, %v5260_v9  ;;  %v819_v12 = vshll.u32 %v486_v27, 16  ;;  %v824_v44 = vshrl.u32 %v487_v20, 16 }
  0xa4   : > { %v1638_v32 = vadd.f32 %v1537_v2, %v1393_v10  ;;  %v1639_v24 = vadd.f32 %v1539_v58, %v1394_v52  ;;  %v1917_v23 = vsel %vm1519_vm10, %v1915_v11, %v1916_v31  ;;  %v1218_v59 = vld [vmem:[#allocation2 + $0x3c] sm:$0xe]  ;;  %v1919_v8 = vsel %vm1519_vm10, %v1916_v31, %v1918_v16 }
  0xa5   : > { %v827_v45 = vshll.u32 %v487_v20, 16  ;;  %v1110_v50 = vld [vmem:[#allocation2 + $0x3c] sm:$0xff]   ;;  %v4227_v10 = vunpack.c.l.bf16 %v1218_v59  ;;  %v818_v52 = vrot.slane %v816_v35, 7  ;;  %v826_v53 = vrot.slane %v824_v44, 7 }
  0xa6   : > { %v1706_v7 = vadd.f32 %v1674_v21, %v1638_v32  ;;  %v1707_v18 = vadd.f32 %v1675_v30, %v1639_v24  ;;  %v1219_v3 = vld [vmem:[#allocation2 + $0x44] sm:$0x1]  ;;  %v4229_v2 = vunpack.c.l.bf16 %v486_v27  ;;  %v4231_v1 = vunpack.c.l.bf16 %v1110_v50 }
  0xa7   : > { %5261 = vst [vmem:[#allocation6_spill] sm:$0xff] %v4227_v10  ;;  %v4233_v9 = vunpack.c.h.bf16 %v1110_v50  ;;  %v4235_v58 = vunpack.c.l.bf16 %v1219_v3  ;;  %v4239_v21 = vmul.f32 %v3510_v47, %v4227_v10  ;;  %v2193_v31 = vmul.f32 %v3639_v33, %v4227_v10 }
  0xa8   : > { %v1774_v11 = vadd.f32 %v1742_v42, %v1706_v7  ;;  %v1775_v30 = vadd.f32 %v1743_v26, %v1707_v18  ;;  %v821_v32 = vor.u32 %v819_v12, %v818_v52  ;;  %v4245_v27 = vmul.f32 %v3503_v43, %v4231_v1  ;;  %v1058_v12 = vld [vmem:[#allocation2 + $0x90] sm:$0xf] }
  0xa9   : > { %5262 = vst [vmem:[#allocation5_spill] sm:$0xff] %v4239_v21  ;;  %v4249_v24 = vmul.f32 %v3510_v47, %v4235_v58  ;;  %v2054_v7 = vmul.f32 %v3625_v6, %v4231_v1  ;;  %v2055_v26 = vmul.f32 %v3625_v6, %v4233_v9  ;;  %v2194_v35 = vmul.f32 %v3639_v33, %v4233_v9  ;;  %v1062_v42 = vld [vmem:[#allocation2 + $0x98] sm:$0x1] }
  0xaa   : > { %5263 = vst [vmem:[#allocation8_spill] sm:$0xff] %v4245_v27  ;;  %v2018_v16 = vadd.f32 %v1917_v23, %v1774_v11  ;;  %v2019_v41 = vadd.f32 %v1919_v8, %v1775_v30  ;;  %v2195_v18 = vmul.f32 %v3639_v33, %v4235_v58  ;;  %v2295_v23 = vrot.slane %v2193_v31, 2 }
  0xab   : > { %5264 = vst [vmem:[#allocation11_spill] sm:$0xff] %v4249_v24  ;;  %v2296_v3 = vrot.slane %v2194_v35, 2  ;;  %v822_v11 = vrot.slane %v818_v52, 4  ;;  %v829_v60 = vor.u32 %v827_v45, %v826_v53  ;;  %v831_v21 = vrot.slane %v826_v53, 4  ;;  %v4287_v53 = vld [vmem:[%s5144_s1] ss:$0 sm:$0xff] }
  0xac   : > { %v2086_v59 = vadd.f32 %v2054_v7, %v2018_v16  ;;  %v2087_v50 = vadd.f32 %v2055_v26, %v2019_v41  ;;  %v2298_v30 = vrot.slane %v2195_v18, 2  ;;  %v1059_v27 = vsel %vm3416_vm9, %v821_v32, %v1058_v12  ;;  %v538_v35 = vld [vmem:[#allocation2 + $0x9c] sm:$0x1]  ;;  %v594_v12 = vld [vmem:[#allocation2 + $0xa4] sm:$0x1] }
  0xad   : > { %v2297_v10 = vsel %vm1519_vm10, %v2295_v23, %v2296_v3  ;;  %v830_v16 = vsel %vm3400_vm8, %v822_v11, %v829_v60  ;;  %1060 = vst [vmem:[#allocation2 + $0x90] sm:$0xf] %v1059_v27  ;;  %v4266_v7 = vunpack.c.l.bf16 %v487_v20  ;;  %v4274_v45 = vmul.f32 %v3507_v46, %v4229_v2 }
  0xae   : > { %v2154_v8 = vadd.f32 %v2122_v63, %v2086_v59  ;;  %v2155_v4 = vadd.f32 %v2123_v34, %v2087_v50  ;;  %v2299_v31 = vsel %vm1519_vm10, %v2296_v3, %v2298_v30  ;;  %1061 = vst.msk [vmem:[#allocation2 + $0x94] sm:$0xf] %vm971_vm4, %v830_v16  ;;  %v1063_v63 = vsel %vm3354_vm3, %v831_v21, %v1062_v42 }
  0xaf   : > { %5265 = vst [vmem:[#allocation15_spill] sm:$0xff] %v4274_v45  ;;  %1064 = vst [vmem:[#allocation2 + $0x98] sm:$0x1] %v1063_v63  ;;  %v4278_v60 = vmul.f32 %v3507_v46, %v4266_v7  ;;  %v1688_v20 = vmul.f32 %v3514_v48, %v4054_v19  ;;  %v1757_v32 = vmul.f32 %v5244_v13, %v3886_v61  ;;  %v539_v16 = vsel %vm3354_vm3, 0, %v538_v35 }
  0xb0   : > { %v2398_v52 = vadd.f32 %v2297_v10, %v2154_v8  ;;  %v2399_v34 = vadd.f32 %v2299_v31, %v2155_v4  ;;  %v1689_v10 = vmul.f32 %v3514_v48, %v4056_v28  ;;  %v1756_v4 = vmul.f32 %v5244_v13, %v3883_v51  ;;  %v4304_v51 = vld [vmem:[%s5145_s2] ss:$0 sm:$0xff]  ;;  %540 = vst [vmem:[#allocation2 + $0x9c] sm:$0x1] %v539_v16 }
  0xb1   : > { %5266 = vst [vmem:[#allocation16_spill] sm:$0xff] %v4278_v60  ;;  %v1834_v19 = vmul.f32 %v3594_v39, %v4039_v49  ;;  %v1720_v42 = vadd.f32 %v1688_v20, %v3947_v0  ;;  %v1835_v26 = vmul.f32 %v3594_v39, %v4056_v28  ;;  %v1836_v49 = vmul.f32 %v3594_v39, %v4058_v37 }
  0xb2   : > { %v2437_v21 = vmul.f32 %v4287_v53, %v2398_v52  ;;  %v2438_v27 = vmul.f32 %v4287_v53, %v2399_v34  ;;  %v1721_v41 = vadd.f32 %v1689_v10, %v3949_v54  ;;  %v2136_v0 = vmul.f32 %v3634_v17, %v4229_v2  ;;  %v488_v54 = vld [vmem:[%s3375_s8 + $0x60] sm:$0xf] }
  0xb3   : > { %v1950_v59 = vrot.slane %v1834_v19, 2  ;;  %v1788_v23 = vadd.f32 %v1756_v4, %v1720_v42  ;;  %v1951_v3 = vrot.slane %v1835_v26, 2  ;;  %v1953_v8 = vrot.slane %v1836_v49, 2 }
  0xb4   : > { %v2476_v61 = vadd.f32 %v4304_v51, %v2437_v21  ;;  %v2477_v18 = vadd.f32 %v4304_v51, %v2438_v27  ;;  %v1789_v50 = vadd.f32 %v1757_v32, %v1721_v41  ;;  %v1232_v11 = vld [vmem:[#allocation2 + $0x90] sm:$0xe]  ;;  %v2137_v30 = vmul.f32 %v3634_v17, %v4266_v7 }
  0xb5   : > { %v595_v37 = vsel %vm3379_vm6, 0, %v594_v12  ;;  %v3174_v52 = vld [vmem:[#allocation2 + $0x90] sm:$0xff]   ;;  %v4319_v63 = vunpack.c.l.bf16 %v1232_v11  ;;  %v1952_v34 = vsel %vm1519_vm10, %v1950_v59, %v1951_v3  ;;  %v833_v20 = vshrl.u32 %v488_v54, 16  ;;  %v489_v59 = vld [vmem:[%s3375_s8 + $0x64] sm:$0xf] }
  0xb6   : > { %v2505_v31 = vpack.c.bf16 %v2477_v18, %v2476_v61  ;;  %596 = vst [vmem:[#allocation2 + $0xa4] sm:$0x1] %v595_v37  ;;  %v3159_v10 = vunpack.c.l.bf16 %v3174_v52  ;;  %v4322_v21 = vunpack.c.h.bf16 %v3174_v52  ;;  %v1233_v4 = vld [vmem:[#allocation2 + $0x98] sm:$0x1]  ;;  %v1954_v32 = vsel %vm1519_vm10, %v1951_v3, %v1953_v8 }
  0xb7   : > { %v2032_v19 = vadd.f32 %v1952_v34, %v1788_v23  ;;  %v1269_v27 = vunpack.c.l.bf16 %v1233_v4  ;;  %v4328_v42 = vmul.f32 %v3510_v47, %v4319_v63  ;;  %v2033_v41 = vadd.f32 %v1954_v32, %v1789_v50 }
  0xb8   : > { %3201 = vmatmul.mubr.msk.bf16.gmra.mxu0 %vm2519_vm11, %v2505_v31  ;;  %v2214_v26 = vmul.f32 %v3639_v33, %v4319_v63  ;;  %v4333_v35 = vmul.f32 %v3159_v10, %v3503_v43  ;;  %v2068_v12 = vmul.f32 %v3159_v10, %v3625_v6  ;;  %v2069_v61 = vmul.f32 %v4322_v21, %v3625_v6 }
  0xb9   : > { %5267 = vst [vmem:[#allocation9_spill] sm:$0xff] %v4328_v42  ;;  %v2215_v49 = vmul.f32 %v4322_v21, %v3639_v33  ;;  %v4342_v18 = vmul.f32 %v3510_v47, %v1269_v27  ;;  %v2216_v50 = vmul.f32 %v3639_v33, %v1269_v27  ;;  %v835_v37 = vrot.slane %v833_v20, 7 }
  0xba   : > { %5268 = vst [vmem:[#allocation10_spill] sm:$0xff] %v4333_v35  ;;  %v2330_v3 = vrot.slane %v2214_v26, 2  ;;  %v2100_v11 = vadd.f32 %v2068_v12, %v2032_v19  ;;  %v2101_v8 = vadd.f32 %v2069_v61, %v2033_v41  ;;  %v836_v34 = vshll.u32 %v488_v54, 16  ;;  %v1065_v35 = vld [vmem:[#allocation2 + $0x9c] sm:$0xf] }
  0xbb   : > { %v2331_v16 = vrot.slane %v2215_v49, 2  ;;  %v2333_v52 = vrot.slane %v2216_v50, 2  ;;  %v841_v4 = vshrl.u32 %v489_v59, 16  ;;  %v839_v45 = vrot.slane %v835_v37, 4 }
  0xbc   : > { %v2168_v32 = vadd.f32 %v2136_v0, %v2100_v11  ;;  %v2169_v44 = vadd.f32 %v2137_v30, %v2101_v8  ;;  %v838_v42 = vor.u32 %v836_v34, %v835_v37  ;;  %v844_v26 = vshll.u32 %v489_v59, 16 }
  0xbd   : > { %v2332_v60 = vsel %vm1519_vm10, %v2330_v3, %v2331_v16  ;;  %v2334_v23 = vsel %vm1519_vm10, %v2331_v16, %v2333_v52  ;;  %v843_v24 = vrot.slane %v841_v4, 7  ;;  %v1069_v12 = vld [vmem:[#allocation2 + $0xa4] sm:$0x1]  ;;  %v4349_v20 = vunpack.c.l.bf16 %v488_v54  ;;  %v517_v16 = vld [vmem:[#allocation2 + $0x48] sm:$0x1] }
  0xbe   : > { %v2412_v19 = vadd.f32 %v2332_v60, %v2168_v32  ;;  %v2413_v41 = vadd.f32 %v2334_v23, %v2169_v44  ;;  %v4351_v61 = vunpack.c.l.bf16 %v489_v59  ;;  %v1066_v0 = vsel %vm3416_vm9, %v838_v42, %v1065_v35  ;;  %v474_v4 = vld [vmem:[%s3375_s8 + $0x28] sm:$0xf]  ;;  %v573_v32 = vld [vmem:[#allocation2 + $0x50] sm:$0x1] }
  0xbf   : > { %v846_v49 = vor.u32 %v844_v26, %v843_v24  ;;  %v848_v50 = vrot.slane %v843_v24, 4  ;;  %v1310_v30 = vmul.f32 %v3503_v43, %v4056_v28  ;;  %1067 = vst [vmem:[#allocation2 + $0x9c] sm:$0xf] %v1066_v0  ;;  %v4361_v44 = vmul.f32 %v3507_v46, %v4349_v20  ;;  %v475_v0 = vld [vmem:[%s3375_s8 + $0x2c] sm:$0xf] }
  0xc0   : > { %v2451_v3 = vmul.f32 %v4287_v53, %v2412_v19  ;;  %v2452_v11 = vmul.f32 %v4287_v53, %v2413_v41  ;;  %v4365_v60 = vmul.f32 %v3507_v46, %v4351_v61  ;;  %v1409_v42 = vadd.f32 %v3989_v29, %v4063_v56 }
  0xc1   : > { %v847_v24 = vsel %vm3400_vm8, %v839_v45, %v846_v49  ;;  %v1070_v54 = vsel %vm3354_vm3, %v848_v50, %v1069_v12  ;;  %v1410_v35 = vadd.f32 %v3993_v62, %v1310_v30  ;;  %v1457_v8 = vmul.f32 %v3510_v47, %v4056_v28 }
  0xc2   : > { %v2490_v59 = vadd.f32 %v4304_v51, %v2451_v3  ;;  %v2491_v23 = vadd.f32 %v4304_v51, %v2452_v11  ;;  %1068 = vst.msk [vmem:[#allocation2 + $0xa0] sm:$0xf] %vm971_vm4, %v847_v24  ;;  %1071 = vst [vmem:[#allocation2 + $0xa4] sm:$0x1] %v1070_v54  ;;  %v1690_v45 = vmul.f32 %v3159_v10, %v3514_v48  ;;  %v5269_v19 = vrot.slane %v4046_v22, 2 }
  0xc3   : > { %v1691_v37 = vmul.f32 %v4322_v21, %v3514_v48  ;;  %v1758_v29 = vmul.f32 %v5244_v13, %v4229_v2  ;;  %v1759_v62 = vmul.f32 %v5244_v13, %v4266_v7  ;;  %v1837_v56 = vmul.f32 %v3594_v39, %v4319_v63 }
  0xc4   : > { %v2512_v52 = vpack.c.bf16 %v2491_v23, %v2490_v59  ;;  %v1576_v34 = vrot.slane %v1457_v8, 2  ;;  %v1838_v28 = vmul.f32 %v4322_v21, %v3594_v39  ;;  %v1839_v10 = vmul.f32 %v3594_v39, %v1269_v27 }
  0xc5   : > { %v1955_v26 = vrot.slane %v1837_v56, 2  ;;  %v2138_v2 = vmul.f32 %v3634_v17, %v4349_v20  ;;  %v2139_v7 = vmul.f32 %v3634_v17, %v4351_v61  ;;  %v518_v63 = vsel %vm3354_vm3, 0, %v517_v16 }
  0xc6   : > { %3216 = vmatprep.mubr.msk.bf16.mxu1 %vm2519_vm11, %v2512_v52  ;;  %v1577_v41 = vsel %vm1519_vm10, %v5269_v19, %v1576_v34  ;;  %v5270_v27 = vrot.slane %v4067_v38, 2  ;;  %v1956_v49 = vrot.slane %v1838_v28, 2  ;;  %v1958_v50 = vrot.slane %v1839_v10, 2  ;;  %519 = vst [vmem:[#allocation2 + $0x48] sm:$0x1] %v518_v63 }
  0xc7   : > { %v1234_v30 = vld [vmem:[#allocation2 + $0x9c] sm:$0xe]  ;;  %v1654_v3 = vadd.f32 %v1577_v41, %v1409_v42  ;;  %v574_v24 = vsel %vm3379_vm6, 0, %v573_v32  ;;  %v714_v54 = vshrl.u32 %v474_v4, 16  ;;  %v717_v38 = vshll.u32 %v474_v4, 16 }
  0xc8   : > { %v1579_v12 = vsel %vm1519_vm10, %v1576_v34, %v5270_v27  ;;  %v4408_v59 = vunpack.c.l.bf16 %v1234_v30  ;;  %v1957_v22 = vsel %vm1519_vm10, %v1955_v26, %v1956_v49  ;;  %v1959_v23 = vsel %vm1519_vm10, %v1956_v49, %v1958_v50  ;;  %575 = vst [vmem:[#allocation2 + $0x50] sm:$0x1] %v574_v24 }
  0xc9   : > { %v1655_v11 = vadd.f32 %v1579_v12, %v1410_v35  ;;  %v1126_v8 = vld [vmem:[#allocation2 + $0x9c] sm:$0xff]   ;;  %v1235_v16 = vld [vmem:[#allocation2 + $0xa4] sm:$0x1]  ;;  %v1722_v56 = vadd.f32 %v1690_v45, %v1654_v3  ;;  %v716_v34 = vrot.slane %v714_v54, 7  ;;  %v722_v28 = vshrl.u32 %v475_v0, 16 }
  0xca   : > { %v4412_v42 = vunpack.c.l.bf16 %v1126_v8  ;;  %v4414_v35 = vunpack.c.h.bf16 %v1126_v8  ;;  %v4416_v10 = vunpack.c.l.bf16 %v1235_v16  ;;  %v4420_v32 = vmul.f32 %v3510_v47, %v4408_v59 }
  0xcb   : > { %v1723_v52 = vadd.f32 %v1691_v37, %v1655_v11  ;;  %v1790_v26 = vadd.f32 %v1758_v29, %v1722_v56  ;;  %v2217_v19 = vmul.f32 %v3639_v33, %v4408_v59  ;;  %v719_v41 = vor.u32 %v717_v38, %v716_v34 }
  0xcc   : > { %5271 = vst [vmem:[#allocation12_spill] sm:$0xff] %v4420_v32  ;;  %v4426_v45 = vmul.f32 %v3503_v43, %v4412_v42  ;;  %v4430_v37 = vmul.f32 %v3510_v47, %v4416_v10  ;;  %v2070_v12 = vmul.f32 %v3625_v6, %v4412_v42  ;;  %v2218_v50 = vmul.f32 %v3639_v33, %v4414_v35 }
  0xcd   : > { %v1791_v63 = vadd.f32 %v1759_v62, %v1723_v52  ;;  %v2034_v49 = vadd.f32 %v1957_v22, %v1790_v26  ;;  %v2071_v62 = vmul.f32 %v3625_v6, %v4414_v35  ;;  %v1016_v30 = vld [vmem:[#allocation2 + $0x48] sm:$0xf]  ;;  %v2219_v11 = vmul.f32 %v3639_v33, %v4416_v10 }
  0xce   : > { %5272 = vst [vmem:[#allocation17_spill] sm:$0xff] %v4430_v37  ;;  %v2335_v24 = vrot.slane %v2217_v19, 2  ;;  %v720_v54 = vrot.slane %v716_v34, 4  ;;  %v2336_v16 = vrot.slane %v2218_v50, 2  ;;  %v724_v56 = vrot.slane %v722_v28, 7 }
  0xcf   : > { %v2035_v29 = vadd.f32 %v1959_v23, %v1791_v63  ;;  %v2102_v38 = vadd.f32 %v2070_v12, %v2034_v49  ;;  %v2338_v22 = vrot.slane %v2219_v11, 2  ;;  %v725_v23 = vshll.u32 %v475_v0, 16  ;;  %v1020_v26 = vld [vmem:[#allocation2 + $0x50] sm:$0x1] }
  0xd0   : > { %v1017_v52 = vsel %vm3416_vm9, %v719_v41, %v1016_v30  ;;  %v4444_v63 = vunpack.c.l.bf16 %v474_v4  ;;  %v2337_v3 = vsel %vm1519_vm10, %v2335_v24, %v2336_v16  ;;  %v729_v37 = vrot.slane %v724_v56, 4  ;;  %v5275_v41 = vld [vmem:[#allocation25_spill] sm:$0xff] }
  0xd1   : > { %v2103_v8 = vadd.f32 %v2071_v62, %v2035_v29  ;;  %v2170_v27 = vadd.f32 %v2138_v2, %v2102_v38  ;;  %1018 = vst [vmem:[#allocation2 + $0x48] sm:$0xf] %v1017_v52  ;;  %v2339_v34 = vsel %vm1519_vm10, %v2336_v16, %v2338_v22  ;;  %v727_v19 = vor.u32 %v725_v23, %v724_v56  ;;  %v520_v56 = vld [vmem:[#allocation2 + $0x54] sm:$0x1] }
  0xd2   : > { %v4448_v12 = vunpack.c.l.bf16 %v475_v0  ;;  %v1296_v28 = vmul.f32 %v4125_v40, %v3503_v43  ;;  %v1021_v4 = vsel %vm3354_vm3, %v729_v37, %v1020_v26  ;;  %v4456_v2 = vmul.f32 %v3507_v46, %v4444_v63  ;;  %v576_v26 = vld [vmem:[#allocation2 + $0x5c] sm:$0x1] }
  0xd3   : > { %v2171_v31 = vadd.f32 %v2139_v7, %v2103_v8  ;;  %v2414_v49 = vadd.f32 %v2337_v3, %v2170_v27  ;;  %v728_v7 = vsel %vm3400_vm8, %v720_v54, %v727_v19  ;;  %1022 = vst [vmem:[#allocation2 + $0x50] sm:$0x1] %v1021_v4  ;;  %v1395_v62 = vadd.f32 %v5275_v41, %v4135_v57  ;;  %v5276_v27 = vld [vmem:[#allocation31_spill] sm:$0xff]  ;;  %v5277_v54 = vld [vmem:[#allocation6_spill] sm:$0xff] }
  0xd4   : > { %5273 = vst [vmem:[#allocation32_spill] sm:$0xff] %v4456_v2  ;;  %v4462_v0 = vmul.f32 %v3507_v46, %v4448_v12  ;;  %1019 = vst.msk [vmem:[#allocation2 + $0x4c] sm:$0xf] %vm971_vm4, %v728_v7  ;;  %v1436_v30 = vmul.f32 %v4125_v40, %v3510_v47  ;;  %v1676_v3 = vmul.f32 %v3514_v48, %v4231_v1  ;;  %v5280_v4 = vld [vmem:[#allocation14_spill] sm:$0xff] }
  0xd5   : > { %v2415_v29 = vadd.f32 %v2339_v34, %v2171_v31  ;;  %v1396_v31 = vadd.f32 %v5276_v27, %v1296_v28  ;;  %v2453_v50 = vmul.f32 %v4287_v53, %v2414_v49  ;;  %v1677_v11 = vmul.f32 %v3514_v48, %v4233_v9  ;;  %v5278_v28 = vld [vmem:[#allocation13_spill] sm:$0xff] }
  0xd6   : > { %5274 = vst [vmem:[#allocation33_spill] sm:$0xff] %v4462_v0  ;;  %v1744_v57 = vmul.f32 %v5244_v13, %v4164_v14  ;;  %v1745_v24 = vmul.f32 %v5244_v13, %v4166_v55  ;;  %v1816_v38 = vmul.f32 %v3594_v39, %v5277_v54  ;;  %v1541_v40 = vrot.slane %v1436_v30, 2 }
  0xd7   : > { %v2454_v37 = vmul.f32 %v4287_v53, %v2415_v29  ;;  %v2492_v8 = vadd.f32 %v4304_v51, %v2453_v50  ;;  %v1817_v1 = vmul.f32 %v3594_v39, %v4233_v9  ;;  %v1818_v23 = vmul.f32 %v3594_v39, %v4235_v58 }
  0xd8   : > { %v1220_v22 = vld [vmem:[#allocation2 + $0x48] sm:$0xe]  ;;  %v1920_v14 = vrot.slane %v1816_v38, 2  ;;  %v2124_v55 = vmul.f32 %v3634_v17, %v4444_v63  ;;  %v2125_v52 = vmul.f32 %v3634_v17, %v4448_v12  ;;  %v5279_v49 = vrot.slane %v5278_v28, 2 }
  0xd9   : > { %v2493_v16 = vadd.f32 %v4304_v51, %v2454_v37  ;;  %v4492_v19 = vunpack.c.l.bf16 %v1220_v22  ;;  %v5281_v7 = vrot.slane %v5280_v4, 2  ;;  %v1921_v50 = vrot.slane %v1817_v1, 2 }
  0xda   : > { %v1542_v29 = vsel %vm1519_vm10, %v5279_v49, %v1541_v40  ;;  %v1923_v37 = vrot.slane %v1818_v23, 2  ;;  %v1221_v30 = vld [vmem:[#allocation2 + $0x50] sm:$0x1] }
  0xdb   : > { %v2513_v34 = vpack.c.bf16 %v2493_v16, %v2492_v8  ;;  %v1544_v41 = vsel %vm1519_vm10, %v1541_v40, %v5281_v7  ;;  %v1640_v58 = vadd.f32 %v1542_v29, %v1395_v62  ;;  %v4503_v54 = vmul.f32 %v3510_v47, %v4492_v19  ;;  %v3171_v62 = vld [vmem:[#allocation2 + $0x48] sm:$0xff]  }
  0xdc   : > { %v1641_v27 = vadd.f32 %v1544_v41, %v1396_v31  ;;  %v2196_v38 = vmul.f32 %v3639_v33, %v4492_v19  ;;  %v521_v8 = vsel %vm3354_vm3, 0, %v520_v56  ;;  %v577_v16 = vsel %vm3379_vm6, 0, %v576_v26 }
  0xdd   : > { %3217 = vmatmul.mubr.msk.bf16.gmra.mxu1 %vm2519_vm11, %v2513_v34  ;;  %5282 = vst [vmem:[#allocation25_spill] sm:$0xff] %v4503_v54  ;;  %v4511_v31 = vunpack.c.l.bf16 %v1221_v30  ;;  %v1708_v40 = vadd.f32 %v1676_v3, %v1640_v58  ;;  %v1922_v22 = vsel %vm1519_vm10, %v1920_v14, %v1921_v50  ;;  %522 = vst [vmem:[#allocation2 + $0x54] sm:$0x1] %v521_v8  ;;  %v3147_v23 = vunpack.c.l.bf16 %v3171_v62  ;;  %v477_v58 = vld [vmem:[%s3375_s8 + $0x34] sm:$0xf] }
  0xde   : > { %v1709_v1 = vadd.f32 %v1677_v11, %v1641_v27  ;;  %578 = vst [vmem:[#allocation2 + $0x5c] sm:$0x1] %v577_v16  ;;  %v4514_v34 = vunpack.c.h.bf16 %v3171_v62  ;;  %v1924_v56 = vsel %vm1519_vm10, %v1921_v50, %v1923_v37  ;;  %v476_v11 = vld [vmem:[%s3375_s8 + $0x30] sm:$0xf]  ;;  %v2300_v50 = vrot.slane %v2196_v38, 2 }
  0xdf   : > { %v4520_v26 = vmul.f32 %v3510_v47, %v4511_v31  ;;  %v1776_v49 = vadd.f32 %v1744_v57, %v1708_v40  ;;  %v2198_v3 = vmul.f32 %v3639_v33, %v4511_v31  ;;  %v4526_v14 = vmul.f32 %v3147_v23, %v3503_v43 }
  0xe0   : > { %v1777_v29 = vadd.f32 %v1745_v24, %v1709_v1  ;;  %v2056_v4 = vmul.f32 %v3147_v23, %v3625_v6  ;;  %v2057_v7 = vmul.f32 %v4514_v34, %v3625_v6  ;;  %v2197_v41 = vmul.f32 %v4514_v34, %v3639_v33 }
  0xe1   : > { %5283 = vst [vmem:[#allocation31_spill] sm:$0xff] %v4526_v14  ;;  %v2020_v57 = vadd.f32 %v1922_v22, %v1776_v49  ;;  %v2303_v30 = vrot.slane %v2198_v3, 2  ;;  %v731_v8 = vshrl.u32 %v476_v11, 16  ;;  %v734_v16 = vshll.u32 %v476_v11, 16 }
  0xe2   : > { %v2021_v24 = vadd.f32 %v1924_v56, %v1777_v29  ;;  %v2301_v37 = vrot.slane %v2197_v41, 2  ;;  %v739_v1 = vshrl.u32 %v477_v58, 16  ;;  %v742_v28 = vshll.u32 %v477_v58, 16 }
  0xe3   : > { %v2088_v62 = vadd.f32 %v2056_v4, %v2020_v57  ;;  %v733_v2 = vrot.slane %v731_v8, 7  ;;  %v4537_v14 = vunpack.c.l.bf16 %v476_v11  ;;  %v4539_v38 = vunpack.c.l.bf16 %v477_v58  ;;  %v5287_v58 = vld [vmem:[#allocation4_spill] sm:$0xff] }
  0xe4   : > { %v2089_v40 = vadd.f32 %v2057_v7, %v2021_v24  ;;  %v2302_v54 = vsel %vm1519_vm10, %v2300_v50, %v2301_v37  ;;  %v2304_v0 = vsel %vm1519_vm10, %v2301_v37, %v2303_v30  ;;  %v741_v22 = vrot.slane %v739_v1, 7  ;;  %v1023_v56 = vld [vmem:[#allocation2 + $0x54] sm:$0xf]  ;;  %v5288_v37 = vld [vmem:[#allocation7_spill] sm:$0xff] }
  0xe5   : > { %v2156_v32 = vadd.f32 %v2124_v55, %v2088_v62  ;;  %v736_v49 = vor.u32 %v734_v16, %v733_v2  ;;  %v737_v29 = vrot.slane %v733_v2, 4  ;;  %v1027_v3 = vld [vmem:[#allocation2 + $0x5c] sm:$0x1]  ;;  %v1298_v4 = vmul.f32 %v3503_v43, %v4233_v9  ;;  %v5286_v2 = vld [vmem:[#allocation8_spill] sm:$0xff] }
  0xe6   : > { %v2157_v27 = vadd.f32 %v2125_v52, %v2089_v40  ;;  %v4545_v7 = vmul.f32 %v3507_v46, %v4537_v14  ;;  %v744_v11 = vor.u32 %v742_v28, %v741_v22  ;;  %v746_v24 = vrot.slane %v741_v22, 4  ;;  %v541_v40 = vld [vmem:[#allocation2 + $0xa8] sm:$0x1] }
  0xe7   : > { %v2400_v41 = vadd.f32 %v2302_v54, %v2156_v32  ;;  %v1024_v55 = vsel %vm3416_vm9, %v736_v49, %v1023_v56  ;;  %v4551_v52 = vmul.f32 %v3507_v46, %v4539_v38  ;;  %v1397_v50 = vadd.f32 %v5287_v58, %v5286_v2  ;;  %v5291_v2 = vld [vmem:[#allocation11_spill] sm:$0xff] }
  0xe8   : > { %5284 = vst [vmem:[#allocation6_spill] sm:$0xff] %v4545_v7  ;;  %v2401_v57 = vadd.f32 %v2304_v0, %v2157_v27  ;;  %v1398_v30 = vadd.f32 %v5288_v37, %v1298_v4  ;;  %v745_v32 = vsel %vm3400_vm8, %v737_v29, %v744_v11  ;;  %1025 = vst [vmem:[#allocation2 + $0x54] sm:$0xf] %v1024_v55  ;;  %v597_v4 = vld [vmem:[#allocation2 + $0xb0] sm:$0x1]  ;;  %v5292_v58 = vrot.slane %v5291_v2, 2 }
  0xe9   : > { %5285 = vst [vmem:[#allocation13_spill] sm:$0xff] %v4551_v52  ;;  %v2439_v8 = vmul.f32 %v4287_v53, %v2400_v41  ;;  %v1028_v0 = vsel %vm3354_vm3, %v746_v24, %v1027_v3  ;;  %1026 = vst.msk [vmem:[#allocation2 + $0x58] sm:$0xf] %vm971_vm4, %v745_v32  ;;  %v1439_v54 = vmul.f32 %v3510_v47, %v4233_v9  ;;  %v4583_v3 = vld [vmem:[%s3375_s8 + $0x68] sm:$0xf] }
  0xea   : > { %v2440_v16 = vmul.f32 %v4287_v53, %v2401_v57  ;;  %1029 = vst [vmem:[#allocation2 + $0x5c] sm:$0x1] %v1028_v0  ;;  %v1678_v28 = vmul.f32 %v3147_v23, %v3514_v48  ;;  %v1679_v27 = vmul.f32 %v4514_v34, %v3514_v48  ;;  %v1746_v62 = vmul.f32 %v5244_v13, %v4444_v63  ;;  %v4588_v11 = vld [vmem:[%s3375_s8 + $0x6c] sm:$0xf] }
  0xeb   : > { %v2478_v1 = vadd.f32 %v4304_v51, %v2439_v8  ;;  %v1747_v56 = vmul.f32 %v5244_v13, %v4448_v12  ;;  %v1819_v9 = vmul.f32 %v3594_v39, %v4492_v19  ;;  %v1546_v49 = vrot.slane %v1439_v54, 2  ;;  %v5289_v24 = vld [vmem:[#allocation5_spill] sm:$0xff] }
  0xec   : > { %v2479_v22 = vadd.f32 %v4304_v51, %v2440_v16  ;;  %v1820_v23 = vmul.f32 %v4514_v34, %v3594_v39  ;;  %v1821_v29 = vmul.f32 %v3594_v39, %v4511_v31  ;;  %v2126_v63 = vmul.f32 %v3634_v17, %v4537_v14 }
  0xed   : > { %v1925_v57 = vrot.slane %v1819_v9, 2  ;;  %v2127_v12 = vmul.f32 %v3634_v17, %v4539_v38  ;;  %v542_v19 = vsel %vm3354_vm3, 0, %v541_v40  ;;  %v5290_v55 = vrot.slane %v5289_v24, 2 }
  0xee   : > { %v2506_v41 = vpack.c.bf16 %v2479_v22, %v2478_v1  ;;  %v1549_v37 = vsel %vm1519_vm10, %v1546_v49, %v5292_v58  ;;  %v1926_v8 = vrot.slane %v1820_v23, 2  ;;  %v1928_v16 = vrot.slane %v1821_v29, 2  ;;  %543 = vst [vmem:[#allocation2 + $0xa8] sm:$0x1] %v542_v19 }
  0xef   : > { %v1547_v31 = vsel %vm1519_vm10, %v5290_v55, %v1546_v49  ;;  %v1643_v0 = vadd.f32 %v1549_v37, %v1398_v30  ;;  %v598_v54 = vsel %vm3379_vm6, 0, %v597_v4  ;;  %v850_v40 = vshrl.u32 %v4583_v3, 16  ;;  %v1222_v1 = vld [vmem:[#allocation2 + $0x54] sm:$0xe] }
  0xf0   : > { %3204 = vmatprep.mubr.msk.bf16.mxu0 %vm2519_vm11, %v2506_v41  ;;  %v1642_v32 = vadd.f32 %v1547_v31, %v1397_v50  ;;  %v1927_v22 = vsel %vm1519_vm10, %v1925_v57, %v1926_v8  ;;  %v1929_v9 = vsel %vm1519_vm10, %v1926_v8, %v1928_v16  ;;  %599 = vst [vmem:[#allocation2 + $0xb0] sm:$0x1] %v598_v54  ;;  %v853_v49 = vshll.u32 %v4583_v3, 16  ;;  %v1114_v29 = vld [vmem:[#allocation2 + $0x54] sm:$0xff]  }
  0xf1   : > { %v858_v23 = vshrl.u32 %v4588_v11, 16  ;;  %v1223_v19 = vld [vmem:[#allocation2 + $0x5c] sm:$0x1]  ;;  %v4606_v41 = vunpack.c.l.bf16 %v1222_v1  ;;  %v1711_v30 = vadd.f32 %v1679_v27, %v1643_v0  ;;  %v852_v24 = vrot.slane %v850_v40, 7 }
  0xf2   : > { %v1710_v50 = vadd.f32 %v1678_v28, %v1642_v32  ;;  %v4608_v4 = vunpack.c.l.bf16 %v1114_v29  ;;  %v4610_v55 = vunpack.c.h.bf16 %v1114_v29  ;;  %v4612_v31 = vunpack.c.l.bf16 %v1223_v19 }
  0xf3   : > { %5293 = vst [vmem:[#allocation14_spill] sm:$0xff] %v4606_v41  ;;  %v860_v57 = vrot.slane %v858_v23, 7  ;;  %v4616_v2 = vmul.f32 %v3510_v47, %v4606_v41  ;;  %v1779_v37 = vadd.f32 %v1747_v56, %v1711_v30  ;;  %v2199_v8 = vmul.f32 %v3639_v33, %v4606_v41 }
  0xf4   : > { %v1778_v58 = vadd.f32 %v1746_v62, %v1710_v50  ;;  %v4622_v28 = vmul.f32 %v3503_v43, %v4608_v4  ;;  %v4626_v27 = vmul.f32 %v3510_v47, %v4612_v31  ;;  %v2058_v16 = vmul.f32 %v3625_v6, %v4608_v4 }
  0xf5   : > { %v2059_v32 = vmul.f32 %v3625_v6, %v4610_v55  ;;  %v2023_v0 = vadd.f32 %v1929_v9, %v1779_v37  ;;  %v2200_v54 = vmul.f32 %v3639_v33, %v4610_v55  ;;  %v1072_v40 = vld [vmem:[#allocation2 + $0xa8] sm:$0xf]  ;;  %v2201_v23 = vmul.f32 %v3639_v33, %v4612_v31 }
  0xf6   : > { %5294 = vst [vmem:[#allocation8_spill] sm:$0xff] %v4622_v28  ;;  %v2022_v56 = vadd.f32 %v1927_v22, %v1778_v58  ;;  %v2305_v29 = vrot.slane %v2199_v8, 2  ;;  %v855_v19 = vor.u32 %v853_v49, %v852_v24  ;;  %v856_v7 = vrot.slane %v852_v24, 4 }
  0xf7   : > { %v2091_v30 = vadd.f32 %v2059_v32, %v2023_v0  ;;  %v2306_v52 = vrot.slane %v2200_v54, 2  ;;  %v1076_v28 = vld [vmem:[#allocation2 + $0xb0] sm:$0x1]  ;;  %v2308_v41 = vrot.slane %v2201_v23, 2  ;;  %v861_v22 = vshll.u32 %v4588_v11, 16 }
  0xf8   : > { %v2090_v50 = vadd.f32 %v2058_v16, %v2022_v56  ;;  %v865_v9 = vrot.slane %v860_v57, 4  ;;  %v1073_v58 = vsel %vm3416_vm9, %v855_v19, %v1072_v40  ;;  %v4643_v8 = vunpack.c.l.bf16 %v4583_v3  ;;  %v5299_v40 = vld [vmem:[#allocation16_spill] sm:$0xff] }
  0xf9   : > { %v2159_v62 = vadd.f32 %v2127_v12, %v2091_v30  ;;  %v2307_v1 = vsel %vm1519_vm10, %v2305_v29, %v2306_v52  ;;  %1074 = vst [vmem:[#allocation2 + $0xa8] sm:$0xf] %v1073_v58  ;;  %v2309_v49 = vsel %vm1519_vm10, %v2306_v52, %v2308_v41  ;;  %v863_v16 = vor.u32 %v861_v22, %v860_v57  ;;  %v5297_v41 = vld [vmem:[#allocation10_spill] sm:$0xff]  ;;  %v5300_v58 = vld [vmem:[#allocation9_spill] sm:$0xff] }
  0xfa   : > { %v2158_v37 = vadd.f32 %v2126_v63, %v2090_v50  ;;  %v1077_v24 = vsel %vm3354_vm3, %v865_v9, %v1076_v28  ;;  %v4649_v32 = vunpack.c.l.bf16 %v4588_v11  ;;  %v1312_v63 = vmul.f32 %v4322_v21, %v3503_v43  ;;  %v5298_v11 = vld [vmem:[#allocation15_spill] sm:$0xff] }
  0xfb   : > { %v2403_v0 = vadd.f32 %v2309_v49, %v2159_v62  ;;  %1078 = vst [vmem:[#allocation2 + $0xb0] sm:$0x1] %v1077_v24  ;;  %v4655_v12 = vmul.f32 %v3507_v46, %v4643_v8  ;;  %v864_v52 = vsel %vm3400_vm8, %v856_v7, %v863_v16  ;;  %v1411_v57 = vadd.f32 %v5298_v11, %v5297_v41 }
  0xfc   : > { %v2402_v56 = vadd.f32 %v2307_v1, %v2158_v37  ;;  %v4661_v3 = vmul.f32 %v3507_v46, %v4649_v32  ;;  %v1460_v28 = vmul.f32 %v4322_v21, %v3510_v47  ;;  %1075 = vst.msk [vmem:[#allocation2 + $0xac] sm:$0xf] %vm971_vm4, %v864_v52  ;;  %v1412_v1 = vadd.f32 %v5299_v40, %v1312_v63  ;;  %v544_v52 = vld [vmem:[#allocation2 + $0xb4] sm:$0x1] }
  0xfd   : > { %5295 = vst [vmem:[#allocation4_spill] sm:$0xff] %v4655_v12  ;;  %v2442_v54 = vmul.f32 %v4287_v53, %v2403_v0  ;;  %v1692_v7 = vmul.f32 %v3514_v48, %v4412_v42  ;;  %v1693_v29 = vmul.f32 %v3514_v48, %v4414_v35  ;;  %v1760_v19 = vmul.f32 %v5244_v13, %v4349_v20 }
  0xfe   : > { %5296 = vst [vmem:[#allocation7_spill] sm:$0xff] %v4661_v3  ;;  %v2441_v62 = vmul.f32 %v4287_v53, %v2402_v56  ;;  %v1581_v23 = vrot.slane %v1460_v28, 2  ;;  %v1761_v21 = vmul.f32 %v5244_v13, %v4351_v61  ;;  %v1840_v22 = vmul.f32 %v3594_v39, %v4408_v59 }
  0xff   : > { %v2481_v30 = vadd.f32 %v4304_v51, %v2442_v54  ;;  %v1841_v42 = vmul.f32 %v3594_v39, %v4414_v35  ;;  %v5301_v37 = vrot.slane %v5300_v58, 2  ;;  %v5302_v20 = vrot.slane %v4342_v18, 2 }
 0x100   : > { %v2480_v50 = vadd.f32 %v4304_v51, %v2441_v62  ;;  %v1236_v9 = vld [vmem:[#allocation2 + $0xa8] sm:$0xe]  ;;  %v1842_v61 = vmul.f32 %v3594_v39, %v4416_v10  ;;  %v2140_v24 = vmul.f32 %v3634_v17, %v4643_v8  ;;  %v1960_v11 = vrot.slane %v1840_v22, 2 }
 0x101   : > { %v1582_v49 = vsel %vm1519_vm10, %v5301_v37, %v1581_v23  ;;  %v1584_v16 = vsel %vm1519_vm10, %v1581_v23, %v5302_v20  ;;  %v4695_v59 = vunpack.c.l.bf16 %v1236_v9  ;;  %v1961_v28 = vrot.slane %v1841_v42, 2 }
 0x102   : > { %v2507_v56 = vpack.c.bf16 %v2481_v30, %v2480_v50  ;;  %v1656_v0 = vadd.f32 %v1582_v49, %v1411_v57  ;;  %v1657_v63 = vadd.f32 %v1584_v16, %v1412_v1  ;;  %v1237_v41 = vld [vmem:[#allocation2 + $0xb0] sm:$0x1]  ;;  %v1963_v62 = vrot.slane %v1842_v61, 2  ;;  %v493_v61 = vld [vmem:[%s3375_s8 + $0x74] sm:$0xf] }
 0x103   : > { %v2141_v18 = vmul.f32 %v3634_v17, %v4649_v32  ;;  %v4700_v10 = vunpack.c.l.bf16 %v1237_v41  ;;  %v4704_v54 = vmul.f32 %v3510_v47, %v4695_v59  ;;  %v3175_v1 = vld [vmem:[#allocation2 + $0xa8] sm:$0xff]   ;;  %v1962_v23 = vsel %vm1519_vm10, %v1960_v11, %v1961_v28 }
 0x104   : > { %3205 = vmatmul.mubr.msk.bf16.gmra.mxu0 %vm2519_vm11, %v2507_v56  ;;  %v1724_v40 = vadd.f32 %v1692_v7, %v1656_v0  ;;  %v1725_v57 = vadd.f32 %v1693_v29, %v1657_v63  ;;  %v1964_v50 = vsel %vm1519_vm10, %v1961_v28, %v1963_v62  ;;  %v2220_v30 = vmul.f32 %v3639_v33, %v4695_v59  ;;  %v492_v29 = vld [vmem:[%s3375_s8 + $0x70] sm:$0xf]  ;;  %v600_v56 = vld [vmem:[#allocation2 + $0xbc] sm:$0x1] }
 0x105   : > { %5303 = vst [vmem:[#allocation5_spill] sm:$0xff] %v4704_v54  ;;  %v545_v22 = vsel %vm3354_vm3, 0, %v544_v52  ;;  %v3163_v42 = vunpack.c.l.bf16 %v3175_v1  ;;  %v4712_v9 = vunpack.c.h.bf16 %v3175_v1  ;;  %v4716_v58 = vmul.f32 %v3510_v47, %v4700_v10 }
 0x106   : > { %546 = vst [vmem:[#allocation2 + $0xb4] sm:$0x1] %v545_v22  ;;  %v1792_v37 = vadd.f32 %v1760_v19, %v1724_v40  ;;  %v1793_v49 = vadd.f32 %v1761_v21, %v1725_v57  ;;  %v2222_v20 = vmul.f32 %v3639_v33, %v4700_v10  ;;  %v2340_v16 = vrot.slane %v2220_v30, 2 }
 0x107   : > { %5304 = vst [vmem:[#allocation11_spill] sm:$0xff] %v4716_v58  ;;  %v4724_v0 = vmul.f32 %v3163_v42, %v3503_v43  ;;  %v2072_v52 = vmul.f32 %v3163_v42, %v3625_v6  ;;  %v2073_v41 = vmul.f32 %v4712_v9, %v3625_v6  ;;  %v2221_v19 = vmul.f32 %v4712_v9, %v3639_v33 }
 0x108   : > { %v2036_v11 = vadd.f32 %v1962_v23, %v1792_v37  ;;  %v2037_v28 = vadd.f32 %v1964_v50, %v1793_v49  ;;  %v2343_v21 = vrot.slane %v2222_v20, 2  ;;  %v601_v62 = vsel %vm3379_vm6, 0, %v600_v56 }
 0x109   : > { %5305 = vst [vmem:[#allocation10_spill] sm:$0xff] %v4724_v0  ;;  %v867_v40 = vshrl.u32 %v492_v29, 16  ;;  %v870_v57 = vshll.u32 %v492_v29, 16  ;;  %v875_v1 = vshrl.u32 %v493_v61, 16  ;;  %v2341_v63 = vrot.slane %v2221_v19, 2 }
 0x10a   : > { %v2104_v30 = vadd.f32 %v2072_v52, %v2036_v11  ;;  %v2105_v22 = vadd.f32 %v2073_v41, %v2037_v28  ;;  %602 = vst [vmem:[#allocation2 + $0xbc] sm:$0x1] %v601_v62  ;;  %v878_v7 = vshll.u32 %v493_v61, 16  ;;  %v4734_v3 = vunpack.c.l.bf16 %v492_v29 }
 0x10b   : > { %v869_v58 = vrot.slane %v867_v40, 7  ;;  %v877_v54 = vrot.slane %v875_v1, 7  ;;  %v4736_v23 = vunpack.c.l.bf16 %v493_v61  ;;  %v2342_v49 = vsel %vm1519_vm10, %v2340_v16, %v2341_v63 }
 0x10c   : > { %v2172_v50 = vadd.f32 %v2140_v24, %v2104_v30  ;;  %v2173_v37 = vadd.f32 %v2141_v18, %v2105_v22  ;;  %v2344_v20 = vsel %vm1519_vm10, %v2341_v63, %v2343_v21  ;;  %v1314_v19 = vmul.f32 %v3503_v43, %v4414_v35  ;;  %v5308_v30 = vld [vmem:[#allocation17_spill] sm:$0xff] }
 0x10d   : > { %v1079_v56 = vld [vmem:[#allocation2 + $0xb4] sm:$0xf]  ;;  %v872_v12 = vor.u32 %v870_v57, %v869_v58  ;;  %v873_v0 = vrot.slane %v869_v58, 4  ;;  %v880_v52 = vor.u32 %v878_v7, %v877_v54  ;;  %v882_v41 = vrot.slane %v877_v54, 4  ;;  %v5306_v57 = vld [vmem:[#allocation12_spill] sm:$0xff] }
 0x10e   : > { %v2416_v11 = vadd.f32 %v2342_v49, %v2172_v50  ;;  %v2417_v28 = vadd.f32 %v2344_v20, %v2173_v37  ;;  %v4744_v29 = vmul.f32 %v3507_v46, %v4734_v3  ;;  %v4752_v58 = vmul.f32 %v3507_v46, %v4736_v23 }
 0x10f   : > { %v881_v24 = vsel %vm3400_vm8, %v873_v0, %v880_v52  ;;  %v1080_v18 = vsel %vm3416_vm9, %v872_v12, %v1079_v56  ;;  %v1413_v54 = vadd.f32 %v4361_v44, %v4426_v45  ;;  %v1414_v61 = vadd.f32 %v4365_v60, %v1314_v19 }
 0x110   : > { %v2455_v7 = vmul.f32 %v4287_v53, %v2416_v11  ;;  %v2456_v16 = vmul.f32 %v4287_v53, %v2417_v28  ;;  %1081 = vst [vmem:[#allocation2 + $0xb4] sm:$0xf] %v1080_v18  ;;  %1082 = vst.msk [vmem:[#allocation2 + $0xb8] sm:$0xf] %vm971_vm4, %v881_v24  ;;  %v1463_v0 = vmul.f32 %v3510_v47, %v4414_v35  ;;  %v5309_v22 = vrot.slane %v5308_v30, 2  ;;  %v5311_v11 = vld [vmem:[#allocation32_spill] sm:$0xff] }
 0x111   : > { %v1083_v12 = vld [vmem:[#allocation2 + $0xbc] sm:$0x1]  ;;  %v1694_v63 = vmul.f32 %v3163_v42, %v3514_v48  ;;  %v1695_v46 = vmul.f32 %v4712_v9, %v3514_v48  ;;  %v1762_v44 = vmul.f32 %v5244_v13, %v4643_v8  ;;  %v1763_v53 = vmul.f32 %v5244_v13, %v4649_v32 }
 0x112   : > { %v2494_v45 = vadd.f32 %v4304_v51, %v2455_v7  ;;  %v2495_v21 = vadd.f32 %v4304_v51, %v2456_v16  ;;  %v1084_v60 = vsel %vm3354_vm3, %v882_v41, %v1083_v12  ;;  %v1586_v35 = vrot.slane %v1463_v0, 2  ;;  %v5310_v41 = vld [vmem:[#allocation31_spill] sm:$0xff] }
 0x113   : > { %1085 = vst [vmem:[#allocation2 + $0xbc] sm:$0x1] %v1084_v60  ;;  %v1843_v42 = vmul.f32 %v3594_v39, %v4695_v59  ;;  %v1844_v62 = vmul.f32 %v4712_v9, %v3594_v39  ;;  %v1845_v8 = vmul.f32 %v3594_v39, %v4700_v10  ;;  %v2142_v32 = vmul.f32 %v3634_v17, %v4734_v3 }
 0x114   : > { %v2514_v40 = vpack.c.bf16 %v2495_v21, %v2494_v45  ;;  %v5307_v51 = vrot.slane %v5306_v57, 2  ;;  %v1589_v50 = vsel %vm1519_vm10, %v1586_v35, %v5309_v22  ;;  %v2143_v59 = vmul.f32 %v3634_v17, %v4736_v23  ;;  %v5313_v22 = vld [vmem:[#allocation25_spill] sm:$0xff] }
 0x115   : > { %v1659_v49 = vadd.f32 %v1589_v50, %v1414_v61  ;;  %v1965_v20 = vrot.slane %v1843_v42, 2  ;;  %v1966_v56 = vrot.slane %v1844_v62, 2  ;;  %v1968_v10 = vrot.slane %v1845_v8, 2 }
 0x116   : > { %v1587_v1 = vsel %vm1519_vm10, %v5307_v51, %v1586_v35  ;;  %3220 = vmatprep.mubr.msk.bf16.mxu1 %vm2519_vm11, %v2514_v40  ;;  %v1300_v52 = vmul.f32 %v4514_v34, %v3503_v43  ;;  %v1399_v28 = vadd.f32 %v5311_v11, %v5310_v41  ;;  %v1442_v19 = vmul.f32 %v4514_v34, %v3510_v47  ;;  %v5312_v34 = vld [vmem:[#allocation33_spill] sm:$0xff] }
 0x117   : > { %v1658_v37 = vadd.f32 %v1587_v1, %v1413_v54  ;;  %v1130_v24 = vld [vmem:[#allocation2 + $0xb4] sm:$0xff]   ;;  %v1727_v16 = vadd.f32 %v1695_v46, %v1659_v49  ;;  %v1967_v54 = vsel %vm1519_vm10, %v1965_v20, %v1966_v56  ;;  %v1680_v61 = vmul.f32 %v3514_v48, %v4608_v4 }
 0x118   : > { %v1238_v18 = vld [vmem:[#allocation2 + $0xb4] sm:$0xe]  ;;  %v4799_v0 = vunpack.c.l.bf16 %v1130_v24  ;;  %v4801_v12 = vunpack.c.h.bf16 %v1130_v24  ;;  %v1969_v21 = vsel %vm1519_vm10, %v1966_v56, %v1968_v10  ;;  %v1400_v42 = vadd.f32 %v5312_v34, %v1300_v52 }
 0x119   : > { %v1726_v7 = vadd.f32 %v1694_v63, %v1658_v37  ;;  %v4803_v45 = vunpack.c.l.bf16 %v1238_v18  ;;  %v1795_v35 = vadd.f32 %v1763_v53, %v1727_v16  ;;  %v1551_v62 = vrot.slane %v1442_v19, 2 }
 0x11a   : > { %v1239_v63 = vld [vmem:[#allocation2 + $0xbc] sm:$0x1]  ;;  %v4809_v46 = vmul.f32 %v3503_v43, %v4799_v0  ;;  %v2074_v8 = vmul.f32 %v3625_v6, %v4799_v0  ;;  %v2075_v40 = vmul.f32 %v3625_v6, %v4801_v12  ;;  %v2224_v30 = vmul.f32 %v3639_v33, %v4801_v12 }
 0x11b   : > { %v1794_v60 = vadd.f32 %v1762_v44, %v1726_v7  ;;  %v4813_v4 = vmul.f32 %v3510_v47, %v4803_v45  ;;  %v4819_v44 = vunpack.c.l.bf16 %v1239_v63  ;;  %v2039_v57 = vadd.f32 %v1969_v21, %v1795_v35 }
 0x11c   : > { %v2223_v51 = vmul.f32 %v3639_v33, %v4803_v45  ;;  %v5314_v50 = vrot.slane %v5313_v22, 2  ;;  %v5315_v49 = vrot.slane %v4520_v26, 2  ;;  %v2346_v19 = vrot.slane %v2224_v30, 2 }
 0x11d   : > { %v2038_v53 = vadd.f32 %v1967_v54, %v1794_v60  ;;  %v1595_v1 = vrot.slane %v4813_v4, 2  ;;  %v4834_v56 = vmul.f32 %v3510_v47, %v4819_v44  ;;  %v2107_v52 = vadd.f32 %v2075_v40, %v2039_v57 }
 0x11e   : > { %v1552_v37 = vsel %vm1519_vm10, %v5314_v50, %v1551_v62  ;;  %v1554_v20 = vsel %vm1519_vm10, %v1551_v62, %v5315_v49  ;;  %v2225_v41 = vmul.f32 %v3639_v33, %v4819_v44  ;;  %v2345_v11 = vrot.slane %v2223_v51, 2  ;;  %v5317_v51 = vld [vmem:[#allocation22_spill] sm:$0xff]  ;;  %v5318_v49 = vld [vmem:[#allocation23_spill] sm:$0xff] }
 0x11f   : > { %v2106_v10 = vadd.f32 %v2074_v8, %v2038_v53  ;;  %v1644_v24 = vadd.f32 %v1552_v37, %v1399_v28  ;;  %v1645_v18 = vadd.f32 %v1554_v20, %v1400_v42  ;;  %v2175_v54 = vadd.f32 %v2143_v59, %v2107_v52  ;;  %v5316_v42 = vld [vmem:[#allocation14_spill] sm:$0xff] }
 0x120   : > { %v2348_v26 = vrot.slane %v2225_v41, 2  ;;  %v2347_v21 = vsel %vm1519_vm10, %v2345_v11, %v2346_v19  ;;  %v1681_v60 = vmul.f32 %v3514_v48, %v4610_v55  ;;  %v1748_v34 = vmul.f32 %v5244_v13, %v4537_v14 }
 0x121   : > { %v2174_v16 = vadd.f32 %v2142_v32, %v2106_v10  ;;  %v1712_v35 = vadd.f32 %v1680_v61, %v1644_v24  ;;  %v1749_v28 = vmul.f32 %v5244_v13, %v4539_v38  ;;  %v1822_v32 = vmul.f32 %v3594_v39, %v5316_v42  ;;  %v4854_v61 = vld [vmem:[%s5144_s1] ss:$0 sm:$0xff] }
 0x122   : > { %v2349_v62 = vsel %vm1519_vm10, %v2346_v19, %v2348_v26  ;;  %v1713_v8 = vadd.f32 %v1681_v60, %v1645_v18  ;;  %v1823_v53 = vmul.f32 %v3594_v39, %v4610_v55  ;;  %v1824_v57 = vmul.f32 %v3594_v39, %v4612_v31  ;;  %v4867_v10 = vld [vmem:[%s5145_s2] ss:$0 sm:$0xff]  ;;  %v5319_v31 = vld [vmem:[#allocation18_spill] sm:$0xff]  ;;  %v5320_v19 = vld [vmem:[#allocation19_spill] sm:$0xff] }
 0x123   : > { %v2418_v63 = vadd.f32 %v2347_v21, %v2174_v16  ;;  %v2419_v59 = vadd.f32 %v2349_v62, %v2175_v54  ;;  %v1780_v40 = vadd.f32 %v1748_v34, %v1712_v35  ;;  %v1930_v38 = vrot.slane %v1822_v32, 2  ;;  %v5321_v54 = vld [vmem:[#allocation24_spill] sm:$0xff] }
 0x124   : > { %v2060_v30 = vmul.f32 %v5317_v51, %v3625_v6  ;;  %v1781_v50 = vadd.f32 %v1749_v28, %v1713_v8  ;;  %v1931_v37 = vrot.slane %v1823_v53, 2  ;;  %v2061_v20 = vmul.f32 %v5318_v49, %v3625_v6  ;;  %v5322_v34 = vld [vmem:[#allocation28_spill] sm:$0xff] }
 0x125   : > { %v2457_v14 = vmul.f32 %v4854_v61, %v2418_v63  ;;  %v2458_v22 = vmul.f32 %v4854_v61, %v2419_v59  ;;  %v1933_v41 = vrot.slane %v1824_v57, 2  ;;  %v2128_v11 = vmul.f32 %v3634_v17, %v5319_v31  ;;  %v5324_v57 = vld [vmem:[#allocation6_spill] sm:$0xff] }
 0x126   : > { %v2129_v24 = vmul.f32 %v3634_v17, %v5320_v19  ;;  %v1932_v16 = vsel %vm1519_vm10, %v1930_v38, %v1931_v37  ;;  %v2202_v26 = vmul.f32 %v3639_v33, %v5321_v54  ;;  %v2203_v21 = vmul.f32 %v5318_v49, %v3639_v33 }
 0x127   : > { %v2496_v52 = vadd.f32 %v4867_v10, %v2457_v14  ;;  %v2497_v18 = vadd.f32 %v4867_v10, %v2458_v22  ;;  %v1934_v60 = vsel %vm1519_vm10, %v1931_v37, %v1933_v41  ;;  %v2024_v35 = vadd.f32 %v1932_v16, %v1780_v40  ;;  %v5323_v14 = vld [vmem:[#allocation8_spill] sm:$0xff]  ;;  %v5325_v22 = vld [vmem:[#allocation13_spill] sm:$0xff] }
 0x128   : > { %v2204_v62 = vmul.f32 %v3639_v33, %v5322_v34  ;;  %v1302_v63 = vmul.f32 %v3503_v43, %v4610_v55  ;;  %v2025_v42 = vadd.f32 %v1934_v60, %v1781_v50  ;;  %v2310_v32 = vrot.slane %v2202_v26, 2 }
 0x129   : > { %v2515_v28 = vpack.c.bf16 %v2497_v18, %v2496_v52  ;;  %v2311_v59 = vrot.slane %v2203_v21, 2  ;;  %v2092_v8 = vadd.f32 %v2060_v30, %v2024_v35  ;;  %v1401_v38 = vadd.f32 %v5324_v57, %v5323_v14  ;;  %v5326_v35 = vld [vmem:[#allocation26_spill] sm:$0xff]  ;;  %v5330_v57 = vld [vmem:[#allocation20_spill] sm:$0xff] }
 0x12a   : > { %v2313_v53 = vrot.slane %v2204_v62, 2  ;;  %v1402_v7 = vadd.f32 %v5325_v22, %v1302_v63  ;;  %v2093_v40 = vadd.f32 %v2061_v20, %v2025_v42  ;;  %v1445_v41 = vmul.f32 %v3510_v47, %v4610_v55 }
 0x12b   : > { %3221 = vmatmul.mubr.msk.bf16.gmra.mxu1 %vm2519_vm11, %v2515_v28  ;;  %v2312_v37 = vsel %vm1519_vm10, %v2310_v32, %v2311_v59  ;;  %v1682_v50 = vmul.f32 %v5317_v51, %v3514_v48  ;;  %v2160_v52 = vadd.f32 %v2128_v11, %v2092_v8  ;;  %v1683_v18 = vmul.f32 %v5318_v49, %v3514_v48 }
 0x12c   : > { %v2314_v30 = vsel %vm1519_vm10, %v2311_v59, %v2313_v53  ;;  %v1750_v16 = vmul.f32 %v5244_v13, %v5319_v31  ;;  %v2161_v26 = vadd.f32 %v2129_v24, %v2093_v40  ;;  %v1556_v21 = vrot.slane %v1445_v41, 2  ;;  %v5329_v53 = vld [vmem:[#allocation27_spill] sm:$0xff] }
 0x12d   : > { %v1751_v20 = vmul.f32 %v5244_v13, %v5320_v19  ;;  %v1825_v55 = vmul.f32 %v3594_v39, %v5321_v54  ;;  %v2404_v60 = vadd.f32 %v2312_v37, %v2160_v52  ;;  %v1826_v51 = vmul.f32 %v5318_v49, %v3594_v39 }
 0x12e   : > { %v1827_v11 = vmul.f32 %v3594_v39, %v5322_v34  ;;  %v2062_v62 = vmul.f32 %v3625_v6, %v5326_v35  ;;  %v2405_v63 = vadd.f32 %v2314_v30, %v2161_v26  ;;  %v5327_v31 = vrot.slane %v4616_v2, 2  ;;  %v5331_v30 = vld [vmem:[#allocation21_spill] sm:$0xff]  ;;  %v4934_v35 = vld [vmem:[%s3375_s8 + $0x78] sm:$0xf] }
 0x12f   : > { %v5328_v19 = vrot.slane %v4626_v27, 2  ;;  %v1935_v54 = vrot.slane %v1825_v55, 2  ;;  %v2443_v42 = vmul.f32 %v4854_v61, %v2404_v60  ;;  %v1936_v59 = vrot.slane %v1826_v51, 2 }
 0x130   : > { %v1557_v24 = vsel %vm1519_vm10, %v5327_v31, %v1556_v21  ;;  %v2444_v34 = vmul.f32 %v4854_v61, %v2405_v63  ;;  %v1938_v8 = vrot.slane %v1827_v11, 2  ;;  %v2063_v14 = vmul.f32 %v3625_v6, %v5329_v53  ;;  %v4937_v63 = vld [vmem:[%s3375_s8 + $0x7c] sm:$0xf] }
 0x131   : > { %v1559_v28 = vsel %vm1519_vm10, %v1556_v21, %v5328_v19  ;;  %v1646_v32 = vadd.f32 %v1557_v24, %v1401_v38  ;;  %v2130_v2 = vmul.f32 %v3634_v17, %v5330_v57  ;;  %v2482_v27 = vadd.f32 %v4867_v10, %v2443_v42  ;;  %v547_v38 = vld [vmem:[#allocation2 + $0xc0] sm:$0x1]  ;;  %v5332_v21 = vld [vmem:[#allocation29_spill] sm:$0xff] }
 0x132   : > { %v1647_v49 = vadd.f32 %v1559_v28, %v1402_v7  ;;  %v1937_v37 = vsel %vm1519_vm10, %v1935_v54, %v1936_v59  ;;  %v603_v7 = vld [vmem:[#allocation2 + $0xc8] sm:$0x1]  ;;  %v2483_v41 = vadd.f32 %v4867_v10, %v2444_v34  ;;  %v1939_v52 = vsel %vm1519_vm10, %v1936_v59, %v1938_v8 }
 0x133   : > { %v1714_v22 = vadd.f32 %v1682_v50, %v1646_v32  ;;  %v2131_v26 = vmul.f32 %v3634_v17, %v5331_v30  ;;  %v2205_v55 = vmul.f32 %v3639_v33, %v5332_v21  ;;  %v2206_v50 = vmul.f32 %v3639_v33, %v5329_v53  ;;  %v5335_v30 = vld [vmem:[#allocation4_spill] sm:$0xff] }
 0x134   : > { %v1715_v40 = vadd.f32 %v1683_v18, %v1647_v49  ;;  %v5333_v18 = vld [vmem:[#allocation30_spill] sm:$0xff]  ;;  %v2508_v31 = vpack.c.bf16 %v2483_v41, %v2482_v27  ;;  %v548_v19 = vsel %vm3354_vm3, 0, %v547_v38  ;;  %v604_v28 = vsel %vm3379_vm6, 0, %v603_v7 }
 0x135   : > { %v1782_v60 = vadd.f32 %v1750_v16, %v1714_v22  ;;  %v2207_v11 = vmul.f32 %v3639_v33, %v5333_v18  ;;  %v2315_v24 = vrot.slane %v2205_v55, 2  ;;  %v2316_v54 = vrot.slane %v2206_v50, 2  ;;  %549 = vst [vmem:[#allocation2 + $0xc0] sm:$0x1] %v548_v19  ;;  %605 = vst [vmem:[#allocation2 + $0xc8] sm:$0x1] %v604_v28 }
 0x136   : > { %v1783_v51 = vadd.f32 %v1751_v20, %v1715_v40  ;;  %3208 = vmatprep.mubr.msk.bf16.mxu0 %vm2519_vm11, %v2508_v31  ;;  %v884_v32 = vshrl.u32 %v4934_v35, 16  ;;  %v887_v49 = vshll.u32 %v4934_v35, 16  ;;  %v892_v59 = vshrl.u32 %v4937_v63, 16  ;;  %v5336_v18 = vld [vmem:[#allocation7_spill] sm:$0xff] }
 0x137   : > { %v2026_v16 = vadd.f32 %v1937_v37, %v1782_v60  ;;  %v2318_v42 = vrot.slane %v2207_v11, 2  ;;  %v895_v34 = vshll.u32 %v4937_v63, 16  ;;  %v2317_v15 = vsel %vm1519_vm10, %v2315_v24, %v2316_v54 }
 0x138   : > { %v2027_v20 = vadd.f32 %v1939_v52, %v1783_v51  ;;  %v886_v27 = vrot.slane %v884_v32, 7  ;;  %v894_v22 = vrot.slane %v892_v59, 7  ;;  %v1204_v40 = vunpack.c.l.bf16 %v4934_v35  ;;  %v5334_v52 = vld [vmem:[#allocation10_spill] sm:$0xff]  ;;  %v5337_v59 = vld [vmem:[#allocation5_spill] sm:$0xff] }
 0x139   : > { %v2094_v8 = vadd.f32 %v2062_v62, %v2026_v16  ;;  %v2319_v57 = vsel %vm1519_vm10, %v2316_v54, %v2318_v42  ;;  %v1205_v37 = vunpack.c.l.bf16 %v4937_v63  ;;  %v1316_v41 = vmul.f32 %v4712_v9, %v3503_v43 }
 0x13a   : > { %v2095_v53 = vadd.f32 %v2063_v14, %v2027_v20  ;;  %v1415_v21 = vadd.f32 %v5335_v30, %v5334_v52  ;;  %v889_v62 = vor.u32 %v887_v49, %v886_v27  ;;  %v890_v14 = vrot.slane %v886_v27, 4  ;;  %v4988_v49 = vld [vmem:[#allocation2 + $0xcc] sm:$0xff]  }
 0x13b   : > { %v2162_v38 = vadd.f32 %v2130_v2, %v2094_v8  ;;  %v897_v55 = vor.u32 %v895_v34, %v894_v22  ;;  %v899_v60 = vrot.slane %v894_v22, 4  ;;  %v1416_v11 = vadd.f32 %v5336_v18, %v1316_v41  ;;  %v5339_v8 = vld [vmem:[#allocation11_spill] sm:$0xff]  ;;  %v4999_v27 = vld [vmem:[#allocation2 + $0xcc] sm:$0xe]  ;;  %v5001_v41 = vld [vmem:[#allocation2 + $0xd4] sm:$0x1] }
 0x13c   : > { %v2163_v7 = vadd.f32 %v2131_v26, %v2095_v53  ;;  %v1466_v35 = vmul.f32 %v4712_v9, %v3510_v47  ;;  %v1086_v26 = vld [vmem:[#allocation2 + $0xc0] sm:$0xf]  ;;  %v1090_v63 = vld [vmem:[#allocation2 + $0xc8] sm:$0x1]  ;;  %v1696_v31 = vmul.f32 %v3514_v48, %v4799_v0  ;;  %v1697_v24 = vmul.f32 %v3514_v48, %v4801_v12 }
 0x13d   : > { %v2406_v51 = vadd.f32 %v2317_v15, %v2162_v38  ;;  %v898_v2 = vsel %vm3400_vm8, %v890_v14, %v897_v55  ;;  %v1764_v19 = vmul.f32 %v5244_v13, %v4734_v3  ;;  %v1087_v9 = vsel %vm3416_vm9, %v889_v62, %v1086_v26 }
 0x13e   : > { %v2407_v50 = vadd.f32 %v2319_v57, %v2163_v7  ;;  %1089 = vst.msk [vmem:[#allocation2 + $0xc4] sm:$0xf] %vm971_vm4, %v898_v2  ;;  %v1091_v25 = vsel %vm3354_vm3, %v899_v60, %v1090_v63  ;;  %1088 = vst [vmem:[#allocation2 + $0xc0] sm:$0xf] %v1087_v9  ;;  %v1591_v0 = vrot.slane %v1466_v35, 2  ;;  %v1765_v20 = vmul.f32 %v5244_v13, %v4736_v23 }
 0x13f   : > { %v2445_v28 = vmul.f32 %v4854_v61, %v2406_v51  ;;  %1092 = vst [vmem:[#allocation2 + $0xc8] sm:$0x1] %v1091_v25  ;;  %v4977_v3 = vmul.f32 %v5244_v13, %v1204_v40  ;;  %v4980_v54 = vmul.f32 %v5244_v13, %v1205_v37  ;;  %v1846_v5 = vmul.f32 %v3594_v39, %v4803_v45 }
 0x140   : > { %v2446_v16 = vmul.f32 %v4854_v61, %v2407_v50  ;;  %v1847_v32 = vmul.f32 %v3594_v39, %v4801_v12  ;;  %v5338_v23 = vrot.slane %v5337_v59, 2  ;;  %v5340_v53 = vrot.slane %v5339_v8, 2 }
 0x141   : > { %v2484_v36 = vadd.f32 %v4867_v10, %v2445_v28  ;;  %v1848_v15 = vmul.f32 %v3594_v39, %v4819_v44  ;;  %v2144_v57 = vmul.f32 %v3634_v17, %v1204_v40  ;;  %v1970_v7 = vrot.slane %v1846_v5, 2 }
 0x142   : > { %v2485_v42 = vadd.f32 %v4867_v10, %v2446_v16  ;;  %v1592_v34 = vsel %vm1519_vm10, %v5338_v23, %v1591_v0  ;;  %v1594_v13 = vsel %vm1519_vm10, %v1591_v0, %v5340_v53  ;;  %v1971_v52 = vrot.slane %v1847_v32, 2 }
 0x143   : > { %v1660_v22 = vadd.f32 %v1592_v34, %v1415_v21  ;;  %v1661_v38 = vadd.f32 %v1594_v13, %v1416_v11  ;;  %v1973_v30 = vrot.slane %v1848_v15, 2  ;;  %v2145_v62 = vmul.f32 %v3634_v17, %v1205_v37 }
 0x144   : > { %v2509_v45 = vpack.c.bf16 %v2485_v42, %v2484_v36  ;;  %v1170_v14 = vunpack.c.l.bf16 %v4988_v49  ;;  %v1171_v40 = vunpack.c.h.bf16 %v4988_v49  ;;  %v1278_v60 = vunpack.c.l.bf16 %v4999_v27  ;;  %v5018_v42 = vpop.f32.mrf.mxu0 }
 0x145   : > { %v1728_v55 = vadd.f32 %v1696_v31, %v1660_v22  ;;  %v1729_v44 = vadd.f32 %v1697_v24, %v1661_v38  ;;  %v1972_v21 = vsel %vm1519_vm10, %v1970_v7, %v1971_v52  ;;  %v1974_v51 = vsel %vm1519_vm10, %v1971_v52, %v1973_v30  ;;  %v3176_v37 = vld [vmem:[#allocation2 + $0xc0] sm:$0xff]  }
 0x146   : > { %3209 = vmatmul.mubr.msk.bf16.gmra.mxu0 %vm2519_vm11, %v2509_v45  ;;  %v1279_v50 = vunpack.c.l.bf16 %v5001_v41  ;;  %v1318_v18 = vmul.f32 %v3503_v43, %v4801_v12  ;;  %v1240_v11 = vld [vmem:[#allocation2 + $0xc0] sm:$0xe]  ;;  %v1241_v35 = vld [vmem:[#allocation2 + $0xc8] sm:$0x1]  ;;  %v1417_v63 = vadd.f32 %v4744_v29, %v4809_v46  ;;  %v1469_v31 = vmul.f32 %v3510_v47, %v4801_v12  ;;  %v2606_v15 = vpop.f32.mrf.mxu0 }
 0x147   : > { %v1796_v2 = vadd.f32 %v1764_v19, %v1728_v55  ;;  %v1797_v26 = vadd.f32 %v1765_v20, %v1729_v44  ;;  %v3167_v24 = vunpack.c.l.bf16 %v3176_v37  ;;  %v3168_v28 = vunpack.c.h.bf16 %v3176_v37 }
 0x148   : > { %v1276_v16 = vunpack.c.l.bf16 %v1240_v11  ;;  %v1277_v9 = vunpack.c.l.bf16 %v1241_v35  ;;  %v1418_v36 = vadd.f32 %v4752_v58, %v1318_v18  ;;  %v1596_v43 = vrot.slane %v1469_v31, 2  ;;  %v5342_v18 = vld [vmem:[#allocation3_spill] sm:$0xff] }
 0x149   : > { %v2040_v25 = vadd.f32 %v1972_v21, %v1796_v2  ;;  %v2041_v0 = vadd.f32 %v1974_v51, %v1797_v26  ;;  %v1698_v19 = vmul.f32 %v3167_v24, %v3514_v48  ;;  %v2076_v46 = vmul.f32 %v3167_v24, %v3625_v6 }
 0x14a   : > { %v1849_v20 = vmul.f32 %v3594_v39, %v1276_v16  ;;  %v1851_v29 = vmul.f32 %v3594_v39, %v1277_v9  ;;  %v2077_v47 = vmul.f32 %v3168_v28, %v3625_v6  ;;  %v2226_v12 = vmul.f32 %v3639_v33, %v1276_v16 }
 0x14b   : > { %v2227_v5 = vmul.f32 %v3168_v28, %v3639_v33  ;;  %v2228_v32 = vmul.f32 %v3639_v33, %v1277_v9  ;;  %v2108_v59 = vadd.f32 %v2076_v46, %v2040_v25  ;;  %v1597_v23 = vsel %vm1519_vm10, %v1595_v1, %v1596_v43 }
 0x14c   : > { %v1975_v58 = vrot.slane %v1849_v20, 2  ;;  %v1978_v49 = vrot.slane %v1851_v29, 2  ;;  %v2109_v34 = vadd.f32 %v2077_v47, %v2041_v0  ;;  %v2350_v8 = vrot.slane %v2226_v12, 2 }
 0x14d   : > { %v2351_v53 = vrot.slane %v2227_v5, 2  ;;  %v2353_v13 = vrot.slane %v2228_v32, 2  ;;  %v2176_v27 = vadd.f32 %v2144_v57, %v2108_v59  ;;  %v5341_v45 = vrot.slane %v4834_v56, 2 }
 0x14e   : > { %v1662_v38 = vadd.f32 %v1597_v23, %v1417_v63  ;;  %v1699_v7 = vmul.f32 %v3168_v28, %v3514_v48  ;;  %v2177_v41 = vadd.f32 %v2145_v62, %v2109_v34  ;;  %v1850_v44 = vmul.f32 %v3168_v28, %v3594_v39  ;;  %v3199_v48 = vpop.f32.mrf.mxu0 }
 0x14f   : > { %v1599_v22 = vsel %vm1519_vm10, %v1596_v43, %v5341_v45  ;;  %v2352_v52 = vsel %vm1519_vm10, %v2350_v8, %v2351_v53  ;;  %v2354_v4 = vsel %vm1519_vm10, %v2351_v53, %v2353_v13  ;;  %v2078_v21 = vmul.f32 %v3625_v6, %v1170_v14 }
 0x150   : > { %v1663_v30 = vadd.f32 %v1599_v22, %v1418_v36  ;;  %v2420_v1 = vadd.f32 %v2352_v52, %v2176_v27  ;;  %v1730_v55 = vadd.f32 %v1698_v19, %v1662_v38  ;;  %v2421_v57 = vadd.f32 %v2354_v4, %v2177_v41 }
 0x151   : > { %v2079_v56 = vmul.f32 %v3625_v6, %v1171_v40  ;;  %v2146_v37 = vmul.f32 %v3634_v17, %v5342_v18  ;;  %v1976_v35 = vrot.slane %v1850_v44, 2  ;;  %v2229_v2 = vmul.f32 %v3639_v33, %v1278_v60 }
 0x152   : > { %v1731_v51 = vadd.f32 %v1699_v7, %v1663_v30  ;;  %v2459_v62 = vmul.f32 %v4854_v61, %v2420_v1  ;;  %v1798_v11 = vadd.f32 %v4977_v3, %v1730_v55  ;;  %v2460_v39 = vmul.f32 %v4854_v61, %v2421_v57 }
 0x153   : > { %v2230_v26 = vmul.f32 %v3639_v33, %v1171_v40  ;;  %v2231_v6 = vmul.f32 %v3639_v33, %v1279_v50  ;;  %v1977_v17 = vsel %vm1519_vm10, %v1975_v58, %v1976_v35  ;;  %v1979_v31 = vsel %vm1519_vm10, %v1976_v35, %v1978_v49  ;;  %v2609_v33 = vpop.f32.mrf.mxu0 }
 0x154   : > { %v1799_v14 = vadd.f32 %v4980_v54, %v1731_v51  ;;  %v2498_v63 = vadd.f32 %v4867_v10, %v2459_v62  ;;  %v2355_v24 = vrot.slane %v2229_v2, 2  ;;  %v2499_v3 = vadd.f32 %v4867_v10, %v2460_v39  ;;  %v3214_v50 = vpop.f32.mrf.mxu1 }
 0x155   : > { %v2042_v28 = vadd.f32 %v1977_v17, %v1798_v11  ;;  %v2356_v60 = vrot.slane %v2230_v26, 2  ;;  %v2358_v54 = vrot.slane %v2231_v6, 2  ;;  %v3103_v40 = vpack.c.bf16 %v5018_v42, %v5018_v42 }
 0x156   : > { %v2043_v16 = vadd.f32 %v1979_v31, %v1799_v14  ;;  %v3101_v9 = vpack.c.bf16 %v2606_v15, %v2606_v15  ;;  %v3104_v25 = vpack.c.bf16 %v3199_v48, %v3199_v48  ;;  %v2516_v0 = vpack.c.bf16 %v2499_v3, %v2498_v63  ;;  %v2670_v46 = vpop.f32.mrf.mxu1 }
 0x157   : > { %v2110_v36 = vadd.f32 %v2078_v21, %v2042_v28  ;;  %v2357_v19 = vsel %vm1519_vm10, %v2355_v24, %v2356_v60  ;;  %v2359_v20 = vsel %vm1519_vm10, %v2356_v60, %v2358_v54  ;;  %2863 = vst.msk [vmem:[%s5058_s9 + $0x8] sm:$0xf] %vm971_vm4, %v3103_v40  ;;  %v3119_v29 = vpack.c.bf16 %v3214_v50, %v3214_v50 }
 0x158   : > { %v2111_v43 = vadd.f32 %v2079_v56, %v2043_v16  ;;  %2861 = vst.msk [vmem:[%s5058_s9] sm:$0xf] %vm971_vm4, %v3101_v9  ;;  %2864 = vst.msk [vmem:[%s5058_s9 + $0xc] sm:$0xf] %vm971_vm4, %v3104_v25  ;;  %v3102_v42 = vpack.c.bf16 %v2609_v33, %v2609_v33  ;;  %3224 = vmatprep.mubr.msk.bf16.mxu1 %vm2519_vm11, %v2516_v0  ;;  %v3117_v5 = vpack.c.bf16 %v2670_v46, %v2670_v46  ;;  %v3215_v32 = vpop.f32.mrf.mxu1 }
 0x159   : > { %v2178_v47 = vadd.f32 %v2146_v37, %v2110_v36  ;;  %2879 = vst.msk [vmem:[%s5058_s9 + $0x48] sm:$0xf] %vm971_vm4, %v3119_v29  ;;  %v3120_v59 = vpack.c.bf16 %v3215_v32, %v3215_v32 }
 0x15a   : > { %v2179_v12 = vadd.f32 %v2146_v37, %v2111_v43  ;;  %2862 = vst.msk [vmem:[%s5058_s9 + $0x4] sm:$0xf] %vm971_vm4, %v3102_v42  ;;  %2877 = vst.msk [vmem:[%s5058_s9 + $0x40] sm:$0xf] %vm971_vm4, %v3117_v5  ;;  %v2673_v23 = vpop.f32.mrf.mxu1 }
 0x15b   : > { %v2422_v58 = vadd.f32 %v2357_v19, %v2178_v47  ;;  %2880 = vst.msk [vmem:[%s5058_s9 + $0x4c] sm:$0xf] %vm971_vm4, %v3120_v59  ;;  %v3118_v53 = vpack.c.bf16 %v2673_v23, %v2673_v23 }
 0x15c   : > { %v2423_v49 = vadd.f32 %v2359_v20, %v2179_v12 }
 0x15d   : > { %v2461_v34 = vmul.f32 %v4854_v61, %v2422_v58  ;;  %2878 = vst.msk [vmem:[%s5058_s9 + $0x44] sm:$0xf] %vm971_vm4, %v3118_v53 }
 0x15e   : > { %v2462_v8 = vmul.f32 %v4854_v61, %v2423_v49 }
 0x15f   : > { %v2500_v13 = vadd.f32 %v4867_v10, %v2461_v34 }
 0x160   : > { %v2501_v15 = vadd.f32 %v4867_v10, %v2462_v8 }
 0x162   : > { %v2517_v27 = vpack.c.bf16 %v2501_v15, %v2500_v13 }
 0x164   : > { %3225 = vmatmul.mubr.msk.bf16.gmra.mxu1 %vm2519_vm11, %v2517_v27 }
 0x178   : > { %v3202_v45 = vpop.f32.mrf.mxu0 }
 0x179   : > { %v3107_v22 = vpack.c.bf16 %v3202_v45, %v3202_v45 }
 0x17a   : > { %v2622_v38 = vpop.f32.mrf.mxu0 }
 0x17b   : > { %2867 = vst.msk [vmem:[%s5058_s9 + $0x18] sm:$0xf] %vm971_vm4, %v3107_v22  ;;  %v3105_v61 = vpack.c.bf16 %v2622_v38, %v2622_v38 }
 0x17c   : > { %v3203_v7 = vpop.f32.mrf.mxu0 }
 0x17d   : > { %2865 = vst.msk [vmem:[%s5058_s9 + $0x10] sm:$0xf] %vm971_vm4, %v3105_v61  ;;  %v3108_v41 = vpack.c.bf16 %v3203_v7, %v3203_v7 }
 0x17e   : > { %v2625_v10 = vpop.f32.mrf.mxu0 }
 0x17f   : > { %2868 = vst.msk [vmem:[%s5058_s9 + $0x1c] sm:$0xf] %vm971_vm4, %v3108_v41  ;;  %v3106_v52 = vpack.c.bf16 %v2625_v10, %v2625_v10 }
 0x181   : > { %2866 = vst.msk [vmem:[%s5058_s9 + $0x14] sm:$0xf] %vm971_vm4, %v3106_v52 }
 0x19d   : > { %v3218_v4 = vpop.f32.mrf.mxu1 }
 0x19e   : > { %v3123_v30 = vpack.c.bf16 %v3218_v4, %v3218_v4 }
 0x19f   : > { %v2686_v1 = vpop.f32.mrf.mxu1 }
 0x1a0   : > { %2883 = vst.msk [vmem:[%s5058_s9 + $0x58] sm:$0xf] %vm971_vm4, %v3123_v30  ;;  %v3121_v55 = vpack.c.bf16 %v2686_v1, %v2686_v1 }
 0x1a1   : > { %v3219_v44 = vpop.f32.mrf.mxu1 }
 0x1a2   : > { %2881 = vst.msk [vmem:[%s5058_s9 + $0x50] sm:$0xf] %vm971_vm4, %v3121_v55  ;;  %v3124_v21 = vpack.c.bf16 %v3219_v44, %v3219_v44 }
 0x1a3   : > { %v2689_v57 = vpop.f32.mrf.mxu1 }
 0x1a4   : > { %2884 = vst.msk [vmem:[%s5058_s9 + $0x5c] sm:$0xf] %vm971_vm4, %v3124_v21  ;;  %v3122_v51 = vpack.c.bf16 %v2689_v57, %v2689_v57 }
 0x1a6   : > { %2882 = vst.msk [vmem:[%s5058_s9 + $0x54] sm:$0xf] %vm971_vm4, %v3122_v51 }
 0x1c4   : > { %v3206_v56 = vpop.f32.mrf.mxu0 }
 0x1c5   : > { %v3111_v18 = vpack.c.bf16 %v3206_v56, %v3206_v56 }
 0x1c6   : > { %v2638_v37 = vpop.f32.mrf.mxu0 }
 0x1c7   : > { %2871 = vst.msk [vmem:[%s5058_s9 + $0x28] sm:$0xf] %vm971_vm4, %v3111_v18  ;;  %v3109_v48 = vpack.c.bf16 %v2638_v37, %v2638_v37 }
 0x1c8   : > { %v3207_v62 = vpop.f32.mrf.mxu0 }
 0x1c9   : > { %2869 = vst.msk [vmem:[%s5058_s9 + $0x20] sm:$0xf] %vm971_vm4, %v3109_v48  ;;  %v3112_v11 = vpack.c.bf16 %v3207_v62, %v3207_v62 }
 0x1ca   : > { %v2641_v35 = vpop.f32.mrf.mxu0 }
 0x1cb   : > { %2872 = vst.msk [vmem:[%s5058_s9 + $0x2c] sm:$0xf] %vm971_vm4, %v3112_v11  ;;  %v3110_v2 = vpack.c.bf16 %v2641_v35, %v2641_v35 }
 0x1cd   : > { %2870 = vst.msk [vmem:[%s5058_s9 + $0x24] sm:$0xf] %vm971_vm4, %v3110_v2 }
 0x1eb   : > { %v3222_v39 = vpop.f32.mrf.mxu1 }
 0x1ec   : > { %v3127_v14 = vpack.c.bf16 %v3222_v39, %v3222_v39 }
 0x1ed   : > { %v2702_v26 = vpop.f32.mrf.mxu1 }
 0x1ee   : > { %2887 = vst.msk [vmem:[%s5058_s9 + $0x68] sm:$0xf] %vm971_vm4, %v3127_v14  ;;  %v3125_v6 = vpack.c.bf16 %v2702_v26, %v2702_v26 }
 0x1ef   : > { %v3223_v63 = vpop.f32.mrf.mxu1 }
 0x1f0   : > { %2885 = vst.msk [vmem:[%s5058_s9 + $0x60] sm:$0xf] %vm971_vm4, %v3125_v6  ;;  %v3128_v17 = vpack.c.bf16 %v3223_v63, %v3223_v63 }
 0x1f1   : > { %v2705_v31 = vpop.f32.mrf.mxu1 }
 0x1f2   : > { %2888 = vst.msk [vmem:[%s5058_s9 + $0x6c] sm:$0xf] %vm971_vm4, %v3128_v17  ;;  %v3126_v24 = vpack.c.bf16 %v2705_v31, %v2705_v31 }
 0x1f4   : > { %2886 = vst.msk [vmem:[%s5058_s9 + $0x64] sm:$0xf] %vm971_vm4, %v3126_v24 }
 0x206   : > { %v3210_v3 = vpop.f32.mrf.mxu0 }
 0x207   : > { %v3115_v28 = vpack.c.bf16 %v3210_v3, %v3210_v3 }
 0x208   : > { %v2654_v16 = vpop.f32.mrf.mxu0 }
 0x209   : > { %2875 = vst.msk [vmem:[%s5058_s9 + $0x38] sm:$0xf] %vm971_vm4, %v3115_v28  ;;  %v3113_v60 = vpack.c.bf16 %v2654_v16, %v2654_v16 }
 0x20a   : > { %v3211_v33 = vpop.f32.mrf.mxu0 }
 0x20b   : > { %2873 = vst.msk [vmem:[%s5058_s9 + $0x30] sm:$0xf] %vm971_vm4, %v3113_v60  ;;  %v3116_v54 = vpack.c.bf16 %v3211_v33, %v3211_v33 }
 0x20c   : > { %v2657_v40 = vpop.f32.mrf.mxu0 }
 0x20d   : > { %2876 = vst.msk [vmem:[%s5058_s9 + $0x3c] sm:$0xf] %vm971_vm4, %v3116_v54  ;;  %v3114_v50 = vpack.c.bf16 %v2657_v40, %v2657_v40 }
 0x20f   : > { %2874 = vst.msk [vmem:[%s5058_s9 + $0x34] sm:$0xf] %vm971_vm4, %v3114_v50 }
 0x224   : > { %v3226_v9 = vpop.f32.mrf.mxu1 }
 0x225   : > { %v3131_v25 = vpack.c.bf16 %v3226_v9, %v3226_v9 }
 0x226   : > { %v2718_v0 = vpop.f32.mrf.mxu1 }
 0x227   : > { %2891 = vst.msk [vmem:[%s5058_s9 + $0x78] sm:$0xf] %vm971_vm4, %v3131_v25  ;;  %v3129_v36 = vpack.c.bf16 %v2718_v0, %v2718_v0 }
 0x228   : > { %v3227_v43 = vpop.f32.mrf.mxu1 }
 0x229   : > { %2889 = vst.msk [vmem:[%s5058_s9 + $0x70] sm:$0xf] %vm971_vm4, %v3129_v36  ;;  %v3132_v19 = vpack.c.bf16 %v3227_v43, %v3227_v43 }
 0x22a   : > { %v2721_v20 = vpop.f32.mrf.mxu1 }
 0x22b   : > { %2892 = vst.msk [vmem:[%s5058_s9 + $0x7c] sm:$0xf] %vm971_vm4, %v3132_v19  ;;  %v3130_v29 = vpack.c.bf16 %v2721_v20, %v2721_v20 }
 0x22d   : > { %2890 = vst.msk [vmem:[%s5058_s9 + $0x74] sm:$0xf] %vm971_vm4, %v3130_v29 }
 0x22e PF: > { %s17_s26 = sadd.s32 1, %s3283_s26   ;;  %s5343_s24 = smov %s3279_s25 }
 0x22f   : > { %p14_p5 = scmp.ge.s32.totalorder %s17_s26, 4   ;;  %s5344_s25 = smov %s5346_s5 }
 0x231   :  { %16 = sbr.rel (!%p14_p5) target bundleno = 2 (0x2), region = 84 }

// kernel: bga_pallas.11
= control target key start
LH: loop header
LB: loop body
LE: loop exit
PB: predicated region body
PF: predicated region fallthrough
CT: control target
= control target key end

     0   :  { %s4909_s19 = smov 0   ;;  %s4911_s20 = smov 0   ;;  %s6594_s0 = inlined_call_operand.vmem [shape: bf16[3,12,4], index: 0, kind: input, shape index: {}]   ;;  %s6595_s1 = inlined_call_operand.vmem [shape: f32[1,4], index: 1, kind: input, shape index: {}]   ;;  %s6596_s2 = inlined_call_operand.vmem [shape: f32[1,4], index: 2, kind: input, shape index: {}]   ;;  %s6597_s3 = inlined_call_operand.vmem [shape: bf16[2,16,16,4], index: 3, kind: input, shape index: {}, may-alias: {3,4,5}]   ;;  %s6598_s4 = inlined_call_operand.vmem [shape: bf16[2,16,16,4], index: 4, kind: input, shape index: {}, may-alias: {3,4,5}]   ;;  %s6599_s5 = inlined_call_operand.vmem [shape: bf16[2,16,16,4], index: 5, kind: input, shape index: {}, may-alias: {3,4,5}]   ;;  %s6600_s6 = inlined_call_operand.vmem [shape: bf16[2,16,16,4], index: 6, kind: input, shape index: {}, may-alias: {6,7,8}]   ;;  %s6601_s7 = inlined_call_operand.vmem [shape: bf16[2,16,16,4], index: 7, kind: input, shape index: {}, may-alias: {6,7,8}]   ;;  %s6602_s8 = inlined_call_operand.vmem [shape: bf16[2,16,16,4], index: 8, kind: input, shape index: {}, may-alias: {6,7,8}]   ;;  %s6603_s9 = inlined_call_operand.vmem [shape: bf16[2,16,16,4], index: 9, kind: input, shape index: {}, may-alias: {9,10,11}]   ;;  %s6604_s10 = inlined_call_operand.vmem [shape: bf16[2,16,16,4], index: 10, kind: input, shape index: {}, may-alias: {9,10,11}]   ;;  %s6605_s11 = inlined_call_operand.vmem [shape: bf16[2,16,16,4], index: 11, kind: input, shape index: {}, may-alias: {9,10,11}]   ;;  %s6606_s12 = inlined_call_operand.vmem [shape: f32[2,16,16,4], index: 12, kind: output, shape index: {}]  }
   0x1   :  { %s4913_s7 = smov 0  }
   0x2 LB: > { %s34_s8 = sadd.s32 1, %s4835_s20  ;;  %p3960_p0 = scmp.ge.s32.totalorder %s4839_s7, 1  ;;  %s4839_s7 = sphi %s4913_s7, %s22_s7   ;;  %s4835_s20 = sphi %s4911_s20, %s6868_s20   ;;  %s4831_s19 = sphi %s4909_s19, %s6867_s19  }
   0x3   : > { %p36_p1 = scmp.ge.s32.totalorder %s34_s8, 2  ;;  %p612_p2 = scmp.lt.s32.totalorder %s4839_s7, 3 }
   0x5   : > { %s6870_s8 = smov (%p36_p1, %s34_s8), 0  ;;  %p613_p3 = pnand %p3960_p0, %p612_p2 }
   0x7   : > { %616 = sbr.rel (%p613_p3) target bundleno = 613 (0x265), region = 68 }
   0xc   : > { %p763_p4 = scmp.lt.s32.totalorder %s4831_s19, 1  ;;  %v4841_v0 = vmov 0   ;;  %s4842_s29 = smov 4   ;;  %vm2145_vm0 = vsmask.f32 3328  ;;  %vm1924_vm6 = vcmask 27648  }
   0xd   : > { %v4929_v1 = vunpack.c.l.bf16 %v4841_v0  ;;  %s4843_s30 = smov 8   ;;  %vm2146_vm1 = vsmask.f32 7440  ;;  %vm1452_vm3 = vsmask.f32 256  ;;  %vm1451_vm7 = vcmask 24576  }
   0xe   : > { %s6872_s19 = smov (!%p763_p4, %s4831_s19), 1  ;;  %vm5438_vm2 = vmor %vm2145_vm0, %vm2146_vm1  ;;  %vm1598_vm4 = vsmask.f32 4368  ;;  %vm2108_vm9 = vcmask 60448   ;;  %vm1925_vm10 = vsmask.f32 7938 }
   0xf   : > { %6664 = vst [vmem:[#allocation3_spill] sm:$0xff] %v4929_v1  ;;  %s4160_s10 = sshll.u32 %s6872_s19, 7  ;;  %v3981_v3 = vmul.f32 -1.442695, %v4929_v1  ;;  %vm5528_vm5 = vmor %vm1452_vm3, %vm1598_vm4  ;;  %vm2754_vm11 = vcmask 1045504   ;;  %vm2418_vm13 = vcmask 93248  }
  0x10   : > { %s4935_s22 = scalar_lea.vmem %s6600_s6, %s4160_s10  ;;  %s4946_s25 = scalar_lea.vmem %s6597_s3, %s4160_s10  ;;  %vm5865_vm8 = vmand %vm1451_vm7, %vm1452_vm3  ;;  %vm2493_vm15 = vcmask 93251   ;;  %vm3659_vm3 = vcmask 31744  }
  0x11   : > { %v4938_v2 = vld [vmem:[%s4935_s22 + $0x40] sm:$0xff]   ;;  %v4949_v7 = vld [vmem:[%s4935_s22 + $0x48] sm:$0xff]   ;;  %s4958_s28 = scalar_lea.vmem %s6603_s9, %s4160_s10  ;;  %v4962_v13 = vld [vmem:[%s4935_s22 + $0x50] sm:$0xff]   ;;  %4683 = vpow2.f32 %v3981_v3  ;;  %s4172_s10 = sshll.u32 %s6872_s19, 8 }
  0x12   : > { %v4308_v4 = vunpack.c.h.bf16 %v4938_v2  ;;  %v4274_v5 = vld [vmem:[%s4935_s22] sm:$0xff]   ;;  %v4312_v9 = vunpack.c.h.bf16 %v4949_v7  ;;  %v4953_v10 = vld [vmem:[%s4935_s22 + $0x8] sm:$0xff]   ;;  %v4316_v16 = vunpack.c.h.bf16 %v4962_v13  ;;  %v4975_v20 = vld [vmem:[%s4935_s22 + $0x58] sm:$0xff]   ;;  %s6432_s24 = scalar_lea.vmem %s6606_s12, %s4172_s10 }
  0x13   : > { %v4276_v6 = vunpack.c.h.bf16 %v4274_v5  ;;  %v4280_v12 = vunpack.c.h.bf16 %v4953_v10  ;;  %v4965_v14 = vld [vmem:[%s4946_s25 + $0x40] sm:$0xff]   ;;  %v4969_v17 = vld [vmem:[%s4935_s22 + $0x68] sm:$0xff]   ;;  %v4275_v25 = vunpack.c.l.bf16 %v4274_v5  ;;  %v4320_v28 = vunpack.c.h.bf16 %v4975_v20  ;;  %v4990_v29 = vld [vmem:[%s4935_s22 + $0x10] sm:$0xff]  }
  0x14   : > { %v4000_v8 = vmul.f32 -1.442695, %v4308_v4  ;;  %v4002_v15 = vmul.f32 -1.442695, %v4312_v9  ;;  %v4972_v18 = vld [vmem:[%s4946_s25] sm:$0xff]   ;;  %v4328_v23 = vunpack.c.h.bf16 %v4969_v17  ;;  %v4244_v26 = vunpack.c.h.bf16 %v4965_v14  ;;  %v4994_v31 = vld [vmem:[%s4946_s25 + $0x48] sm:$0xff]   ;;  %vm5941_vm12 = vmand %vm1924_vm6, %vm1925_vm10 }
  0x15   : > { %v3984_v11 = vmul.f32 -1.442695, %v4276_v6  ;;  %v3986_v19 = vmul.f32 -1.442695, %v4280_v12  ;;  %v4978_v21 = vld [vmem:[%s4958_s28 + $0x40] sm:$0xff]   ;;  %v4212_v30 = vunpack.c.h.bf16 %v4972_v18  ;;  %v4997_v32 = vld [vmem:[%s4958_s28 + $0x48] sm:$0xff]   ;;  %v4284_v39 = vunpack.c.h.bf16 %v4990_v29  ;;  %vm6165_vm14 = vmand %vm2418_vm13, %vm2145_vm0 }
  0x16   : > { %4685 = vpow2.f32 %v4000_v8  ;;  %v4004_v22 = vmul.f32 -1.442695, %v4316_v16  ;;  %v4982_v24 = vld [vmem:[%s4935_s22 + $0x20] sm:$0xff]   ;;  %v4010_v33 = vmul.f32 -1.442695, %v4328_v23  ;;  %v4372_v35 = vunpack.c.h.bf16 %v4978_v21  ;;  %v5002_v36 = vld [vmem:[%s4946_s25 + $0x8] sm:$0xff]  }
  0x17   : > { %4687 = vpow2.f32 %v3984_v11  ;;  %v4986_v27 = vld [vmem:[%s4958_s28] sm:$0xff]   ;;  %v4292_v34 = vunpack.c.h.bf16 %v4982_v24  ;;  %v5005_v37 = vld [vmem:[%s4958_s28 + $0x8] sm:$0xff]   ;;  %v4006_v38 = vmul.f32 -1.442695, %v4320_v28  ;;  %v5010_v41 = vld [vmem:[%s4935_s22 + $0x18] sm:$0xff]   ;;  %v4279_v61 = vunpack.c.l.bf16 %v4953_v10 }
  0x18   : > { %4689 = vpow2.f32 %v4002_v15  ;;  %v5014_v43 = vld [vmem:[%s4946_s25 + $0x50] sm:$0xff]   ;;  %v3983_v46 = vmul.f32 -1.442695, %v4275_v25  ;;  %v5022_v49 = vld [vmem:[%s4946_s25 + $0x68] sm:$0xff]   ;;  %v3988_v50 = vmul.f32 -1.442695, %v4284_v39  ;;  %v4288_v56 = vunpack.c.h.bf16 %v5010_v41 }
  0x19   : > { %4691 = vpow2.f32 %v3986_v19  ;;  %v5017_v44 = vld [vmem:[%s4958_s28 + $0x50] sm:$0xff]   ;;  %v3992_v45 = vmul.f32 -1.442695, %v4292_v34  ;;  %6665 = vst [vmem:[#allocation4_spill] sm:$0xff] %v5022_v49  ;;  %v5025_v51 = vld [vmem:[%s4935_s22 + $0x60] sm:$0xff]   ;;  %v5030_v54 = vld [vmem:[%s4958_s28 + $0x68] sm:$0xff]   ;;  %v4307_v10 = vunpack.c.l.bf16 %v4938_v2  ;;  %v4311_v2 = vunpack.c.l.bf16 %v4949_v7 }
  0x1a   : > { %4693 = vpow2.f32 %v4004_v22  ;;  %6666 = vst [vmem:[#allocation5_spill] sm:$0xff] %v5030_v54  ;;  %v5033_v55 = vld [vmem:[%s4946_s25 + $0x58] sm:$0xff]   ;;  %v5042_v60 = vld [vmem:[%s4946_s25 + $0x20] sm:$0xff]   ;;  %v3990_v0 = vmul.f32 -1.442695, %v4288_v56  ;;  %v4324_v3 = vunpack.c.h.bf16 %v5025_v51  ;;  %v5053_v6 = vld [vmem:[%s4946_s25 + $0x10] sm:$0xff]   ;;  %v4315_v56 = vunpack.c.l.bf16 %v4962_v13 }
  0x1b   : > { %4695 = vpow2.f32 %v4010_v33  ;;  %6667 = vst [vmem:[#allocation6_spill] sm:$0xff] %v5033_v55  ;;  %v5039_v59 = vld [vmem:[%s4958_s28 + $0x58] sm:$0xff]   ;;  %6669 = vst [vmem:[#allocation8_spill] sm:$0xff] %v5042_v60  ;;  %v5047_v63 = vld [vmem:[%s4958_s28 + $0x20] sm:$0xff]   ;;  %v3985_v9 = vmul.f32 -1.442695, %v4279_v61  ;;  %v4319_v53 = vunpack.c.l.bf16 %v4975_v20  ;;  %v4287_v1 = vunpack.c.l.bf16 %v5010_v41 }
  0x1c   : > { %4697 = vpow2.f32 %v4006_v38  ;;  %6668 = vst [vmem:[#allocation7_spill] sm:$0xff] %v5039_v59  ;;  %6670 = vst [vmem:[#allocation9_spill] sm:$0xff] %v5047_v63  ;;  %v5056_v8 = vld [vmem:[%s4958_s28 + $0x10] sm:$0xff]   ;;  %v5064_v16 = vld [vmem:[%s4946_s25 + $0x18] sm:$0xff]   ;;  %v4008_v19 = vmul.f32 -1.442695, %v4324_v3 }
  0x1d   : > { %4699 = vpow2.f32 %v3992_v45  ;;  %6671 = vst [vmem:[#allocation10_spill] sm:$0xff] %v5053_v6  ;;  %6672 = vst [vmem:[#allocation11_spill] sm:$0xff] %v5056_v8  ;;  %v5068_v25 = vld [vmem:[%s4958_s28 + $0x18] sm:$0xff]   ;;  %v3999_v28 = vmul.f32 -1.442695, %v4307_v10  ;;  %v5076_v61 = vld [vmem:[%s4946_s25 + $0x60] sm:$0xff]  }
  0x1e   : > { %4701 = vpow2.f32 %v3988_v50  ;;  %v5059_v11 = vpop.eup %4683  ;;  %6673 = vst [vmem:[#allocation12_spill] sm:$0xff] %v5064_v16  ;;  %6674 = vst [vmem:[#allocation13_spill] sm:$0xff] %v5068_v25  ;;  %v4001_v50 = vmul.f32 -1.442695, %v4311_v2  ;;  %v5107_v23 = vld [vmem:[%s4935_s22 + $0x78] sm:$0xff]   ;;  %v5112_v12 = vld [vmem:[%s4958_s28 + $0x70] sm:$0xff]  }
  0x1f   : > { %4703 = vpow2.f32 %v3983_v46  ;;  %6675 = vst [vmem:[#allocation14_spill] sm:$0xff] %v5076_v61  ;;  %6678 = vst [vmem:[#allocation17_spill] sm:$0xff] %v5107_v23  ;;  %v5120_v4 = vld [vmem:[%s4958_s28 + $0x78] sm:$0xff]   ;;  %v4336_v5 = vunpack.c.h.bf16 %v5107_v23  ;;  %v5124_v62 = vld [vmem:[%s4935_s22 + $0x30] sm:$0xff]   ;;  %vm2494_vm0 = vsmask.f32 7950 }
  0x20   : > { %4705 = vpow2.f32 %v3990_v0  ;;  %v5079_v0 = vld [vmem:[%s4958_s28 + $0x60] sm:$0xff]   ;;  %6679 = vst [vmem:[#allocation18_spill] sm:$0xff] %v5124_v62  ;;  %vm6195_vm1 = vmand %vm2493_vm15, %vm2494_vm0 }
  0x21   : > { %4707 = vpow2.f32 %v3985_v9  ;;  %6676 = vst [vmem:[#allocation15_spill] sm:$0xff] %v5079_v0  ;;  %v5093_v9 = vld [vmem:[%s4935_s22 + $0x70] sm:$0xff]  }
  0x22   : > { %4709 = vpow2.f32 %v4008_v19  ;;  %v5084_v19 = vld [vmem:[%s4935_s22 + $0x28] sm:$0xff]   ;;  %6677 = vst [vmem:[#allocation16_spill] sm:$0xff] %v5093_v9  ;;  %v4332_v38 = vunpack.c.h.bf16 %v5093_v9 }
  0x23   : > { %v4686_v22 = vpop.eup %4685  ;;  %4711 = vpow2.f32 %v3999_v28  ;;  %v4296_v2 = vunpack.c.h.bf16 %v5084_v19 }
  0x24   : > { %v4688_v33 = vpop.eup %4687  ;;  %v1196_v34 = vadd.f32 1.0, %v4686_v22  ;;  %v5128_v58 = vmul.f32 -1.442695, %v4332_v38 }
  0x25   : > { %v4690_v45 = vpop.eup %4689  ;;  %v1180_v46 = vadd.f32 1.0, %v4688_v33 }
  0x26   : > { %v4692_v7 = vpop.eup %4691  ;;  %4713 = vrcp.f32 %v1196_v34  ;;  %v1198_v3 = vadd.f32 1.0, %v4690_v45  ;;  %v5090_v45 = vld [vmem:[%s4946_s25 + $0x28] sm:$0xff]  }
  0x27   : > { %v4694_v22 = vpop.eup %4693  ;;  %4715 = vrcp.f32 %v1180_v46  ;;  %v1182_v33 = vadd.f32 1.0, %v4692_v7  ;;  %v3994_v7 = vmul.f32 -1.442695, %v4296_v2  ;;  %v5133_v2 = vld [vmem:[%s4946_s25 + $0x30] sm:$0xff]  }
  0x28   : > { %4717 = vrcp.f32 %v1198_v3  ;;  %v1200_v28 = vadd.f32 1.0, %v4694_v22  ;;  %v4696_v10 = vpop.eup %4695  ;;  %v5099_v3 = vld [vmem:[%s4958_s28 + $0x28] sm:$0xff]   ;;  %v5102_v22 = vld [vmem:[%s4946_s25 + $0x70] sm:$0xff]  }
  0x29   : > { %4719 = vrcp.f32 %v1182_v33  ;;  %v4698_v39 = vpop.eup %4697  ;;  %v1206_v34 = vadd.f32 1.0, %v4696_v10  ;;  %v5117_v33 = vld [vmem:[%s4946_s25 + $0x78] sm:$0xff]  }
  0x2a   : > { %4721 = vrcp.f32 %v1200_v28  ;;  %v4700_v46 = vpop.eup %4699  ;;  %v1202_v40 = vadd.f32 1.0, %v4698_v39 }
  0x2b   : > { %4723 = vpow2.f32 %v4001_v50  ;;  %v4702_v28 = vpop.eup %4701  ;;  %v1188_v10 = vadd.f32 1.0, %v4700_v46  ;;  %v5138_v46 = vld [vmem:[%s4958_s28 + $0x30] sm:$0xff]  }
  0x2c   : > { %4725 = vrcp.f32 %v1206_v34  ;;  %v4704_v39 = vpop.eup %4703  ;;  %v1184_v50 = vadd.f32 1.0, %v4702_v28 }
  0x2d   : > { %4727 = vrcp.f32 %v1202_v40  ;;  %v1179_v34 = vadd.f32 1.0, %v4704_v39  ;;  %v4706_v15 = vpop.eup %4705  ;;  %v4300_v39 = vunpack.c.h.bf16 %v5124_v62 }
  0x2e   : > { %4729 = vrcp.f32 %v1188_v10  ;;  %v4708_v28 = vpop.eup %4707  ;;  %v1186_v57 = vadd.f32 1.0, %v4706_v15  ;;  %v5169_v15 = vld [vmem:[%s4935_s22 + $0x38] sm:$0xff]  }
  0x2f   : > { %4731 = vrcp.f32 %v1184_v50  ;;  %v4710_v13 = vpop.eup %4709  ;;  %v1181_v48 = vadd.f32 1.0, %v4708_v28  ;;  %v5140_v50 = vmul.f32 -1.442695, %v4336_v5  ;;  %v5151_v38 = vmul.f32 -1.442695, %v4300_v39  ;;  %6682 = vst [vmem:[#allocation20_spill] sm:$0xff] %v5169_v15 }
  0x30   : > { %4733 = vrcp.f32 %v1179_v34  ;;  %v4712_v40 = vpop.eup %4711  ;;  %v1204_v52 = vadd.f32 1.0, %v4710_v13  ;;  %v5144_v34 = vmul.f32 -1.442695, %v4315_v56  ;;  %v5155_v56 = vld [vmem:[%s4946_s25 + $0x38] sm:$0xff]   ;;  %v6686_v39 = vunpack.c.h.bf16 %v5014_v43 }
  0x31   : > { %4735 = vrcp.f32 %v1186_v57  ;;  %v1195_v42 = vadd.f32 1.0, %v4712_v40  ;;  %v4283_v57 = vunpack.c.l.bf16 %v4990_v29  ;;  %6680 = vst [vmem:[#allocation19_spill] sm:$0xff] %v5155_v56  ;;  %v5159_v40 = vmul.f32 -1.442695, %v4319_v53  ;;  %v5199_v5 = vld [vmem:[%s4958_s28 + $0x38] sm:$0xff]  }
  0x32   : > { %4737 = vrcp.f32 %v1181_v48  ;;  %v6684_v53 = vunpack.c.h.bf16 %v5002_v36  ;;  %6692 = vst [vmem:[#allocation23_spill] sm:$0xff] %v5199_v5  ;;  %v6703_v5 = vunpack.c.l.bf16 %v4986_v27 }
  0x33   : > { %v4714_v10 = vpop.eup %4713  ;;  %4739 = vrcp.f32 %v1204_v52  ;;  %v6681_v52 = vunpack.c.h.bf16 %v4994_v31  ;;  %v5182_v9 = vmul.f32 -1.442695, %v4283_v57 }
  0x34   : > { %v4716_v28 = vpop.eup %4715  ;;  %v1304_v20 = vmul.f32 %v4714_v10, %v4244_v26  ;;  %4741 = vrcp.f32 %v1195_v42 }
  0x35   : > { %v4718_v13 = vpop.eup %4717  ;;  %v1288_v48 = vmul.f32 %v4716_v28, %v4212_v30  ;;  %v6683_v30 = vunpack.c.h.bf16 %v4986_v27  ;;  %4743 = vpow2.f32 %v3994_v7 }
  0x36   : > { %v4720_v47 = vpop.eup %4719  ;;  %v1416_v26 = vadd.f32 %v4372_v35, %v1304_v20  ;;  %v1306_v10 = vmul.f32 %v4718_v13, %v6681_v52  ;;  %v6685_v13 = vunpack.c.h.bf16 %v4997_v32 }
  0x37   : > { %v4722_v62 = vpop.eup %4721  ;;  %v1400_v42 = vadd.f32 %v6683_v30, %v1288_v48  ;;  %v1290_v28 = vmul.f32 %v4720_v47, %v6684_v53  ;;  %v6688_v47 = vunpack.c.h.bf16 %v5005_v37  ;;  %v4304_v53 = vunpack.c.h.bf16 %v5169_v15 }
  0x38   : > { %v4724_v35 = vpop.eup %4723  ;;  %v5176_v20 = vpack.c.bf16 %v1416_v26, %v1416_v26  ;;  %v1418_v52 = vadd.f32 %v6685_v13, %v1306_v10  ;;  %v1308_v29 = vmul.f32 %v4722_v62, %v6686_v39  ;;  %v6690_v62 = vunpack.c.h.bf16 %v5017_v44 }
  0x39   : > { %v4726_v23 = vpop.eup %4725  ;;  %v5184_v48 = vpack.c.bf16 %v1400_v42, %v1400_v42  ;;  %v1402_v7 = vadd.f32 %v6688_v47, %v1290_v28  ;;  %v1197_v30 = vadd.f32 1.0, %v4724_v35  ;;  %v6691_v39 = vunpack.c.h.bf16 %v5022_v49 }
  0x3a   : > { %v4728_v26 = vpop.eup %4727  ;;  %2038 = vrot.lane.b32.xlu0 %v5176_v20, %s4842_s29  ;;  %v5191_v10 = vpack.c.bf16 %v1418_v52, %v1418_v52  ;;  %v1420_v57 = vadd.f32 %v6690_v62, %v1308_v29  ;;  %v1753_v13 = vshrl.u32 %v5176_v20, 16  ;;  %v6694_v47 = vunpack.c.h.bf16 %v5033_v55 }
  0x3b   : > { %6687 = vst [vmem:[#allocation21_spill] sm:$0xff] %v5184_v48  ;;  %v1314_v42 = vmul.f32 %v4726_v23, %v6691_v39  ;;  %v4730_v28 = vpop.eup %4729  ;;  %2006 = vrot.lane.b32.xlu1 %v5184_v48, %s4842_s29  ;;  %v5203_v35 = vpack.c.bf16 %v1402_v7, %v1402_v7  ;;  %v6618_v15 = vshll.u32 %v5176_v20, 16  ;;  %4745 = vrcp.f32 %v1197_v30 }
  0x3c   : > { %6689 = vst [vmem:[#allocation22_spill] sm:$0xff] %v5191_v10  ;;  %v1310_v52 = vmul.f32 %v4728_v26, %v6694_v47  ;;  %v4732_v29 = vpop.eup %4731  ;;  %v6695_v62 = vunpack.c.h.bf16 %v5030_v54  ;;  %v6696_v39 = vunpack.c.h.bf16 %v5042_v60  ;;  %4747 = vpow2.f32 %v5128_v58 }
  0x3d   : > { %6693 = vst [vmem:[#allocation24_spill] sm:$0xff] %v5203_v35  ;;  %v4734_v49 = vpop.eup %4733  ;;  %v5214_v7 = vmul.f32 -1.442695, %v4304_v53  ;;  %v6699_v58 = vunpack.c.h.bf16 %v5053_v6  ;;  %v6700_v53 = vunpack.c.l.bf16 %v4972_v18  ;;  %v6701_v30 = vunpack.c.h.bf16 %v5047_v63 }
  0x3e   : > { %v1426_v23 = vadd.f32 %v6695_v62, %v1314_v42  ;;  %v1296_v56 = vmul.f32 %v4730_v28, %v6696_v39  ;;  %2042 = vrot.lane.b32.xlu0 %v5191_v10, %s4842_s29  ;;  %v5221_v42 = vpack.c.bf16 %v1420_v57, %v1420_v57  ;;  %v6698_v28 = vunpack.c.h.bf16 %v5039_v59  ;;  %v4736_v39 = vpop.eup %4735 }
  0x3f   : > { %v1292_v41 = vmul.f32 %v4732_v29, %v6699_v58  ;;  %v1287_v62 = vmul.f32 %v4734_v49, %v6700_v53  ;;  %2010 = vrot.lane.b32.xlu1 %v5203_v35, %s4842_s29  ;;  %v5237_v57 = vrot.slane %v6618_v15, 5  ;;  %v6702_v29 = vunpack.c.h.bf16 %v5064_v16 }
  0x40   : > { %6697 = vst [vmem:[#allocation25_spill] sm:$0xff] %v5221_v42  ;;  %v1422_v47 = vadd.f32 %v6698_v28, %v1310_v52  ;;  %v5231_v55 = vpack.c.bf16 %v1426_v23, %v1426_v23  ;;  %v1408_v26 = vadd.f32 %v6701_v30, %v1296_v56  ;;  %v2235_v52 = vrot.slane %v1753_v13, 4  ;;  %v4738_v28 = vpop.eup %4737 }
  0x41   : > { %v1294_v58 = vmul.f32 %v4736_v39, %v6702_v29  ;;  %v5241_v18 = vmul.f32 -1.442695, %v4287_v1  ;;  %v5244_v49 = vadd.f32 1.0, %v5059_v11  ;;  %v4740_v53 = vpop.eup %4739  ;;  %v1399_v56 = vadd.f32 %v6703_v5, %v1287_v62 }
  0x42   : > { %v6704_v30 = vunpack.c.l.bf16 %v5002_v36  ;;  %v1769_v59 = vshrl.u32 %v5191_v10, 16  ;;  %v6622_v6 = vshll.u32 %v5191_v10, 16  ;;  %v4742_v16 = vpop.eup %4741  ;;  %2046 = vrot.lane.b32.xlu0 %v5221_v42, %s4842_s29  ;;  %v5255_v1 = vpack.c.bf16 %v1422_v47, %v1422_v47 }
  0x43   : > { %v6706_v11 = vunpack.c.h.bf16 %v5056_v8  ;;  %4749 = vpow2.f32 %v5140_v50  ;;  %2058 = vrot.lane.b32.xlu1 %v5231_v55, %s4842_s29  ;;  %v5263_v36 = vpack.c.bf16 %v1408_v26, %v1408_v26  ;;  %v6707_v5 = vunpack.c.h.bf16 %v5076_v61  ;;  %v4744_v47 = vpop.eup %4743 }
  0x44   : > { %v1289_v15 = vmul.f32 %v4738_v28, %v6704_v30  ;;  %6705 = vst [vmem:[#allocation26_spill] sm:$0xff] %v5255_v1  ;;  %v2236_v28 = vor.u32 %v2235_v52, %v5237_v57  ;;  %4751 = vpow2.f32 %v5144_v34  ;;  %v6708_v29 = vunpack.c.h.bf16 %v5068_v25 }
  0x45   : > { %v1404_v39 = vadd.f32 %v6706_v11, %v1292_v41  ;;  %v1312_v62 = vmul.f32 %v4740_v53, %v6707_v5  ;;  %v6709_v50 = vunpack.c.l.bf16 %v4965_v14  ;;  %4753 = vpow2.f32 %v5151_v38 }
  0x46   : > { %v1406_v41 = vadd.f32 %v6708_v29, %v1294_v58  ;;  %v5275_v26 = vpack.c.bf16 %v1399_v56, %v1399_v56  ;;  %v6710_v23 = vunpack.c.l.bf16 %v5005_v37  ;;  %v5281_v52 = vrot.slane %v6622_v6, 5  ;;  %2050 = vrot.lane.b32.xlu0 %v5255_v1, %s4842_s29 }
  0x47   : > { %v1303_v30 = vmul.f32 %v4742_v16, %v6709_v50  ;;  %v2244_v34 = vrot.slane %v1769_v59, 4  ;;  %v5285_v58 = vpack.c.bf16 %v1404_v39, %v1404_v39  ;;  %v5287_v14 = vrot.slane %v1753_v13, 7  ;;  %2022 = vrot.lane.b32.xlu1 %v5263_v36, %s4842_s29 }
  0x48   : > { %v1401_v53 = vadd.f32 %v6710_v23, %v1289_v15  ;;  %v1625_v16 = vshrl.u32 %v5184_v48, 16  ;;  %v6712_v15 = vunpack.c.h.bf16 %v5079_v0  ;;  %v2237_v56 = vrot.slane %v2236_v28, 4  ;;  %v4746_v29 = vpop.eup %4745 }
  0x49   : > { %6711 = vst [vmem:[#allocation27_spill] sm:$0xff] %v5285_v58  ;;  %v5296_v5 = vrot.slane %v1769_v59, 7  ;;  %v5299_v13 = vpack.c.bf16 %v1406_v41, %v1406_v41  ;;  %v6714_v50 = vunpack.c.l.bf16 %v4978_v21  ;;  %v1190_v6 = vadd.f32 1.0, %v4744_v47  ;;  %v4748_v27 = vpop.eup %4747 }
  0x4a   : > { %v1424_v23 = vadd.f32 %v6712_v15, %v1312_v62  ;;  %v5303_v38 = vpack.c.bf16 %v1401_v53, %v1401_v53  ;;  %v2245_v37 = vor.u32 %v2244_v34, %v5281_v52  ;;  %v6715_v0 = vunpack.c.l.bf16 %v4994_v31  ;;  %2014 = vrot.lane.b32.xlu0 %v5285_v58, %s4842_s29 }
  0x4b   : > { %6713 = vst [vmem:[#allocation28_spill] sm:$0xff] %v5296_v5  ;;  %v1415_v11 = vadd.f32 %v6714_v50, %v1303_v30  ;;  %v1641_v59 = vshrl.u32 %v5203_v35, 16  ;;  %v6716_v28 = vshll.u32 %v5184_v48, 16  ;;  %v2163_v21 = vrot.slane %v1625_v16, 4  ;;  %2004 = vrot.lane.b32.xlu1 %v5275_v26, %s4842_s29 }
  0x4c   : > { %v1305_v62 = vmul.f32 %v4746_v29, %v6715_v0  ;;  %4755 = vrcp.f32 %v1190_v6  ;;  %v6625_v47 = vshll.u32 %v5203_v35, 16  ;;  %v6717_v30 = vshrl.u32 %v5275_v26, 16 }
  0x4d   : > { %v5313_v41 = vrot.slane %v6716_v28, 5  ;;  %v5322_v0 = vpack.c.bf16 %v1424_v23, %v1424_v23  ;;  %v6719_v53 = vunpack.c.l.bf16 %v4997_v32  ;;  %v5326_v15 = vrot.slane %v1625_v16, 7 }
  0x4e   : > { %v5320_v31 = vrot.slane %v6717_v30, 7  ;;  %v4191_v29 = vpack.c.bf16 %v1415_v11, %v1415_v11  ;;  %v1208_v50 = vadd.f32 1.0, %v4748_v27  ;;  %v1785_v6 = vshrl.u32 %v5221_v42, 16  ;;  %2018 = vrot.lane.b32.xlu0 %v5299_v13, %s4842_s29 }
  0x4f   : > { %v1417_v34 = vadd.f32 %v6719_v53, %v1305_v62  ;;  %6720 = vst [vmem:[#allocation30_spill] sm:$0xff] %v5326_v15  ;;  %v5332_v39 = vrot.slane %v6625_v47, 5  ;;  %v2172_v61 = vrot.slane %v1641_v59, 4  ;;  %v1801_v30 = vshrl.u32 %v5255_v1, 16  ;;  %2008 = vrot.lane.b32.xlu1 %v5303_v38, %s4842_s29 }
  0x50   : > { %6718 = vst [vmem:[#allocation29_spill] sm:$0xff] %v5320_v31  ;;  %v1633_v32 = vshrl.u32 %v5303_v38, 16  ;;  %v1636_v27 = vshll.u32 %v5303_v38, 16  ;;  %v2164_v11 = vor.u32 %v2163_v21, %v5313_v41  ;;  %4757 = vrcp.f32 %v1208_v50  ;;  %v5341_v16 = vpop.eup %4749 }
  0x51   : > { %v6721_v62 = vshll.u32 %v5275_v26, 16  ;;  %v1745_v47 = vshrl.u32 %v4191_v29, 16  ;;  %v2246_v23 = vrot.slane %v2245_v37, 4  ;;  %v4193_v28 = vpack.c.bf16 %v1417_v34, %v1417_v34  ;;  %v5350_v25 = vpop.eup %4751 }
  0x52   : > { %v6723_v8 = vshll.u32 %v5221_v42, 16  ;;  %v2253_v21 = vrot.slane %v1785_v6, 4  ;;  %v6725_v50 = vshll.u32 %v5255_v1, 16  ;;  %v2262_v5 = vrot.slane %v1801_v30, 4  ;;  %2054 = vrot.lane.b32.xlu0 %v5322_v0, %s4842_s29 }
  0x53   : > { %v5346_v53 = vor.u32 %v6721_v62, %v5320_v31  ;;  %v4754_v62 = vpop.eup %4753  ;;  %v5362_v63 = vrot.slane %v1745_v47, 7  ;;  %v1748_v38 = vshll.u32 %v4191_v29, 16  ;;  %v2173_v37 = vor.u32 %v2172_v61, %v5332_v39  ;;  %2348 = vrot.lane.b32.xlu1 %v2237_v56, %s4843_s30 }
  0x54   : > { %v5354_v35 = vrot.slane %v6723_v8, 5  ;;  %v5358_v10 = vrot.slane %v6725_v50, 5  ;;  %v1761_v34 = vshrl.u32 %v4193_v28, 16  ;;  %v2165_v8 = vrot.slane %v2164_v11, 4 }
  0x55   : > { %6722 = vst [vmem:[#allocation31_spill] sm:$0xff] %v5346_v53  ;;  %v5360_v53 = vrot.slane %v1633_v32, 7  ;;  %v1657_v42 = vshrl.u32 %v5285_v58, 16  ;;  %v5374_v60 = vor.u32 %v1748_v38, %v5362_v63  ;;  %v1764_v54 = vshll.u32 %v4193_v28, 16 }
  0x56   : > { %6724 = vst [vmem:[#allocation32_spill] sm:$0xff] %v5354_v35  ;;  %6726 = vst [vmem:[#allocation33_spill] sm:$0xff] %v5358_v10  ;;  %v5376_v61 = vrot.slane %v1641_v59, 7  ;;  %v5378_v48 = vrot.slane %v1761_v34, 7  ;;  %v5380_v15 = vrot.slane %v1785_v6, 7  ;;  %v2254_v11 = vor.u32 %v2253_v21, %v5354_v35  ;;  %2036 = vrot.lane.b32.xlu0 %v4191_v29, %s4842_s29 }
  0x57   : > { %6727 = vst [vmem:[#allocation34_spill] sm:$0xff] %v5360_v53  ;;  %v5370_v50 = vor.u32 %v1636_v27, %v5360_v53  ;;  %6729 = vst [vmem:[#allocation36_spill] sm:$0xff] %v5374_v60  ;;  %v2263_v1 = vor.u32 %v2262_v5, %v5358_v10  ;;  %v2174_v31 = vrot.slane %v2173_v37, 4  ;;  %v5384_v53 = vrot.slane %v1801_v30, 7  ;;  %2352 = vrot.lane.b32.xlu1 %v2246_v23, %s4843_s30 }
  0x58   : > { %6730 = vst [vmem:[#allocation37_spill] sm:$0xff] %v5376_v61  ;;  %6731 = vst [vmem:[#allocation38_spill] sm:$0xff] %v5380_v15  ;;  %v2229_v56 = vrot.slane %v1745_v47, 4  ;;  %v5388_v59 = vor.u32 %v1764_v54, %v5378_v48  ;;  %v5390_v60 = vrot.slane %v1657_v42, 7  ;;  %v6735_v6 = vshll.u32 %v5285_v58, 16 }
  0x59   : > { %6728 = vst [vmem:[#allocation35_spill] sm:$0xff] %v5370_v50  ;;  %6732 = vst [vmem:[#allocation39_spill] sm:$0xff] %v5384_v53  ;;  %v2230_v50 = vrot.slane %v1748_v38, 5  ;;  %v2181_v21 = vrot.slane %v1657_v42, 4  ;;  %v4756_v5 = vpop.eup %4755  ;;  %v1673_v30 = vshrl.u32 %v5299_v13, 16  ;;  %v2238_v38 = vrot.slane %v1761_v34, 4 }
  0x5a   : > { %6733 = vst [vmem:[#allocation40_spill] sm:$0xff] %v5388_v59  ;;  %6734 = vst [vmem:[#allocation41_spill] sm:$0xff] %v5390_v60  ;;  %v5394_v15 = vrot.slane %v6735_v6, 5  ;;  %v2239_v37 = vrot.slane %v1764_v54, 5  ;;  %v6736_v29 = vunpack.c.h.bf16 %v5090_v45  ;;  %v2255_v59 = vrot.slane %v2254_v11, 4  ;;  %2040 = vrot.lane.b32.xlu0 %v4193_v28, %s4842_s29 }
  0x5b   : > { %v2264_v10 = vrot.slane %v2263_v1, 4  ;;  %v6647_v60 = vshll.u32 %v5322_v0, 16  ;;  %v2231_v58 = vor.u32 %v2230_v50, %v2229_v56  ;;  %v1817_v6 = vshrl.u32 %v5322_v0, 16  ;;  %2316 = vrot.lane.b32.xlu1 %v2165_v8, %s4843_s30 }
  0x5c   : > { %v1298_v53 = vmul.f32 %v4756_v5, %v6736_v29  ;;  %v2166_v42 = vrot.slane %v1633_v32, 4  ;;  %v2167_v61 = vrot.slane %v1636_v27, 5  ;;  %v6737_v23 = vunpack.c.h.bf16 %v5099_v3 }
  0x5d   : > { %v2182_v34 = vor.u32 %v2181_v21, %v5394_v15  ;;  %v6738_v54 = vshrl.u32 %v5275_v26, 16  ;;  %v6739_v11 = vshll.u32 %v5275_v26, 16  ;;  %v4758_v5 = vpop.eup %4757  ;;  %v6740_v50 = vshll.u32 %v5299_v13, 16 }
  0x5e   : > { %v1410_v35 = vadd.f32 %v6737_v23, %v1298_v53  ;;  %v2190_v27 = vrot.slane %v1673_v30, 4  ;;  %v2240_v28 = vor.u32 %v2239_v37, %v2238_v38  ;;  %v1210_v56 = vadd.f32 1.0, %v5341_v16 }
  0x5f   : > { %v2157_v47 = vrot.slane %v6738_v54, 4  ;;  %v2158_v1 = vrot.slane %v6739_v11, 5  ;;  %v5414_v32 = vrot.slane %v6740_v50, 5  ;;  %v6741_v21 = vunpack.c.h.bf16 %v5102_v22  ;;  %2320 = vrot.lane.b32.xlu1 %v2174_v31, %s4843_s30 }
  0x60   : > { %v5417_v53 = vpack.c.bf16 %v1410_v35, %v1410_v35  ;;  %v5423_v26 = vrot.slane %v6647_v60, 5  ;;  %v1199_v23 = vadd.f32 1.0, %v5350_v25  ;;  %v2271_v8 = vrot.slane %v1817_v6, 4 }
  0x61   : > { %v1316_v29 = vmul.f32 %v4758_v5, %v6741_v21  ;;  %v2168_v54 = vor.u32 %v2167_v61, %v2166_v42  ;;  %4759 = vrcp.f32 %v1210_v56  ;;  %v1192_v11 = vadd.f32 1.0, %v4754_v62 }
  0x62   : > { %2026 = vrot.lane.b32.xlu0 %v5417_v53, %s4842_s29  ;;  %v6742_v16 = vunpack.c.h.bf16 %v5112_v12  ;;  %v2159_v38 = vor.u32 %v2158_v1, %v2157_v47  ;;  %4761 = vrcp.f32 %v1199_v23  ;;  %v1833_v37 = vshrl.u32 %v5231_v55, 16 }
  0x63   : > { %v2232_v5 = vrot.slane %v2231_v58, 4  ;;  %v2191_v50 = vor.u32 %v2190_v27, %v5414_v32  ;;  %4763 = vrcp.f32 %v1192_v11  ;;  %v6649_v25 = vshll.u32 %v5231_v55, 16  ;;  %2356 = vrot.lane.b32.xlu1 %v2255_v59, %s4843_s30 }
  0x64   : > { %v1428_v35 = vadd.f32 %v6742_v16, %v1316_v29  ;;  %v5442_v47 = vrot.slane %v2240_v28, 4  ;;  %v1689_v42 = vshrl.u32 %v5263_v36, 16  ;;  %v6648_v31 = vshll.u32 %v5263_v36, 16 }
  0x65   : > { %v2183_v58 = vrot.slane %v2182_v34, 4  ;;  %v5446_v1 = vrot.slane %v1673_v30, 7  ;;  %v2272_v27 = vor.u32 %v2271_v8, %v5423_v26  ;;  %v5449_v56 = vrot.slane %v2168_v54, 4 }
  0x66   : > { %v5434_v61 = vpack.c.bf16 %v1428_v35, %v1428_v35  ;;  %v5453_v21 = vrot.slane %v2159_v38, 4  ;;  %v5457_v28 = vrot.slane %v6649_v25, 5  ;;  %v2280_v29 = vrot.slane %v1833_v37, 4  ;;  %v6770_v25 = vld [vmem:[#allocation17_spill] sm:$0xff] }
  0x67   : > { %4765 = vpow2.f32 %v5159_v40  ;;  %v2234_v30 = vsel %vm5438_vm2, %v2232_v5, %v5237_v57  ;;  %v2192_v34 = vrot.slane %v2191_v50, 4  ;;  %v5464_v23 = vrot.slane %v1817_v6, 7  ;;  %2324 = vrot.lane.b32.xlu1 %v2183_v58, %s4843_s30 }
  0x68   : > { %6743 = vst [vmem:[#allocation42_spill] sm:$0xff] %v5434_v61  ;;  %2062 = vrot.lane.b32.xlu0 %v5434_v61, %s4842_s29  ;;  %4767 = vpow2.f32 %v5182_v9  ;;  %v2243_v8 = vsel %vm5438_vm2, %v5442_v47, %v5281_v52  ;;  %v5473_v54 = vrot.slane %v6648_v31, 5  ;;  %v2199_v40 = vrot.slane %v1689_v42, 4 }
  0x69   : > { %4769 = vpow2.f32 %v5214_v7  ;;  %v2273_v59 = vrot.slane %v2272_v27, 4  ;;  %v1705_v57 = vshrl.u32 %v5417_v53, 16  ;;  %v6646_v6 = vshll.u32 %v5417_v53, 16 }
  0x6a   : > { %4771 = vpow2.f32 %v5241_v18  ;;  %v2171_v9 = vsel %vm5438_vm2, %v5449_v56, %v5332_v39  ;;  %v2162_v52 = vsel %vm5438_vm2, %v5453_v21, %v5313_v41  ;;  %v2281_v7 = vor.u32 %v2280_v29, %v5457_v28 }
  0x6b   : > { %4773 = vrcp.f32 %v5244_v49  ;;  %v5491_v11 = vrot.slane %v1833_v37, 7  ;;  %v5493_v18 = vrot.slane %v1689_v42, 7  ;;  %v4327_v35 = vunpack.c.l.bf16 %v4969_v17  ;;  %2328 = vrot.lane.b32.xlu1 %v2192_v34, %s4843_s30 }
  0x6c   : > { %2360 = vrot.lane.b32.xlu0 %v2264_v10, %s4843_s30  ;;  %v6746_v10 = vunpack.c.l.bf16 %v5025_v51  ;;  %v2200_v38 = vor.u32 %v2199_v40, %v5473_v54  ;;  %v1849_v5 = vshrl.u32 %v5434_v61, 16  ;;  %v6644_v41 = vshll.u32 %v5434_v61, 16  ;;  %v6786_v61 = vld [vmem:[#allocation18_spill] sm:$0xff] }
  0x6d   : > { %v4291_v50 = vunpack.c.l.bf16 %v4982_v24  ;;  %v5504_v49 = vrot.slane %v6646_v6, 5  ;;  %v5506_v37 = vrot.slane %v1705_v57, 4  ;;  %v4009_v47 = vmul.f32 -1.442695, %v4327_v35 }
  0x6e   : > { %v4007_v16 = vmul.f32 -1.442695, %v6746_v10  ;;  %v4760_v51 = vpop.eup %4759  ;;  %v5509_v17 = vrot.slane %v2281_v7, 4  ;;  %v5511_v42 = vrot.slane %v1705_v57, 7  ;;  %v4295_v27 = vunpack.c.l.bf16 %v5084_v19 }
  0x6f   : > { %v3991_v58 = vmul.f32 -1.442695, %v4291_v50  ;;  %v4762_v21 = vpop.eup %4761  ;;  %v6747_v24 = vunpack.c.h.bf16 %v5117_v33  ;;  %v6748_v10 = vunpack.c.l.bf16 %v5014_v43  ;;  %v5519_v7 = vrot.slane %v2200_v38, 4  ;;  %2364 = vrot.lane.b32.xlu1 %v2273_v59, %s4843_s30 }
  0x70   : > { %4775 = vpow2.f32 %v4007_v16  ;;  %2346 = vrot.lane.b32.xlu0 %v2234_v30, %s4843_s30  ;;  %v4764_v40 = vpop.eup %4763  ;;  %v3993_v57 = vmul.f32 -1.442695, %v4295_v27  ;;  %v6749_v16 = vunpack.c.h.bf16 %v5120_v4  ;;  %v6750_v35 = vunpack.c.h.bf16 %v5133_v2 }
  0x71   : > { %v1318_v29 = vmul.f32 %v4760_v51, %v6747_v24  ;;  %4777 = vpow2.f32 %v4009_v47  ;;  %v1307_v30 = vmul.f32 %v4762_v21, %v6748_v10  ;;  %v2209_v50 = vor.u32 %v5506_v37, %v5504_v49 }
  0x72   : > { %4779 = vpow2.f32 %v3991_v58  ;;  %v1300_v34 = vmul.f32 %v4764_v40, %v6750_v35  ;;  %v1751_v43 = vrot.slane %v5362_v63, 4  ;;  %v6753_v38 = vunpack.c.l.bf16 %v5017_v44  ;;  %v6759_v35 = vld [vmem:[#allocation30_spill] sm:$0xff] }
  0x73   : > { %v1430_v19 = vadd.f32 %v6749_v16, %v1318_v29  ;;  %4781 = vpow2.f32 %v3993_v57  ;;  %v6754_v58 = vshll.u32 %v5176_v20, 16  ;;  %v6756_v24 = vunpack.c.h.bf16 %v5138_v46  ;;  %2318 = vrot.lane.b32.xlu1 %v2171_v9, %s4843_s30 }
  0x74   : > { %2350 = vrot.lane.b32.xlu0 %v2243_v8, %s4843_s30  ;;  %v1419_v51 = vadd.f32 %v6753_v38, %v1307_v30  ;;  %v4766_v21 = vpop.eup %4765  ;;  %v5546_v63 = vrot.slane %v6644_v41, 5  ;;  %v2289_v44 = vrot.slane %v1849_v5, 4  ;;  %v5580_v9 = vrot.slane %v2209_v50, 4 }
  0x75   : > { %v1758_v27 = vor.u32 %v6754_v58, %v5287_v14  ;;  %v5540_v37 = vpack.c.bf16 %v1430_v19, %v1430_v19  ;;  %v1412_v29 = vadd.f32 %v6756_v24, %v1300_v34  ;;  %v4768_v8 = vpop.eup %4767  ;;  %v1201_v10 = vadd.f32 1.0, %v4766_v21  ;;  %v6758_v14 = vld [vmem:[#allocation29_spill] sm:$0xff] }
  0x76   : > { %6757 = vst [vmem:[#allocation44_spill] sm:$0xff] %v5546_v63  ;;  %v5548_v40 = vpack.c.bf16 %v1419_v51, %v1419_v51  ;;  %v1623_v30 = vrot.slane %v6758_v14, 4  ;;  %v4770_v59 = vpop.eup %4769  ;;  %v1183_v57 = vadd.f32 1.0, %v4768_v8  ;;  %v6760_v34 = vld [vmem:[#allocation21_spill] sm:$0xff]  ;;  %v6763_v14 = vld [vmem:[#allocation4_spill] sm:$0xff]  ;;  %v1767_v31 = vrot.slane %v5378_v48, 4 }
  0x77   : > { %6755 = vst [vmem:[#allocation43_spill] sm:$0xff] %v5540_v37  ;;  %v1759_v20 = vsel %vm5528_vm5, %v1751_v43, %v1758_v27  ;;  %v1865_v16 = vshrl.u32 %v5540_v37, 16  ;;  %v6645_v19 = vshll.u32 %v5540_v37, 16  ;;  %v6761_v38 = vshll.u32 %v6760_v34, 16  ;;  %v4772_v51 = vpop.eup %4771  ;;  %2066 = vrot.lane.b32.xlu1 %v5540_v37, %s4842_s29  ;;  %v6782_v48 = vld [vmem:[#allocation24_spill] sm:$0xff]  ;;  %v6797_v37 = vld [vmem:[#allocation38_spill] sm:$0xff] }
  0x78   : > { %1967 = vst.msk [vmem:[#allocation2 + $0x4c] sm:$0xf] %vm1924_vm6, %v1759_v20  ;;  %2314 = vrot.lane.b32.xlu0 %v2162_v52, %s4843_s30  ;;  %v1777_v21 = vshrl.u32 %v5548_v40, 16  ;;  %v1780_v43 = vshll.u32 %v5548_v40, 16  ;;  %4783 = vrcp.f32 %v1201_v10  ;;  %v1194_v27 = vadd.f32 1.0, %v4770_v59  ;;  %v4774_v24 = vpop.eup %4773  ;;  %v6765_v10 = vld [vmem:[#allocation3_spill] sm:$0xff] }
  0x79   : > { %v1630_v58 = vor.u32 %v6761_v38, %v6759_v35  ;;  %4785 = vrcp.f32 %v1183_v57  ;;  %v1185_v8 = vadd.f32 1.0, %v4772_v51  ;;  %v5568_v20 = vrot.slane %v1849_v5, 7 }
  0x7a   : > { %v5571_v35 = vpack.c.bf16 %v1412_v29, %v1412_v29  ;;  %v2247_v34 = vrot.slane %v1777_v21, 4  ;;  %v2248_v38 = vrot.slane %v1780_v43, 5  ;;  %4787 = vrcp.f32 %v1194_v27  ;;  %v6767_v29 = vld [vmem:[#allocation5_spill] sm:$0xff] }
  0x7b   : > { %6762 = vst [vmem:[#allocation29_spill] sm:$0xff] %v5568_v20  ;;  %4789 = vrcp.f32 %v1185_v8  ;;  %v1285_v59 = vmul.f32 %v4774_v24, %v6765_v10  ;;  %v5576_v41 = vrot.slane %v6645_v19, 5  ;;  %v2298_v39 = vrot.slane %v1865_v16, 4  ;;  %v6787_v20 = vld [vmem:[#allocation10_spill] sm:$0xff] }
  0x7c   : > { %6764 = vst [vmem:[#allocation30_spill] sm:$0xff] %v5571_v35  ;;  %2044 = vrot.lane.b32.xlu0 %v5548_v40, %s4842_s29  ;;  %v2290_v5 = vor.u32 %v2289_v44, %v5546_v63  ;;  %v1631_v51 = vsel %vm5528_vm5, %v1623_v30, %v1630_v58  ;;  %v2249_v27 = vor.u32 %v2248_v38, %v2247_v34  ;;  %v1721_v8 = vshrl.u32 %v5571_v35, 16  ;;  %v6768_v40 = vld [vmem:[#allocation8_spill] sm:$0xff]  ;;  %v6769_v44 = vld [vmem:[#allocation9_spill] sm:$0xff] }
  0x7d   : > { %6766 = vst [vmem:[#allocation21_spill] sm:$0xff] %v5576_v41  ;;  %v4776_v56 = vpop.eup %4775  ;;  %v6650_v19 = vshll.u32 %v5571_v35, 16  ;;  %1935 = vst.msk [vmem:[#allocation2 + $0xc] sm:$0xf] %vm1924_vm6, %v1631_v51  ;;  %v4335_v30 = vunpack.c.l.bf16 %v6770_v25  ;;  %v1397_v57 = vadd.f32 %v1285_v59, %v6765_v10  ;;  %v2299_v34 = vor.u32 %v2298_v39, %v5576_v41  ;;  %2030 = vrot.lane.b32.xlu1 %v5571_v35, %s4842_s29  ;;  %v6776_v41 = vld [vmem:[#allocation28_spill] sm:$0xff] }
  0x7e   : > { %v1203_v24 = vadd.f32 1.0, %v4776_v56  ;;  %v4778_v50 = vpop.eup %4777  ;;  %v1779_v56 = vrot.slane %v1777_v21, 7  ;;  %v5599_v51 = vrot.slane %v2290_v5, 4  ;;  %v5604_v25 = vrot.slane %v2249_v27, 4  ;;  %v6777_v21 = vld [vmem:[#allocation22_spill] sm:$0xff] }
  0x7f   : > { %v4780_v58 = vpop.eup %4779  ;;  %v1205_v38 = vadd.f32 1.0, %v4778_v50  ;;  %v5608_v10 = vrot.slane %v6650_v19, 5  ;;  %v5610_v59 = vrot.slane %v1721_v8, 4  ;;  %v5615_v39 = vrot.slane %v1865_v16, 7  ;;  %v6775_v19 = vld [vmem:[#allocation16_spill] sm:$0xff] }
  0x80   : > { %4791 = vrcp.f32 %v1203_v24  ;;  %2368 = vrot.lane.b32.xlu0 %v5509_v17, %s4843_s30  ;;  %v1187_v6 = vadd.f32 1.0, %v4780_v58  ;;  %v4782_v52 = vpop.eup %4781  ;;  %v5613_v17 = vor.u32 %v1780_v43, %v1779_v56  ;;  %v5617_v5 = vrot.slane %v1721_v8, 7  ;;  %v6779_v8 = vld [vmem:[#allocation32_spill] sm:$0xff] }
  0x81   : > { %6771 = vst [vmem:[#allocation4_spill] sm:$0xff] %v5608_v10  ;;  %6773 = vst [vmem:[#allocation5_spill] sm:$0xff] %v5615_v39  ;;  %4793 = vrcp.f32 %v1205_v38  ;;  %v5619_v24 = vpack.c.bf16 %v1397_v57, %v1397_v57  ;;  %v5621_v50 = vrot.slane %v2299_v34, 4  ;;  %v4013_v27 = vmul.f32 -1.442695, %v4335_v30  ;;  %2332 = vrot.lane.b32.xlu1 %v5519_v7, %s4843_s30  ;;  %v6781_v30 = vld [vmem:[#allocation37_spill] sm:$0xff] }
  0x82   : > { %6772 = vst [vmem:[#allocation3_spill] sm:$0xff] %v5613_v17  ;;  %6774 = vst [vmem:[#allocation8_spill] sm:$0xff] %v5617_v5  ;;  %4795 = vrcp.f32 %v1187_v6  ;;  %v1189_v58 = vadd.f32 1.0, %v4782_v52  ;;  %v4331_v60 = vunpack.c.l.bf16 %v6775_v19  ;;  %v6778_v43 = vshll.u32 %v6777_v21, 16  ;;  %v6780_v52 = vld [vmem:[#allocation34_spill] sm:$0xff] }
  0x83   : > { %v2252_v57 = vsel %vm5438_vm2, %v5604_v25, %v6779_v8  ;;  %v2218_v6 = vor.u32 %v5610_v59, %v5608_v10  ;;  %v1639_v19 = vrot.slane %v6780_v52, 4  ;;  %v6783_v34 = vshll.u32 %v6782_v48, 16  ;;  %v6789_v48 = vld [vmem:[#allocation7_spill] sm:$0xff] }
  0x84   : > { %v1774_v63 = vor.u32 %v6778_v43, %v6776_v41  ;;  %v6784_v41 = vld [vmem:[#allocation6_spill] sm:$0xff]  ;;  %v1601_v7 = vshrl.u32 %v5619_v24, 16  ;;  %v4299_v25 = vunpack.c.l.bf16 %v6786_v61  ;;  %v6788_v59 = vunpack.c.l.bf16 %v6787_v20  ;;  %v6793_v20 = vld [vmem:[#allocation11_spill] sm:$0xff] }
  0x85   : > { %v4784_v16 = vpop.eup %4783  ;;  %v1646_v38 = vor.u32 %v6783_v34, %v6781_v30  ;;  %v6785_v43 = vunpack.c.l.bf16 %v6784_v41  ;;  %4797 = vpow2.f32 %v4013_v27  ;;  %v6790_v34 = vunpack.c.l.bf16 %v6789_v48  ;;  %v6795_v27 = vld [vmem:[#allocation12_spill] sm:$0xff] }
  0x86   : > { %v4786_v21 = vpop.eup %4785  ;;  %v1775_v5 = vsel %vm5528_vm5, %v1767_v31, %v1774_v63  ;;  %4799 = vrcp.f32 %v1189_v58  ;;  %v4011_v61 = vmul.f32 -1.442695, %v4331_v60  ;;  %v6796_v52 = vunpack.c.l.bf16 %v6795_v27 }
  0x87   : > { %v1309_v35 = vmul.f32 %v4784_v16, %v6785_v43  ;;  %v4788_v8 = vpop.eup %4787  ;;  %v1291_v10 = vmul.f32 %v4786_v21, %v6788_v59  ;;  %1971 = vst.msk [vmem:[#allocation2 + $0x54] sm:$0xf] %vm1924_vm6, %v1775_v5  ;;  %v1647_v30 = vsel %vm5528_vm5, %v1639_v19, %v1646_v38  ;;  %v6791_v43 = vld [vmem:[#allocation19_spill] sm:$0xff]  ;;  %v6794_v21 = vunpack.c.l.bf16 %v6793_v20  ;;  %v6798_v19 = vld [vmem:[#allocation25_spill] sm:$0xff] }
  0x88   : > { %v4790_v16 = vpop.eup %4789  ;;  %v6792_v31 = vunpack.c.h.bf16 %v6791_v43  ;;  %1939 = vst.msk [vmem:[#allocation2 + $0x14] sm:$0xf] %vm1924_vm6, %v1647_v30  ;;  %v1783_v17 = vrot.slane %v1779_v56, 4  ;;  %v6799_v38 = vshll.u32 %v6798_v19, 16  ;;  %v2148_v58 = vrot.slane %v1601_v7, 4  ;;  %v6802_v30 = vld [vmem:[#allocation13_spill] sm:$0xff] }
  0x89   : > { %v1421_v41 = vadd.f32 %v6790_v34, %v1309_v35  ;;  %v1403_v59 = vadd.f32 %v6794_v21, %v1291_v10  ;;  %v1293_v5 = vmul.f32 %v4790_v16, %v6796_v52  ;;  %v6800_v35 = vld [vmem:[#allocation23_spill] sm:$0xff]  ;;  %v3995_v60 = vmul.f32 -1.442695, %v4299_v25 }
  0x8a   : > { %v1302_v63 = vmul.f32 %v4788_v8, %v6792_v31  ;;  %v1790_v39 = vor.u32 %v6799_v38, %v6797_v37  ;;  %v6801_v34 = vunpack.c.h.bf16 %v6800_v35  ;;  %v6803_v31 = vunpack.c.l.bf16 %v6802_v30 }
  0x8b   : > { %v5664_v48 = vpack.c.bf16 %v1421_v41, %v1421_v41  ;;  %v5668_v43 = vpack.c.bf16 %v1403_v59, %v1403_v59  ;;  %v6804_v20 = vshll.u32 %v5619_v24, 16  ;;  %4801 = vpow2.f32 %v4011_v61 }
  0x8c   : > { %v1414_v8 = vadd.f32 %v6801_v34, %v1302_v63  ;;  %v1405_v10 = vadd.f32 %v6803_v31, %v1293_v5  ;;  %v1791_v56 = vsel %vm5528_vm5, %v1783_v17, %v1790_v39  ;;  %v6805_v39 = vld [vmem:[#allocation14_spill] sm:$0xff]  ;;  %v5694_v38 = vrot.slane %v2218_v6, 4 }
  0x8d   : > { %v5674_v52 = vrot.slane %v6804_v20, 5  ;;  %v4792_v37 = vpop.eup %4791  ;;  %v1793_v16 = vshrl.u32 %v5664_v48, 16  ;;  %v6659_v41 = vshll.u32 %v5664_v48, 16  ;;  %2048 = vrot.lane.b32.xlu0 %v5664_v48, %s4842_s29  ;;  %1975 = vst.msk [vmem:[#allocation2 + $0x5c] sm:$0xf] %vm1924_vm6, %v1791_v56  ;;  %v1649_v63 = vshrl.u32 %v5668_v43, 16  ;;  %2012 = vrot.lane.b32.xlu1 %v5668_v43, %s4842_s29 }
  0x8e   : > { %v6657_v21 = vshll.u32 %v5668_v43, 16  ;;  %v5688_v17 = vpack.c.bf16 %v1405_v10, %v1405_v10  ;;  %v6806_v59 = vunpack.c.l.bf16 %v6805_v39  ;;  %4803 = vpow2.f32 %v3995_v60  ;;  %v4794_v61 = vpop.eup %4793  ;;  %v6807_v60 = vld [vmem:[#allocation15_spill] sm:$0xff] }
  0x8f   : > { %v2256_v5 = vrot.slane %v1793_v16, 4  ;;  %v2257_v19 = vrot.slane %v6659_v41, 5  ;;  %v2175_v30 = vrot.slane %v1649_v63, 4  ;;  %v2150_v31 = vor.u32 %v5674_v52, %v2148_v58  ;;  %v4796_v10 = vpop.eup %4795 }
  0x90   : > { %v1311_v27 = vmul.f32 %v4792_v37, %v6806_v59  ;;  %v6658_v35 = vshrl.u32 %v5688_v17, 16  ;;  %v6660_v34 = vshll.u32 %v5688_v17, 16  ;;  %v5702_v20 = vpack.c.bf16 %v1414_v8, %v1414_v8 }
  0x91   : > { %2354 = vrot.lane.b32.xlu0 %v2252_v57, %s4843_s30  ;;  %v2258_v56 = vor.u32 %v2257_v19, %v2256_v5  ;;  %v2176_v6 = vrot.slane %v6657_v21, 5  ;;  %v6808_v37 = vunpack.c.l.bf16 %v6807_v60  ;;  %2336 = vrot.lane.b32.xlu1 %v5580_v9, %s4843_s30  ;;  %v5714_v25 = vrot.slane %v1601_v7, 7 }
  0x92   : > { %v2184_v59 = vrot.slane %v6658_v35, 4  ;;  %v2185_v58 = vrot.slane %v6660_v34, 5  ;;  %v6809_v60 = vunpack.c.l.bf16 %v6763_v14  ;;  %v6810_v9 = vunpack.c.l.bf16 %v6768_v40  ;;  %v4798_v34 = vpop.eup %4797  ;;  %v6811_v40 = vld [vmem:[#allocation33_spill] sm:$0xff] }
  0x93   : > { %v1423_v39 = vadd.f32 %v6808_v37, %v1311_v27  ;;  %v2259_v8 = vrot.slane %v2258_v56, 4  ;;  %v2177_v5 = vor.u32 %v2176_v6, %v2175_v30  ;;  %v5729_v6 = vrot.slane %v2150_v31, 4  ;;  %v4800_v14 = vpop.eup %4799 }
  0x94   : > { %v1313_v27 = vmul.f32 %v4794_v61, %v6809_v60  ;;  %v2186_v37 = vor.u32 %v2185_v58, %v2184_v59  ;;  %v1295_v21 = vmul.f32 %v4796_v10, %v6810_v9  ;;  %v6813_v58 = vunpack.c.l.bf16 %v6769_v44 }
  0x95   : > { %v5717_v19 = vpack.c.bf16 %v1423_v39, %v1423_v39  ;;  %2034 = vrot.lane.b32.xlu0 %v5702_v20, %s4842_s29  ;;  %v2178_v7 = vrot.slane %v2177_v5, 4  ;;  %2016 = vrot.lane.b32.xlu1 %v5688_v17, %s4842_s29  ;;  %v2261_v61 = vsel %vm5438_vm2, %v2259_v8, %v6811_v40  ;;  %v6812_v39 = vunpack.c.l.bf16 %v6767_v29 }
  0x96   : > { %v2187_v10 = vrot.slane %v2186_v37, 4  ;;  %v1407_v5 = vadd.f32 %v6813_v58, %v1295_v21  ;;  %v5740_v60 = vrot.slane %v1793_v16, 7  ;;  %v6662_v31 = vshrl.u32 %v5702_v20, 16 }
  0x97   : > { %v1809_v30 = vshrl.u32 %v5717_v19, 16  ;;  %v1812_v56 = vshll.u32 %v5717_v19, 16  ;;  %v1425_v59 = vadd.f32 %v6812_v39, %v1313_v27  ;;  %v6814_v41 = vshll.u32 %v5231_v55, 16 }
  0x98   : > { %v2189_v8 = vsel %vm5438_vm2, %v2187_v10, %v5414_v32  ;;  %v5752_v29 = vpack.c.bf16 %v1407_v5, %v1407_v5  ;;  %v6661_v44 = vshll.u32 %v5702_v20, 16  ;;  %v2180_v16 = vsel %vm5438_vm2, %v2178_v7, %v5394_v15 }
  0x99   : > { %v1838_v35 = vor.u32 %v6814_v41, %v5491_v11  ;;  %v5750_v37 = vpack.c.bf16 %v1425_v59, %v1425_v59  ;;  %2358 = vrot.lane.b32.xlu0 %v2261_v61, %s4843_s30  ;;  %v2265_v21 = vrot.slane %v1809_v30, 4  ;;  %v2266_v27 = vrot.slane %v1812_v56, 5  ;;  %v4802_v41 = vpop.eup %4801  ;;  %2326 = vrot.lane.b32.xlu1 %v2189_v8, %s4843_s30 }
  0x9a   : > { %v6815_v55 = vunpack.c.l.bf16 %v5090_v45  ;;  %v1681_v10 = vshrl.u32 %v5752_v29, 16  ;;  %v1684_v61 = vshll.u32 %v5752_v29, 16  ;;  %v5768_v39 = vrot.slane %v1649_v63, 7 }
  0x9b   : > { %v1825_v32 = vshrl.u32 %v5750_v37, 16  ;;  %v6663_v40 = vshll.u32 %v5750_v37, 16  ;;  %v6816_v15 = vunpack.c.l.bf16 %v5099_v3  ;;  %v1209_v45 = vadd.f32 1.0, %v4798_v34  ;;  %v4804_v58 = vpop.eup %4803 }
  0x9c   : > { %v1297_v11 = vmul.f32 %v4800_v14, %v6815_v55  ;;  %v6817_v14 = vld [vmem:[#allocation20_spill] sm:$0xff]  ;;  %v6818_v5 = vshll.u32 %v5664_v48, 16  ;;  %v6819_v63 = vshll.u32 %v5668_v43, 16  ;;  %v6820_v34 = vshrl.u32 %v5688_v17, 16 }
  0x9d   : > { %v4303_v59 = vunpack.c.l.bf16 %v6817_v14  ;;  %v5778_v55 = vrot.slane %v1825_v32, 7  ;;  %v2274_v9 = vrot.slane %v1825_v32, 4  ;;  %v2275_v57 = vrot.slane %v6663_v40, 5  ;;  %2322 = vrot.lane.b32.xlu0 %v2180_v16, %s4843_s30  ;;  %2372 = vrot.lane.b32.xlu1 %v5599_v51, %s4843_s30 }
  0x9e   : > { %v1409_v7 = vadd.f32 %v6816_v15, %v1297_v11  ;;  %v5776_v8 = vor.u32 %v6818_v5, %v5740_v60  ;;  %v5785_v3 = vor.u32 %v6819_v63, %v5768_v39  ;;  %v5789_v11 = vrot.slane %v6820_v34, 7 }
  0x9f   : > { %v2267_v48 = vor.u32 %v2266_v27, %v2265_v21  ;;  %v5794_v15 = vrot.slane %v6661_v44, 5  ;;  %v2226_v32 = vrot.slane %v6662_v31, 4  ;;  %v2193_v43 = vrot.slane %v1681_v10, 4 }
  0xa0   : > { %v2194_v14 = vrot.slane %v1684_v61, 5  ;;  %v5802_v5 = vpack.c.bf16 %v1409_v7, %v1409_v7  ;;  %v2276_v63 = vor.u32 %v2275_v57, %v2274_v9  ;;  %4805 = vrcp.f32 %v1209_v45 }
  0xa1   : > { %v1207_v16 = vadd.f32 1.0, %v4802_v41  ;;  %v1191_v21 = vadd.f32 1.0, %v4804_v58  ;;  %v5804_v27 = vrot.slane %v1809_v30, 7  ;;  %v1831_v51 = vrot.slane %v5778_v55, 4  ;;  %2002 = vrot.lane.b32.xlu0 %v5619_v24, %s4842_s29  ;;  %2376 = vrot.lane.b32.xlu1 %v5621_v50, %s4843_s30  ;;  %v6823_v58 = vld [vmem:[#allocation26_spill] sm:$0xff] }
  0xa2   : > { %v1697_v34 = vshrl.u32 %v5802_v5, 16  ;;  %v1700_v44 = vshll.u32 %v5802_v5, 16  ;;  %v6821_v31 = vshll.u32 %v5688_v17, 16  ;;  %v5816_v57 = vrot.slane %v1681_v10, 7 }
  0xa3   : > { %4807 = vrcp.f32 %v1207_v16  ;;  %v3997_v9 = vmul.f32 -1.442695, %v4303_v59  ;;  %v5821_v30 = vor.u32 %v1812_v56, %v5804_v27  ;;  %v5823_v41 = vrot.slane %v2267_v48, 4  ;;  %v6822_v56 = vld [vmem:[#allocation39_spill] sm:$0xff] }
  0xa4   : > { %v5812_v40 = vor.u32 %v6821_v31, %v5789_v11  ;;  %v2227_v7 = vor.u32 %v2226_v32, %v5794_v15  ;;  %v2195_v17 = vor.u32 %v2194_v14, %v2193_v43  ;;  %v5826_v31 = vrot.slane %v2276_v63, 4  ;;  %v6826_v63 = vld [vmem:[#allocation41_spill] sm:$0xff]  ;;  %v6827_v16 = vld [vmem:[#allocation27_spill] sm:$0xff] }
  0xa5   : > { %4809 = vrcp.f32 %v1191_v21  ;;  %v1839_v10 = vsel %vm5528_vm5, %v1831_v51, %v1838_v35  ;;  %v1799_v45 = vrot.slane %v5740_v60, 4  ;;  %v2202_v59 = vrot.slane %v1697_v34, 4  ;;  %2052 = vrot.lane.b32.xlu0 %v5717_v19, %s4842_s29  ;;  %2340 = vrot.lane.b32.xlu1 %v5694_v38, %s4843_s30 }
  0xa6   : > { %v2203_v50 = vrot.slane %v1700_v44, 5  ;;  %1987 = vst.msk [vmem:[#allocation2 + $0x74] sm:$0xf] %vm1924_vm6, %v1839_v10  ;;  %4811 = vpow2.f32 %v3997_v9  ;;  %v6824_v48 = vshll.u32 %v6823_v58, 16  ;;  %v1687_v43 = vrot.slane %v5816_v57, 4 }
  0xa7   : > { %v6825_v35 = vshll.u32 %v5263_v36, 16  ;;  %v1655_v14 = vrot.slane %v5768_v39, 4  ;;  %v6828_v21 = vshll.u32 %v6827_v16, 16  ;;  %v1457_v9 = vld [vmem:[#allocation2 + $0x8] sm:$0x1]  ;;  %v2270_v19 = vsel %vm5438_vm2, %v5823_v41, %v5423_v26 }
  0xa8   : > { %v1806_v32 = vor.u32 %v6824_v48, %v6822_v56  ;;  %v1460_v10 = vld [vmem:[#allocation2 + $0x10] sm:$0x1]  ;;  %v5853_v56 = vrot.slane %v1697_v34, 7  ;;  %v1671_v26 = vrot.slane %v5789_v11, 4  ;;  %v1481_v34 = vld [vmem:[#allocation2 + $0x48] sm:$0x1] }
  0xa9   : > { %v1694_v60 = vor.u32 %v6825_v35, %v5493_v18  ;;  %v1662_v51 = vor.u32 %v6828_v21, %v6826_v63  ;;  %v5857_v18 = vrot.slane %v2227_v7, 4  ;;  %v1484_v41 = vld [vmem:[#allocation2 + $0x50] sm:$0x1]  ;;  %v1458_v7 = vsel %vm5865_vm8, 0, %v1457_v9  ;;  %v4632_v11 = vld [vmem:[%s6594_s0 + $0x8] sm:$0x3f]   ;;  %2056 = vrot.lane.b32.xlu0 %v5750_v37, %s4842_s29  ;;  %2020 = vrot.lane.b32.xlu1 %v5752_v29, %s4842_s29 }
  0xaa   : > { %v1807_v36 = vsel %vm5528_vm5, %v1799_v45, %v1806_v32  ;;  %v2204_v45 = vor.u32 %v2203_v50, %v2202_v59  ;;  %v6831_v48 = vshll.u32 %v5299_v13, 16  ;;  %v2279_v59 = vsel %vm5438_vm2, %v5826_v31, %v5457_v28  ;;  %1459 = vst [vmem:[#allocation2 + $0x8] sm:$0x1] %v1458_v7  ;;  %v1463_v31 = vld [vmem:[#allocation2 + $0x18] sm:$0x1]  ;;  %4602 = vmatprep.subr.msk.bf16.mxu1 %vm2754_vm11, %v4632_v11 }
  0xab   : > { %1979 = vst.msk [vmem:[#allocation2 + $0x64] sm:$0xf] %vm1924_vm6, %v1807_v36  ;;  %v1695_v39 = vsel %vm5528_vm5, %v1687_v43, %v1694_v60  ;;  %v1663_v38 = vsel %vm5528_vm5, %v1655_v14, %v1662_v51  ;;  %v1461_v43 = vsel %vm5865_vm8, 0, %v1460_v10  ;;  %v5888_v50 = vrot.slane %v2195_v17, 4  ;;  %v1487_v60 = vld [vmem:[#allocation2 + $0x58] sm:$0x1]  ;;  %4601 = vmatprep.subr.msk.bf16.mxu0 %vm2754_vm11, %v4632_v11 }
  0xac   : > { %1951 = vst.msk [vmem:[#allocation2 + $0x2c] sm:$0xf] %vm1924_vm6, %v1695_v39  ;;  %1943 = vst.msk [vmem:[#allocation2 + $0x1c] sm:$0xf] %vm1924_vm6, %v1663_v38  ;;  %v1678_v32 = vor.u32 %v6831_v48, %v5446_v1  ;;  %v1815_v13 = vrot.slane %v5804_v27, 4  ;;  %v6832_v1 = vshll.u32 %v5322_v0, 16  ;;  %v6839_v48 = vunpack.c.l.bf16 %v5120_v4 }
  0xad   : > { %1462 = vst [vmem:[#allocation2 + $0x10] sm:$0x1] %v1461_v43  ;;  %v1490_v14 = vld [vmem:[#allocation2 + $0x60] sm:$0x1]  ;;  %v1482_v28 = vsel %vm5865_vm8, 0, %v1481_v34  ;;  %v1485_v17 = vsel %vm5865_vm8, 0, %v1484_v41  ;;  %v4806_v51 = vpop.eup %4805  ;;  %2362 = vrot.lane.b32.xlu0 %v2270_v19, %s4843_s30  ;;  %2366 = vrot.lane.b32.xlu1 %v2279_v59, %s4843_s30  ;;  %v2198_v29 = vsel %vm5438_vm2, %v5888_v50, %v5473_v54  ;;  %v6840_v43 = vunpack.c.l.bf16 %v5102_v22 }
  0xae   : > { %v1822_v35 = vor.u32 %v6832_v1, %v5464_v23  ;;  %v1679_v63 = vsel %vm5528_vm5, %v1671_v26, %v1678_v32  ;;  %v1703_v27 = vrot.slane %v5853_v56, 4  ;;  %1483 = vst [vmem:[#allocation2 + $0x48] sm:$0x1] %v1482_v28  ;;  %1486 = vst [vmem:[#allocation2 + $0x50] sm:$0x1] %v1485_v17  ;;  %v6833_v23 = vshll.u32 %v5417_v53, 16 }
  0xaf   : > { %1947 = vst.msk [vmem:[#allocation2 + $0x24] sm:$0xf] %vm1924_vm6, %v1679_v63  ;;  %v1466_v21 = vld [vmem:[#allocation2 + $0x20] sm:$0x1]  ;;  %v6834_v9 = vshll.u32 %v5750_v37, 16  ;;  %v5914_v36 = vrot.slane %v2204_v45, 4  ;;  %v5925_v37 = vor.u32 %v1684_v61, %v5816_v57 }
  0xb0   : > { %v1823_v0 = vsel %vm5528_vm5, %v1815_v13, %v1822_v35  ;;  %v1710_v16 = vor.u32 %v6833_v23, %v5511_v42  ;;  %v2756_v39 = vsel %vm2754_vm11, %v4632_v11, 0  ;;  %v1488_v53 = vsel %vm5865_vm8, 0, %v1487_v60  ;;  %v1493_v42 = vld [vmem:[#allocation2 + $0x68] sm:$0x1]  ;;  %v1496_v41 = vld [vmem:[#allocation2 + $0x70] sm:$0x1]  ;;  %v4808_v7 = vpop.eup %4807 }
  0xb1   : > { %v5912_v10 = vor.u32 %v6834_v9, %v5778_v55  ;;  %1983 = vst.msk [vmem:[#allocation2 + $0x6c] sm:$0xf] %vm1924_vm6, %v1823_v0  ;;  %v6835_v55 = vunpack.c.l.bf16 %v5117_v33  ;;  %4600 = vmatpush3.bf16.msra.mxu1 %v2756_v39  ;;  %1489 = vst [vmem:[#allocation2 + $0x58] sm:$0x1] %v1488_v53  ;;  %v1491_v34 = vsel %vm5865_vm8, 0, %v1490_v14  ;;  %4498 = vmatpush3.bf16.msra.mxu0 %v2756_v39  ;;  %v1464_v61 = vsel %vm5865_vm8, 0, %v1463_v31 }
  0xb2   : > { %v1711_v26 = vsel %vm5528_vm5, %v1703_v27, %v1710_v16  ;;  %v1469_v45 = vld [vmem:[#allocation2 + $0x28] sm:$0x1]  ;;  %1492 = vst [vmem:[#allocation2 + $0x60] sm:$0x1] %v1491_v34  ;;  %v1467_v57 = vsel %vm5865_vm8, 0, %v1466_v21  ;;  %v6838_v19 = vshll.u32 %v5619_v24, 16  ;;  %v1315_v11 = vmul.f32 %v4808_v7, %v6840_v43  ;;  %v4810_v1 = vpop.eup %4809  ;;  %2344 = vrot.lane.b32.xlu0 %v5857_v18, %s4843_s30  ;;  %2330 = vrot.lane.b32.xlu1 %v2198_v29, %s4843_s30 }
  0xb3   : > { %v1317_v38 = vmul.f32 %v4806_v51, %v6835_v55  ;;  %1955 = vst.msk [vmem:[#allocation2 + $0x34] sm:$0xf] %vm1924_vm6, %v1711_v26  ;;  %1465 = vst [vmem:[#allocation2 + $0x18] sm:$0x1] %v1464_v61  ;;  %v1607_v59 = vrot.slane %v5714_v25, 4  ;;  %v1494_v50 = vsel %vm5865_vm8, 0, %v1493_v42  ;;  %v2207_v35 = vsel %vm5438_vm2, %v5914_v36, %v5504_v49  ;;  %v4812_v27 = vpop.eup %4811  ;;  %v2039_v26 = vpop.permute.xlu0 %2038 }
  0xb4   : > { %v5953_v54 = vor.u32 %v6838_v19, %v5714_v25  ;;  %1468 = vst [vmem:[#allocation2 + $0x20] sm:$0x1] %v1467_v57  ;;  %v1472_v13 = vld [vmem:[#allocation2 + $0x30] sm:$0x1]  ;;  %v1932_v60 = vld [vmem:[#allocation2 + $0x8] sm:$0xf]  ;;  %v6844_v0 = vunpack.c.l.bf16 %v5112_v12  ;;  %v6845_v16 = vunpack.c.l.bf16 %v5133_v2  ;;  %v6848_v7 = vunpack.c.l.bf16 %v5138_v46  ;;  %v2007_v46 = vpop.permute.xlu1 %2006 }
  0xb5   : > { %v1429_v32 = vadd.f32 %v6839_v48, %v1317_v38  ;;  %v1936_v4 = vld [vmem:[#allocation2 + $0x10] sm:$0xf]  ;;  %v6841_v14 = vld [vmem:[#allocation5_spill] sm:$0xff]  ;;  %1495 = vst [vmem:[#allocation2 + $0x68] sm:$0x1] %v1494_v50  ;;  %v1497_v25 = vsel %vm5865_vm8, 0, %v1496_v41 }
  0xb6   : > { %v6842_v63 = vld [vmem:[#allocation43_spill] sm:$0xff]  ;;  %v1470_v17 = vsel %vm5865_vm8, 0, %v1469_v45  ;;  %v1427_v23 = vadd.f32 %v6844_v0, %v1315_v11  ;;  %v1299_v21 = vmul.f32 %v4810_v1, %v6845_v16  ;;  %1498 = vst [vmem:[#allocation2 + $0x70] sm:$0x1] %v1497_v25  ;;  %v1502_v39 = vld [vmem:[#allocation2 + $0x80] sm:$0x1]  ;;  %v1615_v2 = vsel %vm5528_vm5, %v1607_v59, %v5953_v54  ;;  %2024 = vrot.lane.b32.xlu0 %v5802_v5, %s4842_s29 }
  0xb7   : > { %v6843_v22 = vshll.u32 %v6842_v63, 16  ;;  %v5977_v31 = vpack.c.bf16 %v1429_v32, %v1429_v32  ;;  %v6846_v51 = vld [vmem:[#allocation31_spill] sm:$0xff]  ;;  %1471 = vst [vmem:[#allocation2 + $0x28] sm:$0x1] %v1470_v17  ;;  %v1193_v53 = vadd.f32 1.0, %v4812_v27  ;;  %v1473_v38 = vsel %vm5865_vm8, 0, %v1472_v13  ;;  %2312 = vrot.lane.b32.xlu1 %v5729_v6, %s4843_s30 }
  0xb8   : > { %v1933_v9 = vsel %vm5941_vm12, %v6846_v51, %v1932_v60  ;;  %v6847_v18 = vld [vmem:[#allocation35_spill] sm:$0xff]  ;;  %v1964_v12 = vld [vmem:[#allocation2 + $0x48] sm:$0xf]  ;;  %v5997_v45 = vpack.c.bf16 %v1427_v23, %v1427_v23  ;;  %v1411_v29 = vadd.f32 %v6848_v7, %v1299_v21  ;;  %1931 = vst.msk [vmem:[#allocation2 + $0x4] sm:$0xf] %vm1924_vm6, %v1615_v2  ;;  %v6849_v19 = vld [vmem:[#allocation36_spill] sm:$0xff]  ;;  %v6048_v27 = vor.u32 %v1700_v44, %v5853_v56  ;;  %v2043_v23 = vpop.permute.xlu0 %2042 }
  0xb9   : > { %v5969_v28 = vor.u32 %v6843_v22, %v6841_v14  ;;  %1934 = vst [vmem:[#allocation2 + $0x8] sm:$0xf] %v1933_v9  ;;  %v1937_v42 = vsel %vm5941_vm12, %v6847_v18, %v1936_v4  ;;  %v1968_v55 = vld [vmem:[#allocation2 + $0x50] sm:$0xf]  ;;  %v1857_v34 = vshrl.u32 %v5977_v31, 16  ;;  %v1860_v41 = vshll.u32 %v5977_v31, 16 }
  0xba   : > { %1938 = vst [vmem:[#allocation2 + $0x10] sm:$0xf] %v1937_v42  ;;  %1999 = vst.msk [vmem:[#allocation2 + $0x8c] sm:$0xf] %vm1924_vm6, %v1615_v2  ;;  %v6006_v61 = vld [vmem:[%s6594_s0] sm:$0x3f]   ;;  %4813 = vrcp.f32 %v1193_v53  ;;  %v1965_v48 = vsel %vm5941_vm12, %v6849_v19, %v1964_v12  ;;  %v6027_v60 = vpack.c.bf16 %v1411_v29, %v1411_v29  ;;  %2334 = vrot.lane.b32.xlu0 %v2207_v35, %s4843_s30 }
  0xbb   : > { %1474 = vst [vmem:[#allocation2 + $0x30] sm:$0x1] %v1473_v38  ;;  %v6011_v57 = vld [vmem:[%s6594_s0 + $0x10] sm:$0x3f]   ;;  %2128 = vst.msk [vmem:[#allocation2 + $0x4c] sm:$0xf] %vm2108_vm9, %v2039_v26  ;;  %4603 = vmatprep.subr.msk.bf16.mxu1 %vm2754_vm11, %v6006_v61  ;;  %2064 = vrot.lane.b32.xlu1 %v5977_v31, %s4842_s29 }
  0xbc   : > { %v6850_v32 = vld [vmem:[#allocation40_spill] sm:$0xff]  ;;  %v1503_v59 = vsel %vm5865_vm8, 0, %v1502_v39  ;;  %2112 = vst.msk [vmem:[#allocation2 + $0xc] sm:$0xf] %vm2108_vm9, %v2007_v46  ;;  %v1859_v50 = vrot.slane %v1857_v34, 7  ;;  %v1841_v13 = vshrl.u32 %v5997_v45, 16  ;;  %4604 = vmatprep.subr.msk.bf16.mxu0 %vm2754_vm11, %v6011_v57 }
  0xbd   : > { %v1969_v43 = vsel %vm5941_vm12, %v6850_v32, %v1968_v55  ;;  %v1972_v11 = vld [vmem:[#allocation2 + $0x58] sm:$0xf]  ;;  %v1844_v1 = vshll.u32 %v5997_v45, 16  ;;  %1966 = vst [vmem:[#allocation2 + $0x48] sm:$0xf] %v1965_v48  ;;  %v6033_v14 = vrot.slane %v1857_v34, 4 }
  0xbe   : > { %1970 = vst [vmem:[#allocation2 + $0x50] sm:$0xf] %v1969_v43  ;;  %v1976_v4 = vld [vmem:[#allocation2 + $0x60] sm:$0xf]  ;;  %1504 = vst [vmem:[#allocation2 + $0x80] sm:$0x1] %v1503_v59  ;;  %v1862_v32 = vor.u32 %v1860_v41, %v1859_v50  ;;  %v2047_v43 = vpop.permute.xlu0 %2046  ;;  %2060 = vrot.lane.b32.xlu0 %v5997_v45, %s4842_s29 }
  0xbf   : > { %v6035_v63 = vrot.slane %v1860_v41, 5  ;;  %v6851_v22 = vld [vmem:[#allocation3_spill] sm:$0xff]  ;;  %v1977_v17 = vsel %vm5941_vm12, %v5776_v8, %v1976_v4  ;;  %v6050_v0 = vrot.slane %v1841_v13, 7  ;;  %v1713_v16 = vshrl.u32 %v6027_v60, 16  ;;  %2130 = vst.msk [vmem:[#allocation2 + $0x54] sm:$0xf] %vm2108_vm9, %v2043_v23  ;;  %v2011_v8 = vpop.permute.xlu1 %2010  ;;  %2028 = vrot.lane.b32.xlu1 %v6027_v60, %s4842_s29 }
  0xc0   : > { %v1973_v25 = vsel %vm5941_vm12, %v6851_v22, %v1972_v11  ;;  %v1716_v21 = vshll.u32 %v6027_v60, 16  ;;  %1978 = vst [vmem:[#allocation2 + $0x60] sm:$0xf] %v1977_v17  ;;  %v2283_v51 = vrot.slane %v1841_v13, 4  ;;  %v2284_v9 = vrot.slane %v1844_v1, 5  ;;  %v6852_v39 = vld [vmem:[#allocation29_spill] sm:$0xff] }
  0xc1   : > { %1974 = vst [vmem:[#allocation2 + $0x58] sm:$0xf] %v1973_v25  ;;  %v6853_v5 = vld [vmem:[#allocation42_spill] sm:$0xff]  ;;  %v1863_v53 = vrot.slane %v1859_v50, 4  ;;  %v1940_v18 = vld [vmem:[#allocation2 + $0x18] sm:$0xf]  ;;  %v2294_v49 = vor.u32 %v6035_v63, %v6033_v14 }
  0xc2   : > { %v6854_v44 = vshll.u32 %v6853_v5, 16  ;;  %2114 = vst.msk [vmem:[#allocation2 + $0x14] sm:$0xf] %vm2108_vm9, %v2011_v8  ;;  %v6067_v42 = vrot.slane %v1713_v16, 7  ;;  %v2211_v12 = vrot.slane %v1713_v16, 4  ;;  %v2212_v55 = vrot.slane %v1716_v21, 5 }
  0xc3   : > { %v6855_v2 = vld [vmem:[#allocation8_spill] sm:$0xff]  ;;  %v6856_v38 = vld [vmem:[#allocation30_spill] sm:$0xff]  ;;  %v1944_v7 = vld [vmem:[#allocation2 + $0x20] sm:$0xf]  ;;  %v2285_v29 = vor.u32 %v2284_v9, %v2283_v51  ;;  %v1847_v36 = vrot.slane %v6050_v0, 4  ;;  %v1871_v35 = vsel %vm5528_vm5, %v1863_v53, %v5969_v28  ;;  %v1941_v59 = vsel %vm5941_vm12, %v5785_v3, %v1940_v18  ;;  %v2059_v28 = vpop.permute.xlu1 %2058 }
  0xc4   : > { %v1854_v56 = vor.u32 %v6854_v44, %v6852_v39  ;;  %v6857_v26 = vshll.u32 %v6856_v38, 16  ;;  %v1980_v46 = vld [vmem:[#allocation2 + $0x68] sm:$0xf]  ;;  %v1984_v19 = vld [vmem:[#allocation2 + $0x70] sm:$0xf]  ;;  %v2213_v11 = vor.u32 %v2212_v55, %v2211_v12  ;;  %v1719_v31 = vrot.slane %v6067_v42, 4  ;;  %v2051_v44 = vpop.permute.xlu0 %2050 }
  0xc5   : > { %v1499_v48 = vld [vmem:[#allocation2 + $0x78] sm:$0x1]  ;;  %1995 = vst.msk [vmem:[#allocation2 + $0x84] sm:$0xf] %vm1924_vm6, %v1871_v35  ;;  %v1948_v13 = vld [vmem:[#allocation2 + $0x28] sm:$0xf]  ;;  %v1945_v50 = vsel %vm5941_vm12, %v5812_v40, %v1944_v7  ;;  %v1981_v16 = vsel %vm5941_vm12, %v5821_v30, %v1980_v46  ;;  %v1985_v40 = vsel %vm5941_vm12, %v5912_v10, %v1984_v19  ;;  %v1846_v35 = vor.u32 %v1844_v1, %v6050_v0 }
  0xc6   : > { %v1726_v34 = vor.u32 %v6857_v26, %v6855_v2  ;;  %v1952_v4 = vld [vmem:[#allocation2 + $0x30] sm:$0xf]  ;;  %v2286_v14 = vrot.slane %v2285_v29, 4  ;;  %2132 = vst.msk [vmem:[#allocation2 + $0x5c] sm:$0xf] %vm2108_vm9, %v2047_v43  ;;  %v4815_v63 = vld [vmem:[%s4946_s25 + $0x38] sm:$0xff]   ;;  %v1855_v41 = vsel %vm5528_vm5, %v1847_v36, %v1854_v56  ;;  %v1949_v30 = vsel %vm5941_vm12, %v5925_v37, %v1948_v13 }
  0xc7   : > { %v4239_v22 = vunpack.c.l.bf16 %v4815_v63  ;;  %1942 = vst [vmem:[#allocation2 + $0x18] sm:$0xf] %v1941_v59  ;;  %v1992_v25 = vld [vmem:[#allocation2 + $0x80] sm:$0xf]  ;;  %v1475_v17 = vld [vmem:[#allocation2 + $0x38] sm:$0x1]  ;;  %v1953_v10 = vsel %vm5941_vm12, %v6048_v27, %v1952_v4  ;;  %v2023_v27 = vpop.permute.xlu1 %2022  ;;  %v4814_v7 = vpop.eup %4813  ;;  %v1718_v43 = vor.u32 %v1716_v21, %v6067_v42 }
  0xc8   : > { %2138 = vst.msk [vmem:[#allocation2 + $0x74] sm:$0xf] %vm2108_vm9, %v2059_v28  ;;  %v2214_v3 = vrot.slane %v2213_v11, 4  ;;  %v1727_v23 = vsel %vm5528_vm5, %v1719_v31, %v1726_v34  ;;  %1946 = vst [vmem:[#allocation2 + $0x20] sm:$0xf] %v1945_v50  ;;  %v6858_v9 = vld [vmem:[#allocation44_spill] sm:$0xff]  ;;  %v1993_v18 = vsel %vm5941_vm12, %v1862_v32, %v1992_v25  ;;  %v2015_v36 = vpop.permute.xlu0 %2014 }
  0xc9   : > { %1991 = vst.msk [vmem:[#allocation2 + $0x7c] sm:$0xf] %vm1924_vm6, %v1855_v41  ;;  %v1478_v8 = vld [vmem:[#allocation2 + $0x40] sm:$0x1]  ;;  %v2288_v39 = vsel %vm5438_vm2, %v2286_v14, %v6858_v9  ;;  %v2295_v5 = vrot.slane %v2294_v49, 4  ;;  %v6859_v56 = vld [vmem:[#allocation4_spill] sm:$0xff] }
  0xca   : > { %v1454_v51 = vld [vmem:[#allocation2] sm:$0x1]  ;;  %1959 = vst.msk [vmem:[#allocation2 + $0x3c] sm:$0xf] %vm1924_vm6, %v1727_v23  ;;  %1982 = vst [vmem:[#allocation2 + $0x68] sm:$0xf] %v1981_v16  ;;  %v2216_v53 = vsel %vm5438_vm2, %v2214_v3, %v6859_v56  ;;  %2370 = vrot.lane.b32.xlu0 %v2288_v39, %s4843_s30  ;;  %v2153_v56 = vsel %vm5438_vm2, %v5729_v6, %v5674_v52 }
  0xcb   : > { %1986 = vst [vmem:[#allocation2 + $0x70] sm:$0xf] %v1985_v40  ;;  %1950 = vst [vmem:[#allocation2 + $0x28] sm:$0xf] %v1949_v30  ;;  %v1500_v12 = vsel %vm5865_vm8, 0, %v1499_v48  ;;  %v6127_v37 = vsel %vm2754_vm11, %v6011_v57, 0  ;;  %v1301_v57 = vmul.f32 %v4814_v7, %v4239_v22  ;;  %v2005_v19 = vpop.permute.xlu1 %2004 }
  0xcc   : > { %1954 = vst [vmem:[#allocation2 + $0x30] sm:$0xf] %v1953_v10  ;;  %v4816_v55 = vld [vmem:[%s4958_s28 + $0x38] sm:$0xff]   ;;  %2134 = vst.msk [vmem:[#allocation2 + $0x64] sm:$0xf] %vm2108_vm9, %v2051_v44  ;;  %v1476_v38 = vsel %vm5865_vm8, 0, %v1475_v17  ;;  %v2019_v31 = vpop.permute.xlu0 %2018 }
  0xcd   : > { %v4367_v2 = vunpack.c.l.bf16 %v4816_v55  ;;  %1994 = vst [vmem:[#allocation2 + $0x80] sm:$0xf] %v1993_v18  ;;  %1501 = vst [vmem:[#allocation2 + $0x78] sm:$0x1] %v1500_v12  ;;  %v1479_v26 = vsel %vm5865_vm8, 0, %v1478_v8  ;;  %v1455_v34 = vsel %vm5865_vm8, 0, %v1454_v51 }
  0xce   : > { %2120 = vst.msk [vmem:[#allocation2 + $0x2c] sm:$0xf] %vm2108_vm9, %v2023_v27  ;;  %1477 = vst [vmem:[#allocation2 + $0x38] sm:$0x1] %v1476_v38  ;;  %v6860_v29 = vld [vmem:[#allocation21_spill] sm:$0xff]  ;;  %v6861_v48 = vshrl.u32 %v5702_v20, 16 }
  0xcf   : > { %1480 = vst [vmem:[#allocation2 + $0x40] sm:$0x1] %v1479_v26  ;;  %1456 = vst [vmem:[#allocation2] sm:$0x1] %v1455_v34  ;;  %v2297_v49 = vsel %vm5438_vm2, %v2295_v5, %v6860_v29  ;;  %v1413_v46 = vadd.f32 %v4367_v2, %v1301_v57  ;;  %v2009_v59 = vpop.permute.xlu1 %2008  ;;  %v6862_v21 = vshll.u32 %v5702_v20, 16 }
  0xd0   : > { %2116 = vst.msk [vmem:[#allocation2 + $0x1c] sm:$0xf] %vm2108_vm9, %v2015_v36  ;;  %v1739_v32 = vrot.slane %v6861_v48, 7  ;;  %2374 = vrot.lane.b32.xlu0 %v2297_v49, %s4843_s30  ;;  %2111 = vst.msk [vmem:[#allocation2 + $0x8] sm:$0xf] %vm2108_vm9, %v2005_v19  ;;  %v2055_v50 = vpop.permute.xlu0 %2054 }
  0xd1   : > { %v4189_v11 = vpack.c.bf16 %v1413_v46, %v1413_v46  ;;  %2118 = vst.msk [vmem:[#allocation2 + $0x24] sm:$0xf] %vm2108_vm9, %v2019_v31  ;;  %2113 = vst.msk [vmem:[#allocation2 + $0x10] sm:$0xf] %vm2108_vm9, %v2009_v59  ;;  %v2458_v23 = vld [vmem:[#allocation2 + $0x4c] sm:$0xf] }
  0xd2   : > { %v1742_v42 = vor.u32 %v6862_v21, %v1739_v32  ;;  %2136 = vst.msk [vmem:[#allocation2 + $0x6c] sm:$0xf] %vm2108_vm9, %v2055_v50  ;;  %v2462_v10 = vld [vmem:[#allocation2 + $0x54] sm:$0xf]  ;;  %v2426_v12 = vld [vmem:[#allocation2 + $0xc] sm:$0xf] }
  0xd3   : > { %v1729_v1 = vshrl.u32 %v4189_v11, 16  ;;  %v1732_v0 = vshll.u32 %v4189_v11, 16  ;;  %2032 = vrot.lane.b32.xlu1 %v4189_v11, %s4842_s29  ;;  %v2349_v16 = vpop.permute.xlu1 %2348  ;;  %v2430_v27 = vld [vmem:[#allocation2 + $0x14] sm:$0xf]  ;;  %v2466_v57 = vld [vmem:[#allocation2 + $0x5c] sm:$0xf] }
  0xd4   : > { %v1988_v45 = vld [vmem:[#allocation2 + $0x78] sm:$0xf]  ;;  %2338 = vrot.lane.b32.xlu0 %v2216_v53, %s4843_s30  ;;  %v2459_v8 = vsel %vm6165_vm14, %v2349_v16, %v2458_v23  ;;  %v2037_v5 = vpop.permute.xlu0 %2036 }
  0xd5   : > { %v1989_v13 = vsel %vm5941_vm12, %v1846_v35, %v1988_v45  ;;  %v1956_v60 = vld [vmem:[#allocation2 + $0x38] sm:$0xf]  ;;  %v1731_v63 = vrot.slane %v1729_v1, 7  ;;  %v2220_v22 = vrot.slane %v1729_v1, 4  ;;  %v2221_v41 = vrot.slane %v1732_v0, 5 }
  0xd6   : > { %1990 = vst [vmem:[#allocation2 + $0x78] sm:$0xf] %v1989_v13  ;;  %v1957_v4 = vsel %vm5941_vm12, %v1718_v43, %v1956_v60  ;;  %v1927_v14 = vld [vmem:[#allocation2] sm:$0xf]  ;;  %2460 = vst [vmem:[#allocation2 + $0x4c] sm:$0xf] %v2459_v8 }
  0xd7   : > { %1958 = vst [vmem:[#allocation2 + $0x38] sm:$0xf] %v1957_v4  ;;  %v1928_v20 = vsel %vm5941_vm12, %v5953_v54, %v1927_v14  ;;  %v1960_v25 = vld [vmem:[#allocation2 + $0x40] sm:$0xf]  ;;  %v1734_v17 = vor.u32 %v1732_v0, %v1731_v63  ;;  %v2222_v3 = vor.u32 %v2221_v41, %v2220_v22  ;;  %v1735_v40 = vrot.slane %v1731_v63, 4  ;;  %v2353_v44 = vpop.permute.xlu1 %2352 }
  0xd8   : > { %1929 = vst [vmem:[#allocation2] sm:$0xf] %v1928_v20  ;;  %2000 = vrot.lane.b32.xlu0 %v5619_v24, %s4842_s29  ;;  %2127 = vst.msk [vmem:[#allocation2 + $0x48] sm:$0xf] %vm2108_vm9, %v2037_v5  ;;  %v2463_v47 = vsel %vm6165_vm14, %v2353_v44, %v2462_v10  ;;  %v2041_v53 = vpop.permute.xlu0 %2040  ;;  %v2434_v48 = vld [vmem:[#allocation2 + $0x1c] sm:$0xf] }
  0xd9   : > { %v2223_v51 = vrot.slane %v2222_v3, 4  ;;  %v1743_v9 = vsel %vm5528_vm5, %v1735_v40, %v1742_v42  ;;  %v1961_v39 = vsel %vm5941_vm12, %v1734_v17, %v1960_v25  ;;  %2464 = vst [vmem:[#allocation2 + $0x54] sm:$0xf] %v2463_v47  ;;  %2129 = vst.msk [vmem:[#allocation2 + $0x50] sm:$0xf] %vm2108_vm9, %v2041_v53  ;;  %v3053_v8 = vsel %vm2754_vm11, %v6006_v61, 0 }
  0xda   : > { %1963 = vst.msk [vmem:[#allocation2 + $0x44] sm:$0xf] %vm1924_vm6, %v1743_v9  ;;  %1962 = vst [vmem:[#allocation2 + $0x40] sm:$0xf] %v1961_v39  ;;  %v2438_v1 = vld [vmem:[#allocation2 + $0x24] sm:$0xf] }
  0xdb   : > { %v2225_v30 = vsel %vm5438_vm2, %v2223_v51, %v5794_v15  ;;  %v2317_v18 = vpop.permute.xlu1 %2316  ;;  %v2474_v4 = vld [vmem:[#allocation2 + $0x6c] sm:$0xf]  ;;  %vm2705_vm2 = vcmask 97280   ;;  %v2478_v39 = vld [vmem:[#allocation2 + $0x74] sm:$0xf] }
  0xdc   : > { %2342 = vrot.lane.b32.xlu1 %v2225_v30, %s4843_s30  ;;  %2070 = vrot.lane.b32.xlu0 %v5619_v24, %s4842_s29  ;;  %v2427_v2 = vsel %vm6165_vm14, %v2317_v18, %v2426_v12  ;;  %v2027_v52 = vpop.permute.xlu0 %2026  ;;  %v2442_v53 = vld [vmem:[#allocation2 + $0x2c] sm:$0xf] }
  0xdd   : > { %v2523_v55 = vld [vmem:[#allocation2 + $0x4c] sm:$0x8]  ;;  %2428 = vst [vmem:[#allocation2 + $0xc] sm:$0xf] %v2427_v2  ;;  %2122 = vst.msk [vmem:[#allocation2 + $0x34] sm:$0xf] %vm2108_vm9, %v2027_v52 }
  0xde   : > { %v2524_v62 = vsel %vm6195_vm1, 0, %v2523_v55 }
  0xdf   : > { %2525 = vst [vmem:[#allocation2 + $0x4c] sm:$0x8] %v2524_v62  ;;  %v2321_v38 = vpop.permute.xlu1 %2320 }
  0xe0   : > { %2310 = vrot.lane.b32.xlu1 %v2153_v56, %s4843_s30  ;;  %2068 = vrot.lane.b32.xlu0 %v5619_v24, %s4842_s29  ;;  %v2526_v26 = vld [vmem:[#allocation2 + $0x54] sm:$0x8]  ;;  %v2431_v34 = vsel %vm6165_vm14, %v2321_v38, %v2430_v27  ;;  %v2063_v7 = vpop.permute.xlu0 %2062 }
  0xe1   : > { %v2527_v24 = vsel %vm6195_vm1, 0, %v2526_v26  ;;  %2432 = vst [vmem:[#allocation2 + $0x14] sm:$0xf] %v2431_v34  ;;  %2140 = vst.msk [vmem:[#allocation2 + $0x7c] sm:$0xf] %vm2108_vm9, %v2063_v7 }
  0xe2   : > { %2528 = vst [vmem:[#allocation2 + $0x54] sm:$0x8] %v2527_v24 }
  0xe3   : > { %v2357_v29 = vpop.permute.xlu1 %2356 }
  0xe4   : > { %2380 = vrot.lane.b32.xlu1 %v5729_v6, %s4843_s30  ;;  %v2499_v49 = vld [vmem:[#allocation2 + $0xc] sm:$0x8]  ;;  %v2467_v36 = vsel %vm6165_vm14, %v2357_v29, %v2466_v57  ;;  %v2470_v6 = vld [vmem:[#allocation2 + $0x64] sm:$0xf]  ;;  %v2361_v46 = vpop.permute.xlu0 %2360  ;;  %v2446_v24 = vld [vmem:[#allocation2 + $0x34] sm:$0xf] }
  0xe5   : > { %v2500_v35 = vsel %vm6195_vm1, 0, %v2499_v49  ;;  %2468 = vst [vmem:[#allocation2 + $0x5c] sm:$0xf] %v2467_v36  ;;  %v2471_v19 = vsel %vm6165_vm14, %v2361_v46, %v2470_v6 }
  0xe6   : > { %2501 = vst [vmem:[#allocation2 + $0xc] sm:$0x8] %v2500_v35  ;;  %2472 = vst [vmem:[#allocation2 + $0x64] sm:$0xf] %v2471_v19 }
  0xe7   : > { %v2325_v32 = vpop.permute.xlu1 %2324 }
  0xe8   : > { %2378 = vrot.lane.b32.xlu1 %v2153_v56, %s4843_s30  ;;  %v2502_v43 = vld [vmem:[#allocation2 + $0x14] sm:$0x8]  ;;  %v2435_v11 = vsel %vm6165_vm14, %v2325_v32, %v2434_v48  ;;  %v2347_v45 = vpop.permute.xlu0 %2346  ;;  %v1505_v56 = vld [vmem:[#allocation2 + $0x88] sm:$0x1]  ;;  %v2482_v19 = vld [vmem:[#allocation2 + $0x7c] sm:$0xf] }
  0xe9   : > { %v2503_v31 = vsel %vm6195_vm1, 0, %v2502_v43  ;;  %2436 = vst [vmem:[#allocation2 + $0x1c] sm:$0xf] %v2435_v11  ;;  %2457 = vst.msk [vmem:[#allocation2 + $0x48] sm:$0xf] %vm2418_vm13, %v2347_v45  ;;  %v1506_v12 = vsel %vm5865_vm8, 0, %v1505_v56 }
  0xea   : > { %2504 = vst [vmem:[#allocation2 + $0x14] sm:$0x8] %v2503_v31  ;;  %1507 = vst [vmem:[#allocation2 + $0x88] sm:$0x1] %v1506_v12 }
  0xeb   : > { %v2329_v0 = vpop.permute.xlu1 %2328 }
  0xec   : > { %v2529_v59 = vld [vmem:[#allocation2 + $0x5c] sm:$0x8]  ;;  %v2439_v13 = vsel %vm6165_vm14, %v2329_v0, %v2438_v1  ;;  %v2351_v21 = vpop.permute.xlu0 %2350 }
  0xed   : > { %v2530_v60 = vsel %vm6195_vm1, 0, %v2529_v59  ;;  %2440 = vst [vmem:[#allocation2 + $0x24] sm:$0xf] %v2439_v13  ;;  %v2532_v42 = vld [vmem:[#allocation2 + $0x64] sm:$0x8] }
  0xee   : > { %2531 = vst [vmem:[#allocation2 + $0x5c] sm:$0x8] %v2530_v60  ;;  %2461 = vst.msk [vmem:[#allocation2 + $0x50] sm:$0xf] %vm2418_vm13, %v2351_v21  ;;  %v2533_v63 = vsel %vm6195_vm1, 0, %v2532_v42 }
  0xef   : > { %v2365_v14 = vpop.permute.xlu1 %2364  ;;  %2534 = vst [vmem:[#allocation2 + $0x64] sm:$0x8] %v2533_v63 }
  0xf0   : > { %v2505_v22 = vld [vmem:[#allocation2 + $0x1c] sm:$0x8]  ;;  %v2475_v41 = vsel %vm6165_vm14, %v2365_v14, %v2474_v4  ;;  %v2315_v50 = vpop.permute.xlu0 %2314  ;;  %v4633_v25 = vld [vmem:[#allocation2 + $0x48] sm:$0xff]  }
  0xf1   : > { %v2506_v20 = vsel %vm6195_vm1, 0, %v2505_v22  ;;  %2476 = vst [vmem:[#allocation2 + $0x6c] sm:$0xf] %v2475_v41  ;;  %2425 = vst.msk [vmem:[#allocation2 + $0x8] sm:$0xf] %vm2418_vm13, %v2315_v50  ;;  %4515 = vmatprep.mubr.msk.bf16.mxu1 %vm2705_vm2, %v4633_v25 }
  0xf2   : > { %2507 = vst [vmem:[#allocation2 + $0x1c] sm:$0x8] %v2506_v20  ;;  %v1996_v27 = vld [vmem:[#allocation2 + $0x88] sm:$0xf] }
  0xf3   : > { %v2319_v17 = vpop.permute.xlu1 %2318  ;;  %v1997_v58 = vsel %vm5941_vm12, %v5953_v54, %v1996_v27 }
  0xf4   : > { %v2508_v3 = vld [vmem:[#allocation2 + $0x24] sm:$0x8]  ;;  %2429 = vst.msk [vmem:[#allocation2 + $0x10] sm:$0xf] %vm2418_vm13, %v2319_v17  ;;  %v2045_v16 = vpop.permute.xlu0 %2044  ;;  %1998 = vst [vmem:[#allocation2 + $0x88] sm:$0xf] %v1997_v58 }
  0xf5   : > { %v2509_v23 = vsel %vm6195_vm1, 0, %v2508_v3  ;;  %v4634_v40 = vld [vmem:[#allocation2 + $0x50] sm:$0xff]   ;;  %2131 = vst.msk [vmem:[#allocation2 + $0x58] sm:$0xf] %vm2108_vm9, %v2045_v16 }
  0xf6   : > { %2510 = vst [vmem:[#allocation2 + $0x24] sm:$0x8] %v2509_v23  ;;  %4516 = vmatmul.mubr.msk.bf16.vlgmr.msra.gmra.mxu1 %vm2705_vm2, %v4634_v40 }
  0xf7   : > { %v2067_v51 = vpop.permute.xlu1 %2066  ;;  %4532 = vmatpush3.bf16.msra.mxu1 %v3053_v8 }
  0xf8   : > { %v2535_v9 = vld [vmem:[#allocation2 + $0x6c] sm:$0x8]  ;;  %2142 = vst.msk [vmem:[#allocation2 + $0x84] sm:$0xf] %vm2108_vm9, %v2067_v51  ;;  %v2369_v30 = vpop.permute.xlu0 %2368 }
  0xf9   : > { %v2536_v5 = vsel %vm6195_vm1, 0, %v2535_v9  ;;  %v4635_v10 = vld [vmem:[#allocation2 + $0x8] sm:$0xff]   ;;  %v2479_v61 = vsel %vm6165_vm14, %v2369_v30, %v2478_v39 }
  0xfa   : > { %2537 = vst [vmem:[#allocation2 + $0x6c] sm:$0x8] %v2536_v5  ;;  %2480 = vst [vmem:[#allocation2 + $0x74] sm:$0xf] %v2479_v61  ;;  %4499 = vmatprep.mubr.msk.bf16.mxu0 %vm2705_vm2, %v4635_v10 }
  0xfb   : > { %v2031_v44 = vpop.permute.xlu1 %2030  ;;  %v4636_v47 = vld [vmem:[#allocation2 + $0x10] sm:$0xff]  }
  0xfc   : > { %2124 = vst.msk [vmem:[#allocation2 + $0x3c] sm:$0xf] %vm2108_vm9, %v2031_v44  ;;  %4500 = vmatmul.mubr.msk.bf16.vlgmr.msra.gmra.mxu0 %vm2705_vm2, %v4636_v47 }
  0xfd   : > { %4566 = vmatpush3.bf16.msra.mxu0 %v6127_v37 }
  0xff   : > { %v2333_v18 = vpop.permute.xlu1 %2332  ;;  %v2049_v52 = vpop.permute.xlu0 %2048  ;;  %v2486_v31 = vld [vmem:[#allocation2 + $0x84] sm:$0xf] }
 0x100   : > { %v2443_v55 = vsel %vm6165_vm14, %v2333_v18, %v2442_v53  ;;  %2133 = vst.msk [vmem:[#allocation2 + $0x60] sm:$0xf] %vm2108_vm9, %v2049_v52 }
 0x101   : > { %2444 = vst [vmem:[#allocation2 + $0x2c] sm:$0xf] %v2443_v55  ;;  %v2538_v2 = vld [vmem:[#allocation2 + $0x74] sm:$0x8] }
 0x102   : > { %v2539_v62 = vsel %vm6195_vm1, 0, %v2538_v2 }
 0x103   : > { %2540 = vst [vmem:[#allocation2 + $0x74] sm:$0x8] %v2539_v62  ;;  %v2013_v37 = vpop.permute.xlu1 %2012  ;;  %v2355_v34 = vpop.permute.xlu0 %2354  ;;  %v2450_v60 = vld [vmem:[#allocation2 + $0x3c] sm:$0xf] }
 0x104   : > { %2115 = vst.msk [vmem:[#allocation2 + $0x18] sm:$0xf] %vm2108_vm9, %v2013_v37 }
 0x105   : > { %2465 = vst.msk [vmem:[#allocation2 + $0x58] sm:$0xf] %vm2418_vm13, %v2355_v34 }
 0x107   : > { %v2337_v7 = vpop.permute.xlu1 %2336  ;;  %v2035_v29 = vpop.permute.xlu0 %2034 }
 0x108   : > { %v2511_v38 = vld [vmem:[#allocation2 + $0x2c] sm:$0x8]  ;;  %v2447_v57 = vsel %vm6165_vm14, %v2337_v7, %v2446_v24  ;;  %2126 = vst.msk [vmem:[#allocation2 + $0x44] sm:$0xf] %vm2108_vm9, %v2035_v29 }
 0x109   : > { %v2512_v26 = vsel %vm6195_vm1, 0, %v2511_v38  ;;  %2448 = vst [vmem:[#allocation2 + $0x34] sm:$0xf] %v2447_v57 }
 0x10a   : > { %2513 = vst [vmem:[#allocation2 + $0x2c] sm:$0x8] %v2512_v26 }
 0x10b   : > { %v2017_v49 = vpop.permute.xlu1 %2016  ;;  %v2359_v33 = vpop.permute.xlu0 %2358 }
 0x10c   : > { %2117 = vst.msk [vmem:[#allocation2 + $0x20] sm:$0xf] %vm2108_vm9, %v2017_v49  ;;  %v4637_v54 = vld [vmem:[#allocation2 + $0x58] sm:$0xff]  }
 0x10d   : > { %2469 = vst.msk [vmem:[#allocation2 + $0x60] sm:$0xf] %vm2418_vm13, %v2359_v33  ;;  %4519 = vmatprep.mubr.msk.bf16.mxu1 %vm2705_vm2, %v4637_v54 }
 0x10f   : > { %v2327_v36 = vpop.permute.xlu1 %2326  ;;  %v2323_v46 = vpop.permute.xlu0 %2322  ;;  %v2454_v23 = vld [vmem:[#allocation2 + $0x44] sm:$0xf] }
 0x110   : > { %v2514_v35 = vld [vmem:[#allocation2 + $0x34] sm:$0x8]  ;;  %2437 = vst.msk [vmem:[#allocation2 + $0x20] sm:$0xf] %vm2418_vm13, %v2327_v36  ;;  %2433 = vst.msk [vmem:[#allocation2 + $0x18] sm:$0xf] %vm2418_vm13, %v2323_v46 }
 0x111   : > { %v2515_v6 = vsel %vm6195_vm1, 0, %v2514_v35  ;;  %v4651_v36 = vld [vmem:[#allocation2 + $0x10] sm:$0xff]  }
 0x112   : > { %2516 = vst [vmem:[#allocation2 + $0x34] sm:$0x8] %v2515_v6 }
 0x113   : > { %v2373_v48 = vpop.permute.xlu1 %2372  ;;  %v2003_v43 = vpop.permute.xlu0 %2002 }
 0x114   : > { %v2483_v32 = vsel %vm6165_vm14, %v2373_v48, %v2482_v19  ;;  %v4638_v11 = vld [vmem:[#allocation2 + $0x60] sm:$0xff]   ;;  %2110 = vst.msk [vmem:[#allocation2 + $0x4] sm:$0xf] %vm2108_vm9, %v2003_v43  ;;  %v4653_v48 = vld [vmem:[#allocation2 + $0x8] sm:$0xff]  }
 0x115   : > { %2484 = vst [vmem:[#allocation2 + $0x7c] sm:$0xf] %v2483_v32  ;;  %4520 = vmatmul.mubr.msk.bf16.gmra.mxu1 %vm2705_vm2, %v4638_v11  ;;  %v4654_v32 = vld [vmem:[#allocation2 + $0x10] sm:$0xff]  }
 0x117   : > { %v2377_v45 = vpop.permute.xlu1 %2376  ;;  %v4640_v0 = vld [vmem:[#allocation2 + $0x20] sm:$0xff]   ;;  %v2053_v59 = vpop.permute.xlu0 %2052  ;;  %v4639_v13 = vld [vmem:[#allocation2 + $0x18] sm:$0xff]  }
 0x118   : > { %v2487_v1 = vsel %vm6165_vm14, %v2377_v45, %v2486_v31  ;;  %2135 = vst.msk [vmem:[#allocation2 + $0x68] sm:$0xf] %vm2108_vm9, %v2053_v59  ;;  %4503 = vmatprep.mubr.msk.bf16.mxu0 %vm2705_vm2, %v4639_v13  ;;  %v4655_v43 = vld [vmem:[#allocation2 + $0x18] sm:$0xff]   ;;  %v4656_v11 = vld [vmem:[#allocation2 + $0x20] sm:$0xff]  }
 0x119   : > { %2488 = vst [vmem:[#allocation2 + $0x84] sm:$0xf] %v2487_v1  ;;  %4504 = vmatmul.mubr.msk.bf16.gmra.mxu0 %vm2705_vm2, %v4640_v0  ;;  %v4657_v45 = vld [vmem:[#allocation2 + $0x18] sm:$0xff]   ;;  %v4658_v1 = vld [vmem:[#allocation2 + $0x20] sm:$0xff]  }
 0x11b   : > { %v2341_v21 = vpop.permute.xlu1 %2340  ;;  %v2057_v63 = vpop.permute.xlu0 %2056  ;;  %v2422_v5 = vld [vmem:[#allocation2 + $0x4] sm:$0xf] }
 0x11c   : > { %v2541_v42 = vld [vmem:[#allocation2 + $0x7c] sm:$0x8]  ;;  %v2451_v4 = vsel %vm6165_vm14, %v2341_v21, %v2450_v60  ;;  %2137 = vst.msk [vmem:[#allocation2 + $0x70] sm:$0xf] %vm2108_vm9, %v2057_v63  ;;  %v4668_v63 = vld [vmem:[#allocation2 + $0x50] sm:$0xff]  }
 0x11d   : > { %v2542_v14 = vsel %vm6195_vm1, 0, %v2541_v42  ;;  %2452 = vst [vmem:[#allocation2 + $0x3c] sm:$0xf] %v2451_v4 }
 0x11e   : > { %2543 = vst [vmem:[#allocation2 + $0x7c] sm:$0x8] %v2542_v14  ;;  %v4667_v14 = vld [vmem:[#allocation2 + $0x48] sm:$0xff]  }
 0x11f   : > { %v2021_v22 = vpop.permute.xlu1 %2020  ;;  %v2363_v50 = vpop.permute.xlu0 %2362 }
 0x120   : > { %v2544_v41 = vld [vmem:[#allocation2 + $0x84] sm:$0x8]  ;;  %2119 = vst.msk [vmem:[#allocation2 + $0x28] sm:$0xf] %vm2108_vm9, %v2021_v22  ;;  %v4669_v22 = vld [vmem:[#allocation2 + $0x48] sm:$0xff]  }
 0x121   : > { %v2545_v20 = vsel %vm6195_vm1, 0, %v2544_v41  ;;  %2473 = vst.msk [vmem:[#allocation2 + $0x68] sm:$0xf] %vm2418_vm13, %v2363_v50  ;;  %v4670_v41 = vld [vmem:[#allocation2 + $0x50] sm:$0xff]   ;;  %v4672_v50 = vld [vmem:[#allocation2 + $0x60] sm:$0xff]  }
 0x122   : > { %2546 = vst [vmem:[#allocation2 + $0x84] sm:$0x8] %v2545_v20  ;;  %v4671_v20 = vld [vmem:[#allocation2 + $0x58] sm:$0xff]  }
 0x123   : > { %v2367_v25 = vpop.permute.xlu1 %2366 }
 0x124   : > { %v2517_v17 = vld [vmem:[#allocation2 + $0x3c] sm:$0x8]  ;;  %2477 = vst.msk [vmem:[#allocation2 + $0x70] sm:$0xf] %vm2418_vm13, %v2367_v25  ;;  %v2345_v16 = vpop.permute.xlu0 %2344 }
 0x125   : > { %v2518_v3 = vsel %vm6195_vm1, 0, %v2517_v17  ;;  %v2455_v40 = vsel %vm6165_vm14, %v2345_v16, %v2454_v23  ;;  %v4673_v25 = vld [vmem:[#allocation2 + $0x58] sm:$0xff]   ;;  %v4674_v17 = vld [vmem:[#allocation2 + $0x60] sm:$0xff]  }
 0x126   : > { %2519 = vst [vmem:[#allocation2 + $0x3c] sm:$0x8] %v2518_v3  ;;  %2456 = vst [vmem:[#allocation2 + $0x44] sm:$0xf] %v2455_v40 }
 0x127   : > { %v2331_v8 = vpop.permute.xlu1 %2330 }
 0x128   : > { %2441 = vst.msk [vmem:[#allocation2 + $0x28] sm:$0xf] %vm2418_vm13, %v2331_v8  ;;  %v2025_v51 = vpop.permute.xlu0 %2024  ;;  %v4641_v9 = vld [vmem:[#allocation2 + $0x68] sm:$0xff]  }
 0x129   : > { %2121 = vst.msk [vmem:[#allocation2 + $0x30] sm:$0xf] %vm2108_vm9, %v2025_v51  ;;  %4523 = vmatprep.mubr.msk.bf16.mxu1 %vm2705_vm2, %v4641_v9  ;;  %v4675_v3 = vld [vmem:[#allocation2 + $0x68] sm:$0xff]  }
 0x12a   : > { %v4677_v16 = vld [vmem:[#allocation2 + $0x68] sm:$0xff]  }
 0x12b   : > { %v2313_v39 = vpop.permute.xlu1 %2312  ;;  %v4643_v30 = vld [vmem:[#allocation2 + $0x70] sm:$0xff]  }
 0x12c   : > { %v2423_v10 = vsel %vm6165_vm14, %v2313_v39, %v2422_v5  ;;  %4524 = vmatmul.mubr.msk.bf16.gmra.mxu1 %vm2705_vm2, %v4643_v30  ;;  %v2335_v44 = vpop.permute.xlu0 %2334  ;;  %v4676_v23 = vld [vmem:[#allocation2 + $0x70] sm:$0xff]  }
 0x12d   : > { %2424 = vst [vmem:[#allocation2 + $0x4] sm:$0xf] %v2423_v10  ;;  %v2520_v61 = vld [vmem:[#allocation2 + $0x44] sm:$0x8]  ;;  %2445 = vst.msk [vmem:[#allocation2 + $0x30] sm:$0xf] %vm2418_vm13, %v2335_v44 }
 0x12e   : > { %v2521_v53 = vsel %vm6195_vm1, 0, %v2520_v61  ;;  %v4678_v40 = vld [vmem:[#allocation2 + $0x70] sm:$0xff]  }
 0x12f   : > { %v2065_v47 = vpop.permute.xlu1 %2064  ;;  %v4645_v56 = vld [vmem:[#allocation2 + $0x28] sm:$0xff]   ;;  %2522 = vst [vmem:[#allocation2 + $0x44] sm:$0x8] %v2521_v53 }
 0x130   : > { %2141 = vst.msk [vmem:[#allocation2 + $0x80] sm:$0xf] %vm2108_vm9, %v2065_v47  ;;  %4507 = vmatprep.mubr.msk.bf16.mxu0 %vm2705_vm2, %v4645_v56  ;;  %v2061_v18 = vpop.permute.xlu0 %2060  ;;  %v4659_v0 = vld [vmem:[#allocation2 + $0x28] sm:$0xff]  }
 0x131   : > { %2139 = vst.msk [vmem:[#allocation2 + $0x78] sm:$0xf] %vm2108_vm9, %v2061_v18  ;;  %v4661_v13 = vld [vmem:[#allocation2 + $0x28] sm:$0xff]  }
 0x133   : > { %v2029_v12 = vpop.permute.xlu1 %2028 }
 0x134   : > { %v2496_v55 = vld [vmem:[#allocation2 + $0x4] sm:$0x8]  ;;  %2123 = vst.msk [vmem:[#allocation2 + $0x38] sm:$0xf] %vm2108_vm9, %v2029_v12  ;;  %v4646_v52 = vld [vmem:[#allocation2 + $0x30] sm:$0xff]  }
 0x135   : > { %v2497_v2 = vsel %vm6195_vm1, 0, %v2496_v55  ;;  %4508 = vmatmul.mubr.msk.bf16.gmra.mxu0 %vm2705_vm2, %v4646_v52  ;;  %v4660_v59 = vld [vmem:[#allocation2 + $0x30] sm:$0xff]  }
 0x136   : > { %2498 = vst [vmem:[#allocation2 + $0x4] sm:$0x8] %v2497_v2  ;;  %v4662_v60 = vld [vmem:[#allocation2 + $0x30] sm:$0xff]  }
 0x13c   : > { %v2371_v62 = vpop.permute.xlu0 %2370 }
 0x13d   : > { %2481 = vst.msk [vmem:[#allocation2 + $0x78] sm:$0xf] %vm2418_vm13, %v2371_v62 }
 0x142   : > { %v2375_v37 = vpop.permute.xlu0 %2374 }
 0x143   : > { %2485 = vst.msk [vmem:[#allocation2 + $0x80] sm:$0xf] %vm2418_vm13, %v2375_v37 }
 0x144   : > { %v4647_v58 = vld [vmem:[#allocation2 + $0x78] sm:$0xff]  }
 0x145   : > { %v2033_v27 = vpop.permute.xlu1 %2032  ;;  %4527 = vmatprep.mubr.msk.bf16.mxu1 %vm2705_vm2, %v4647_v58  ;;  %v4679_v8 = vld [vmem:[#allocation2 + $0x78] sm:$0xff]  }
 0x146   : > { %2125 = vst.msk [vmem:[#allocation2 + $0x40] sm:$0xf] %vm2108_vm9, %v2033_v27  ;;  %v2339_v38 = vpop.permute.xlu0 %2338  ;;  %v4681_v9 = vld [vmem:[#allocation2 + $0x78] sm:$0xff]  }
 0x147   : > { %2449 = vst.msk [vmem:[#allocation2 + $0x38] sm:$0xf] %vm2418_vm13, %v2339_v38 }
 0x14a   : > { %v2001_v26 = vpop.permute.xlu0 %2000  ;;  %v4648_v34 = vld [vmem:[#allocation2 + $0x80] sm:$0xff]  }
 0x14b   : > { %2109 = vst.msk [vmem:[#allocation2] sm:$0xf] %vm2108_vm9, %v2001_v26  ;;  %4528 = vmatmul.mubr.msk.bf16.gmra.mxu1 %vm2705_vm2, %v4648_v34  ;;  %v4680_v51 = vld [vmem:[#allocation2 + $0x80] sm:$0xff]  }
 0x14e   : > { %v2343_v24 = vpop.permute.xlu1 %2342  ;;  %v4649_v7 = vld [vmem:[#allocation2 + $0x38] sm:$0xff]   ;;  %v2071_v57 = vpop.permute.xlu0 %2070 }
 0x14f   : > { %2453 = vst.msk [vmem:[#allocation2 + $0x40] sm:$0xf] %vm2418_vm13, %v2343_v24  ;;  %4511 = vmatprep.mubr.msk.bf16.mxu0 %vm2705_vm2, %v4649_v7  ;;  %v4663_v15 = vld [vmem:[#allocation2 + $0x38] sm:$0xff]  }
 0x150   : > { %2144 = vst.msk [vmem:[#allocation2 + $0x8c] sm:$0xf] %vm2108_vm9, %v2071_v57  ;;  %v4665_v42 = vld [vmem:[#allocation2 + $0x38] sm:$0xff]  }
 0x152   : > { %v2311_v29 = vpop.permute.xlu1 %2310  ;;  %v2069_v49 = vpop.permute.xlu0 %2068 }
 0x153   : > { %2419 = vst.msk [vmem:[#allocation2] sm:$0xf] %vm2418_vm13, %v2311_v29 }
 0x154   : > { %2143 = vst.msk [vmem:[#allocation2 + $0x88] sm:$0xf] %vm2108_vm9, %v2069_v49 }
 0x156   : > { %v4650_v33 = vld [vmem:[#allocation2 + $0x40] sm:$0xff]   ;;  %v2381_v54 = vpop.permute.xlu1 %2380 }
 0x157   : > { %4512 = vmatmul.mubr.msk.bf16.gmra.mxu0 %vm2705_vm2, %v4650_v33  ;;  %v2490_v35 = vld [vmem:[#allocation2 + $0x8c] sm:$0xf]  ;;  %v4664_v21 = vld [vmem:[#allocation2 + $0x40] sm:$0xff]  }
 0x158   : > { %4567 = vmatprep.mubr.msk.bf16.mxu0 %vm2705_vm2, %v4651_v36  ;;  %v2491_v6 = vsel %vm6165_vm14, %v2381_v54, %v2490_v35  ;;  %v4666_v4 = vld [vmem:[#allocation2 + $0x40] sm:$0xff]  }
 0x159   : > { %2492 = vst [vmem:[#allocation2 + $0x8c] sm:$0xf] %v2491_v6 }
 0x15a   : > { %v4652_v46 = vld [vmem:[#allocation2] sm:$0xff]   ;;  %v2379_v19 = vpop.permute.xlu1 %2378 }
 0x15b   : > { %2489 = vst.msk [vmem:[#allocation2 + $0x88] sm:$0xf] %vm2418_vm13, %v2379_v19  ;;  %4533 = vmatprep.mubr.msk.bf16.mxu1 %vm2705_vm2, %v4652_v46 }
 0x15c   : > { %4534 = vmatmul.mubr.msk.bf16.vlgmr.msra.gmra.mxu1 %vm2705_vm2, %v4653_v48 }
 0x15d   : > { %4537 = vmatprep.mubr.msk.bf16.mxu1 %vm2705_vm2, %v4654_v32 }
 0x15f   : > { %4568 = vmatmul.mubr.msk.bf16.vlgmr.msra.gmra.mxu0 %vm2705_vm2, %v4655_v43 }
 0x160   : > { %4571 = vmatprep.mubr.msk.bf16.mxu0 %vm2705_vm2, %v4656_v11  ;;  %v2547_v28 = vld [vmem:[#allocation2 + $0x8c] sm:$0x8] }
 0x161   : > { %v2548_v31 = vsel %vm6195_vm1, 0, %v2547_v28 }
 0x162   : > { %2549 = vst [vmem:[#allocation2 + $0x8c] sm:$0x8] %v2548_v31  ;;  %v6420_v31 = vld [vmem:[%s6595_s1] ss:$0 sm:$0xff] }
 0x164   : > { %4538 = vmatmul.mubr.msk.bf16.gmra.mxu1 %vm2705_vm2, %v4657_v45 }
 0x165   : > { %4541 = vmatprep.mubr.msk.bf16.mxu1 %vm2705_vm2, %v4658_v1 }
 0x167   : > { %4572 = vmatmul.mubr.msk.bf16.gmra.mxu0 %vm2705_vm2, %v4659_v0  ;;  %v6426_v0 = vld [vmem:[%s6596_s2] ss:$0 sm:$0xff] }
 0x168   : > { %4575 = vmatprep.mubr.msk.bf16.mxu0 %vm2705_vm2, %v4660_v59 }
 0x169   : > { %v4682_v39 = vld [vmem:[#allocation2 + $0x88] sm:$0xff]  }
 0x16c   : > { %4542 = vmatmul.mubr.msk.bf16.gmra.mxu1 %vm2705_vm2, %v4661_v13 }
 0x16d   : > { %4545 = vmatprep.mubr.msk.bf16.mxu1 %vm2705_vm2, %v4662_v60 }
 0x16f   : > { %4576 = vmatmul.mubr.msk.bf16.gmra.mxu0 %vm2705_vm2, %v4663_v15 }
 0x170   : > { %4579 = vmatprep.mubr.msk.bf16.mxu0 %vm2705_vm2, %v4664_v21 }
 0x174   : > { %4546 = vmatmul.mubr.msk.bf16.gmra.mxu1 %vm2705_vm2, %v4665_v42 }
 0x175   : > { %4549 = vmatprep.mubr.msk.bf16.mxu1 %vm2705_vm2, %v4666_v4 }
 0x177   : > { %4580 = vmatmul.mubr.msk.bf16.gmra.mxu0 %vm2705_vm2, %v4667_v14 }
 0x178   : > { %4583 = vmatprep.mubr.msk.bf16.mxu0 %vm2705_vm2, %v4668_v63 }
 0x17c   : > { %4550 = vmatmul.mubr.msk.bf16.gmra.mxu1 %vm2705_vm2, %v4669_v22 }
 0x17d   : > { %4553 = vmatprep.mubr.msk.bf16.mxu1 %vm2705_vm2, %v4670_v41 }
 0x17f   : > { %4584 = vmatmul.mubr.msk.bf16.gmra.mxu0 %vm2705_vm2, %v4671_v20 }
 0x180   : > { %4587 = vmatprep.mubr.msk.bf16.mxu0 %vm2705_vm2, %v4672_v50 }
 0x184   : > { %4554 = vmatmul.mubr.msk.bf16.gmra.mxu1 %vm2705_vm2, %v4673_v25 }
 0x185   : > { %4557 = vmatprep.mubr.msk.bf16.mxu1 %vm2705_vm2, %v4674_v17 }
 0x187   : > { %4588 = vmatmul.mubr.msk.bf16.gmra.mxu0 %vm2705_vm2, %v4675_v3 }
 0x188   : > { %4591 = vmatprep.mubr.msk.bf16.mxu0 %vm2705_vm2, %v4676_v23 }
 0x18c   : > { %4558 = vmatmul.mubr.msk.bf16.gmra.mxu1 %vm2705_vm2, %v4677_v16 }
 0x18d   : > { %4561 = vmatprep.mubr.msk.bf16.mxu1 %vm2705_vm2, %v4678_v40 }
 0x18f   : > { %4592 = vmatmul.mubr.msk.bf16.gmra.mxu0 %vm2705_vm2, %v4679_v8 }
 0x190   : > { %4595 = vmatprep.mubr.msk.bf16.mxu0 %vm2705_vm2, %v4680_v51 }
 0x194   : > { %4562 = vmatmul.mubr.msk.bf16.gmra.mxu1 %vm2705_vm2, %v4681_v9 }
 0x197   : > { %4596 = vmatmul.mubr.msk.bf16.gmra.mxu0 %vm2705_vm2, %v4682_v39 }
 0x1b6   : > { %v6369_v5 = vpop.f32.mrf.mxu1 }
 0x1b8   : > { %v6371_v30 = vpop.f32.mrf.mxu1 }
 0x1ba   : > { %v6373_v10 = vpop.f32.mrf.mxu1 }
 0x1bc   : > { %v4501_v44 = vpop.f32.mrf.mxu0  ;;  %v6375_v61 = vpop.f32.mrf.mxu1 }
 0x1be   : > { %v2792_v47 = vpop.f32.mrf.mxu0 }
 0x1c0   : > { %v4502_v53 = vpop.f32.mrf.mxu0 }
 0x1c2   : > { %v2795_v12 = vpop.f32.mrf.mxu0 }
 0x1d5   : > { %v6377_v56 = vpop.f32.mrf.mxu1 }
 0x1d7   : > { %v6379_v18 = vpop.f32.mrf.mxu1 }
 0x1d9   : > { %v6381_v55 = vpop.f32.mrf.mxu1  ;;  %v4505_v2 = vpop.f32.mrf.mxu0 }
 0x1db   : > { %v6383_v62 = vpop.f32.mrf.mxu1  ;;  %v2808_v52 = vpop.f32.mrf.mxu0 }
 0x1dd   : > { %v4506_v27 = vpop.f32.mrf.mxu0 }
 0x1df   : > { %v2811_v58 = vpop.f32.mrf.mxu0 }
 0x1ec   : > { %v6385_v37 = vpop.f32.mrf.mxu1 }
 0x1ee   : > { %v6387_v38 = vpop.f32.mrf.mxu1 }
 0x1f0   : > { %v6389_v26 = vpop.f32.mrf.mxu1 }
 0x1f2   : > { %v6393_v24 = vpop.f32.mrf.mxu1 }
 0x1f5   : > { %v6391_v34 = vpop.f32.mrf.mxu0 }
 0x1f7   : > { %v6395_v7 = vpop.f32.mrf.mxu0 }
 0x1f9   : > { %v6399_v29 = vpop.f32.mrf.mxu0 }
 0x1fb   : > { %v6403_v33 = vpop.f32.mrf.mxu0 }
 0x20b   : > { %v6397_v57 = vpop.f32.mrf.mxu1 }
 0x20d   : > { %v6401_v49 = vpop.f32.mrf.mxu1 }
 0x20f   : > { %v6405_v54 = vpop.f32.mrf.mxu1 }
 0x211   : > { %v6411_v6 = vpop.f32.mrf.mxu1 }
 0x217   : > { %v6407_v36 = vpop.f32.mrf.mxu0 }
 0x219   : > { %v6409_v35 = vpop.f32.mrf.mxu0 }
 0x21b   : > { %v6413_v46 = vpop.f32.mrf.mxu0 }
 0x21c   : > { %v4535_v19 = vpop.f32.mrf.mxu1 }
 0x21d   : > { %v3098_v48 = vadd.f32 %v4535_v19, %v4501_v44  ;;  %v6415_v32 = vpop.f32.mrf.mxu0 }
 0x21e   : > { %v3089_v43 = vpop.f32.mrf.mxu1 }
 0x21f   : > { %v3090_v11 = vadd.f32 %v3089_v43, %v2792_v47  ;;  %v4569_v28 = vpop.f32.mrf.mxu0 }
 0x220   : > { %v3551_v45 = vadd.f32 %v4569_v28, %v3098_v48  ;;  %v4536_v1 = vpop.f32.mrf.mxu1 }
 0x221   : > { %v3101_v59 = vadd.f32 %v4536_v1, %v4502_v53  ;;  %v3422_v13 = vpop.f32.mrf.mxu0 }
 0x222   : > { %v3590_v60 = vmul.f32 %v6420_v31, %v3551_v45  ;;  %v3549_v15 = vadd.f32 %v3422_v13, %v3090_v11  ;;  %v3092_v21 = vpop.f32.mrf.mxu1 }
 0x223   : > { %v3093_v42 = vadd.f32 %v3092_v21, %v2795_v12  ;;  %v4570_v4 = vpop.f32.mrf.mxu0 }
 0x224   : > { %v3629_v14 = vadd.f32 %v6426_v0, %v3590_v60  ;;  %v3588_v63 = vmul.f32 %v6420_v31, %v3549_v15  ;;  %v3552_v22 = vadd.f32 %v4570_v4, %v3101_v59  ;;  %v4539_v41 = vpop.f32.mrf.mxu1 }
 0x225   : > { %v3114_v20 = vadd.f32 %v4539_v41, %v4505_v2  ;;  %v3425_v50 = vpop.f32.mrf.mxu0 }
 0x226   : > { %3662 = vst.msk [vmem:[%s6432_s24 + $0x10] sm:$0xff] %vm3659_vm3, %v3629_v14  ;;  %v3627_v25 = vadd.f32 %v6426_v0, %v3588_v63  ;;  %v3591_v17 = vmul.f32 %v6420_v31, %v3552_v22  ;;  %v3550_v3 = vadd.f32 %v3425_v50, %v3093_v42  ;;  %v3105_v23 = vpop.f32.mrf.mxu1 }
 0x227   : > { %v3106_v16 = vadd.f32 %v3105_v23, %v2808_v52  ;;  %v4573_v40 = vpop.f32.mrf.mxu0 }
 0x228   : > { %3660 = vst.msk [vmem:[%s6432_s24] sm:$0xff] %vm3659_vm3, %v3627_v25  ;;  %v3630_v8 = vadd.f32 %v6426_v0, %v3591_v17  ;;  %v3589_v51 = vmul.f32 %v6420_v31, %v3550_v3  ;;  %v3555_v9 = vadd.f32 %v4573_v40, %v3114_v20  ;;  %v4540_v39 = vpop.f32.mrf.mxu1 }
 0x229   : > { %v3117_v44 = vadd.f32 %v4540_v39, %v4506_v27  ;;  %v3438_v47 = vpop.f32.mrf.mxu0 }
 0x22a   : > { %3663 = vst.msk [vmem:[%s6432_s24 + $0x18] sm:$0xff] %vm3659_vm3, %v3630_v8  ;;  %v3628_v53 = vadd.f32 %v6426_v0, %v3589_v51  ;;  %v3594_v12 = vmul.f32 %v6420_v31, %v3555_v9  ;;  %v3553_v2 = vadd.f32 %v3438_v47, %v3106_v16  ;;  %v3108_v52 = vpop.f32.mrf.mxu1 }
 0x22b   : > { %v3109_v19 = vadd.f32 %v3108_v52, %v2811_v58  ;;  %v4574_v48 = vpop.f32.mrf.mxu0 }
 0x22c   : > { %3661 = vst.msk [vmem:[%s6432_s24 + $0x8] sm:$0xff] %vm3659_vm3, %v3628_v53  ;;  %v3633_v43 = vadd.f32 %v6426_v0, %v3594_v12  ;;  %v3592_v11 = vmul.f32 %v6420_v31, %v3553_v2  ;;  %v3556_v27 = vadd.f32 %v4574_v48, %v3117_v44  ;;  %v4543_v28 = vpop.f32.mrf.mxu1 }
 0x22d   : > { %v3130_v45 = vadd.f32 %v4543_v28, %v6391_v34  ;;  %v3441_v1 = vpop.f32.mrf.mxu0 }
 0x22e   : > { %3666 = vst.msk [vmem:[%s6432_s24 + $0x30] sm:$0xff] %vm3659_vm3, %v3633_v43  ;;  %v3631_v59 = vadd.f32 %v6426_v0, %v3592_v11  ;;  %v3595_v58 = vmul.f32 %v6420_v31, %v3556_v27  ;;  %v3554_v13 = vadd.f32 %v3441_v1, %v3109_v19  ;;  %v3121_v60 = vpop.f32.mrf.mxu1 }
 0x22f   : > { %v3122_v15 = vadd.f32 %v3121_v60, %v6395_v7  ;;  %v4577_v21 = vpop.f32.mrf.mxu0 }
 0x230   : > { %3664 = vst.msk [vmem:[%s6432_s24 + $0x20] sm:$0xff] %vm3659_vm3, %v3631_v59  ;;  %v3634_v42 = vadd.f32 %v6426_v0, %v3595_v58  ;;  %v3593_v34 = vmul.f32 %v6420_v31, %v3554_v13  ;;  %v3559_v4 = vadd.f32 %v4577_v21, %v3130_v45  ;;  %v4544_v14 = vpop.f32.mrf.mxu1 }
 0x231   : > { %v3133_v63 = vadd.f32 %v4544_v14, %v6399_v29  ;;  %v3454_v22 = vpop.f32.mrf.mxu0 }
 0x232   : > { %3667 = vst.msk [vmem:[%s6432_s24 + $0x38] sm:$0xff] %vm3659_vm3, %v3634_v42  ;;  %v3632_v41 = vadd.f32 %v6426_v0, %v3593_v34  ;;  %v3598_v7 = vmul.f32 %v6420_v31, %v3559_v4  ;;  %v3557_v20 = vadd.f32 %v3454_v22, %v3122_v15  ;;  %v3124_v50 = vpop.f32.mrf.mxu1 }
 0x233   : > { %v3125_v25 = vadd.f32 %v3124_v50, %v6403_v33  ;;  %v4578_v17 = vpop.f32.mrf.mxu0 }
 0x234   : > { %3665 = vst.msk [vmem:[%s6432_s24 + $0x28] sm:$0xff] %vm3659_vm3, %v3632_v41  ;;  %v3637_v3 = vadd.f32 %v6426_v0, %v3598_v7  ;;  %v3596_v29 = vmul.f32 %v6420_v31, %v3557_v20  ;;  %v3560_v23 = vadd.f32 %v4578_v17, %v3133_v63  ;;  %v4547_v16 = vpop.f32.mrf.mxu1 }
 0x235   : > { %v3146_v40 = vadd.f32 %v4547_v16, %v6407_v36  ;;  %v3457_v8 = vpop.f32.mrf.mxu0 }
 0x236   : > { %3670 = vst.msk [vmem:[%s6432_s24 + $0x50] sm:$0xff] %vm3659_vm3, %v3637_v3  ;;  %v3635_v51 = vadd.f32 %v6426_v0, %v3596_v29  ;;  %v3599_v33 = vmul.f32 %v6420_v31, %v3560_v23  ;;  %v3558_v9 = vadd.f32 %v3457_v8, %v3125_v25  ;;  %v3137_v39 = vpop.f32.mrf.mxu1 }
 0x237   : > { %v3138_v44 = vadd.f32 %v3137_v39, %v6409_v35  ;;  %v4581_v47 = vpop.f32.mrf.mxu0 }
 0x238   : > { %3668 = vst.msk [vmem:[%s6432_s24 + $0x40] sm:$0xff] %vm3659_vm3, %v3635_v51  ;;  %v3638_v53 = vadd.f32 %v6426_v0, %v3599_v33  ;;  %v3597_v36 = vmul.f32 %v6420_v31, %v3558_v9  ;;  %v3563_v12 = vadd.f32 %v4581_v47, %v3146_v40  ;;  %v4548_v2 = vpop.f32.mrf.mxu1 }
 0x239   : > { %v3149_v52 = vadd.f32 %v4548_v2, %v6413_v46  ;;  %v3470_v19 = vpop.f32.mrf.mxu0 }
 0x23a   : > { %3671 = vst.msk [vmem:[%s6432_s24 + $0x58] sm:$0xff] %vm3659_vm3, %v3638_v53  ;;  %v3636_v48 = vadd.f32 %v6426_v0, %v3597_v36  ;;  %v3602_v35 = vmul.f32 %v6420_v31, %v3563_v12  ;;  %v3561_v43 = vadd.f32 %v3470_v19, %v3138_v44  ;;  %v3140_v11 = vpop.f32.mrf.mxu1 }
 0x23b   : > { %v3141_v27 = vadd.f32 %v3140_v11, %v6415_v32  ;;  %v4582_v28 = vpop.f32.mrf.mxu0 }
 0x23c   : > { %3669 = vst.msk [vmem:[%s6432_s24 + $0x48] sm:$0xff] %vm3659_vm3, %v3636_v48  ;;  %v3641_v45 = vadd.f32 %v6426_v0, %v3602_v35  ;;  %v3600_v46 = vmul.f32 %v6420_v31, %v3561_v43  ;;  %v3564_v1 = vadd.f32 %v4582_v28, %v3149_v52  ;;  %v4551_v59 = vpop.f32.mrf.mxu1 }
 0x23d   : > { %v3162_v58 = vadd.f32 %v4551_v59, %v6369_v5  ;;  %v3473_v13 = vpop.f32.mrf.mxu0 }
 0x23e   : > { %3674 = vst.msk [vmem:[%s6432_s24 + $0x70] sm:$0xff] %vm3659_vm3, %v3641_v45  ;;  %v3639_v60 = vadd.f32 %v6426_v0, %v3600_v46  ;;  %v3603_v32 = vmul.f32 %v6420_v31, %v3564_v1  ;;  %v3562_v15 = vadd.f32 %v3473_v13, %v3141_v27  ;;  %v3153_v21 = vpop.f32.mrf.mxu1 }
 0x23f   : > { %v3154_v42 = vadd.f32 %v3153_v21, %v6371_v30  ;;  %v4585_v34 = vpop.f32.mrf.mxu0 }
 0x240   : > { %3672 = vst.msk [vmem:[%s6432_s24 + $0x60] sm:$0xff] %vm3659_vm3, %v3639_v60  ;;  %v3642_v4 = vadd.f32 %v6426_v0, %v3603_v32  ;;  %v3601_v5 = vmul.f32 %v6420_v31, %v3562_v15  ;;  %v3567_v14 = vadd.f32 %v4585_v34, %v3162_v58  ;;  %v4552_v63 = vpop.f32.mrf.mxu1 }
 0x241   : > { %v3165_v22 = vadd.f32 %v4552_v63, %v6373_v10  ;;  %v3486_v41 = vpop.f32.mrf.mxu0 }
 0x242   : > { %3675 = vst.msk [vmem:[%s6432_s24 + $0x78] sm:$0xff] %vm3659_vm3, %v3642_v4  ;;  %v3640_v7 = vadd.f32 %v6426_v0, %v3601_v5  ;;  %v3606_v30 = vmul.f32 %v6420_v31, %v3567_v14  ;;  %v3565_v20 = vadd.f32 %v3486_v41, %v3154_v42  ;;  %v3156_v50 = vpop.f32.mrf.mxu1 }
 0x243   : > { %v3157_v25 = vadd.f32 %v3156_v50, %v6375_v61  ;;  %v4586_v17 = vpop.f32.mrf.mxu0 }
 0x244   : > { %3673 = vst.msk [vmem:[%s6432_s24 + $0x68] sm:$0xff] %vm3659_vm3, %v3640_v7  ;;  %v3645_v3 = vadd.f32 %v6426_v0, %v3606_v30  ;;  %v3604_v10 = vmul.f32 %v6420_v31, %v3565_v20  ;;  %v3568_v29 = vadd.f32 %v4586_v17, %v3165_v22  ;;  %v4555_v23 = vpop.f32.mrf.mxu1 }
 0x245   : > { %v3178_v16 = vadd.f32 %v4555_v23, %v6377_v56  ;;  %v3489_v40 = vpop.f32.mrf.mxu0 }
 0x246   : > { %3678 = vst.msk [vmem:[%s6432_s24 + $0x90] sm:$0xff] %vm3659_vm3, %v3645_v3  ;;  %v3643_v8 = vadd.f32 %v6426_v0, %v3604_v10  ;;  %v3607_v61 = vmul.f32 %v6420_v31, %v3568_v29  ;;  %v3566_v51 = vadd.f32 %v3489_v40, %v3157_v25  ;;  %v3169_v33 = vpop.f32.mrf.mxu1 }
 0x247   : > { %v3170_v9 = vadd.f32 %v3169_v33, %v6379_v18  ;;  %v4589_v39 = vpop.f32.mrf.mxu0 }
 0x248   : > { %3676 = vst.msk [vmem:[%s6432_s24 + $0x80] sm:$0xff] %vm3659_vm3, %v3643_v8  ;;  %v3646_v44 = vadd.f32 %v6426_v0, %v3607_v61  ;;  %v3605_v56 = vmul.f32 %v6420_v31, %v3566_v51  ;;  %v3571_v47 = vadd.f32 %v4589_v39, %v3178_v16  ;;  %v4556_v53 = vpop.f32.mrf.mxu1 }
 0x249   : > { %v3181_v36 = vadd.f32 %v4556_v53, %v6381_v55  ;;  %v3502_v12 = vpop.f32.mrf.mxu0 }
 0x24a   : > { %3679 = vst.msk [vmem:[%s6432_s24 + $0x98] sm:$0xff] %vm3659_vm3, %v3646_v44  ;;  %v3644_v2 = vadd.f32 %v6426_v0, %v3605_v56  ;;  %v3610_v18 = vmul.f32 %v6420_v31, %v3571_v47  ;;  %v3569_v52 = vadd.f32 %v3502_v12, %v3170_v9  ;;  %v3172_v19 = vpop.f32.mrf.mxu1 }
 0x24b   : > { %v3173_v48 = vadd.f32 %v3172_v19, %v6383_v62  ;;  %v4590_v35 = vpop.f32.mrf.mxu0 }
 0x24c   : > { %3677 = vst.msk [vmem:[%s6432_s24 + $0x88] sm:$0xff] %vm3659_vm3, %v3644_v2  ;;  %v3649_v43 = vadd.f32 %v6426_v0, %v3610_v18  ;;  %v3608_v55 = vmul.f32 %v6420_v31, %v3569_v52  ;;  %v3572_v11 = vadd.f32 %v4590_v35, %v3181_v36  ;;  %v4559_v27 = vpop.f32.mrf.mxu1 }
 0x24d   : > { %v3194_v28 = vadd.f32 %v4559_v27, %v6385_v37  ;;  %v3505_v45 = vpop.f32.mrf.mxu0 }
 0x24e   : > { %3682 = vst.msk [vmem:[%s6432_s24 + $0xb0] sm:$0xff] %vm3659_vm3, %v3649_v43  ;;  %v3647_v46 = vadd.f32 %v6426_v0, %v3608_v55  ;;  %v3611_v62 = vmul.f32 %v6420_v31, %v3572_v11  ;;  %v3570_v1 = vadd.f32 %v3505_v45, %v3173_v48  ;;  %v3185_v59 = vpop.f32.mrf.mxu1 }
 0x24f   : > { %v3186_v58 = vadd.f32 %v3185_v59, %v6387_v38  ;;  %v4593_v13 = vpop.f32.mrf.mxu0 }
 0x250   : > { %3680 = vst.msk [vmem:[%s6432_s24 + $0xa0] sm:$0xff] %vm3659_vm3, %v3647_v46  ;;  %v3650_v60 = vadd.f32 %v6426_v0, %v3611_v62  ;;  %v3609_v37 = vmul.f32 %v6420_v31, %v3570_v1  ;;  %v3575_v32 = vadd.f32 %v4593_v13, %v3194_v28  ;;  %v4560_v15 = vpop.f32.mrf.mxu1 }
 0x251   : > { %v3197_v21 = vadd.f32 %v4560_v15, %v6389_v26  ;;  %v3518_v42 = vpop.f32.mrf.mxu0 }
 0x252   : > { %3683 = vst.msk [vmem:[%s6432_s24 + $0xb8] sm:$0xff] %vm3659_vm3, %v3650_v60  ;;  %v3648_v34 = vadd.f32 %v6426_v0, %v3609_v37  ;;  %v3614_v38 = vmul.f32 %v6420_v31, %v3575_v32  ;;  %v3573_v4 = vadd.f32 %v3518_v42, %v3186_v58  ;;  %v3188_v5 = vpop.f32.mrf.mxu1 }
 0x253   : > { %v3189_v14 = vadd.f32 %v3188_v5, %v6393_v24  ;;  %v4594_v63 = vpop.f32.mrf.mxu0 }
 0x254   : > { %3681 = vst.msk [vmem:[%s6432_s24 + $0xa8] sm:$0xff] %vm3659_vm3, %v3648_v34  ;;  %v3653_v22 = vadd.f32 %v6426_v0, %v3614_v38  ;;  %v3612_v26 = vmul.f32 %v6420_v31, %v3573_v4  ;;  %v3576_v41 = vadd.f32 %v4594_v63, %v3197_v21  ;;  %v4563_v7 = vpop.f32.mrf.mxu1 }
 0x255   : > { %v3210_v30 = vadd.f32 %v4563_v7, %v6397_v57  ;;  %v3521_v20 = vpop.f32.mrf.mxu0 }
 0x256   : > { %3686 = vst.msk [vmem:[%s6432_s24 + $0xd0] sm:$0xff] %vm3659_vm3, %v3653_v22  ;;  %v3651_v50 = vadd.f32 %v6426_v0, %v3612_v26  ;;  %v3615_v24 = vmul.f32 %v6420_v31, %v3576_v41  ;;  %v3574_v25 = vadd.f32 %v3521_v20, %v3189_v14  ;;  %v3201_v17 = vpop.f32.mrf.mxu1 }
 0x257   : > { %v3202_v3 = vadd.f32 %v3201_v17, %v6401_v49  ;;  %v4597_v10 = vpop.f32.mrf.mxu0 }
 0x258   : > { %3684 = vst.msk [vmem:[%s6432_s24 + $0xc0] sm:$0xff] %vm3659_vm3, %v3651_v50  ;;  %v3654_v29 = vadd.f32 %v6426_v0, %v3615_v24  ;;  %v3613_v57 = vmul.f32 %v6420_v31, %v3574_v25  ;;  %v3579_v23 = vadd.f32 %v4597_v10, %v3210_v30  ;;  %v4564_v16 = vpop.f32.mrf.mxu1 }
 0x259   : > { %v3213_v40 = vadd.f32 %v4564_v16, %v6405_v54  ;;  %v3534_v8 = vpop.f32.mrf.mxu0 }
 0x25a   : > { %3687 = vst.msk [vmem:[%s6432_s24 + $0xd8] sm:$0xff] %vm3659_vm3, %v3654_v29  ;;  %v3652_v61 = vadd.f32 %v6426_v0, %v3613_v57  ;;  %v3618_v49 = vmul.f32 %v6420_v31, %v3579_v23  ;;  %v3577_v51 = vadd.f32 %v3534_v8, %v3202_v3  ;;  %v3204_v33 = vpop.f32.mrf.mxu1 }
 0x25b   : > { %v3205_v9 = vadd.f32 %v3204_v33, %v6411_v6  ;;  %v4598_v39 = vpop.f32.mrf.mxu0 }
 0x25c   : > { %3685 = vst.msk [vmem:[%s6432_s24 + $0xc8] sm:$0xff] %vm3659_vm3, %v3652_v61  ;;  %v3657_v44 = vadd.f32 %v6426_v0, %v3618_v49  ;;  %v3616_v54 = vmul.f32 %v6420_v31, %v3577_v51  ;;  %v3580_v56 = vadd.f32 %v4598_v39, %v3213_v40 }
 0x25d   : > { %v3537_v47 = vpop.f32.mrf.mxu0 }
 0x25e   : > { %3690 = vst.msk [vmem:[%s6432_s24 + $0xf0] sm:$0xff] %vm3659_vm3, %v3657_v44  ;;  %v3655_v53 = vadd.f32 %v6426_v0, %v3616_v54  ;;  %v3619_v36 = vmul.f32 %v6420_v31, %v3580_v56  ;;  %v3578_v12 = vadd.f32 %v3537_v47, %v3205_v9 }
 0x260   : > { %3688 = vst.msk [vmem:[%s6432_s24 + $0xe0] sm:$0xff] %vm3659_vm3, %v3655_v53  ;;  %v3658_v6 = vadd.f32 %v6426_v0, %v3619_v36  ;;  %v3617_v2 = vmul.f32 %v6420_v31, %v3578_v12 }
 0x262   : > { %3691 = vst.msk [vmem:[%s6432_s24 + $0xf8] sm:$0xff] %vm3659_vm3, %v3658_v6  ;;  %v3656_v18 = vadd.f32 %v6426_v0, %v3617_v2 }
 0x264   : > { %3689 = vst.msk [vmem:[%s6432_s24 + $0xe8] sm:$0xff] %vm3659_vm3, %v3656_v18 }
 0x265 PF: > { %s22_s7 = sadd.s32 1, %s4839_s7   ;;  %s6867_s19 = smov %s4835_s20 }
 0x266   : > { %p19_p5 = scmp.ge.s32.totalorder %s22_s7, 4   ;;  %s6868_s20 = smov %s6870_s8 }
 0x268   :  { %21 = sbr.rel (!%p19_p5) target bundleno = 2 (0x2), region = 126 }

</bundles_post_ra>
